<compile_context>
chip_gen: v6e
topology: v6e:2x2x1
jax: 0.10.0
libtpu: 0.0.40
codegen_flags: <defaults>
</compile_context>

<pallas_src>
from functools import partial

import jax
import jax.numpy as jnp
from jax.experimental import pallas as pl
from jax.experimental.pallas import tpu as pltpu


def _round_up(v, m):
    return ((v + m - 1) // m) * m


def _elu(x):
    # ELU(alpha=1): x if x > 0 else exp(x) - 1
    return jnp.where(x > 0, x, jnp.exp(x) - 1.0)


# ---------------------------------------------------------------------------
# Pallas kernels
# ---------------------------------------------------------------------------

def _mm_bias_act_kernel(x_ref, w_ref, b_ref, o_ref, *, apply_elu):
    """One M-tile of: out = elu?(x @ w + b). bf16 operands, f32 accumulate."""
    acc = jnp.dot(x_ref[...], w_ref[...], preferred_element_type=jnp.float32)
    acc = acc + b_ref[...]
    if apply_elu:
        acc = _elu(acc)
    o_ref[...] = acc.astype(o_ref.dtype)


def _dense_head_kernel(x_ref, w1_ref, b1_ref, w2_ref, b2_ref,
                       w3_ref, b3_ref, w4_ref, b4_ref, o_ref):
    """Fused Linear(4224,100)+ELU -> Linear(100,50)+ELU -> Linear(50,10)
    -> Linear(10,1). Everything resident in VMEM; padded lanes are zero
    (weights/biases zero-padded) so they stay zero through every layer."""
    h = jnp.dot(x_ref[...], w1_ref[...], preferred_element_type=jnp.float32)
    h = _elu(h + b1_ref[...])
    h = jnp.dot(h.astype(w2_ref.dtype), w2_ref[...],
                preferred_element_type=jnp.float32)
    h = _elu(h + b2_ref[...])
    h = jnp.dot(h.astype(w3_ref.dtype), w3_ref[...],
                preferred_element_type=jnp.float32)
    h = h + b3_ref[...]
    h = jnp.dot(h.astype(w4_ref.dtype), w4_ref[...],
                preferred_element_type=jnp.float32)
    o_ref[...] = h + b4_ref[...]


# ---------------------------------------------------------------------------
# Wrappers
# ---------------------------------------------------------------------------

def conv_matmul(cols, w_pad, b_pad, apply_elu, tm=512):
    """elu?(cols @ w_pad + b_pad), tiled over M.

    cols: (M, K) bf16; w_pad: (Kp, 128) bf16 pre-padded; b_pad: (1, 128) f32.
    Returns (Mp, 128) bf16.
    """
    M, K = cols.shape
    Kp, Np = w_pad.shape

    # Cap tile so even small layers get >= 2 grid steps (keeps both v7x
    # TensorCores busy) and tiny M is never padded up to a huge tile.
    tm = min(tm, max(8, _round_up((M + 1) // 2, 8)))
    Mp = _round_up(M, tm)
    xp = jnp.pad(cols, ((0, Mp - M), (0, Kp - K)))

    out = pl.pallas_call(
        partial(_mm_bias_act_kernel, apply_elu=apply_elu),
        out_shape=jax.ShapeDtypeStruct((Mp, Np), jnp.bfloat16),
        grid=(Mp // tm,),
        in_specs=[
            pl.BlockSpec((tm, Kp), lambda i: (i, 0)),
            pl.BlockSpec((Kp, Np), lambda i: (0, 0)),
            pl.BlockSpec((1, Np), lambda i: (0, 0)),
        ],
        out_specs=pl.BlockSpec((tm, Np), lambda i: (i, 0)),
        compiler_params=pltpu.CompilerParams(
            dimension_semantics=("parallel",)),
    )(xp, w_pad, b_pad)
    return out


def conv2d_pallas(x, w_pad, b_pad, kh, kw, cout, stride, apply_elu):
    """Valid 2-D convolution: XLA im2col (glue) + Pallas matmul (hot path).

    x: (B, H, W, Cin) bf16 NHWC; w_pad: (Kp, 128) bf16; b_pad: (1, 128) f32.
    Returns (B, OH, OW, cout) bf16.
    """
    B, H, W, C = x.shape
    OH = (H - kh) // stride + 1
    OW = (W - kw) // stride + 1

    patches = []
    for i in range(kh):
        for j in range(kw):
            patches.append(
                x[:, i: i + stride * (OH - 1) + 1: stride,
                     j: j + stride * (OW - 1) + 1: stride, :])
    cols = jnp.stack(patches, axis=3)                 # (B, OH, OW, kh*kw, Cin)
    cols = cols.reshape(B * OH * OW, kh * kw * C)

    out = conv_matmul(cols, w_pad, b_pad, apply_elu=apply_elu)
    return out[:B * OH * OW, :cout].reshape(B, OH, OW, cout)


def dense_head_pallas(x, p):
    """Fused l1..l4 head. x: (B, 4224) bf16 -> (B, 1) f32."""
    B, K = x.shape
    BP = _round_up(B, 8)
    xp = jnp.pad(x, ((0, BP - B), (0, 0)))

    args = (xp, p["l1w"], p["l1b"], p["l2w"], p["l2b"],
            p["l3w"], p["l3b"], p["l4w"], p["l4b"])
    out = pl.pallas_call(
        _dense_head_kernel,
        out_shape=jax.ShapeDtypeStruct((BP, 128), jnp.float32),
        grid=(1,),
        in_specs=[pl.BlockSpec(a.shape, lambda i: (0, 0)) for a in args],
        out_specs=pl.BlockSpec((BP, 128), lambda i: (0, 0)),
        compiler_params=pltpu.CompilerParams(
            dimension_semantics=("arbitrary",)),
    )(*args)
    return out[:B, :1]


# ---------------------------------------------------------------------------
# Parameters
# ---------------------------------------------------------------------------

def init_params(key):
    """Random parameters in PyTorch layouts (OIHW convs, (out, in) linears)."""
    ks = jax.random.split(key, 9)

    def conv_p(k, cout, cin, kh, kw):
        kw_, kb_ = jax.random.split(k)
        w = jax.random.normal(kw_, (cout, cin, kh, kw), jnp.float32) * 0.05
        b = jax.random.normal(kb_, (cout,), jnp.float32) * 0.05
        return w, b

    def lin_p(k, fout, fin):
        kw_, kb_ = jax.random.split(k)
        w = jax.random.normal(kw_, (fout, fin), jnp.float32) * 0.05
        b = jax.random.normal(kb_, (fout,), jnp.float32) * 0.05
        return w, b

    return {
        "c1": conv_p(ks[0], 24, 3, 5, 5),
        "c2": conv_p(ks[1], 36, 24, 5, 5),
        "c3": conv_p(ks[2], 48, 36, 5, 5),
        "c4": conv_p(ks[3], 64, 48, 3, 3),
        "c5": conv_p(ks[4], 64, 64, 3, 3),
        "l1": lin_p(ks[5], 100, 64 * 2 * 33),
        "l2": lin_p(ks[6], 50, 100),
        "l3": lin_p(ks[7], 10, 50),
        "l4": lin_p(ks[8], 1, 10),
    }


def prepare_params(raw):
    """One-time transform of PyTorch-layout params into kernel-ready tensors:
    matmul layout, NCHW-flatten permutation folded into l1, zero-pad K to a
    multiple of 128 and N (lanes) to 128, cast matmul weights to bf16."""
    out = {}

    def conv_prep(name, w, b):
        cout, cin, kh, kw = w.shape
        k = kh * kw * cin
        kp = _round_up(k, 128)
        wm = jnp.transpose(w, (2, 3, 1, 0)).reshape(k, cout)   # (kh,kw,cin) rows
        out[name + "w"] = jnp.pad(
            wm, ((0, kp - k), (0, 128 - cout))).astype(jnp.bfloat16)
        out[name + "b"] = jnp.pad(
            b, ((0, 128 - cout),)).reshape(1, 128).astype(jnp.float32)

    for name in ("c1", "c2", "c3", "c4", "c5"):
        conv_prep(name, *raw[name])

    def lin_prep(name, w, b, kpad):
        fout, fin = w.shape
        wm = w.T                                               # (fin, fout)
        out[name + "w"] = jnp.pad(
            wm, ((0, kpad - fin), (0, 128 - fout))).astype(jnp.bfloat16)
        out[name + "b"] = jnp.pad(
            b, ((0, 128 - fout),)).reshape(1, 128).astype(jnp.float32)

    # l1: fold the PyTorch NCHW flatten order (c, h, w) into the weight rows so
    # the NHWC conv output (B, 2, 33, 64) reshapes directly to (B, 4224).
    w1, b1 = raw["l1"]
    w1t = w1.T.reshape(64, 2, 33, 100)                         # rows: (c, h, w)
    w1t = jnp.transpose(w1t, (1, 2, 0, 3)).reshape(64 * 2 * 33, 100)
    lin_prep("l1", w1t.T, b1, kpad=64 * 2 * 33)                # 4224 = 33*128
    lin_prep("l2", *raw["l2"], kpad=128)
    lin_prep("l3", *raw["l3"], kpad=128)
    lin_prep("l4", *raw["l4"], kpad=128)

    return out


# ---------------------------------------------------------------------------
# Forward
# ---------------------------------------------------------------------------

def nvidia_forward(x, p):
    B = x.shape[0]
    x = x.reshape(B, 3, 70, 320)                       # mirrors x.view(B, 3, 70, 320)
    x = jnp.transpose(x, (0, 2, 3, 1)).astype(jnp.bfloat16)   # NCHW -> NHWC, bf16

    x = conv2d_pallas(x, p["c1w"], p["c1b"], 5, 5, 24, stride=2, apply_elu=True)
    x = conv2d_pallas(x, p["c2w"], p["c2b"], 5, 5, 36, stride=2, apply_elu=True)
    x = conv2d_pallas(x, p["c3w"], p["c3b"], 5, 5, 48, stride=2, apply_elu=True)
    x = conv2d_pallas(x, p["c4w"], p["c4b"], 3, 3, 64, stride=1, apply_elu=True)
    x = conv2d_pallas(x, p["c5w"], p["c5b"], 3, 3, 64, stride=1, apply_elu=False)
    # Dropout(0.2): identity in eval mode.

    # NHWC (B, 2, 33, 64) flattens directly; NCHW reorder is folded into l1w.
    x = x.reshape(B, 64 * 2 * 33)

    out = dense_head_pallas(x, p)
    # Dropout(0.5): identity in eval mode.
    return out


if __name__ == "__main__":
    key = jax.random.PRNGKey(0)
    pkey, xkey = jax.random.split(key)
    params = prepare_params(init_params(pkey))

    # Input matching the module: batch=2, 3x70x320 image.
    x = jax.random.normal(xkey, (2, 3, 70, 320), jnp.float32)

    fwd = jax.jit(nvidia_forward)
    out = fwd(x, params)
    out = jax.block_until_ready(out)

    assert out.shape == (2, 1), out.shape
    assert bool(jnp.all(jnp.isfinite(out)))
    print("KERNEL_OK")
</pallas_src>

<mosaic_0001>
module attributes {stable_mosaic.version = 11 : i64} {
  func.func @_mm_bias_act_kernel(%arg0: i32, %arg1: memref<512x128xbf16, #tpu.memory_space<vmem>>, %arg2: memref<128x128xbf16, #tpu.memory_space<vmem>>, %arg3: memref<1x128xf32, #tpu.memory_space<vmem>>, %arg4: memref<512x128xbf16, #tpu.memory_space<vmem>>) attributes {dimension_semantics = [#tpu.dimension_semantics<parallel>], iteration_bounds = array<i64: 21>, scalar_prefetch = 0 : i64, scratch_operands = 0 : i64, tpu.core_type = #tpu.core_type<tc>, window_params = [{transform_indices = @transform_0, window_bounds = array<i64: 512, 128>}, {pipeline_mode = #tpu.pipeline_mode<synchronous>, transform_indices = @transform_1, window_bounds = array<i64: 128, 128>}, {pipeline_mode = #tpu.pipeline_mode<synchronous>, transform_indices = @transform_2, window_bounds = array<i64: 1, 128>}, {transform_indices = @transform_3, window_bounds = array<i64: 512, 128>}]} {
    %c0 = arith.constant 0 : index
    %c0_0 = arith.constant 0 : index
    %0 = vector.load %arg1[%c0, %c0_0] : memref<512x128xbf16, #tpu.memory_space<vmem>>, vector<512x128xbf16>
    %c0_1 = arith.constant 0 : index
    %c0_2 = arith.constant 0 : index
    %1 = vector.load %arg2[%c0_1, %c0_2] : memref<128x128xbf16, #tpu.memory_space<vmem>>, vector<128x128xbf16>
    %cst = arith.constant dense<0.000000e+00> : vector<512x128xf32>
    %2 = tpu.matmul %0, %1, %cst {dimension_numbers = #tpu.dot_dimension_numbers<[1], [0], [0], [1], [0, 0, 1, 1], [], []>} : vector<512x128xbf16>, vector<128x128xbf16>, vector<512x128xf32> -> vector<512x128xf32>
    %c0_3 = arith.constant 0 : index
    %c0_4 = arith.constant 0 : index
    %3 = vector.load %arg3[%c0_3, %c0_4] : memref<1x128xf32, #tpu.memory_space<vmem>>, vector<1x128xf32>
    %4 = vector.broadcast %3 : vector<1x128xf32> to vector<512x128xf32>
    %5 = arith.addf %2, %4 : vector<512x128xf32>
    %cst_5 = arith.constant 0.000000e+00 : f32
    %6 = vector.broadcast %cst_5 : f32 to vector<512x128xf32>
    %7 = arith.cmpf ogt, %5, %6 : vector<512x128xf32>
    %8 = math.exp %5 : vector<512x128xf32>
    %cst_6 = arith.constant 1.000000e+00 : f32
    %9 = vector.broadcast %cst_6 : f32 to vector<512x128xf32>
    %10 = arith.subf %8, %9 : vector<512x128xf32>
    %11 = arith.select %7, %5, %10 : vector<512x128xi1>, vector<512x128xf32>
    %12 = arith.truncf %11 : vector<512x128xf32> to vector<512x128xbf16>
    %c0_7 = arith.constant 0 : index
    %c0_8 = arith.constant 0 : index
    %13 = vector.load %arg4[%c0_7, %c0_8] : memref<512x128xbf16, #tpu.memory_space<vmem>>, vector<512x128xbf16>
    tpu.vector_store %arg4[%c0_7, %c0_8], %12 {strides = array<i32>} : memref<512x128xbf16, #tpu.memory_space<vmem>>, vector<512x128xbf16>,
    return
  }
  func.func @transform_0(%arg0: i32) -> (i32, i32) {
    %c0_i32 = arith.constant 0 : i32
    %c0_i32_0 = arith.constant 0 : i32
    return %arg0, %c0_i32 : i32, i32
  }
  func.func @transform_1(%arg0: i32) -> (i32, i32) {
    %c0_i32 = arith.constant 0 : i32
    %c0_i32_0 = arith.constant 0 : i32
    %c0_i32_1 = arith.constant 0 : i32
    return %c0_i32, %c0_i32_0 : i32, i32
  }
  func.func @transform_2(%arg0: i32) -> (i32, i32) {
    %c0_i32 = arith.constant 0 : i32
    %c0_i32_0 = arith.constant 0 : i32
    %c0_i32_1 = arith.constant 0 : i32
    return %c0_i32, %c0_i32_0 : i32, i32
  }
  func.func @transform_3(%arg0: i32) -> (i32, i32) {
    %c0_i32 = arith.constant 0 : i32
    %c0_i32_0 = arith.constant 0 : i32
    return %arg0, %c0_i32 : i32, i32
  }
}

module attributes {stable_mosaic.version = 11 : i64} {
  func.func @_mm_bias_act_kernel(%arg0: i32, %arg1: memref<512x640xbf16, #tpu.memory_space<vmem>>, %arg2: memref<640x128xbf16, #tpu.memory_space<vmem>>, %arg3: memref<1x128xf32, #tpu.memory_space<vmem>>, %arg4: memref<512x128xbf16, #tpu.memory_space<vmem>>) attributes {dimension_semantics = [#tpu.dimension_semantics<parallel>], iteration_bounds = array<i64: 5>, scalar_prefetch = 0 : i64, scratch_operands = 0 : i64, tpu.core_type = #tpu.core_type<tc>, window_params = [{transform_indices = @transform_0, window_bounds = array<i64: 512, 640>}, {pipeline_mode = #tpu.pipeline_mode<synchronous>, transform_indices = @transform_1, window_bounds = array<i64: 640, 128>}, {pipeline_mode = #tpu.pipeline_mode<synchronous>, transform_indices = @transform_2, window_bounds = array<i64: 1, 128>}, {transform_indices = @transform_3, window_bounds = array<i64: 512, 128>}]} {
    %c0 = arith.constant 0 : index
    %c0_0 = arith.constant 0 : index
    %0 = vector.load %arg1[%c0, %c0_0] : memref<512x640xbf16, #tpu.memory_space<vmem>>, vector<512x640xbf16>
    %c0_1 = arith.constant 0 : index
    %c0_2 = arith.constant 0 : index
    %1 = vector.load %arg2[%c0_1, %c0_2] : memref<640x128xbf16, #tpu.memory_space<vmem>>, vector<640x128xbf16>
    %cst = arith.constant dense<0.000000e+00> : vector<512x128xf32>
    %2 = tpu.matmul %0, %1, %cst {dimension_numbers = #tpu.dot_dimension_numbers<[1], [0], [0], [1], [0, 0, 1, 1], [], []>} : vector<512x640xbf16>, vector<640x128xbf16>, vector<512x128xf32> -> vector<512x128xf32>
    %c0_3 = arith.constant 0 : index
    %c0_4 = arith.constant 0 : index
    %3 = vector.load %arg3[%c0_3, %c0_4] : memref<1x128xf32, #tpu.memory_space<vmem>>, vector<1x128xf32>
    %4 = vector.broadcast %3 : vector<1x128xf32> to vector<512x128xf32>
    %5 = arith.addf %2, %4 : vector<512x128xf32>
    %cst_5 = arith.constant 0.000000e+00 : f32
    %6 = vector.broadcast %cst_5 : f32 to vector<512x128xf32>
    %7 = arith.cmpf ogt, %5, %6 : vector<512x128xf32>
    %8 = math.exp %5 : vector<512x128xf32>
    %cst_6 = arith.constant 1.000000e+00 : f32
    %9 = vector.broadcast %cst_6 : f32 to vector<512x128xf32>
    %10 = arith.subf %8, %9 : vector<512x128xf32>
    %11 = arith.select %7, %5, %10 : vector<512x128xi1>, vector<512x128xf32>
    %12 = arith.truncf %11 : vector<512x128xf32> to vector<512x128xbf16>
    %c0_7 = arith.constant 0 : index
    %c0_8 = arith.constant 0 : index
    %13 = vector.load %arg4[%c0_7, %c0_8] : memref<512x128xbf16, #tpu.memory_space<vmem>>, vector<512x128xbf16>
    tpu.vector_store %arg4[%c0_7, %c0_8], %12 {strides = array<i32>} : memref<512x128xbf16, #tpu.memory_space<vmem>>, vector<512x128xbf16>,
    return
  }
  func.func @transform_0(%arg0: i32) -> (i32, i32) {
    %c0_i32 = arith.constant 0 : i32
    %c0_i32_0 = arith.constant 0 : i32
    return %arg0, %c0_i32 : i32, i32
  }
  func.func @transform_1(%arg0: i32) -> (i32, i32) {
    %c0_i32 = arith.constant 0 : i32
    %c0_i32_0 = arith.constant 0 : i32
    %c0_i32_1 = arith.constant 0 : i32
    return %c0_i32, %c0_i32_0 : i32, i32
  }
  func.func @transform_2(%arg0: i32) -> (i32, i32) {
    %c0_i32 = arith.constant 0 : i32
    %c0_i32_0 = arith.constant 0 : i32
    %c0_i32_1 = arith.constant 0 : i32
    return %c0_i32, %c0_i32_0 : i32, i32
  }
  func.func @transform_3(%arg0: i32) -> (i32, i32) {
    %c0_i32 = arith.constant 0 : i32
    %c0_i32_0 = arith.constant 0 : i32
    return %arg0, %c0_i32 : i32, i32
  }
}

module attributes {stable_mosaic.version = 11 : i64} {
  func.func @_mm_bias_act_kernel(%arg0: i32, %arg1: memref<224x1024xbf16, #tpu.memory_space<vmem>>, %arg2: memref<1024x128xbf16, #tpu.memory_space<vmem>>, %arg3: memref<1x128xf32, #tpu.memory_space<vmem>>, %arg4: memref<224x128xbf16, #tpu.memory_space<vmem>>) attributes {dimension_semantics = [#tpu.dimension_semantics<parallel>], iteration_bounds = array<i64: 2>, scalar_prefetch = 0 : i64, scratch_operands = 0 : i64, tpu.core_type = #tpu.core_type<tc>, window_params = [{transform_indices = @transform_0, window_bounds = array<i64: 224, 1024>}, {pipeline_mode = #tpu.pipeline_mode<synchronous>, transform_indices = @transform_1, window_bounds = array<i64: 1024, 128>}, {pipeline_mode = #tpu.pipeline_mode<synchronous>, transform_indices = @transform_2, window_bounds = array<i64: 1, 128>}, {transform_indices = @transform_3, window_bounds = array<i64: 224, 128>}]} {
    %c0 = arith.constant 0 : index
    %c0_0 = arith.constant 0 : index
    %0 = vector.load %arg1[%c0, %c0_0] : memref<224x1024xbf16, #tpu.memory_space<vmem>>, vector<224x1024xbf16>
    %c0_1 = arith.constant 0 : index
    %c0_2 = arith.constant 0 : index
    %1 = vector.load %arg2[%c0_1, %c0_2] : memref<1024x128xbf16, #tpu.memory_space<vmem>>, vector<1024x128xbf16>
    %cst = arith.constant dense<0.000000e+00> : vector<224x128xf32>
    %2 = tpu.matmul %0, %1, %cst {dimension_numbers = #tpu.dot_dimension_numbers<[1], [0], [0], [1], [0, 0, 1, 1], [], []>} : vector<224x1024xbf16>, vector<1024x128xbf16>, vector<224x128xf32> -> vector<224x128xf32>
    %c0_3 = arith.constant 0 : index
    %c0_4 = arith.constant 0 : index
    %3 = vector.load %arg3[%c0_3, %c0_4] : memref<1x128xf32, #tpu.memory_space<vmem>>, vector<1x128xf32>
    %4 = vector.broadcast %3 : vector<1x128xf32> to vector<224x128xf32>
    %5 = arith.addf %2, %4 : vector<224x128xf32>
    %cst_5 = arith.constant 0.000000e+00 : f32
    %6 = vector.broadcast %cst_5 : f32 to vector<224x128xf32>
    %7 = arith.cmpf ogt, %5, %6 : vector<224x128xf32>
    %8 = math.exp %5 : vector<224x128xf32>
    %cst_6 = arith.constant 1.000000e+00 : f32
    %9 = vector.broadcast %cst_6 : f32 to vector<224x128xf32>
    %10 = arith.subf %8, %9 : vector<224x128xf32>
    %11 = arith.select %7, %5, %10 : vector<224x128xi1>, vector<224x128xf32>
    %12 = arith.truncf %11 : vector<224x128xf32> to vector<224x128xbf16>
    %c0_7 = arith.constant 0 : index
    %c0_8 = arith.constant 0 : index
    %13 = vector.load %arg4[%c0_7, %c0_8] : memref<224x128xbf16, #tpu.memory_space<vmem>>, vector<224x128xbf16>
    tpu.vector_store %arg4[%c0_7, %c0_8], %12 {strides = array<i32>} : memref<224x128xbf16, #tpu.memory_space<vmem>>, vector<224x128xbf16>,
    return
  }
  func.func @transform_0(%arg0: i32) -> (i32, i32) {
    %c0_i32 = arith.constant 0 : i32
    %c0_i32_0 = arith.constant 0 : i32
    return %arg0, %c0_i32 : i32, i32
  }
  func.func @transform_1(%arg0: i32) -> (i32, i32) {
    %c0_i32 = arith.constant 0 : i32
    %c0_i32_0 = arith.constant 0 : i32
    %c0_i32_1 = arith.constant 0 : i32
    return %c0_i32, %c0_i32_0 : i32, i32
  }
  func.func @transform_2(%arg0: i32) -> (i32, i32) {
    %c0_i32 = arith.constant 0 : i32
    %c0_i32_0 = arith.constant 0 : i32
    %c0_i32_1 = arith.constant 0 : i32
    return %c0_i32, %c0_i32_0 : i32, i32
  }
  func.func @transform_3(%arg0: i32) -> (i32, i32) {
    %c0_i32 = arith.constant 0 : i32
    %c0_i32_0 = arith.constant 0 : i32
    return %arg0, %c0_i32 : i32, i32
  }
}

module attributes {stable_mosaic.version = 11 : i64} {
  func.func @_mm_bias_act_kernel(%arg0: i32, %arg1: memref<144x512xbf16, #tpu.memory_space<vmem>>, %arg2: memref<512x128xbf16, #tpu.memory_space<vmem>>, %arg3: memref<1x128xf32, #tpu.memory_space<vmem>>, %arg4: memref<144x128xbf16, #tpu.memory_space<vmem>>) attributes {dimension_semantics = [#tpu.dimension_semantics<parallel>], iteration_bounds = array<i64: 2>, scalar_prefetch = 0 : i64, scratch_operands = 0 : i64, tpu.core_type = #tpu.core_type<tc>, window_params = [{transform_indices = @transform_0, window_bounds = array<i64: 144, 512>}, {pipeline_mode = #tpu.pipeline_mode<synchronous>, transform_indices = @transform_1, window_bounds = array<i64: 512, 128>}, {pipeline_mode = #tpu.pipeline_mode<synchronous>, transform_indices = @transform_2, window_bounds = array<i64: 1, 128>}, {transform_indices = @transform_3, window_bounds = array<i64: 144, 128>}]} {
    %c0 = arith.constant 0 : index
    %c0_0 = arith.constant 0 : index
    %0 = vector.load %arg1[%c0, %c0_0] : memref<144x512xbf16, #tpu.memory_space<vmem>>, vector<144x512xbf16>
    %c0_1 = arith.constant 0 : index
    %c0_2 = arith.constant 0 : index
    %1 = vector.load %arg2[%c0_1, %c0_2] : memref<512x128xbf16, #tpu.memory_space<vmem>>, vector<512x128xbf16>
    %cst = arith.constant dense<0.000000e+00> : vector<144x128xf32>
    %2 = tpu.matmul %0, %1, %cst {dimension_numbers = #tpu.dot_dimension_numbers<[1], [0], [0], [1], [0, 0, 1, 1], [], []>} : vector<144x512xbf16>, vector<512x128xbf16>, vector<144x128xf32> -> vector<144x128xf32>
    %c0_3 = arith.constant 0 : index
    %c0_4 = arith.constant 0 : index
    %3 = vector.load %arg3[%c0_3, %c0_4] : memref<1x128xf32, #tpu.memory_space<vmem>>, vector<1x128xf32>
    %4 = vector.broadcast %3 : vector<1x128xf32> to vector<144x128xf32>
    %5 = arith.addf %2, %4 : vector<144x128xf32>
    %cst_5 = arith.constant 0.000000e+00 : f32
    %6 = vector.broadcast %cst_5 : f32 to vector<144x128xf32>
    %7 = arith.cmpf ogt, %5, %6 : vector<144x128xf32>
    %8 = math.exp %5 : vector<144x128xf32>
    %cst_6 = arith.constant 1.000000e+00 : f32
    %9 = vector.broadcast %cst_6 : f32 to vector<144x128xf32>
    %10 = arith.subf %8, %9 : vector<144x128xf32>
    %11 = arith.select %7, %5, %10 : vector<144x128xi1>, vector<144x128xf32>
    %12 = arith.truncf %11 : vector<144x128xf32> to vector<144x128xbf16>
    %c0_7 = arith.constant 0 : index
    %c0_8 = arith.constant 0 : index
    %13 = vector.load %arg4[%c0_7, %c0_8] : memref<144x128xbf16, #tpu.memory_space<vmem>>, vector<144x128xbf16>
    tpu.vector_store %arg4[%c0_7, %c0_8], %12 {strides = array<i32>} : memref<144x128xbf16, #tpu.memory_space<vmem>>, vector<144x128xbf16>,
    return
  }
  func.func @transform_0(%arg0: i32) -> (i32, i32) {
    %c0_i32 = arith.constant 0 : i32
    %c0_i32_0 = arith.constant 0 : i32
    return %arg0, %c0_i32 : i32, i32
  }
  func.func @transform_1(%arg0: i32) -> (i32, i32) {
    %c0_i32 = arith.constant 0 : i32
    %c0_i32_0 = arith.constant 0 : i32
    %c0_i32_1 = arith.constant 0 : i32
    return %c0_i32, %c0_i32_0 : i32, i32
  }
  func.func @transform_2(%arg0: i32) -> (i32, i32) {
    %c0_i32 = arith.constant 0 : i32
    %c0_i32_0 = arith.constant 0 : i32
    %c0_i32_1 = arith.constant 0 : i32
    return %c0_i32, %c0_i32_0 : i32, i32
  }
  func.func @transform_3(%arg0: i32) -> (i32, i32) {
    %c0_i32 = arith.constant 0 : i32
    %c0_i32_0 = arith.constant 0 : i32
    return %arg0, %c0_i32 : i32, i32
  }
}

module attributes {stable_mosaic.version = 11 : i64} {
  func.func @_mm_bias_act_kernel(%arg0: i32, %arg1: memref<72x640xbf16, #tpu.memory_space<vmem>>, %arg2: memref<640x128xbf16, #tpu.memory_space<vmem>>, %arg3: memref<1x128xf32, #tpu.memory_space<vmem>>, %arg4: memref<72x128xbf16, #tpu.memory_space<vmem>>) attributes {dimension_semantics = [#tpu.dimension_semantics<parallel>], iteration_bounds = array<i64: 2>, scalar_prefetch = 0 : i64, scratch_operands = 0 : i64, tpu.core_type = #tpu.core_type<tc>, window_params = [{transform_indices = @transform_0, window_bounds = array<i64: 72, 640>}, {pipeline_mode = #tpu.pipeline_mode<synchronous>, transform_indices = @transform_1, window_bounds = array<i64: 640, 128>}, {pipeline_mode = #tpu.pipeline_mode<synchronous>, transform_indices = @transform_2, window_bounds = array<i64: 1, 128>}, {transform_indices = @transform_3, window_bounds = array<i64: 72, 128>}]} {
    %c0 = arith.constant 0 : index
    %c0_0 = arith.constant 0 : index
    %0 = vector.load %arg1[%c0, %c0_0] : memref<72x640xbf16, #tpu.memory_space<vmem>>, vector<72x640xbf16>
    %c0_1 = arith.constant 0 : index
    %c0_2 = arith.constant 0 : index
    %1 = vector.load %arg2[%c0_1, %c0_2] : memref<640x128xbf16, #tpu.memory_space<vmem>>, vector<640x128xbf16>
    %cst = arith.constant dense<0.000000e+00> : vector<72x128xf32>
    %2 = tpu.matmul %0, %1, %cst {dimension_numbers = #tpu.dot_dimension_numbers<[1], [0], [0], [1], [0, 0, 1, 1], [], []>} : vector<72x640xbf16>, vector<640x128xbf16>, vector<72x128xf32> -> vector<72x128xf32>
    %c0_3 = arith.constant 0 : index
    %c0_4 = arith.constant 0 : index
    %3 = vector.load %arg3[%c0_3, %c0_4] : memref<1x128xf32, #tpu.memory_space<vmem>>, vector<1x128xf32>
    %4 = vector.broadcast %3 : vector<1x128xf32> to vector<72x128xf32>
    %5 = arith.addf %2, %4 : vector<72x128xf32>
    %6 = arith.truncf %5 : vector<72x128xf32> to vector<72x128xbf16>
    %c0_5 = arith.constant 0 : index
    %c0_6 = arith.constant 0 : index
    %7 = vector.load %arg4[%c0_5, %c0_6] : memref<72x128xbf16, #tpu.memory_space<vmem>>, vector<72x128xbf16>
    tpu.vector_store %arg4[%c0_5, %c0_6], %6 {strides = array<i32>} : memref<72x128xbf16, #tpu.memory_space<vmem>>, vector<72x128xbf16>,
    return
  }
  func.func @transform_0(%arg0: i32) -> (i32, i32) {
    %c0_i32 = arith.constant 0 : i32
    %c0_i32_0 = arith.constant 0 : i32
    return %arg0, %c0_i32 : i32, i32
  }
  func.func @transform_1(%arg0: i32) -> (i32, i32) {
    %c0_i32 = arith.constant 0 : i32
    %c0_i32_0 = arith.constant 0 : i32
    %c0_i32_1 = arith.constant 0 : i32
    return %c0_i32, %c0_i32_0 : i32, i32
  }
  func.func @transform_2(%arg0: i32) -> (i32, i32) {
    %c0_i32 = arith.constant 0 : i32
    %c0_i32_0 = arith.constant 0 : i32
    %c0_i32_1 = arith.constant 0 : i32
    return %c0_i32, %c0_i32_0 : i32, i32
  }
  func.func @transform_3(%arg0: i32) -> (i32, i32) {
    %c0_i32 = arith.constant 0 : i32
    %c0_i32_0 = arith.constant 0 : i32
    return %arg0, %c0_i32 : i32, i32
  }
}

module attributes {stable_mosaic.version = 11 : i64} {
  func.func @_dense_head_kernel(%arg0: i32, %arg1: memref<8x4224xbf16, #tpu.memory_space<vmem>>, %arg2: memref<4224x128xbf16, #tpu.memory_space<vmem>>, %arg3: memref<1x128xf32, #tpu.memory_space<vmem>>, %arg4: memref<128x128xbf16, #tpu.memory_space<vmem>>, %arg5: memref<1x128xf32, #tpu.memory_space<vmem>>, %arg6: memref<128x128xbf16, #tpu.memory_space<vmem>>, %arg7: memref<1x128xf32, #tpu.memory_space<vmem>>, %arg8: memref<128x128xbf16, #tpu.memory_space<vmem>>, %arg9: memref<1x128xf32, #tpu.memory_space<vmem>>, %arg10: memref<8x128xf32, #tpu.memory_space<vmem>>) attributes {dimension_semantics = [#tpu.dimension_semantics<arbitrary>], iteration_bounds = array<i64: 1>, scalar_prefetch = 0 : i64, scratch_operands = 0 : i64, tpu.core_type = #tpu.core_type<tc>, window_params = [{pipeline_mode = #tpu.pipeline_mode<synchronous>, transform_indices = @transform_0, window_bounds = array<i64: 8, 4224>}, {pipeline_mode = #tpu.pipeline_mode<synchronous>, transform_indices = @transform_1, window_bounds = array<i64: 4224, 128>}, {pipeline_mode = #tpu.pipeline_mode<synchronous>, transform_indices = @transform_2, window_bounds = array<i64: 1, 128>}, {pipeline_mode = #tpu.pipeline_mode<synchronous>, transform_indices = @transform_3, window_bounds = array<i64: 128, 128>}, {pipeline_mode = #tpu.pipeline_mode<synchronous>, transform_indices = @transform_4, window_bounds = array<i64: 1, 128>}, {pipeline_mode = #tpu.pipeline_mode<synchronous>, transform_indices = @transform_5, window_bounds = array<i64: 128, 128>}, {pipeline_mode = #tpu.pipeline_mode<synchronous>, transform_indices = @transform_6, window_bounds = array<i64: 1, 128>}, {pipeline_mode = #tpu.pipeline_mode<synchronous>, transform_indices = @transform_7, window_bounds = array<i64: 128, 128>}, {pipeline_mode = #tpu.pipeline_mode<synchronous>, transform_indices = @transform_8, window_bounds = array<i64: 1, 128>}, {pipeline_mode = #tpu.pipeline_mode<synchronous>, transform_indices = @transform_9, window_bounds = array<i64: 8, 128>}]} {
    %c0 = arith.constant 0 : index
    %c0_0 = arith.constant 0 : index
    %0 = vector.load %arg1[%c0, %c0_0] : memref<8x4224xbf16, #tpu.memory_space<vmem>>, vector<8x4224xbf16>
    %c0_1 = arith.constant 0 : index
    %c0_2 = arith.constant 0 : index
    %1 = vector.load %arg2[%c0_1, %c0_2] : memref<4224x128xbf16, #tpu.memory_space<vmem>>, vector<4224x128xbf16>
    %cst = arith.constant dense<0.000000e+00> : vector<8x128xf32>
    %2 = tpu.matmul %0, %1, %cst {dimension_numbers = #tpu.dot_dimension_numbers<[1], [0], [0], [1], [0, 0, 1, 1], [], []>} : vector<8x4224xbf16>, vector<4224x128xbf16>, vector<8x128xf32> -> vector<8x128xf32>
    %c0_3 = arith.constant 0 : index
    %c0_4 = arith.constant 0 : index
    %3 = vector.load %arg3[%c0_3, %c0_4] : memref<1x128xf32, #tpu.memory_space<vmem>>, vector<1x128xf32>
    %4 = vector.broadcast %3 : vector<1x128xf32> to vector<8x128xf32>
    %5 = arith.addf %2, %4 : vector<8x128xf32>
    %cst_5 = arith.constant 0.000000e+00 : f32
    %6 = vector.broadcast %cst_5 : f32 to vector<8x128xf32>
    %7 = arith.cmpf ogt, %5, %6 : vector<8x128xf32>
    %8 = math.exp %5 : vector<8x128xf32>
    %cst_6 = arith.constant 1.000000e+00 : f32
    %9 = vector.broadcast %cst_6 : f32 to vector<8x128xf32>
    %10 = arith.subf %8, %9 : vector<8x128xf32>
    %11 = arith.select %7, %5, %10 : vector<8x128xi1>, vector<8x128xf32>
    %12 = arith.truncf %11 : vector<8x128xf32> to vector<8x128xbf16>
    %c0_7 = arith.constant 0 : index
    %c0_8 = arith.constant 0 : index
    %13 = vector.load %arg4[%c0_7, %c0_8] : memref<128x128xbf16, #tpu.memory_space<vmem>>, vector<128x128xbf16>
    %cst_9 = arith.constant dense<0.000000e+00> : vector<8x128xf32>
    %14 = tpu.matmul %12, %13, %cst_9 {dimension_numbers = #tpu.dot_dimension_numbers<[1], [0], [0], [1], [0, 0, 1, 1], [], []>} : vector<8x128xbf16>, vector<128x128xbf16>, vector<8x128xf32> -> vector<8x128xf32>
    %c0_10 = arith.constant 0 : index
    %c0_11 = arith.constant 0 : index
    %15 = vector.load %arg5[%c0_10, %c0_11] : memref<1x128xf32, #tpu.memory_space<vmem>>, vector<1x128xf32>
    %16 = vector.broadcast %15 : vector<1x128xf32> to vector<8x128xf32>
    %17 = arith.addf %14, %16 : vector<8x128xf32>
    %cst_12 = arith.constant 0.000000e+00 : f32
    %18 = vector.broadcast %cst_12 : f32 to vector<8x128xf32>
    %19 = arith.cmpf ogt, %17, %18 : vector<8x128xf32>
    %20 = math.exp %17 : vector<8x128xf32>
    %cst_13 = arith.constant 1.000000e+00 : f32
    %21 = vector.broadcast %cst_13 : f32 to vector<8x128xf32>
    %22 = arith.subf %20, %21 : vector<8x128xf32>
    %23 = arith.select %19, %17, %22 : vector<8x128xi1>, vector<8x128xf32>
    %24 = arith.truncf %23 : vector<8x128xf32> to vector<8x128xbf16>
    %c0_14 = arith.constant 0 : index
    %c0_15 = arith.constant 0 : index
    %25 = vector.load %arg6[%c0_14, %c0_15] : memref<128x128xbf16, #tpu.memory_space<vmem>>, vector<128x128xbf16>
    %cst_16 = arith.constant dense<0.000000e+00> : vector<8x128xf32>
    %26 = tpu.matmul %24, %25, %cst_16 {dimension_numbers = #tpu.dot_dimension_numbers<[1], [0], [0], [1], [0, 0, 1, 1], [], []>} : vector<8x128xbf16>, vector<128x128xbf16>, vector<8x128xf32> -> vector<8x128xf32>
    %c0_17 = arith.constant 0 : index
    %c0_18 = arith.constant 0 : index
    %27 = vector.load %arg7[%c0_17, %c0_18] : memref<1x128xf32, #tpu.memory_space<vmem>>, vector<1x128xf32>
    %28 = vector.broadcast %27 : vector<1x128xf32> to vector<8x128xf32>
    %29 = arith.addf %26, %28 : vector<8x128xf32>
    %30 = arith.truncf %29 : vector<8x128xf32> to vector<8x128xbf16>
    %c0_19 = arith.constant 0 : index
    %c0_20 = arith.constant 0 : index
    %31 = vector.load %arg8[%c0_19, %c0_20] : memref<128x128xbf16, #tpu.memory_space<vmem>>, vector<128x128xbf16>
    %cst_21 = arith.constant dense<0.000000e+00> : vector<8x128xf32>
    %32 = tpu.matmul %30, %31, %cst_21 {dimension_numbers = #tpu.dot_dimension_numbers<[1], [0], [0], [1], [0, 0, 1, 1], [], []>} : vector<8x128xbf16>, vector<128x128xbf16>, vector<8x128xf32> -> vector<8x128xf32>
    %c0_22 = arith.constant 0 : index
    %c0_23 = arith.constant 0 : index
    %33 = vector.load %arg9[%c0_22, %c0_23] : memref<1x128xf32, #tpu.memory_space<vmem>>, vector<1x128xf32>
    %34 = vector.broadcast %33 : vector<1x128xf32> to vector<8x128xf32>
    %35 = arith.addf %32, %34 : vector<8x128xf32>
    %c0_24 = arith.constant 0 : index
    %c0_25 = arith.constant 0 : index
    %36 = vector.load %arg10[%c0_24, %c0_25] : memref<8x128xf32, #tpu.memory_space<vmem>>, vector<8x128xf32>
    tpu.vector_store %arg10[%c0_24, %c0_25], %35 {strides = array<i32>} : memref<8x128xf32, #tpu.memory_space<vmem>>, vector<8x128xf32>,
    return
  }
  func.func @transform_0(%arg0: i32) -> (i32, i32) {
    %c0_i32 = arith.constant 0 : i32
    %c0_i32_0 = arith.constant 0 : i32
    %c0_i32_1 = arith.constant 0 : i32
    return %c0_i32, %c0_i32_0 : i32, i32
  }
  func.func @transform_1(%arg0: i32) -> (i32, i32) {
    %c0_i32 = arith.constant 0 : i32
    %c0_i32_0 = arith.constant 0 : i32
    %c0_i32_1 = arith.constant 0 : i32
    return %c0_i32, %c0_i32_0 : i32, i32
  }
  func.func @transform_2(%arg0: i32) -> (i32, i32) {
    %c0_i32 = arith.constant 0 : i32
    %c0_i32_0 = arith.constant 0 : i32
    %c0_i32_1 = arith.constant 0 : i32
    return %c0_i32, %c0_i32_0 : i32, i32
  }
  func.func @transform_3(%arg0: i32) -> (i32, i32) {
    %c0_i32 = arith.constant 0 : i32
    %c0_i32_0 = arith.constant 0 : i32
    %c0_i32_1 = arith.constant 0 : i32
    return %c0_i32, %c0_i32_0 : i32, i32
  }
  func.func @transform_4(%arg0: i32) -> (i32, i32) {
    %c0_i32 = arith.constant 0 : i32
    %c0_i32_0 = arith.constant 0 : i32
    %c0_i32_1 = arith.constant 0 : i32
    return %c0_i32, %c0_i32_0 : i32, i32
  }
  func.func @transform_5(%arg0: i32) -> (i32, i32) {
    %c0_i32 = arith.constant 0 : i32
    %c0_i32_0 = arith.constant 0 : i32
    %c0_i32_1 = arith.constant 0 : i32
    return %c0_i32, %c0_i32_0 : i32, i32
  }
  func.func @transform_6(%arg0: i32) -> (i32, i32) {
    %c0_i32 = arith.constant 0 : i32
    %c0_i32_0 = arith.constant 0 : i32
    %c0_i32_1 = arith.constant 0 : i32
    return %c0_i32, %c0_i32_0 : i32, i32
  }
  func.func @transform_7(%arg0: i32) -> (i32, i32) {
    %c0_i32 = arith.constant 0 : i32
    %c0_i32_0 = arith.constant 0 : i32
    %c0_i32_1 = arith.constant 0 : i32
    return %c0_i32, %c0_i32_0 : i32, i32
  }
  func.func @transform_8(%arg0: i32) -> (i32, i32) {
    %c0_i32 = arith.constant 0 : i32
    %c0_i32_0 = arith.constant 0 : i32
    %c0_i32_1 = arith.constant 0 : i32
    return %c0_i32, %c0_i32_0 : i32, i32
  }
  func.func @transform_9(%arg0: i32) -> (i32, i32) {
    %c0_i32 = arith.constant 0 : i32
    %c0_i32_0 = arith.constant 0 : i32
    %c0_i32_1 = arith.constant 0 : i32
    return %c0_i32, %c0_i32_0 : i32, i32
  }
}

</mosaic_0001>

<bundles_post_ra>
// kernel: nvidia_forward.6
= control target key start
LH: loop header
LB: loop body
LE: loop exit
PB: predicated region body
PF: predicated region fallthrough
CT: control target
= control target key end

     0   :  { %s2262_s12 = smov 0   ;;  %s2922_s0 = inlined_call_operand.vmem [shape: bf16[10752,128], index: 0, kind: input, shape index: {}]   ;;  %s2923_s1 = inlined_call_operand.vmem [shape: bf16[128,128], index: 1, kind: input, shape index: {}]   ;;  %s2924_s2 = inlined_call_operand.vmem [shape: f32[1,128], index: 2, kind: input, shape index: {}]   ;;  %s2925_s3 = inlined_call_operand.vmem [shape: bf16[10752,128], index: 3, kind: output, shape index: {}]  }
   0x1 LB: > { %s1487_s13 = sadd.s32 4294967295, %s2240_s12   ;;  %p1491_p0 = scmp.ge.s32.totalorder %s2240_s12, 1  ;;  %s2240_s12 = sphi %s2262_s12, %s13_s12  }
   0x2   : > { %p138_p1 = scmp.lt.s32.totalorder %s2240_s12, 22 }
   0x4   : > { %p139_p2 = pnand %p1491_p0, %p138_p1 }
   0x5   : > { %s1492_s16 = sshll.u32 (!%p139_p2), %s1487_s13, 6 }
   0x6   : > { %142 = sbr.rel (%p139_p2) target bundleno = 352 (0x160), region = 32  ;;  %p163_p3 = scmp.lt.s32.totalorder (!%p139_p2), %s1492_s16, 1343 }
   0xb   : > { %v2066_v0 = vld [vmem:[%s2923_s1 + $0x38] sm:$0xff]   ;;  %v2067_v1 = vld [vmem:[%s2923_s1 + $0x30] sm:$0xff]   ;;  %s2927_s16 = smov (!%p163_p3, %s1492_s16), 1343  ;;  %v2068_v2 = vld [vmem:[%s2923_s1 + $0x28] sm:$0xff]  }
   0xc   : > { %1962 = vmatprep.subr.bf16.mxu0 %v2066_v0  ;;  %2042 = vmatprep.subr.bf16.mxu1 %v2066_v0  ;;  %s1493_s21 = sshll.u32 %s2927_s16, 2  ;;  %v2069_v3 = vld [vmem:[%s2923_s1 + $0x20] sm:$0xff]   ;;  %v2070_v6 = vld [vmem:[%s2923_s1 + $0x18] sm:$0xff]   ;;  %v2071_v7 = vld [vmem:[%s2923_s1 + $0x10] sm:$0xff]  }
   0xd   : > { %1963 = vmatpush3.bf16.msra.mxu0 %v2066_v0  ;;  %2050 = vmatpush3.bf16.msra.mxu1 %v2066_v0  ;;  %s2287_s24 = scalar_lea.vmem %s2922_s0, %s1493_s21  ;;  %v2072_v8 = vld [vmem:[%s2923_s1 + $0x8] sm:$0xff]   ;;  %v2073_v9 = vld [vmem:[%s2923_s1] sm:$0xff]   ;;  %s2451_s13 = scalar_lea.vmem %s2925_s3, %s1493_s21 }
   0xe   : > { %1964 = vmatprep.subr.bf16.mxu0 %v2067_v1  ;;  %2043 = vmatprep.subr.bf16.mxu1 %v2067_v1  ;;  %v2074_v4 = vld [vmem:[%s2287_s24] sm:$0xff]   ;;  %v2076_v10 = vld [vmem:[%s2287_s24 + $0x8] sm:$0xff]   ;;  %v2078_v12 = vld [vmem:[%s2287_s24 + $0x10] sm:$0xff]  }
   0xf   : > { %v2075_v5 = vld [vmem:[%s2287_s24 + $0x80] sm:$0xff]   ;;  %1978 = vmatprep.mubr.bf16.mxu0 %v2074_v4  ;;  %v2077_v11 = vld [vmem:[%s2287_s24 + $0x88] sm:$0xff]   ;;  %v2079_v13 = vld [vmem:[%s2287_s24 + $0x90] sm:$0xff]  }
  0x10   : > { %2010 = vmatprep.mubr.bf16.mxu1 %v2075_v5  ;;  %v2080_v14 = vld [vmem:[%s2287_s24 + $0x18] sm:$0xff]   ;;  %v2082_v16 = vld [vmem:[%s2287_s24 + $0x20] sm:$0xff]   ;;  %v2084_v18 = vld [vmem:[%s2287_s24 + $0x28] sm:$0xff]  }
  0x11   : > { %1965 = vmatpush3.bf16.msra.mxu0 %v2067_v1  ;;  %2051 = vmatpush3.bf16.msra.mxu1 %v2067_v1  ;;  %v2081_v15 = vld [vmem:[%s2287_s24 + $0x98] sm:$0xff]   ;;  %v2083_v17 = vld [vmem:[%s2287_s24 + $0xa0] sm:$0xff]   ;;  %v2085_v19 = vld [vmem:[%s2287_s24 + $0xa8] sm:$0xff]  }
  0x12   : > { %1966 = vmatprep.subr.bf16.mxu0 %v2068_v2  ;;  %2044 = vmatprep.subr.bf16.mxu1 %v2068_v2  ;;  %v2086_v20 = vld [vmem:[%s2287_s24 + $0x30] sm:$0xff]   ;;  %v2088_v22 = vld [vmem:[%s2287_s24 + $0x38] sm:$0xff]   ;;  %v2090_v24 = vld [vmem:[%s2287_s24 + $0x40] sm:$0xff]  }
  0x13   : > { %v2087_v21 = vld [vmem:[%s2287_s24 + $0xb0] sm:$0xff]   ;;  %v2089_v23 = vld [vmem:[%s2287_s24 + $0xb8] sm:$0xff]   ;;  %v2091_v25 = vld [vmem:[%s2287_s24 + $0xc0] sm:$0xff]  }
  0x14   : > { %v2092_v26 = vld [vmem:[%s2287_s24 + $0x48] sm:$0xff]   ;;  %v2094_v28 = vld [vmem:[%s2287_s24 + $0x50] sm:$0xff]   ;;  %v2096_v30 = vld [vmem:[%s2287_s24 + $0x58] sm:$0xff]  }
  0x15   : > { %1967 = vmatpush3.bf16.msra.mxu0 %v2068_v2  ;;  %2052 = vmatpush3.bf16.msra.mxu1 %v2068_v2  ;;  %v2093_v27 = vld [vmem:[%s2287_s24 + $0xc8] sm:$0xff]   ;;  %v2095_v29 = vld [vmem:[%s2287_s24 + $0xd0] sm:$0xff]   ;;  %v2097_v31 = vld [vmem:[%s2287_s24 + $0xd8] sm:$0xff]  }
  0x16   : > { %1968 = vmatprep.subr.bf16.mxu0 %v2069_v3  ;;  %2045 = vmatprep.subr.bf16.mxu1 %v2069_v3  ;;  %v2098_v32 = vld [vmem:[%s2287_s24 + $0x60] sm:$0xff]   ;;  %v2100_v34 = vld [vmem:[%s2287_s24 + $0x68] sm:$0xff]   ;;  %v2102_v36 = vld [vmem:[%s2287_s24 + $0x70] sm:$0xff]  }
  0x17   : > { %v2099_v33 = vld [vmem:[%s2287_s24 + $0xe0] sm:$0xff]   ;;  %v2101_v35 = vld [vmem:[%s2287_s24 + $0xe8] sm:$0xff]   ;;  %v2103_v37 = vld [vmem:[%s2287_s24 + $0xf0] sm:$0xff]  }
  0x18   : > { %v2104_v38 = vld [vmem:[%s2287_s24 + $0x78] sm:$0xff]   ;;  %v2339_v40 = vld [vmem:[%s2924_s2] ss:$0 sm:$0xff] }
  0x19   : > { %1969 = vmatpush3.bf16.msra.mxu0 %v2069_v3  ;;  %2053 = vmatpush3.bf16.msra.mxu1 %v2069_v3  ;;  %v2105_v39 = vld [vmem:[%s2287_s24 + $0xf8] sm:$0xff]  }
  0x1a   : > { %1970 = vmatprep.subr.bf16.mxu0 %v2070_v6  ;;  %2046 = vmatprep.subr.bf16.mxu1 %v2070_v6 }
  0x1d   : > { %1971 = vmatpush3.bf16.msra.mxu0 %v2070_v6  ;;  %2054 = vmatpush3.bf16.msra.mxu1 %v2070_v6 }
  0x1e   : > { %1972 = vmatprep.subr.bf16.mxu0 %v2071_v7  ;;  %2047 = vmatprep.subr.bf16.mxu1 %v2071_v7 }
  0x21   : > { %1973 = vmatpush3.bf16.msra.mxu0 %v2071_v7  ;;  %2055 = vmatpush3.bf16.msra.mxu1 %v2071_v7 }
  0x22   : > { %1974 = vmatprep.subr.bf16.mxu0 %v2072_v8  ;;  %2048 = vmatprep.subr.bf16.mxu1 %v2072_v8 }
  0x25   : > { %1975 = vmatpush3.bf16.msra.mxu0 %v2072_v8  ;;  %2056 = vmatpush3.bf16.msra.mxu1 %v2072_v8 }
  0x26   : > { %1976 = vmatprep.subr.bf16.mxu0 %v2073_v9  ;;  %2049 = vmatprep.subr.bf16.mxu1 %v2073_v9 }
  0x29   : > { %1977 = vmatpush3.bf16.msra.mxu0 %v2073_v9  ;;  %2057 = vmatpush3.bf16.msra.mxu1 %v2073_v9 }
  0x2c   : > { %1979 = vmatmul.mubr.bf16.vlgmr.msra.gmra.mxu0 %v2076_v10  ;;  %2011 = vmatmul.mubr.bf16.vlgmr.msra.gmra.mxu1 %v2077_v11 }
  0x2d   : > { %1982 = vmatprep.mubr.bf16.mxu0 %v2078_v12  ;;  %2014 = vmatprep.mubr.bf16.mxu1 %v2079_v13 }
  0x34   : > { %1983 = vmatmul.mubr.bf16.gmra.mxu0 %v2080_v14  ;;  %2015 = vmatmul.mubr.bf16.gmra.mxu1 %v2081_v15 }
  0x35   : > { %1986 = vmatprep.mubr.bf16.mxu0 %v2082_v16  ;;  %2018 = vmatprep.mubr.bf16.mxu1 %v2083_v17 }
  0x3c   : > { %1987 = vmatmul.mubr.bf16.gmra.mxu0 %v2084_v18  ;;  %2019 = vmatmul.mubr.bf16.gmra.mxu1 %v2085_v19 }
  0x3d   : > { %1990 = vmatprep.mubr.bf16.mxu0 %v2086_v20  ;;  %2022 = vmatprep.mubr.bf16.mxu1 %v2087_v21 }
  0x44   : > { %1991 = vmatmul.mubr.bf16.gmra.mxu0 %v2088_v22  ;;  %2023 = vmatmul.mubr.bf16.gmra.mxu1 %v2089_v23 }
  0x45   : > { %1994 = vmatprep.mubr.bf16.mxu0 %v2090_v24  ;;  %2026 = vmatprep.mubr.bf16.mxu1 %v2091_v25 }
  0x4c   : > { %1995 = vmatmul.mubr.bf16.gmra.mxu0 %v2092_v26  ;;  %2027 = vmatmul.mubr.bf16.gmra.mxu1 %v2093_v27 }
  0x4d   : > { %1998 = vmatprep.mubr.bf16.mxu0 %v2094_v28  ;;  %2030 = vmatprep.mubr.bf16.mxu1 %v2095_v29 }
  0x54   : > { %1999 = vmatmul.mubr.bf16.gmra.mxu0 %v2096_v30  ;;  %2031 = vmatmul.mubr.bf16.gmra.mxu1 %v2097_v31 }
  0x55   : > { %2002 = vmatprep.mubr.bf16.mxu0 %v2098_v32  ;;  %2034 = vmatprep.mubr.bf16.mxu1 %v2099_v33 }
  0x5c   : > { %2003 = vmatmul.mubr.bf16.gmra.mxu0 %v2100_v34  ;;  %2035 = vmatmul.mubr.bf16.gmra.mxu1 %v2101_v35 }
  0x5d   : > { %2006 = vmatprep.mubr.bf16.mxu0 %v2102_v36  ;;  %2038 = vmatprep.mubr.bf16.mxu1 %v2103_v37 }
  0x64   : > { %2007 = vmatmul.mubr.bf16.gmra.mxu0 %v2104_v38  ;;  %2039 = vmatmul.mubr.bf16.gmra.mxu1 %v2105_v39 }
  0xec   : > { %v1980_v41 = vpop.f32.mrf.mxu0  ;;  %v2012_v42 = vpop.f32.mrf.mxu1 }
  0xed   : > { %v2342_v43 = vadd.f32 %v1980_v41, %v2339_v40  ;;  %v2345_v44 = vadd.f32 %v2012_v42, %v2339_v40 }
  0xee   : > { %v536_v45 = vpop.f32.mrf.mxu0  ;;  %v664_v46 = vpop.f32.mrf.mxu1 }
  0xef   : > { %v859_v47 = vmul.f32 1.442695, %v2342_v43  ;;  %v923_v48 = vmul.f32 1.442695, %v2345_v44  ;;  %v2350_v49 = vadd.f32 %v2339_v40, %v536_v45  ;;  %v2353_v50 = vadd.f32 %v2339_v40, %v664_v46 }
  0xf0   : > { %v1981_v51 = vpop.f32.mrf.mxu0  ;;  %v2013_v52 = vpop.f32.mrf.mxu1  ;;  %vm793_vm0 = vcmp.gt.f32.partialorder %v2342_v43, 0.0  ;;  %vm825_vm1 = vcmp.gt.f32.partialorder %v2345_v44, 0.0 }
  0xf1   : > { %2106 = vpow2.f32 %v859_v47  ;;  %v2356_v53 = vadd.f32 %v1981_v51, %v2339_v40  ;;  %v2359_v54 = vadd.f32 %v2013_v52, %v2339_v40  ;;  %v855_v55 = vmul.f32 1.442695, %v2350_v49 }
  0xf2   : > { %2108 = vpow2.f32 %v923_v48  ;;  %v539_v56 = vpop.f32.mrf.mxu0  ;;  %v667_v57 = vpop.f32.mrf.mxu1  ;;  %v919_v58 = vmul.f32 1.442695, %v2353_v50  ;;  %vm791_vm2 = vcmp.gt.f32.partialorder %v2350_v49, 0.0  ;;  %vm823_vm3 = vcmp.gt.f32.partialorder %v2353_v50, 0.0 }
  0xf3   : > { %v861_v59 = vmul.f32 1.442695, %v2356_v53  ;;  %2110 = vpow2.f32 %v855_v55  ;;  %v925_v60 = vmul.f32 1.442695, %v2359_v54  ;;  %v2366_v61 = vadd.f32 %v2339_v40, %v539_v56 }
  0xf4   : > { %v2369_v62 = vadd.f32 %v2339_v40, %v667_v57  ;;  %v1984_v63 = vpop.f32.mrf.mxu0  ;;  %v2016_v0 = vpop.f32.mrf.mxu1  ;;  %2112 = vpow2.f32 %v919_v58  ;;  %vm794_vm4 = vcmp.gt.f32.partialorder %v2356_v53, 0.0  ;;  %vm826_vm5 = vcmp.gt.f32.partialorder %v2359_v54, 0.0 }
  0xf5   : > { %v2372_v1 = vadd.f32 %v1984_v63, %v2339_v40  ;;  %v2375_v2 = vadd.f32 %v2016_v0, %v2339_v40  ;;  %2114 = vpow2.f32 %v861_v59  ;;  %v857_v3 = vmul.f32 1.442695, %v2366_v61 }
  0xf6   : > { %v552_v4 = vpop.f32.mrf.mxu0  ;;  %v680_v5 = vpop.f32.mrf.mxu1  ;;  %2116 = vpow2.f32 %v925_v60  ;;  %v921_v6 = vmul.f32 1.442695, %v2369_v62  ;;  %vm792_vm6 = vcmp.gt.f32.partialorder %v2366_v61, 0.0  ;;  %vm824_vm7 = vcmp.gt.f32.partialorder %v2369_v62, 0.0 }
  0xf7   : > { %v867_v7 = vmul.f32 1.442695, %v2372_v1  ;;  %2118 = vpow2.f32 %v857_v3  ;;  %v931_v8 = vmul.f32 1.442695, %v2375_v2  ;;  %v2382_v9 = vadd.f32 %v2339_v40, %v552_v4 }
  0xf8   : > { %v1985_v10 = vpop.f32.mrf.mxu0  ;;  %v2017_v11 = vpop.f32.mrf.mxu1  ;;  %2120 = vpow2.f32 %v921_v6  ;;  %v2385_v12 = vadd.f32 %v2339_v40, %v680_v5  ;;  %vm797_vm8 = vcmp.gt.f32.partialorder %v2372_v1, 0.0  ;;  %vm829_vm9 = vcmp.gt.f32.partialorder %v2375_v2, 0.0 }
  0xf9   : > { %v2388_v13 = vadd.f32 %v1985_v10, %v2339_v40  ;;  %v2391_v14 = vadd.f32 %v2017_v11, %v2339_v40  ;;  %2122 = vpow2.f32 %v867_v7  ;;  %v863_v15 = vmul.f32 1.442695, %v2382_v9 }
  0xfa   : > { %v555_v16 = vpop.f32.mrf.mxu0  ;;  %v683_v17 = vpop.f32.mrf.mxu1  ;;  %2124 = vpow2.f32 %v931_v8  ;;  %v927_v18 = vmul.f32 1.442695, %v2385_v12  ;;  %vm795_vm12 = vcmp.gt.f32.partialorder %v2382_v9, 0.0  ;;  %vm827_vm13 = vcmp.gt.f32.partialorder %v2385_v12, 0.0 }
  0xfb   : > { %2126 = vpow2.f32 %v863_v15  ;;  %v869_v19 = vmul.f32 1.442695, %v2388_v13  ;;  %v933_v20 = vmul.f32 1.442695, %v2391_v14  ;;  %v2398_v23 = vadd.f32 %v2339_v40, %v555_v16 }
  0xfc   : > { %v1988_v21 = vpop.f32.mrf.mxu0  ;;  %v2020_v22 = vpop.f32.mrf.mxu1  ;;  %2128 = vpow2.f32 %v927_v18  ;;  %v2401_v24 = vadd.f32 %v2339_v40, %v683_v17  ;;  %vm798_vm10 = vcmp.gt.f32.partialorder %v2388_v13, 0.0  ;;  %vm830_vm11 = vcmp.gt.f32.partialorder %v2391_v14, 0.0 }
  0xfd   : > { %v2404_v25 = vadd.f32 %v1988_v21, %v2339_v40  ;;  %2130 = vpow2.f32 %v869_v19  ;;  %v865_v30 = vmul.f32 1.442695, %v2398_v23  ;;  %v2411_v33 = vadd.f32 %v2020_v22, %v2339_v40 }
  0xfe   : > { %v2107_v26 = vpop.eup %2106  ;;  %v568_v27 = vpop.f32.mrf.mxu0  ;;  %2132 = vpow2.f32 %v933_v20  ;;  %v929_v32 = vmul.f32 1.442695, %v2401_v24  ;;  %vm796_vm14 = vcmp.gt.f32.partialorder %v2398_v23, 0.0  ;;  %vm828_vm15 = vcmp.gt.f32.partialorder %v2401_v24, 0.0 }
  0xff   : > { %v696_v28 = vpop.f32.mrf.mxu1  ;;  %v2109_v29 = vpop.eup %2108  ;;  %v1539_v31 = vadd.f32 -1.0, %v2107_v26  ;;  %2134 = vpow2.f32 %v865_v30  ;;  %v875_v38 = vmul.f32 1.442695, %v2404_v25  ;;  %v2427_v46 = vadd.f32 %v2339_v40, %v568_v27 }
 0x100   : > { %v1989_v34 = vpop.f32.mrf.mxu0  ;;  %v2111_v36 = vpop.eup %2110  ;;  %v1571_v37 = vadd.f32 -1.0, %v2109_v29  ;;  %2136 = vpow2.f32 %v929_v32  ;;  %v2430_v47 = vadd.f32 %v2339_v40, %v696_v28  ;;  %v939_v56 = vmul.f32 1.442695, %v2411_v33 }
 0x101   : > { %v2413_v35 = vpop.f32.mrf.mxu1  ;;  %v2113_v39 = vpop.eup %2112  ;;  %v1049_v51 = vsel %vm793_vm0, %v2342_v43, %v1539_v31  ;;  %v1537_v52 = vadd.f32 -1.0, %v2111_v36  ;;  %2138 = vpow2.f32 %v875_v38  ;;  %v2459_v5 = vadd.f32 %v1989_v34, %v2339_v40 }
 0x102   : > { %v2420_v41 = vpop.f32.mrf.mxu0  ;;  %v2115_v45 = vpop.eup %2114  ;;  %v1081_v60 = vsel %vm825_vm1, %v2345_v44, %v1571_v37  ;;  %v1569_v63 = vadd.f32 -1.0, %v2113_v39  ;;  %v871_v44 = vmul.f32 1.442695, %v2427_v46  ;;  %v935_v15 = vmul.f32 1.442695, %v2430_v47 }
 0x103   : > { %v2422_v42 = vpop.f32.mrf.mxu1  ;;  %v2117_v48 = vpop.eup %2116  ;;  %v1540_v55 = vadd.f32 -1.0, %v2115_v45  ;;  %v1047_v17 = vsel %vm791_vm2, %v2350_v49, %v1537_v52  ;;  %2140 = vpow2.f32 %v939_v56  ;;  %v877_v30 = vmul.f32 1.442695, %v2459_v5 }
 0x104   : > { %v2437_v57 = vpop.f32.mrf.mxu0  ;;  %v2119_v59 = vpop.eup %2118  ;;  %v1572_v0 = vadd.f32 -1.0, %v2117_v48  ;;  %v1079_v22 = vsel %vm823_vm3, %v2353_v50, %v1569_v63  ;;  %2142 = vpow2.f32 %v871_v44  ;;  %v2502_v34 = vadd.f32 %v2339_v40, %v2420_v41 }
 0x105   : > { %v2439_v58 = vpop.f32.mrf.mxu1  ;;  %v2121_v43 = vpop.eup %2120  ;;  %v1050_v3 = vsel %vm794_vm4, %v2356_v53, %v1540_v55  ;;  %v1538_v4 = vadd.f32 -1.0, %v2119_v59  ;;  %2144 = vpow2.f32 %v935_v15  ;;  %v2508_v38 = vadd.f32 %v2339_v40, %v2422_v42 }
 0x106   : > { %v2461_v6 = vpop.f32.mrf.mxu0  ;;  %v2123_v8 = vpop.eup %2122  ;;  %v1739_v10 = vpack.c.bf16 %v1050_v3, %v1049_v51  ;;  %v1082_v11 = vsel %vm826_vm5, %v2359_v54, %v1572_v0  ;;  %v1570_v53 = vadd.f32 -1.0, %v2121_v43  ;;  %2146 = vpow2.f32 %v877_v30 }
 0x107   : > { %v2463_v7 = vpop.f32.mrf.mxu1  ;;  %v2125_v16 = vpop.eup %2124  ;;  %v1819_v18 = vpack.c.bf16 %v1082_v11, %v1081_v60  ;;  %v1048_v19 = vsel %vm792_vm6, %v2366_v61, %v1538_v4  ;;  %v1543_v61 = vadd.f32 -1.0, %v2123_v8  ;;  %v2540_v44 = vadd.f32 %v2439_v58, %v2339_v40 }
 0x108   : > { %v2476_v20 = vpop.f32.mrf.mxu0  ;;  %v2127_v21 = vpop.eup %2126  ;;  %1891 = vst [vmem:[%s2451_s13 + $0x8] sm:$0xff] %v1739_v10   ;;  %v1734_v49 = vpack.c.bf16 %v1048_v19, %v1047_v17  ;;  %v1080_v26 = vsel %vm824_vm7, %v2369_v62, %v1570_v53  ;;  %v1575_v29 = vadd.f32 -1.0, %v2125_v16  ;;  %v2498_v62 = vadd.f32 %v2413_v35, %v2339_v40 }
 0x109   : > { %v2478_v54 = vpop.f32.mrf.mxu1  ;;  %v2129_v27 = vpop.eup %2128  ;;  %1907 = vst [vmem:[%s2451_s13 + $0x88] sm:$0xff] %v1819_v18   ;;  %v1814_v28 = vpack.c.bf16 %v1080_v26, %v1079_v22  ;;  %v1053_v39 = vsel %vm797_vm8, %v2372_v1, %v1543_v61  ;;  %v1541_v35 = vadd.f32 -1.0, %v2127_v21  ;;  %v873_v1 = vmul.f32 1.442695, %v2502_v34 }
 0x10a   : > { %v2490_v31 = vpop.f32.mrf.mxu0  ;;  %v2131_v32 = vpop.eup %2130  ;;  %1735 = vst [vmem:[%s2451_s13] sm:$0xff] %v1734_v49   ;;  %v941_v48 = vmul.f32 1.442695, %v2498_v62  ;;  %v1085_v55 = vsel %vm829_vm9, %v2375_v2, %v1575_v29  ;;  %v1573_v56 = vadd.f32 -1.0, %v2129_v27  ;;  %v937_v2 = vmul.f32 1.442695, %v2508_v38 }
 0x10b   : > { %v2492_v50 = vpop.f32.mrf.mxu1  ;;  %v2133_v36 = vpop.eup %2132  ;;  %1906 = vst [vmem:[%s2451_s13 + $0x80] sm:$0xff] %v1814_v28   ;;  %v1544_v37 = vadd.f32 -1.0, %v2131_v32  ;;  %v947_v15 = vmul.f32 1.442695, %v2540_v44  ;;  %v2558_v16 = vadd.f32 %v2339_v40, %v2461_v6  ;;  %vm801_vm0 = vcmp.gt.f32.partialorder %v2404_v25, 0.0 }
 0x10c   : > { %v1576_v45 = vadd.f32 -1.0, %v2133_v36  ;;  %v1996_v41 = vpop.f32.mrf.mxu0  ;;  %v2135_v52 = vpop.eup %2134  ;;  %2148 = vpow2.f32 %v941_v48  ;;  %vm833_vm1 = vcmp.gt.f32.partialorder %v2411_v33, 0.0  ;;  %vm799_vm2 = vcmp.gt.f32.partialorder %v2427_v46, 0.0 }
 0x10d   : > { %v2514_v51 = vpop.f32.mrf.mxu1  ;;  %v1054_v42 = vsel %vm798_vm10, %v2388_v13, %v1544_v37  ;;  %v2137_v59 = vpop.eup %2136  ;;  %v1542_v0 = vadd.f32 -1.0, %v2135_v52  ;;  %2150 = vpow2.f32 %v873_v1  ;;  %v1051_v13 = vsel %vm795_vm12, %v2382_v9, %v1541_v35 }
 0x10e   : > { %v1749_v60 = vpack.c.bf16 %v1054_v42, %v1053_v39  ;;  %v1086_v63 = vsel %vm830_vm11, %v2391_v14, %v1576_v45  ;;  %v1574_v3 = vadd.f32 -1.0, %v2137_v59  ;;  %v2536_v14 = vadd.f32 %v2437_v57, %v2339_v40  ;;  %v2542_v8 = vpop.f32.mrf.mxu0  ;;  %v2139_v11 = vpop.eup %2138 }
 0x10f   : > { %v1829_v43 = vpack.c.bf16 %v1086_v63, %v1085_v55  ;;  %v1052_v4 = vsel %vm796_vm14, %v2398_v23, %v1542_v0  ;;  %v2544_v10 = vpop.f32.mrf.mxu1  ;;  %v1083_v9 = vsel %vm827_vm13, %v2385_v12, %v1573_v56  ;;  %2152 = vpow2.f32 %v937_v2 }
 0x110   : > { %1893 = vst [vmem:[%s2451_s13 + $0x18] sm:$0xff] %v1749_v60   ;;  %v1744_v23 = vpack.c.bf16 %v1052_v4, %v1051_v13  ;;  %v1084_v57 = vsel %vm828_vm15, %v2401_v24, %v1574_v3  ;;  %v883_v58 = vmul.f32 1.442695, %v2536_v14  ;;  %v2141_v17 = vpop.eup %2140  ;;  %v2563_v12 = vadd.f32 %v2339_v40, %v2463_v7  ;;  %v2569_v18 = vpop.f32.mrf.mxu0 }
 0x111   : > { %1909 = vst [vmem:[%s2451_s13 + $0x98] sm:$0xff] %v1829_v43   ;;  %v1824_v53 = vpack.c.bf16 %v1084_v57, %v1083_v9  ;;  %v2567_v24 = vadd.f32 %v2476_v20, %v2339_v40  ;;  %v2571_v19 = vpop.f32.mrf.mxu1  ;;  %v879_v6 = vmul.f32 1.442695, %v2558_v16  ;;  %v2143_v21 = vpop.eup %2142  ;;  %v1547_v22 = vadd.f32 -1.0, %v2139_v11 }
 0x112   : > { %1892 = vst [vmem:[%s2451_s13 + $0x10] sm:$0xff] %v1744_v23   ;;  %2154 = vpow2.f32 %v883_v58  ;;  %vm802_vm3 = vcmp.gt.f32.partialorder %v2459_v5, 0.0  ;;  %vm834_vm4 = vcmp.gt.f32.partialorder %v2498_v62, 0.0  ;;  %v943_v7 = vmul.f32 1.442695, %v2563_v12  ;;  %v2145_v20 = vpop.eup %2144  ;;  %v603_v30 = vpop.f32.mrf.mxu0 }
 0x113   : > { %1908 = vst [vmem:[%s2451_s13 + $0x90] sm:$0xff] %v1824_v53   ;;  %2156 = vpow2.f32 %v947_v15  ;;  %vm831_vm5 = vcmp.gt.f32.partialorder %v2430_v47, 0.0  ;;  %vm800_vm6 = vcmp.gt.f32.partialorder %v2502_v34, 0.0  ;;  %v885_v49 = vmul.f32 1.442695, %v2567_v24  ;;  %v2147_v61 = vpop.eup %2146  ;;  %v2599_v32 = vpop.f32.mrf.mxu1 }
 0x114   : > { %2158 = vpow2.f32 %v879_v6  ;;  %v2585_v26 = vadd.f32 %v2478_v54, %v2339_v40  ;;  %vm832_vm7 = vcmp.gt.f32.partialorder %v2508_v38, 0.0  ;;  %v2590_v27 = vadd.f32 %v2339_v40, %v2490_v31  ;;  %v2000_v1 = vpop.f32.mrf.mxu0 }
 0x115   : > { %2160 = vpow2.f32 %v943_v7  ;;  %v2594_v28 = vadd.f32 %v2339_v40, %v2492_v50  ;;  %v2597_v29 = vadd.f32 %v1996_v41, %v2339_v40  ;;  %v1579_v54 = vadd.f32 -1.0, %v2141_v17  ;;  %v2032_v59 = vpop.f32.mrf.mxu1 }
 0x116   : > { %v1548_v36 = vadd.f32 -1.0, %v2147_v61  ;;  %2162 = vpow2.f32 %v885_v49  ;;  %v949_v37 = vmul.f32 1.442695, %v2585_v26  ;;  %v1057_v31 = vsel %vm801_vm0, %v2404_v25, %v1547_v22  ;;  %v616_v11 = vpop.f32.mrf.mxu0 }
 0x117   : > { %v1545_v39 = vadd.f32 -1.0, %v2143_v21  ;;  %v881_v35 = vmul.f32 1.442695, %v2590_v27  ;;  %v945_v50 = vmul.f32 1.442695, %v2594_v28  ;;  %v1577_v48 = vadd.f32 -1.0, %v2145_v20  ;;  %v2641_v9 = vpop.f32.mrf.mxu1 }
 0x118   : > { %v1058_v41 = vsel %vm802_vm3, %v2459_v5, %v1548_v36  ;;  %2164 = vpow2.f32 %v949_v37  ;;  %v891_v52 = vmul.f32 1.442695, %v2597_v29  ;;  %v2613_v25 = vadd.f32 %v2514_v51, %v2339_v40  ;;  %v2001_v6 = vpop.f32.mrf.mxu0 }
 0x119   : > { %v2149_v45 = vpop.eup %2148  ;;  %v1759_v56 = vpack.c.bf16 %v1058_v41, %v1057_v31  ;;  %2166 = vpow2.f32 %v881_v35  ;;  %v2617_v63 = vadd.f32 %v2339_v40, %v2542_v8  ;;  %v2621_v5 = vadd.f32 %v2339_v40, %v2544_v10  ;;  %v2033_v21 = vpop.f32.mrf.mxu1 }
 0x11a   : > { %v2151_v55 = vpop.eup %2150  ;;  %v1580_v42 = vadd.f32 -1.0, %v2149_v45  ;;  %2168 = vpow2.f32 %v945_v50  ;;  %v1089_v43 = vsel %vm833_vm1, %v2411_v33, %v1579_v54  ;;  %v955_v3 = vmul.f32 1.442695, %v2613_v25  ;;  %v619_v50 = vpop.f32.mrf.mxu0 }
 0x11b   : > { %v1546_v60 = vadd.f32 -1.0, %v2151_v55  ;;  %1895 = vst [vmem:[%s2451_s13 + $0x28] sm:$0xff] %v1759_v56   ;;  %2170 = vpow2.f32 %v891_v52  ;;  %v1055_v2 = vsel %vm799_vm2, %v2427_v46, %v1545_v39  ;;  %v1087_v8 = vsel %vm831_vm5, %v2430_v47, %v1577_v48  ;;  %v2686_v45 = vpop.f32.mrf.mxu1 }
 0x11c   : > { %v2153_v0 = vpop.eup %2152  ;;  %v1090_v51 = vsel %vm834_vm4, %v2498_v62, %v1580_v42  ;;  %2172 = vpow2.f32 %v955_v3  ;;  %v887_v62 = vmul.f32 1.442695, %v2617_v63  ;;  %v2650_v57 = vadd.f32 %v2569_v18, %v2339_v40 }
 0x11d   : > { %v1839_v13 = vpack.c.bf16 %v1090_v51, %v1089_v43  ;;  %v1056_v4 = vsel %vm800_vm6, %v2502_v34, %v1546_v60  ;;  %v1578_v33 = vadd.f32 -1.0, %v2153_v0  ;;  %v951_v34 = vmul.f32 1.442695, %v2621_v5 }
 0x11e   : > { %v1754_v10 = vpack.c.bf16 %v1056_v4, %v1055_v2  ;;  %v2654_v47 = vadd.f32 %v2571_v19, %v2339_v40  ;;  %vm805_vm8 = vcmp.gt.f32.partialorder %v2536_v14, 0.0  ;;  %vm837_vm9 = vcmp.gt.f32.partialorder %v2540_v44, 0.0  ;;  %v2004_v2 = vpop.f32.mrf.mxu0 }
 0x11f   : > { %v2155_v23 = vpop.eup %2154  ;;  %1911 = vst [vmem:[%s2451_s13 + $0xa8] sm:$0xff] %v1839_v13   ;;  %v1088_v46 = vsel %vm832_vm7, %v2508_v38, %v1578_v33  ;;  %v2660_v15 = vadd.f32 %v2339_v40, %v603_v30  ;;  %vm803_vm10 = vcmp.gt.f32.partialorder %v2558_v16, 0.0  ;;  %vm835_vm11 = vcmp.gt.f32.partialorder %v2563_v12, 0.0  ;;  %v2036_v13 = vpop.f32.mrf.mxu1 }
 0x120   : > { %v2157_v53 = vpop.eup %2156  ;;  %1894 = vst [vmem:[%s2451_s13 + $0x20] sm:$0xff] %v1754_v10   ;;  %v1834_v58 = vpack.c.bf16 %v1088_v46, %v1087_v8  ;;  %2174 = vpow2.f32 %v887_v62  ;;  %v893_v38 = vmul.f32 1.442695, %v2650_v57  ;;  %v1551_v18 = vadd.f32 -1.0, %v2155_v23 }
 0x121   : > { %v2159_v17 = vpop.eup %2158  ;;  %vm806_vm12 = vcmp.gt.f32.partialorder %v2567_v24, 0.0  ;;  %2176 = vpow2.f32 %v951_v34  ;;  %v957_v19 = vmul.f32 1.442695, %v2654_v47  ;;  %v1583_v7 = vadd.f32 -1.0, %v2157_v53  ;;  %v632_v34 = vpop.f32.mrf.mxu0 }
 0x122   : > { %1910 = vst [vmem:[%s2451_s13 + $0xa0] sm:$0xff] %v1834_v58   ;;  %v2161_v22 = vpop.eup %2160  ;;  %vm838_vm13 = vcmp.gt.f32.partialorder %v2585_v26, 0.0  ;;  %2178 = vpow2.f32 %v893_v38  ;;  %v889_v20 = vmul.f32 1.442695, %v2660_v15  ;;  %vm804_vm14 = vcmp.gt.f32.partialorder %v2590_v27, 0.0  ;;  %v760_v53 = vpop.f32.mrf.mxu1 }
 0x123   : > { %v2163_v49 = vpop.eup %2162  ;;  %2180 = vpow2.f32 %v957_v19  ;;  %v2673_v61 = vadd.f32 %v2339_v40, %v2599_v32  ;;  %v2676_v30 = vadd.f32 %v2000_v1, %v2339_v40  ;;  %v1549_v54 = vadd.f32 -1.0, %v2159_v17 }
 0x124   : > { %v1552_v36 = vadd.f32 -1.0, %v2163_v49  ;;  %2182 = vpow2.f32 %v889_v20  ;;  %v2679_v37 = vadd.f32 %v2032_v59, %v2339_v40  ;;  %v1061_v39 = vsel %vm805_vm8, %v2536_v14, %v1551_v18 }
 0x125   : > { %v2165_v31 = vpop.eup %2164  ;;  %v1581_v35 = vadd.f32 -1.0, %v2161_v22  ;;  %vm836_vm15 = vcmp.gt.f32.partialorder %v2594_v28, 0.0  ;;  %v953_v32 = vmul.f32 1.442695, %v2673_v61  ;;  %v1093_v41 = vsel %vm837_vm9, %v2540_v44, %v1583_v7 }
 0x126   : > { %v2167_v48 = vpop.eup %2166  ;;  %v1062_v52 = vsel %vm806_vm12, %v2567_v24, %v1552_v36  ;;  %v1584_v55 = vadd.f32 -1.0, %v2165_v31  ;;  %v899_v14 = vmul.f32 1.442695, %v2676_v30  ;;  %v963_v59 = vmul.f32 1.442695, %v2679_v37  ;;  %v2037_v31 = vpop.f32.mrf.mxu1 }
 0x127   : > { %v2169_v56 = vpop.eup %2168  ;;  %v1769_v42 = vpack.c.bf16 %v1062_v52, %v1061_v39  ;;  %v1550_v1 = vadd.f32 -1.0, %v2167_v48  ;;  %2184 = vpow2.f32 %v953_v32  ;;  %v1059_v0 = vsel %vm803_vm10, %v2558_v16, %v1549_v54 }
 0x128   : > { %v2171_v60 = vpop.eup %2170  ;;  %v1094_v44 = vsel %vm838_vm13, %v2585_v26, %v1584_v55  ;;  %v1582_v24 = vadd.f32 -1.0, %v2169_v56  ;;  %v2703_v43 = vadd.f32 %v2339_v40, %v616_v11  ;;  %v1091_v51 = vsel %vm835_vm11, %v2563_v12, %v1581_v35 }
 0x129   : > { %1897 = vst [vmem:[%s2451_s13 + $0x38] sm:$0xff] %v1769_v42   ;;  %v1849_v3 = vpack.c.bf16 %v1094_v44, %v1093_v41  ;;  %v1060_v16 = vsel %vm804_vm14, %v2590_v27, %v1550_v1  ;;  %2186 = vpow2.f32 %v899_v14  ;;  %v2173_v4 = vpop.eup %2172  ;;  %v1555_v8 = vadd.f32 -1.0, %v2171_v60 }
 0x12a   : > { %v1764_v26 = vpack.c.bf16 %v1060_v16, %v1059_v0  ;;  %v1092_v33 = vsel %vm836_vm15, %v2594_v28, %v1582_v24  ;;  %v895_v12 = vmul.f32 1.442695, %v2703_v43  ;;  %v1587_v62 = vadd.f32 -1.0, %v2173_v4 }
 0x12b   : > { %1913 = vst [vmem:[%s2451_s13 + $0xb8] sm:$0xff] %v1849_v3   ;;  %v1844_v10 = vpack.c.bf16 %v1092_v33, %v1091_v51  ;;  %2188 = vpow2.f32 %v963_v59  ;;  %v2719_v27 = vadd.f32 %v2339_v40, %v2641_v9  ;;  %vm809_vm0 = vcmp.gt.f32.partialorder %v2597_v29, 0.0  ;;  %v763_v59 = vpop.f32.mrf.mxu1 }
 0x12c   : > { %1896 = vst [vmem:[%s2451_s13 + $0x30] sm:$0xff] %v1764_v26   ;;  %v2724_v11 = vadd.f32 %v2001_v6, %v2339_v40  ;;  %v2727_v23 = vadd.f32 %v2033_v21, %v2339_v40  ;;  %v2730_v28 = vadd.f32 %v2339_v40, %v619_v50  ;;  %vm841_vm1 = vcmp.gt.f32.partialorder %v2613_v25, 0.0 }
 0x12d   : > { %v2175_v46 = vpop.eup %2174  ;;  %1912 = vst [vmem:[%s2451_s13 + $0xb0] sm:$0xff] %v1844_v10   ;;  %vm807_vm2 = vcmp.gt.f32.partialorder %v2617_v63, 0.0  ;;  %vm810_vm3 = vcmp.gt.f32.partialorder %v2650_v57, 0.0  ;;  %v959_v9 = vmul.f32 1.442695, %v2719_v27  ;;  %vm842_vm4 = vcmp.gt.f32.partialorder %v2654_v47, 0.0  ;;  %v2040_v4 = vpop.f32.mrf.mxu1 }
 0x12e   : > { %v2177_v58 = vpop.eup %2176  ;;  %vm808_vm5 = vcmp.gt.f32.partialorder %v2660_v15, 0.0  ;;  %2190 = vpow2.f32 %v895_v12  ;;  %v901_v38 = vmul.f32 1.442695, %v2724_v11  ;;  %v1065_v18 = vsel %vm809_vm0, %v2597_v29, %v1555_v8 }
 0x12f   : > { %v2179_v17 = vpop.eup %2178  ;;  %v1097_v19 = vsel %vm841_vm1, %v2613_v25, %v1587_v62  ;;  %2192 = vpow2.f32 %v959_v9  ;;  %v965_v6 = vmul.f32 1.442695, %v2727_v23  ;;  %v1553_v22 = vadd.f32 -1.0, %v2175_v46  ;;  %v2005_v25 = vpop.f32.mrf.mxu0 }
 0x130   : > { %v2181_v21 = vpop.eup %2180  ;;  %v1556_v7 = vadd.f32 -1.0, %v2179_v17  ;;  %2194 = vpow2.f32 %v901_v38  ;;  %v897_v20 = vmul.f32 1.442695, %v2730_v28  ;;  %v2748_v36 = vadd.f32 %v2339_v40, %v2686_v45 }
 0x131   : > { %v2183_v49 = vpop.eup %2182  ;;  %v1588_v54 = vadd.f32 -1.0, %v2181_v21  ;;  %2196 = vpow2.f32 %v965_v6  ;;  %v2751_v29 = vadd.f32 %v2004_v2, %v2339_v40  ;;  %v2757_v32 = vadd.f32 %v2036_v13, %v2339_v40 }
 0x132   : > { %v1066_v39 = vsel %vm810_vm3, %v2650_v57, %v1556_v7  ;;  %v1554_v35 = vadd.f32 -1.0, %v2183_v49  ;;  %2198 = vpow2.f32 %v897_v20  ;;  %v1585_v50 = vadd.f32 -1.0, %v2177_v58 }
 0x133   : > { %v1779_v48 = vpack.c.bf16 %v1066_v39, %v1065_v18  ;;  %v1098_v45 = vsel %vm842_vm4, %v2654_v47, %v1588_v54  ;;  %v961_v41 = vmul.f32 1.442695, %v2748_v36  ;;  %v1063_v55 = vsel %vm807_vm2, %v2617_v63, %v1553_v22  ;;  %v635_v47 = vpop.f32.mrf.mxu0  ;;  %v776_v18 = vpop.f32.mrf.mxu1 }
 0x134   : > { %v2185_v52 = vpop.eup %2184  ;;  %v1859_v57 = vpack.c.bf16 %v1098_v45, %v1097_v19  ;;  %v1064_v14 = vsel %vm808_vm5, %v2660_v15, %v1554_v35  ;;  %v907_v1 = vmul.f32 1.442695, %v2751_v29  ;;  %vm839_vm6 = vcmp.gt.f32.partialorder %v2621_v5, 0.0 }
 0x135   : > { %1899 = vst [vmem:[%s2451_s13 + $0x48] sm:$0xff] %v1779_v48   ;;  %v1774_v56 = vpack.c.bf16 %v1064_v14, %v1063_v55  ;;  %v1586_v42 = vadd.f32 -1.0, %v2185_v52  ;;  %2200 = vpow2.f32 %v961_v41  ;;  %vm840_vm7 = vcmp.gt.f32.partialorder %v2673_v61, 0.0  ;;  %v2008_v13 = vpop.f32.mrf.mxu0 }
 0x136   : > { %v2187_v60 = vpop.eup %2186  ;;  %1915 = vst [vmem:[%s2451_s13 + $0xc8] sm:$0xff] %v1859_v57   ;;  %v971_v63 = vmul.f32 1.442695, %v2757_v32  ;;  %v2776_v0 = vadd.f32 %v2339_v40, %v632_v34  ;;  %v1095_v15 = vsel %vm839_vm6, %v2621_v5, %v1585_v50  ;;  %v2782_v24 = vadd.f32 %v2339_v40, %v760_v53 }
 0x137   : > { %1898 = vst [vmem:[%s2451_s13 + $0x40] sm:$0xff] %v1774_v56   ;;  %v1096_v44 = vsel %vm840_vm7, %v2673_v61, %v1586_v42  ;;  %v2785_v51 = vadd.f32 %v2005_v25, %v2339_v40  ;;  %vm813_vm8 = vcmp.gt.f32.partialorder %v2676_v30, 0.0  ;;  %vm845_vm9 = vcmp.gt.f32.partialorder %v2679_v37, 0.0  ;;  %v648_v17 = vpop.f32.mrf.mxu0 }
 0x138   : > { %v2189_v3 = vpop.eup %2188  ;;  %v1854_v16 = vpack.c.bf16 %v1096_v44, %v1095_v15  ;;  %v1559_v2 = vadd.f32 -1.0, %v2187_v60  ;;  %vm811_vm10 = vcmp.gt.f32.partialorder %v2703_v43, 0.0  ;;  %2202 = vpow2.f32 %v907_v1 }
 0x139   : > { %v903_v5 = vmul.f32 1.442695, %v2776_v0  ;;  %v967_v61 = vmul.f32 1.442695, %v2782_v24  ;;  %vm814_vm11 = vcmp.gt.f32.partialorder %v2724_v11, 0.0  ;;  %2204 = vpow2.f32 %v971_v63  ;;  %v2009_v48 = vpop.f32.mrf.mxu0 }
 0x13a   : > { %1914 = vst [vmem:[%s2451_s13 + $0xc0] sm:$0xff] %v1854_v16   ;;  %v909_v26 = vmul.f32 1.442695, %v2785_v51  ;;  %v2796_v33 = vadd.f32 %v2037_v31, %v2339_v40  ;;  %v1591_v12 = vadd.f32 -1.0, %v2189_v3  ;;  %v2799_v10 = vadd.f32 %v2339_v40, %v635_v47 }
 0x13b   : > { %v2191_v8 = vpop.eup %2190  ;;  %2206 = vpow2.f32 %v903_v5  ;;  %v2802_v62 = vadd.f32 %v2339_v40, %v763_v59  ;;  %vm846_vm12 = vcmp.gt.f32.partialorder %v2727_v23, 0.0  ;;  %v2807_v34 = vadd.f32 %v2008_v13, %v2339_v40  ;;  %v651_v59 = vpop.f32.mrf.mxu0 }
 0x13c   : > { %v2193_v46 = vpop.eup %2192  ;;  %2208 = vpow2.f32 %v967_v61  ;;  %v973_v9 = vmul.f32 1.442695, %v2796_v33  ;;  %v1069_v58 = vsel %vm813_vm8, %v2676_v30, %v1559_v2  ;;  %vm812_vm13 = vcmp.gt.f32.partialorder %v2730_v28, 0.0 }
 0x13d   : > { %v2195_v53 = vpop.eup %2194  ;;  %2210 = vpow2.f32 %v909_v26  ;;  %v905_v38 = vmul.f32 1.442695, %v2799_v10  ;;  %v1557_v6 = vadd.f32 -1.0, %v2191_v8  ;;  %v969_v22 = vmul.f32 1.442695, %v2802_v62 }
 0x13e   : > { %v2197_v19 = vpop.eup %2196  ;;  %v1560_v21 = vadd.f32 -1.0, %v2195_v53  ;;  %2212 = vpow2.f32 %v973_v9  ;;  %v1101_v20 = vsel %vm845_vm9, %v2679_v37, %v1591_v12  ;;  %v1589_v49 = vadd.f32 -1.0, %v2193_v46 }
 0x13f   : > { %v2199_v7 = vpop.eup %2198  ;;  %v1592_v30 = vadd.f32 -1.0, %v2197_v19  ;;  %2214 = vpow2.f32 %v905_v38  ;;  %v915_v31 = vmul.f32 1.442695, %v2807_v34  ;;  %v2826_v37 = vadd.f32 %v2040_v4, %v2339_v40 }
 0x140   : > { %v1070_v54 = vsel %vm814_vm11, %v2724_v11, %v1560_v21  ;;  %v1558_v25 = vadd.f32 -1.0, %v2199_v7  ;;  %2216 = vpow2.f32 %v969_v22  ;;  %v2829_v50 = vadd.f32 %v2339_v40, %v648_v17  ;;  %v2041_v11 = vpop.f32.mrf.mxu1 }
 0x141   : > { %v1789_v39 = vpack.c.bf16 %v1070_v54, %v1069_v58  ;;  %v1102_v35 = vsel %vm846_vm12, %v2727_v23, %v1592_v30  ;;  %v1067_v41 = vsel %vm811_vm10, %v2703_v43, %v1557_v6  ;;  %v2838_v55 = vadd.f32 %v2339_v40, %v776_v18 }
 0x142   : > { %v2201_v45 = vpop.eup %2200  ;;  %v1869_v52 = vpack.c.bf16 %v1102_v35, %v1101_v20  ;;  %v1068_v23 = vsel %vm812_vm13, %v2730_v28, %v1558_v25  ;;  %vm843_vm14 = vcmp.gt.f32.partialorder %v2719_v27, 0.0  ;;  %v979_v56 = vmul.f32 1.442695, %v2826_v37  ;;  %v779_v60 = vpop.f32.mrf.mxu1 }
 0x143   : > { %1901 = vst [vmem:[%s2451_s13 + $0x58] sm:$0xff] %v1789_v39   ;;  %v1784_v57 = vpack.c.bf16 %v1068_v23, %v1067_v41  ;;  %v1590_v14 = vadd.f32 -1.0, %v2201_v45  ;;  %v1099_v42 = vsel %vm843_vm14, %v2719_v27, %v1589_v49  ;;  %vm844_vm15 = vcmp.gt.f32.partialorder %v2748_v36, 0.0 }
 0x144   : > { %1917 = vst [vmem:[%s2451_s13 + $0xd8] sm:$0xff] %v1869_v52   ;;  %v911_v43 = vmul.f32 1.442695, %v2829_v50  ;;  %2218 = vpow2.f32 %v915_v31  ;;  %v975_v1 = vmul.f32 1.442695, %v2838_v55  ;;  %v2851_v47 = vadd.f32 %v2009_v48, %v2339_v40 }
 0x145   : > { %1900 = vst [vmem:[%s2451_s13 + $0x50] sm:$0xff] %v1784_v57   ;;  %v1100_v28 = vsel %vm844_vm15, %v2748_v36, %v1590_v14  ;;  %v2203_v63 = vpop.eup %2202  ;;  %vm817_vm0 = vcmp.gt.f32.partialorder %v2751_v29, 0.0  ;;  %2220 = vpow2.f32 %v979_v56  ;;  %vm849_vm1 = vcmp.gt.f32.partialorder %v2757_v32, 0.0 }
 0x146   : > { %v1864_v15 = vpack.c.bf16 %v1100_v28, %v1099_v42  ;;  %v2205_v27 = vpop.eup %2204  ;;  %2222 = vpow2.f32 %v911_v43  ;;  %v917_v36 = vmul.f32 1.442695, %v2851_v47  ;;  %v2857_v44 = vadd.f32 %v2041_v11, %v2339_v40 }
 0x147   : > { %vm815_vm2 = vcmp.gt.f32.partialorder %v2776_v0, 0.0  ;;  %2224 = vpow2.f32 %v975_v1  ;;  %v2862_v16 = vadd.f32 %v2339_v40, %v651_v59  ;;  %v2865_v2 = vadd.f32 %v2339_v40, %v779_v60 }
 0x148   : > { %v2207_v3 = vpop.eup %2206  ;;  %1916 = vst [vmem:[%s2451_s13 + $0xd0] sm:$0xff] %v1864_v15   ;;  %v1563_v61 = vadd.f32 -1.0, %v2203_v63  ;;  %vm847_vm3 = vcmp.gt.f32.partialorder %v2782_v24, 0.0  ;;  %2226 = vpow2.f32 %v917_v36  ;;  %v981_v13 = vmul.f32 1.442695, %v2857_v44 }
 0x149   : > { %v2209_v5 = vpop.eup %2208  ;;  %v1595_v26 = vadd.f32 -1.0, %v2205_v27  ;;  %vm818_vm4 = vcmp.gt.f32.partialorder %v2785_v51, 0.0  ;;  %vm850_vm5 = vcmp.gt.f32.partialorder %v2796_v33, 0.0  ;;  %v913_v8 = vmul.f32 1.442695, %v2862_v16 }
 0x14a   : > { %v2211_v4 = vpop.eup %2210  ;;  %v1561_v46 = vadd.f32 -1.0, %v2207_v3  ;;  %2228 = vpow2.f32 %v981_v13  ;;  %v977_v40 = vmul.f32 1.442695, %v2865_v2  ;;  %v1593_v58 = vadd.f32 -1.0, %v2209_v5 }
 0x14b   : > { %v2213_v12 = vpop.eup %2212  ;;  %v1564_v9 = vadd.f32 -1.0, %v2211_v4  ;;  %vm816_vm6 = vcmp.gt.f32.partialorder %v2799_v10, 0.0  ;;  %2230 = vpow2.f32 %v913_v8  ;;  %v1073_v18 = vsel %vm817_vm0, %v2751_v29, %v1563_v61 }
 0x14c   : > { %v2215_v53 = vpop.eup %2214  ;;  %v1596_v38 = vadd.f32 -1.0, %v2213_v12  ;;  %2232 = vpow2.f32 %v977_v40  ;;  %v1105_v21 = vsel %vm849_vm1, %v2757_v32, %v1595_v26  ;;  %v1071_v29 = vsel %vm815_vm2, %v2776_v0, %v1561_v46 }
 0x14d   : > { %v2217_v17 = vpop.eup %2216  ;;  %v1074_v19 = vsel %vm818_vm4, %v2785_v51, %v1564_v9  ;;  %v1562_v6 = vadd.f32 -1.0, %v2215_v53  ;;  %vm848_vm7 = vcmp.gt.f32.partialorder %v2802_v62, 0.0  ;;  %v1103_v32 = vsel %vm847_vm3, %v2782_v24, %v1593_v58 }
 0x14e   : > { %v1799_v22 = vpack.c.bf16 %v1074_v19, %v1073_v18  ;;  %v1106_v7 = vsel %vm850_vm5, %v2796_v33, %v1596_v38  ;;  %v1594_v20 = vadd.f32 -1.0, %v2217_v17  ;;  %vm821_vm8 = vcmp.gt.f32.partialorder %v2807_v34, 0.0 }
 0x14f   : > { %v1879_v49 = vpack.c.bf16 %v1106_v7, %v1105_v21  ;;  %v1072_v51 = vsel %vm816_vm6, %v2799_v10, %v1562_v6  ;;  %vm853_vm9 = vcmp.gt.f32.partialorder %v2826_v37, 0.0  ;;  %vm819_vm10 = vcmp.gt.f32.partialorder %v2829_v50, 0.0 }
 0x150   : > { %1903 = vst [vmem:[%s2451_s13 + $0x68] sm:$0xff] %v1799_v22   ;;  %v1794_v30 = vpack.c.bf16 %v1072_v51, %v1071_v29  ;;  %v1104_v54 = vsel %vm848_vm7, %v2802_v62, %v1594_v20  ;;  %vm822_vm11 = vcmp.gt.f32.partialorder %v2851_v47, 0.0  ;;  %vm851_vm12 = vcmp.gt.f32.partialorder %v2838_v55, 0.0 }
 0x151   : > { %1919 = vst [vmem:[%s2451_s13 + $0xe8] sm:$0xff] %v1879_v49   ;;  %v1874_v33 = vpack.c.bf16 %v1104_v54, %v1103_v32  ;;  %v2219_v25 = vpop.eup %2218  ;;  %vm854_vm13 = vcmp.gt.f32.partialorder %v2857_v44, 0.0  ;;  %vm820_vm14 = vcmp.gt.f32.partialorder %v2862_v16, 0.0  ;;  %vm852_vm15 = vcmp.gt.f32.partialorder %v2865_v2, 0.0 }
 0x152   : > { %1902 = vst [vmem:[%s2451_s13 + $0x60] sm:$0xff] %v1794_v30   ;;  %v2221_v31 = vpop.eup %2220  ;;  %v1567_v35 = vadd.f32 -1.0, %v2219_v25 }
 0x153   : > { %1918 = vst [vmem:[%s2451_s13 + $0xe0] sm:$0xff] %v1874_v33   ;;  %v2223_v0 = vpop.eup %2222  ;;  %v1599_v48 = vadd.f32 -1.0, %v2221_v31 }
 0x154   : > { %v2225_v39 = vpop.eup %2224  ;;  %v1565_v24 = vadd.f32 -1.0, %v2223_v0  ;;  %v1077_v41 = vsel %vm821_vm8, %v2807_v34, %v1567_v35 }
 0x155   : > { %v2227_v10 = vpop.eup %2226  ;;  %v1597_v52 = vadd.f32 -1.0, %v2225_v39  ;;  %v1109_v43 = vsel %vm853_vm9, %v2826_v37, %v1599_v48 }
 0x156   : > { %v1568_v11 = vadd.f32 -1.0, %v2227_v10  ;;  %v1075_v1 = vsel %vm819_vm10, %v2829_v50, %v1565_v24 }
 0x157   : > { %v2229_v45 = vpop.eup %2228  ;;  %v1107_v60 = vsel %vm851_vm12, %v2838_v55, %v1597_v52 }
 0x158   : > { %v2231_v62 = vpop.eup %2230  ;;  %v1078_v23 = vsel %vm822_vm11, %v2851_v47, %v1568_v11  ;;  %v1600_v57 = vadd.f32 -1.0, %v2229_v45 }
 0x159   : > { %v2233_v14 = vpop.eup %2232  ;;  %v1809_v56 = vpack.c.bf16 %v1078_v23, %v1077_v41  ;;  %v1566_v42 = vadd.f32 -1.0, %v2231_v62 }
 0x15a   : > { %v1110_v28 = vsel %vm854_vm13, %v2857_v44, %v1600_v57  ;;  %v1598_v34 = vadd.f32 -1.0, %v2233_v14 }
 0x15b   : > { %1905 = vst [vmem:[%s2451_s13 + $0x78] sm:$0xff] %v1809_v56   ;;  %v1889_v47 = vpack.c.bf16 %v1110_v28, %v1109_v43  ;;  %v1076_v59 = vsel %vm820_vm14, %v2862_v16, %v1566_v42 }
 0x15c   : > { %v1804_v63 = vpack.c.bf16 %v1076_v59, %v1075_v1  ;;  %v1108_v37 = vsel %vm852_vm15, %v2865_v2, %v1598_v34 }
 0x15d   : > { %1921 = vst [vmem:[%s2451_s13 + $0xf8] sm:$0xff] %v1889_v47   ;;  %v1884_v15 = vpack.c.bf16 %v1108_v37, %v1107_v60 }
 0x15e   : > { %1904 = vst [vmem:[%s2451_s13 + $0x70] sm:$0xff] %v1804_v63  }
 0x15f   : > { %1920 = vst [vmem:[%s2451_s13 + $0xf0] sm:$0xff] %v1884_v15  }
 0x160 PF: > { %s13_s12 = sadd.s32 1, %s2240_s12  }
 0x161   : > { %p10_p4 = scmp.ge.s32.totalorder %s13_s12, 23  }
 0x163   :  { %12 = sbr.rel (!%p10_p4) target bundleno = 1 (0x1), region = 62 }

// kernel: nvidia_forward.7
= control target key start
LH: loop header
LB: loop body
LE: loop exit
PB: predicated region body
PF: predicated region fallthrough
CT: control target
= control target key end

     0   :  { %s4271_s12 = smov 0   ;;  %s5483_s0 = inlined_call_operand.vmem [shape: bf16[2560,640], index: 0, kind: input, shape index: {}]   ;;  %s5484_s1 = inlined_call_operand.vmem [shape: bf16[640,128], index: 1, kind: input, shape index: {}]   ;;  %s5485_s2 = inlined_call_operand.vmem [shape: f32[1,128], index: 2, kind: input, shape index: {}]   ;;  %s5486_s3 = inlined_call_operand.vmem [shape: bf16[2560,128], index: 3, kind: output, shape index: {}]  }
   0x1 LB: > { %s3092_s13 = sadd.s32 4294967295, %s4248_s12   ;;  %p3096_p0 = scmp.ge.s32.totalorder %s4248_s12, 1  ;;  %s4248_s12 = sphi %s4271_s12, %s13_s12  }
   0x2   : > { %p139_p1 = scmp.lt.s32.totalorder %s4248_s12, 6 }
   0x4   : > { %p140_p2 = pnand %p3096_p0, %p139_p1 }
   0x6   : > { %143 = sbr.rel (%p140_p2) target bundleno = 612 (0x264), region = 32 }
   0xb   : > { %v3849_v0 = vld [vmem:[%s5484_s1 + $0x38] sm:$0xff]   ;;  %v4250_v1 = vmov 0   ;;  %s3097_s16 = sshll.u32 %s3092_s13, 6  ;;  %v3850_v2 = vld [vmem:[%s5484_s1 + $0x30] sm:$0xff]   ;;  %v3851_v3 = vld [vmem:[%s5484_s1 + $0x28] sm:$0xff]  }
   0xc   : > { %1529 = vmatprep.subr.bf16.mxu0 %v4250_v1  ;;  %3807 = vmatprep.subr.bf16.mxu1 %v4250_v1  ;;  %p165_p3 = scmp.lt.s32.totalorder %s3097_s16, 319  ;;  %v3852_v4 = vld [vmem:[%s5484_s1 + $0x20] sm:$0xff]   ;;  %v3853_v5 = vld [vmem:[%s5484_s1 + $0x18] sm:$0xff]   ;;  %v3854_v7 = vld [vmem:[%s5484_s1 + $0x10] sm:$0xff]  }
   0xd   : > { %1530 = vmatpush1.bf16.msra.mxu0 %v3849_v0  ;;  %3823 = vmatpush1.bf16.msra.mxu1 %v3849_v0  ;;  %v3855_v9 = vld [vmem:[%s5484_s1 + $0x8] sm:$0xff]   ;;  %v3856_v10 = vld [vmem:[%s5484_s1] sm:$0xff]   ;;  %v3857_v11 = vld [vmem:[%s5484_s1 + $0x78] sm:$0xff]  }
   0xe   : > { %1531 = vmatprep.subr.bf16.mxu0 %v4250_v1  ;;  %3808 = vmatprep.subr.bf16.mxu1 %v4250_v1  ;;  %s5534_s16 = smov (!%p165_p3, %s3097_s16), 319  ;;  %v3858_v12 = vld [vmem:[%s5484_s1 + $0x70] sm:$0xff]   ;;  %v3859_v13 = vld [vmem:[%s5484_s1 + $0x68] sm:$0xff]   ;;  %v3860_v14 = vld [vmem:[%s5484_s1 + $0x60] sm:$0xff]  }
   0xf   : > { %s3839_s23 = smul.u32 20, %s5534_s16  ;;  %v3861_v15 = vld [vmem:[%s5484_s1 + $0x58] sm:$0xff]   ;;  %v3862_v16 = vld [vmem:[%s5484_s1 + $0x50] sm:$0xff]   ;;  %v3863_v17 = vld [vmem:[%s5484_s1 + $0x48] sm:$0xff]  }
  0x10   : > { %v3864_v18 = vld [vmem:[%s5484_s1 + $0x40] sm:$0xff]   ;;  %v3871_v19 = vld [vmem:[%s5484_s1 + $0x138] sm:$0xff]   ;;  %v3896_v25 = vld [vmem:[%s5484_s1 + $0x130] sm:$0xff]  }
  0x11   : > { %1532 = vmatpush1.bf16.msra.mxu0 %v3850_v2  ;;  %3824 = vmatpush1.bf16.msra.mxu1 %v3850_v2  ;;  %s4308_s28 = scalar_lea.vmem %s5483_s0, %s3839_s23  ;;  %v3872_v22 = vld [vmem:[%s5484_s1 + $0xb8] sm:$0xff]   ;;  %v3873_v26 = vld [vmem:[%s5484_s1 + $0xb0] sm:$0xff]   ;;  %v3921_v27 = vld [vmem:[%s5484_s1 + $0x128] sm:$0xff]  }
  0x12   : > { %1533 = vmatprep.subr.bf16.mxu0 %v4250_v1  ;;  %3809 = vmatprep.subr.bf16.mxu1 %v4250_v1  ;;  %v3867_v6 = vld [vmem:[%s4308_s28 + $0x4] ss:$20 sps:$4 sm:$0xff]   ;;  %v3865_v20 = vld [vmem:[%s4308_s28] ss:$20 sps:$4 sm:$0xff]   ;;  %v3878_v28 = vld [vmem:[%s4308_s28 + $0x28] ss:$20 sps:$4 sm:$0xff]  }
  0x13   : > { %v3870_v8 = vld [vmem:[%s4308_s28 + $0x3c4] ss:$20 sps:$4 sm:$0xff]   ;;  %1561 = vmatprep.mubr.bf16.mxu0 %v3867_v6  ;;  %v3868_v21 = vld [vmem:[%s4308_s28 + $0x3c0] ss:$20 sps:$4 sm:$0xff]   ;;  %v3879_v29 = vld [vmem:[%s4308_s28 + $0x3e8] ss:$20 sps:$4 sm:$0xff]  }
  0x14   : > { %1753 = vmatprep.mubr.bf16.mxu1 %v3870_v8  ;;  %v3874_v23 = vld [vmem:[%s4308_s28 + $0x2c] ss:$20 sps:$4 sm:$0xff]   ;;  %v3882_v31 = vld [vmem:[%s4308_s28 + $0x54] ss:$20 sps:$4 sm:$0xff]   ;;  %v3886_v35 = vld [vmem:[%s4308_s28 + $0x50] ss:$20 sps:$4 sm:$0xff]  }
  0x15   : > { %1534 = vmatpush1.bf16.msra.mxu0 %v3851_v3  ;;  %3825 = vmatpush1.bf16.msra.mxu1 %v3851_v3  ;;  %v3876_v24 = vld [vmem:[%s4308_s28 + $0x3ec] ss:$20 sps:$4 sm:$0xff]   ;;  %v3884_v32 = vld [vmem:[%s4308_s28 + $0x414] ss:$20 sps:$4 sm:$0xff]   ;;  %v3887_v36 = vld [vmem:[%s4308_s28 + $0x410] ss:$20 sps:$4 sm:$0xff]  }
  0x16   : > { %1535 = vmatprep.subr.bf16.mxu0 %v4250_v1  ;;  %3810 = vmatprep.subr.bf16.mxu1 %v4250_v1  ;;  %v3880_v30 = vld [vmem:[%s5484_s1 + $0xa8] sm:$0xff]   ;;  %v3944_v33 = vld [vmem:[%s5484_s1 + $0x120] sm:$0xff]   ;;  %v3888_v37 = vld [vmem:[%s5484_s1 + $0x98] sm:$0xff]  }
  0x17   : > { %v3881_v34 = vld [vmem:[%s5484_s1 + $0xa0] sm:$0xff]   ;;  %v3890_v38 = vld [vmem:[%s4308_s28 + $0x7c] ss:$20 sps:$4 sm:$0xff]   ;;  %v3894_v43 = vld [vmem:[%s4308_s28 + $0x78] ss:$20 sps:$4 sm:$0xff]  }
  0x18   : > { %v3892_v39 = vld [vmem:[%s4308_s28 + $0x43c] ss:$20 sps:$4 sm:$0xff]   ;;  %v3895_v44 = vld [vmem:[%s4308_s28 + $0x438] ss:$20 sps:$4 sm:$0xff]   ;;  %v3898_v49 = vld [vmem:[%s5484_s1 + $0x80] sm:$0xff]  }
  0x19   : > { %1536 = vmatpush1.bf16.msra.mxu0 %v3852_v4  ;;  %3826 = vmatpush1.bf16.msra.mxu1 %v3852_v4  ;;  %v3963_v40 = vld [vmem:[%s5484_s1 + $0x118] sm:$0xff]   ;;  %v3889_v41 = vld [vmem:[%s5484_s1 + $0x90] sm:$0xff]   ;;  %v3897_v45 = vld [vmem:[%s5484_s1 + $0x88] sm:$0xff]  }
  0x1a   : > { %1537 = vmatprep.subr.bf16.mxu0 %v4250_v1  ;;  %3811 = vmatprep.subr.bf16.mxu1 %v4250_v1  ;;  %v3982_v42 = vld [vmem:[%s5484_s1 + $0x110] sm:$0xff]   ;;  %v3899_v46 = vld [vmem:[%s4308_s28 + $0xa4] ss:$20 sps:$4 sm:$0xff]   ;;  %v4001_v48 = vld [vmem:[%s5484_s1 + $0x108] sm:$0xff]  }
  0x1b   : > { %v3901_v47 = vld [vmem:[%s4308_s28 + $0x464] ss:$20 sps:$4 sm:$0xff]   ;;  %v3903_v50 = vld [vmem:[%s4308_s28 + $0xa0] ss:$20 sps:$4 sm:$0xff]   ;;  %v3911_v56 = vld [vmem:[%s4308_s28 + $0xc8] ss:$20 sps:$4 sm:$0xff]  }
  0x1c   : > { %v3904_v51 = vld [vmem:[%s4308_s28 + $0x460] ss:$20 sps:$4 sm:$0xff]   ;;  %v3905_v52 = vld [vmem:[%s5484_s1 + $0xf8] sm:$0xff]   ;;  %v3913_v58 = vld [vmem:[%s5484_s1 + $0xe8] sm:$0xff]  }
  0x1d   : > { %1538 = vmatpush1.bf16.msra.mxu0 %v3853_v5  ;;  %3827 = vmatpush1.bf16.msra.mxu1 %v3853_v5  ;;  %v3907_v53 = vld [vmem:[%s4308_s28 + $0xcc] ss:$20 sps:$4 sm:$0xff]   ;;  %v3906_v55 = vld [vmem:[%s5484_s1 + $0xf0] sm:$0xff]   ;;  %v3912_v57 = vld [vmem:[%s4308_s28 + $0x488] ss:$20 sps:$4 sm:$0xff]  }
  0x1e   : > { %1539 = vmatprep.subr.bf16.mxu0 %v4250_v1  ;;  %3812 = vmatprep.subr.bf16.mxu1 %v4250_v1  ;;  %v3909_v54 = vld [vmem:[%s4308_s28 + $0x48c] ss:$20 sps:$4 sm:$0xff]   ;;  %v3915_v59 = vld [vmem:[%s4308_s28 + $0xf4] ss:$20 sps:$4 sm:$0xff]   ;;  %v3919_v63 = vld [vmem:[%s4308_s28 + $0xf0] ss:$20 sps:$4 sm:$0xff]  }
  0x1f   : > { %v3917_v60 = vld [vmem:[%s4308_s28 + $0x4b4] ss:$20 sps:$4 sm:$0xff]   ;;  %v4020_v61 = vld [vmem:[%s5484_s1 + $0x100] sm:$0xff]   ;;  %v3922_v2 = vld [vmem:[%s5484_s1 + $0xd8] sm:$0xff]  }
  0x20   : > { %v3914_v62 = vld [vmem:[%s5484_s1 + $0xe0] sm:$0xff]   ;;  %v3924_v3 = vld [vmem:[%s4308_s28 + $0x11c] ss:$20 sps:$4 sm:$0xff]   ;;  %v3928_v6 = vld [vmem:[%s4308_s28 + $0x118] ss:$20 sps:$4 sm:$0xff]  }
  0x21   : > { %1540 = vmatpush1.bf16.msra.mxu0 %v3854_v7  ;;  %3828 = vmatpush1.bf16.msra.mxu1 %v3854_v7  ;;  %v3920_v0 = vld [vmem:[%s4308_s28 + $0x4b0] ss:$20 sps:$4 sm:$0xff]   ;;  %v3929_v7 = vld [vmem:[%s4308_s28 + $0x4d8] ss:$20 sps:$4 sm:$0xff]  }
  0x22   : > { %1541 = vmatprep.subr.bf16.mxu0 %v4250_v1  ;;  %3813 = vmatprep.subr.bf16.mxu1 %v4250_v1  ;;  %v3926_v4 = vld [vmem:[%s4308_s28 + $0x4dc] ss:$20 sps:$4 sm:$0xff]   ;;  %v3930_v8 = vld [vmem:[%s5484_s1 + $0xc8] sm:$0xff]  }
  0x23   : > { %v3923_v5 = vld [vmem:[%s5484_s1 + $0xd0] sm:$0xff]  }
  0x25   : > { %1542 = vmatpush1.bf16.msra.mxu0 %v3855_v9  ;;  %3829 = vmatpush1.bf16.msra.mxu1 %v3855_v9  ;;  %v3932_v9 = vld [vmem:[%s4308_s28 + $0x144] ss:$20 sps:$4 sm:$0xff]  }
  0x26   : > { %1543 = vmatprep.subr.bf16.mxu0 %v4250_v1  ;;  %3814 = vmatprep.subr.bf16.mxu1 %v4250_v1 }
  0x29   : > { %1544 = vmatpush1.bf16.msra.mxu0 %v3856_v10  ;;  %3830 = vmatpush1.bf16.msra.mxu1 %v3856_v10  ;;  %v3936_v10 = vld [vmem:[%s4308_s28 + $0xc] ss:$20 sps:$4 sm:$0xff]  }
  0x2a   : > { %1545 = vmatprep.subr.bf16.mxu0 %v4250_v1  ;;  %3815 = vmatprep.subr.bf16.mxu1 %v4250_v1 }
  0x2d   : > { %1546 = vmatpush2.bf16.msra.mxu0 %v3857_v11  ;;  %3831 = vmatpush2.bf16.msra.mxu1 %v3857_v11  ;;  %v3931_v11 = vld [vmem:[%s5484_s1 + $0xc0] sm:$0xff]  }
  0x2e   : > { %1547 = vmatprep.subr.bf16.mxu0 %v4250_v1  ;;  %3816 = vmatprep.subr.bf16.mxu1 %v4250_v1 }
  0x31   : > { %1548 = vmatpush2.bf16.msra.mxu0 %v3858_v12  ;;  %3832 = vmatpush2.bf16.msra.mxu1 %v3858_v12  ;;  %v3934_v12 = vld [vmem:[%s4308_s28 + $0x8] ss:$20 sps:$4 sm:$0xff]  }
  0x32   : > { %1549 = vmatprep.subr.bf16.mxu0 %v4250_v1  ;;  %3817 = vmatprep.subr.bf16.mxu1 %v4250_v1 }
  0x35   : > { %1550 = vmatpush2.bf16.msra.mxu0 %v3859_v13  ;;  %3833 = vmatpush2.bf16.msra.mxu1 %v3859_v13  ;;  %v3937_v13 = vld [vmem:[%s4308_s28 + $0x140] ss:$20 sps:$4 sm:$0xff]  }
  0x36   : > { %1551 = vmatprep.subr.bf16.mxu0 %v4250_v1  ;;  %3818 = vmatprep.subr.bf16.mxu1 %v4250_v1 }
  0x39   : > { %1552 = vmatpush2.bf16.msra.mxu0 %v3860_v14  ;;  %3834 = vmatpush2.bf16.msra.mxu1 %v3860_v14  ;;  %v3938_v14 = vld [vmem:[%s4308_s28 + $0x16c] ss:$20 sps:$4 sm:$0xff]  }
  0x3a   : > { %1553 = vmatprep.subr.bf16.mxu0 %v4250_v1  ;;  %3819 = vmatprep.subr.bf16.mxu1 %v4250_v1 }
  0x3d   : > { %1554 = vmatpush2.bf16.msra.mxu0 %v3861_v15  ;;  %3835 = vmatpush2.bf16.msra.mxu1 %v3861_v15  ;;  %v3940_v15 = vld [vmem:[%s4308_s28 + $0x34] ss:$20 sps:$4 sm:$0xff]  }
  0x3e   : > { %1555 = vmatprep.subr.bf16.mxu0 %v4250_v1  ;;  %3820 = vmatprep.subr.bf16.mxu1 %v4250_v1 }
  0x41   : > { %1556 = vmatpush2.bf16.msra.mxu0 %v3862_v16  ;;  %3836 = vmatpush2.bf16.msra.mxu1 %v3862_v16  ;;  %v3942_v16 = vld [vmem:[%s4308_s28 + $0x168] ss:$20 sps:$4 sm:$0xff]  }
  0x42   : > { %1557 = vmatprep.subr.bf16.mxu0 %v4250_v1  ;;  %3821 = vmatprep.subr.bf16.mxu1 %v4250_v1 }
  0x45   : > { %1558 = vmatpush2.bf16.msra.mxu0 %v3863_v17  ;;  %3837 = vmatpush2.bf16.msra.mxu1 %v3863_v17  ;;  %v3943_v17 = vld [vmem:[%s4308_s28 + $0x30] ss:$20 sps:$4 sm:$0xff]  }
  0x46   : > { %1559 = vmatprep.subr.bf16.mxu0 %v4250_v1  ;;  %3822 = vmatprep.subr.bf16.mxu1 %v4250_v1 }
  0x49   : > { %1560 = vmatpush2.bf16.msra.mxu0 %v3864_v18  ;;  %3838 = vmatpush2.bf16.msra.mxu1 %v3864_v18  ;;  %v3945_v18 = vld [vmem:[%s4308_s28 + $0x194] ss:$20 sps:$4 sm:$0xff]  }
  0x4a   : > { %1818 = vmatprep.subr.bf16.mxu1 %v4250_v1  ;;  %3727 = vmatprep.subr.bf16.mxu0 %v3871_v19 }
  0x4c   : > { %1562 = vmatmul.mubr.bf16.vlgmr.msra.gmra.mxu0 %v3865_v20  ;;  %1754 = vmatmul.mubr.bf16.vlgmr.msra.gmra.mxu1 %v3868_v21  ;;  %v3950_v20 = vld [vmem:[%s4308_s28 + $0x58] ss:$20 sps:$4 sm:$0xff]   ;;  %v3951_v21 = vld [vmem:[%s4308_s28 + $0x1bc] ss:$20 sps:$4 sm:$0xff]  }
  0x4d   : > { %1819 = vmatpush1.bf16.msra.mxu1 %v3872_v22  ;;  %3728 = vmatpush3.bf16.msra.mxu0 %v3871_v19  ;;  %v3949_v19 = vld [vmem:[%s4308_s28 + $0x190] ss:$20 sps:$4 sm:$0xff]  }
  0x4e   : > { %1820 = vmatprep.subr.bf16.mxu1 %v4250_v1  ;;  %1569 = vmatprep.mubr.bf16.mxu0 %v3874_v23  ;;  %v3953_v22 = vld [vmem:[%s4308_s28 + $0x84] ss:$20 sps:$4 sm:$0xff]  }
  0x4f   : > { %1761 = vmatprep.mubr.bf16.mxu1 %v3876_v24  ;;  %3729 = vmatprep.subr.bf16.mxu0 %v3896_v25  ;;  %v3955_v23 = vld [vmem:[%s4308_s28 + $0x1b8] ss:$20 sps:$4 sm:$0xff]   ;;  %v3956_v24 = vld [vmem:[%s4308_s28 + $0x80] ss:$20 sps:$4 sm:$0xff]  }
  0x51   : > { %1821 = vmatpush1.bf16.msra.mxu1 %v3873_v26  ;;  %3730 = vmatpush3.bf16.msra.mxu0 %v3896_v25  ;;  %v3957_v25 = vld [vmem:[%s4308_s28 + $0x1e4] ss:$20 sps:$4 sm:$0xff]   ;;  %v3959_v26 = vld [vmem:[%s4308_s28 + $0xac] ss:$20 sps:$4 sm:$0xff]  }
  0x52   : > { %1822 = vmatprep.subr.bf16.mxu1 %v4250_v1  ;;  %3731 = vmatprep.subr.bf16.mxu0 %v3921_v27 }
  0x54   : > { %1570 = vmatmul.mubr.bf16.gmra.mxu0 %v3878_v28  ;;  %1762 = vmatmul.mubr.bf16.gmra.mxu1 %v3879_v29  ;;  %v3962_v28 = vld [vmem:[%s4308_s28 + $0xa8] ss:$20 sps:$4 sm:$0xff]   ;;  %v3964_v29 = vld [vmem:[%s4308_s28 + $0x20c] ss:$20 sps:$4 sm:$0xff]  }
  0x55   : > { %1823 = vmatpush1.bf16.msra.mxu1 %v3880_v30  ;;  %1577 = vmatprep.mubr.bf16.mxu0 %v3882_v31  ;;  %v3966_v30 = vld [vmem:[%s4308_s28 + $0xd4] ss:$20 sps:$4 sm:$0xff]  }
  0x56   : > { %1824 = vmatprep.subr.bf16.mxu1 %v4250_v1  ;;  %1769 = vmatprep.mubr.bf16.mxu1 %v3884_v32  ;;  %v3968_v31 = vld [vmem:[%s4308_s28 + $0x208] ss:$20 sps:$4 sm:$0xff]   ;;  %v3969_v32 = vld [vmem:[%s4308_s28 + $0xd0] ss:$20 sps:$4 sm:$0xff]  }
  0x57   : > { %3732 = vmatpush3.bf16.msra.mxu0 %v3921_v27  ;;  %v3961_v27 = vld [vmem:[%s4308_s28 + $0x1e0] ss:$20 sps:$4 sm:$0xff]  }
  0x58   : > { %3733 = vmatprep.subr.bf16.mxu0 %v3944_v33 }
  0x59   : > { %1825 = vmatpush1.bf16.msra.mxu1 %v3881_v34  ;;  %v3972_v34 = vld [vmem:[%s4308_s28 + $0xfc] ss:$20 sps:$4 sm:$0xff]  }
  0x5a   : > { %1826 = vmatprep.subr.bf16.mxu1 %v4250_v1 }
  0x5b   : > { %3734 = vmatpush3.bf16.msra.mxu0 %v3944_v33  ;;  %v3970_v33 = vld [vmem:[%s4308_s28 + $0x234] ss:$20 sps:$4 sm:$0xff]  }
  0x5c   : > { %1578 = vmatmul.mubr.bf16.gmra.mxu0 %v3886_v35  ;;  %1770 = vmatmul.mubr.bf16.gmra.mxu1 %v3887_v36  ;;  %v3974_v35 = vld [vmem:[%s4308_s28 + $0x230] ss:$20 sps:$4 sm:$0xff]   ;;  %v3975_v36 = vld [vmem:[%s4308_s28 + $0xf8] ss:$20 sps:$4 sm:$0xff]  }
  0x5d   : > { %1827 = vmatpush1.bf16.msra.mxu1 %v3888_v37  ;;  %1585 = vmatprep.mubr.bf16.mxu0 %v3890_v38  ;;  %v3976_v37 = vld [vmem:[%s4308_s28 + $0x25c] ss:$20 sps:$4 sm:$0xff]   ;;  %v3978_v38 = vld [vmem:[%s4308_s28 + $0x124] ss:$20 sps:$4 sm:$0xff]  }
  0x5e   : > { %1828 = vmatprep.subr.bf16.mxu1 %v4250_v1  ;;  %1777 = vmatprep.mubr.bf16.mxu1 %v3892_v39  ;;  %v3980_v39 = vld [vmem:[%s4308_s28 + $0x258] ss:$20 sps:$4 sm:$0xff]  }
  0x5f   : > { %3735 = vmatprep.subr.bf16.mxu0 %v3963_v40 }
  0x60   : > { %3736 = vmatpush3.bf16.msra.mxu0 %v3963_v40  ;;  %v3981_v40 = vld [vmem:[%s4308_s28 + $0x120] ss:$20 sps:$4 sm:$0xff]  }
  0x61   : > { %1829 = vmatpush1.bf16.msra.mxu1 %v3889_v41  ;;  %3737 = vmatprep.subr.bf16.mxu0 %v3982_v42  ;;  %v3983_v41 = vld [vmem:[%s4308_s28 + $0x284] ss:$20 sps:$4 sm:$0xff]  }
  0x62   : > { %1830 = vmatprep.subr.bf16.mxu1 %v4250_v1 }
  0x64   : > { %1586 = vmatmul.mubr.bf16.gmra.mxu0 %v3894_v43  ;;  %1778 = vmatmul.mubr.bf16.gmra.mxu1 %v3895_v44  ;;  %v3987_v43 = vld [vmem:[%s4308_s28 + $0x280] ss:$20 sps:$4 sm:$0xff]   ;;  %v3988_v44 = vld [vmem:[%s4308_s28 + $0x148] ss:$20 sps:$4 sm:$0xff]  }
  0x65   : > { %1831 = vmatpush1.bf16.msra.mxu1 %v3897_v45  ;;  %1593 = vmatprep.mubr.bf16.mxu0 %v3899_v46  ;;  %v3989_v45 = vld [vmem:[%s4308_s28 + $0x2ac] ss:$20 sps:$4 sm:$0xff]   ;;  %v3991_v46 = vld [vmem:[%s4308_s28 + $0x174] ss:$20 sps:$4 sm:$0xff]  }
  0x66   : > { %1832 = vmatprep.subr.bf16.mxu1 %v4250_v1  ;;  %1785 = vmatprep.mubr.bf16.mxu1 %v3901_v47  ;;  %v3993_v47 = vld [vmem:[%s4308_s28 + $0x2a8] ss:$20 sps:$4 sm:$0xff]  }
  0x67   : > { %3738 = vmatpush3.bf16.msra.mxu0 %v3982_v42  ;;  %v3985_v42 = vld [vmem:[%s4308_s28 + $0x14c] ss:$20 sps:$4 sm:$0xff]  }
  0x68   : > { %3739 = vmatprep.subr.bf16.mxu0 %v4001_v48 }
  0x69   : > { %1833 = vmatpush1.bf16.msra.mxu1 %v3898_v49  ;;  %v3995_v49 = vld [vmem:[%s4308_s28 + $0x2d4] ss:$20 sps:$4 sm:$0xff]  }
  0x6a   : > { %1834 = vmatprep.subr.bf16.mxu1 %v4250_v1 }
  0x6b   : > { %3740 = vmatpush3.bf16.msra.mxu0 %v4001_v48  ;;  %v3994_v48 = vld [vmem:[%s4308_s28 + $0x170] ss:$20 sps:$4 sm:$0xff]  }
  0x6c   : > { %1594 = vmatmul.mubr.bf16.gmra.mxu0 %v3903_v50  ;;  %1786 = vmatmul.mubr.bf16.gmra.mxu1 %v3904_v51  ;;  %v3997_v50 = vld [vmem:[%s4308_s28 + $0x19c] ss:$20 sps:$4 sm:$0xff]  }
  0x6d   : > { %1835 = vmatpush2.bf16.msra.mxu1 %v3905_v52  ;;  %1601 = vmatprep.mubr.bf16.mxu0 %v3907_v53  ;;  %v3999_v51 = vld [vmem:[%s4308_s28 + $0x2d0] ss:$20 sps:$4 sm:$0xff]   ;;  %v4000_v52 = vld [vmem:[%s4308_s28 + $0x198] ss:$20 sps:$4 sm:$0xff]  }
  0x6e   : > { %1836 = vmatprep.subr.bf16.mxu1 %v4250_v1  ;;  %1793 = vmatprep.mubr.bf16.mxu1 %v3909_v54  ;;  %v4002_v53 = vld [vmem:[%s4308_s28 + $0x2fc] ss:$20 sps:$4 sm:$0xff]   ;;  %v4004_v54 = vld [vmem:[%s4308_s28 + $0x1c4] ss:$20 sps:$4 sm:$0xff]  }
  0x6f   : > { %3741 = vmatprep.subr.bf16.mxu0 %v4020_v61 }
  0x70   : > { %3742 = vmatpush3.bf16.msra.mxu0 %v4020_v61  ;;  %v4014_v61 = vld [vmem:[%s4308_s28 + $0x34c] ss:$20 sps:$4 sm:$0xff]  }
  0x71   : > { %1837 = vmatpush2.bf16.msra.mxu1 %v3906_v55  ;;  %v4006_v55 = vld [vmem:[%s4308_s28 + $0x2f8] ss:$20 sps:$4 sm:$0xff]  }
  0x72   : > { %1838 = vmatprep.subr.bf16.mxu1 %v4250_v1 }
  0x74   : > { %1602 = vmatmul.mubr.bf16.gmra.mxu0 %v3911_v56  ;;  %1794 = vmatmul.mubr.bf16.gmra.mxu1 %v3912_v57  ;;  %v4007_v56 = vld [vmem:[%s4308_s28 + $0x1c0] ss:$20 sps:$4 sm:$0xff]   ;;  %v4008_v57 = vld [vmem:[%s4308_s28 + $0x324] ss:$20 sps:$4 sm:$0xff]  }
  0x75   : > { %1839 = vmatpush2.bf16.msra.mxu1 %v3913_v58  ;;  %1609 = vmatprep.mubr.bf16.mxu0 %v3915_v59  ;;  %v4010_v58 = vld [vmem:[%s4308_s28 + $0x1ec] ss:$20 sps:$4 sm:$0xff]  }
  0x76   : > { %1840 = vmatprep.subr.bf16.mxu1 %v4250_v1  ;;  %1801 = vmatprep.mubr.bf16.mxu1 %v3917_v60  ;;  %v4012_v59 = vld [vmem:[%s4308_s28 + $0x320] ss:$20 sps:$4 sm:$0xff]   ;;  %v4013_v60 = vld [vmem:[%s4308_s28 + $0x1e8] ss:$20 sps:$4 sm:$0xff]  }
  0x79   : > { %1841 = vmatpush2.bf16.msra.mxu1 %v3914_v62  ;;  %v4016_v62 = vld [vmem:[%s4308_s28 + $0x214] ss:$20 sps:$4 sm:$0xff]  }
  0x7a   : > { %1842 = vmatprep.subr.bf16.mxu1 %v4250_v1 }
  0x7c   : > { %1610 = vmatmul.mubr.bf16.gmra.mxu0 %v3919_v63  ;;  %1802 = vmatmul.mubr.bf16.gmra.mxu1 %v3920_v0  ;;  %v4018_v63 = vld [vmem:[%s4308_s28 + $0x348] ss:$20 sps:$4 sm:$0xff]   ;;  %v4019_v0 = vld [vmem:[%s4308_s28 + $0x210] ss:$20 sps:$4 sm:$0xff]  }
  0x7d   : > { %1843 = vmatpush2.bf16.msra.mxu1 %v3922_v2  ;;  %1617 = vmatprep.mubr.bf16.mxu0 %v3924_v3  ;;  %v4021_v2 = vld [vmem:[%s4308_s28 + $0x374] ss:$20 sps:$4 sm:$0xff]   ;;  %v4023_v3 = vld [vmem:[%s4308_s28 + $0x23c] ss:$20 sps:$4 sm:$0xff]  }
  0x7e   : > { %1844 = vmatprep.subr.bf16.mxu1 %v4250_v1  ;;  %1809 = vmatprep.mubr.bf16.mxu1 %v3926_v4  ;;  %v4025_v4 = vld [vmem:[%s4308_s28 + $0x370] ss:$20 sps:$4 sm:$0xff]  }
  0x81   : > { %1845 = vmatpush2.bf16.msra.mxu1 %v3923_v5  ;;  %v4026_v5 = vld [vmem:[%s4308_s28 + $0x238] ss:$20 sps:$4 sm:$0xff]  }
  0x82   : > { %1846 = vmatprep.subr.bf16.mxu1 %v4250_v1 }
  0x84   : > { %1618 = vmatmul.mubr.bf16.gmra.mxu0 %v3928_v6  ;;  %1810 = vmatmul.mubr.bf16.gmra.mxu1 %v3929_v7  ;;  %v4027_v6 = vld [vmem:[%s4308_s28 + $0x39c] ss:$20 sps:$4 sm:$0xff]   ;;  %v4029_v7 = vld [vmem:[%s4308_s28 + $0x264] ss:$20 sps:$4 sm:$0xff]  }
  0x85   : > { %1847 = vmatpush2.bf16.msra.mxu1 %v3930_v8  ;;  %1625 = vmatprep.mubr.bf16.mxu0 %v3932_v9  ;;  %v4031_v8 = vld [vmem:[%s4308_s28 + $0x398] ss:$20 sps:$4 sm:$0xff]   ;;  %v4032_v9 = vld [vmem:[%s4308_s28 + $0x260] ss:$20 sps:$4 sm:$0xff]  }
  0x86   : > { %1848 = vmatprep.subr.bf16.mxu1 %v4250_v1  ;;  %1850 = vmatprep.mubr.bf16.mxu1 %v3936_v10  ;;  %v3947_v1 = vld [vmem:[%s4308_s28 + $0x5c] ss:$20 sps:$4 sm:$0xff]   ;;  %v4033_v10 = vld [vmem:[%s4308_s28 + $0x28c] ss:$20 sps:$4 sm:$0xff]  }
  0x89   : > { %1849 = vmatpush2.bf16.msra.mxu1 %v3931_v11  ;;  %v4035_v11 = vld [vmem:[%s4308_s28 + $0x10] ss:$20 sps:$4 sm:$0xff]  }
  0x8c   : > { %1626 = vmatmul.mubr.bf16.gmra.mxu0 %v3937_v13  ;;  %1851 = vmatmul.mubr.bf16.vlgmr.msra.gmra.mxu1 %v3934_v12  ;;  %v4036_v12 = vld [vmem:[%s4308_s28 + $0x288] ss:$20 sps:$4 sm:$0xff]   ;;  %v4037_v13 = vld [vmem:[%s4308_s28 + $0x38] ss:$20 sps:$4 sm:$0xff]  }
  0x8d   : > { %1633 = vmatprep.mubr.bf16.mxu0 %v3938_v14  ;;  %1858 = vmatprep.mubr.bf16.mxu1 %v3940_v15  ;;  %v4038_v14 = vld [vmem:[%s4308_s28 + $0x2b4] ss:$20 sps:$4 sm:$0xff]  }
  0x8e   : > { %v4040_v15 = vld [vmem:[%s4308_s28 + $0x60] ss:$20 sps:$4 sm:$0xff]  }
  0x94   : > { %1634 = vmatmul.mubr.bf16.gmra.mxu0 %v3942_v16  ;;  %1859 = vmatmul.mubr.bf16.gmra.mxu1 %v3943_v17 }
  0x95   : > { %1641 = vmatprep.mubr.bf16.mxu0 %v3945_v18  ;;  %1866 = vmatprep.mubr.bf16.mxu1 %v3947_v1 }
  0x9c   : > { %1642 = vmatmul.mubr.bf16.gmra.mxu0 %v3949_v19  ;;  %1867 = vmatmul.mubr.bf16.gmra.mxu1 %v3950_v20 }
  0x9d   : > { %1649 = vmatprep.mubr.bf16.mxu0 %v3951_v21  ;;  %1874 = vmatprep.mubr.bf16.mxu1 %v3953_v22  ;;  %v4041_v21 = vld [vmem:[%s4308_s28 + $0x2b0] ss:$20 sps:$4 sm:$0xff]   ;;  %v4042_v22 = vld [vmem:[%s4308_s28 + $0x88] ss:$20 sps:$4 sm:$0xff]  }
  0xa4   : > { %1650 = vmatmul.mubr.bf16.gmra.mxu0 %v3955_v23  ;;  %1875 = vmatmul.mubr.bf16.gmra.mxu1 %v3956_v24  ;;  %v4043_v23 = vld [vmem:[%s4308_s28 + $0x2dc] ss:$20 sps:$4 sm:$0xff]  }
  0xa5   : > { %1657 = vmatprep.mubr.bf16.mxu0 %v3957_v25  ;;  %1882 = vmatprep.mubr.bf16.mxu1 %v3959_v26  ;;  %v4045_v24 = vld [vmem:[%s4308_s28 + $0xb0] ss:$20 sps:$4 sm:$0xff]  }
  0xac   : > { %1658 = vmatmul.mubr.bf16.gmra.mxu0 %v3961_v27  ;;  %1883 = vmatmul.mubr.bf16.gmra.mxu1 %v3962_v28 }
  0xad   : > { %1665 = vmatprep.mubr.bf16.mxu0 %v3964_v29  ;;  %1890 = vmatprep.mubr.bf16.mxu1 %v3966_v30 }
  0xb4   : > { %1666 = vmatmul.mubr.bf16.gmra.mxu0 %v3968_v31  ;;  %1891 = vmatmul.mubr.bf16.gmra.mxu1 %v3969_v32 }
  0xb5   : > { %1673 = vmatprep.mubr.bf16.mxu0 %v3970_v33  ;;  %1898 = vmatprep.mubr.bf16.mxu1 %v3972_v34  ;;  %v4046_v33 = vld [vmem:[%s4308_s28 + $0x2d8] ss:$20 sps:$4 sm:$0xff]  }
  0xb6   : > { %v4047_v34 = vld [vmem:[%s4308_s28 + $0xd8] ss:$20 sps:$4 sm:$0xff]  }
  0xbc   : > { %1674 = vmatmul.mubr.bf16.gmra.mxu0 %v3974_v35  ;;  %1899 = vmatmul.mubr.bf16.gmra.mxu1 %v3975_v36  ;;  %v4048_v35 = vld [vmem:[%s4308_s28 + $0x304] ss:$20 sps:$4 sm:$0xff]   ;;  %v4050_v36 = vld [vmem:[%s4308_s28 + $0x100] ss:$20 sps:$4 sm:$0xff]  }
  0xbd   : > { %1681 = vmatprep.mubr.bf16.mxu0 %v3976_v37  ;;  %1906 = vmatprep.mubr.bf16.mxu1 %v3978_v38 }
  0xc4   : > { %1682 = vmatmul.mubr.bf16.gmra.mxu0 %v3980_v39  ;;  %1907 = vmatmul.mubr.bf16.gmra.mxu1 %v3981_v40 }
  0xc5   : > { %1689 = vmatprep.mubr.bf16.mxu0 %v3983_v41  ;;  %1914 = vmatprep.mubr.bf16.mxu1 %v3985_v42 }
  0xcc   : > { %1690 = vmatmul.mubr.bf16.gmra.mxu0 %v3987_v43  ;;  %1915 = vmatmul.mubr.bf16.gmra.mxu1 %v3988_v44 }
  0xcd   : > { %1697 = vmatprep.mubr.bf16.mxu0 %v3989_v45  ;;  %1922 = vmatprep.mubr.bf16.mxu1 %v3991_v46  ;;  %v4051_v45 = vld [vmem:[%s4308_s28 + $0x300] ss:$20 sps:$4 sm:$0xff]   ;;  %v4052_v46 = vld [vmem:[%s4308_s28 + $0x128] ss:$20 sps:$4 sm:$0xff]  }
  0xd4   : > { %1698 = vmatmul.mubr.bf16.gmra.mxu0 %v3993_v47  ;;  %1923 = vmatmul.mubr.bf16.gmra.mxu1 %v3994_v48  ;;  %v4055_v47 = vld [vmem:[%s4308_s28 + $0x32c] ss:$20 sps:$4 sm:$0xff]   ;;  %v4056_v48 = vld [vmem:[%s4308_s28 + $0x150] ss:$20 sps:$4 sm:$0xff]  }
  0xd5   : > { %1705 = vmatprep.mubr.bf16.mxu0 %v3995_v49  ;;  %1930 = vmatprep.mubr.bf16.mxu1 %v3997_v50 }
  0xdc   : > { %1706 = vmatmul.mubr.bf16.gmra.mxu0 %v3999_v51  ;;  %1931 = vmatmul.mubr.bf16.gmra.mxu1 %v4000_v52 }
  0xdd   : > { %1713 = vmatprep.mubr.bf16.mxu0 %v4002_v53  ;;  %1938 = vmatprep.mubr.bf16.mxu1 %v4004_v54 }
  0xe4   : > { %1714 = vmatmul.mubr.bf16.gmra.mxu0 %v4006_v55  ;;  %1939 = vmatmul.mubr.bf16.gmra.mxu1 %v4007_v56 }
  0xe5   : > { %1721 = vmatprep.mubr.bf16.mxu0 %v4008_v57  ;;  %1946 = vmatprep.mubr.bf16.mxu1 %v4010_v58  ;;  %v4053_v57 = vld [vmem:[%s4308_s28 + $0x328] ss:$20 sps:$4 sm:$0xff]   ;;  %v4057_v58 = vld [vmem:[%s4308_s28 + $0x178] ss:$20 sps:$4 sm:$0xff]  }
  0xec   : > { %1722 = vmatmul.mubr.bf16.gmra.mxu0 %v4012_v59  ;;  %1947 = vmatmul.mubr.bf16.gmra.mxu1 %v4013_v60  ;;  %v4060_v59 = vld [vmem:[%s4308_s28 + $0x354] ss:$20 sps:$4 sm:$0xff]  }
  0xed   : > { %1729 = vmatprep.mubr.bf16.mxu0 %v4014_v61  ;;  %1954 = vmatprep.mubr.bf16.mxu1 %v4016_v62  ;;  %v4061_v60 = vld [vmem:[%s4308_s28 + $0x1a0] ss:$20 sps:$4 sm:$0xff]  }
  0xf4   : > { %1730 = vmatmul.mubr.bf16.gmra.mxu0 %v4018_v63  ;;  %1955 = vmatmul.mubr.bf16.gmra.mxu1 %v4019_v0 }
  0xf5   : > { %1737 = vmatprep.mubr.bf16.mxu0 %v4021_v2  ;;  %1962 = vmatprep.mubr.bf16.mxu1 %v4023_v3 }
  0xfc   : > { %1738 = vmatmul.mubr.bf16.gmra.mxu0 %v4025_v4  ;;  %1963 = vmatmul.mubr.bf16.gmra.mxu1 %v4026_v5 }
  0xfd   : > { %1745 = vmatprep.mubr.bf16.mxu0 %v4027_v6  ;;  %1970 = vmatprep.mubr.bf16.mxu1 %v4029_v7  ;;  %v4058_v6 = vld [vmem:[%s4308_s28 + $0x350] ss:$20 sps:$4 sm:$0xff]   ;;  %v4062_v7 = vld [vmem:[%s4308_s28 + $0x1c8] ss:$20 sps:$4 sm:$0xff]  }
 0x104   : > { %1746 = vmatmul.mubr.bf16.gmra.mxu0 %v4031_v8  ;;  %1971 = vmatmul.mubr.bf16.gmra.mxu1 %v4032_v9  ;;  %v4065_v8 = vld [vmem:[%s4308_s28 + $0x37c] ss:$20 sps:$4 sm:$0xff]  }
 0x105   : > { %1978 = vmatprep.mubr.bf16.mxu1 %v4033_v10  ;;  %3743 = vmatprep.mubr.bf16.mxu0 %v4035_v11  ;;  %v4066_v9 = vld [vmem:[%s4308_s28 + $0x1f0] ss:$20 sps:$4 sm:$0xff]  }
 0x10c   : > { %v4557_v16 = vpop.f32.mrf.mxu0  ;;  %v4559_v17 = vpop.f32.mrf.mxu1  ;;  %1979 = vmatmul.mubr.bf16.gmra.mxu1 %v4036_v12  ;;  %3744 = vmatmul.mubr.bf16.vlgmr.msra.gmra.mxu0 %v4037_v13 }
 0x10d   : > { %1986 = vmatprep.mubr.bf16.mxu1 %v4038_v14  ;;  %3747 = vmatprep.mubr.bf16.mxu0 %v4040_v15 }
 0x10e   : > { %v1565_v18 = vpop.f32.mrf.mxu0  ;;  %v1757_v1 = vpop.f32.mrf.mxu1 }
 0x110   : > { %v4561_v19 = vpop.f32.mrf.mxu0  ;;  %v4563_v20 = vpop.f32.mrf.mxu1 }
 0x112   : > { %v1568_v25 = vpop.f32.mrf.mxu0  ;;  %v1760_v26 = vpop.f32.mrf.mxu1 }
 0x114   : > { %v4569_v27 = vpop.f32.mrf.mxu0  ;;  %v4571_v28 = vpop.f32.mrf.mxu1  ;;  %1987 = vmatmul.mubr.bf16.gmra.mxu1 %v4041_v21  ;;  %3748 = vmatmul.mubr.bf16.gmra.mxu0 %v4042_v22  ;;  %v4063_v21 = vld [vmem:[%s4308_s28 + $0x378] ss:$20 sps:$4 sm:$0xff]  }
 0x115   : > { %1994 = vmatprep.mubr.bf16.mxu1 %v4043_v23  ;;  %3751 = vmatprep.mubr.bf16.mxu0 %v4045_v24  ;;  %v4067_v22 = vld [vmem:[%s4308_s28 + $0x218] ss:$20 sps:$4 sm:$0xff]   ;;  %v4071_v24 = vld [vmem:[%s4308_s28 + $0x240] ss:$20 sps:$4 sm:$0xff]  }
 0x116   : > { %v1573_v29 = vpop.f32.mrf.mxu0  ;;  %v1765_v30 = vpop.f32.mrf.mxu1  ;;  %v4070_v23 = vld [vmem:[%s4308_s28 + $0x3a4] ss:$20 sps:$4 sm:$0xff]  }
 0x118   : > { %v4573_v31 = vpop.f32.mrf.mxu0  ;;  %v4575_v32 = vpop.f32.mrf.mxu1 }
 0x11a   : > { %v1576_v37 = vpop.f32.mrf.mxu0  ;;  %v1768_v38 = vpop.f32.mrf.mxu1 }
 0x11b   : > { %v4068_v37 = vld [vmem:[%s4308_s28 + $0x3a0] ss:$20 sps:$4 sm:$0xff]   ;;  %v4072_v38 = vld [vmem:[%s4308_s28 + $0x268] ss:$20 sps:$4 sm:$0xff]  }
 0x11c   : > { %v4581_v39 = vpop.f32.mrf.mxu0  ;;  %v4583_v40 = vpop.f32.mrf.mxu1  ;;  %1995 = vmatmul.mubr.bf16.gmra.mxu1 %v4046_v33  ;;  %3752 = vmatmul.mubr.bf16.gmra.mxu0 %v4047_v34 }
 0x11d   : > { %2002 = vmatprep.mubr.bf16.mxu1 %v4048_v35  ;;  %3755 = vmatprep.mubr.bf16.mxu0 %v4050_v36 }
 0x11e   : > { %v1581_v41 = vpop.f32.mrf.mxu0  ;;  %v1773_v42 = vpop.f32.mrf.mxu1 }
 0x11f   : > { %v4075_v41 = vld [vmem:[%s4308_s28 + $0x3cc] ss:$20 sps:$4 sm:$0xff]   ;;  %v4076_v42 = vld [vmem:[%s4308_s28 + $0x290] ss:$20 sps:$4 sm:$0xff]  }
 0x120   : > { %v4585_v43 = vpop.f32.mrf.mxu0  ;;  %v4587_v44 = vpop.f32.mrf.mxu1 }
 0x122   : > { %v1584_v49 = vpop.f32.mrf.mxu0  ;;  %v1776_v50 = vpop.f32.mrf.mxu1 }
 0x124   : > { %v4593_v51 = vpop.f32.mrf.mxu0  ;;  %v4595_v52 = vpop.f32.mrf.mxu1  ;;  %2003 = vmatmul.mubr.bf16.gmra.mxu1 %v4051_v45  ;;  %3756 = vmatmul.mubr.bf16.gmra.mxu0 %v4052_v46 }
 0x125   : > { %2010 = vmatprep.mubr.bf16.mxu1 %v4055_v47  ;;  %3759 = vmatprep.mubr.bf16.mxu0 %v4056_v48 }
 0x126   : > { %v1589_v53 = vpop.f32.mrf.mxu0  ;;  %v1781_v54 = vpop.f32.mrf.mxu1 }
 0x127   : > { %v4648_v53 = vld [vmem:[%s5485_s2] ss:$0 sm:$0xff] }
 0x128   : > { %v4597_v55 = vpop.f32.mrf.mxu0  ;;  %v4599_v56 = vpop.f32.mrf.mxu1 }
 0x129   : > { %5487 = vst [vmem:[#allocation2_spill] sm:$0xff] %v4599_v56 }
 0x12a   : > { %v1592_v61 = vpop.f32.mrf.mxu0  ;;  %v1784_v62 = vpop.f32.mrf.mxu1 }
 0x12b   : > { %v4081_v61 = vld [vmem:[%s4308_s28 + $0x2e0] ss:$20 sps:$4 sm:$0xff]  }
 0x12c   : > { %v4605_v63 = vpop.f32.mrf.mxu0  ;;  %v4607_v0 = vpop.f32.mrf.mxu1  ;;  %2011 = vmatmul.mubr.bf16.gmra.mxu1 %v4053_v57  ;;  %3760 = vmatmul.mubr.bf16.gmra.mxu0 %v4057_v58  ;;  %v4073_v58 = vld [vmem:[%s4308_s28 + $0x3c8] ss:$20 sps:$4 sm:$0xff]  }
 0x12d   : > { %5488 = vst [vmem:[#allocation3_spill] sm:$0xff] %v4607_v0  ;;  %2018 = vmatprep.mubr.bf16.mxu1 %v4060_v59  ;;  %3763 = vmatprep.mubr.bf16.mxu0 %v4061_v60  ;;  %v4077_v59 = vld [vmem:[%s4308_s28 + $0x2b8] ss:$20 sps:$4 sm:$0xff]   ;;  %v4080_v60 = vld [vmem:[%s4308_s28 + $0x3f4] ss:$20 sps:$4 sm:$0xff]  }
 0x12e   : > { %v1597_v2 = vpop.f32.mrf.mxu0  ;;  %v1789_v3 = vpop.f32.mrf.mxu1 }
 0x12f   : > { %v1564_v3 = vadd.f32 %v4648_v53, %v4557_v16  ;;  %v4078_v16 = vld [vmem:[%s4308_s28 + $0x3f0] ss:$20 sps:$4 sm:$0xff]  }
 0x130   : > { %v4609_v4 = vpop.f32.mrf.mxu0  ;;  %v4611_v5 = vpop.f32.mrf.mxu1 }
 0x131   : > { %5489 = vst [vmem:[#allocation4_spill] sm:$0xff] %v4611_v5 }
 0x132   : > { %v1600_v10 = vpop.f32.mrf.mxu0  ;;  %v1792_v11 = vpop.f32.mrf.mxu1 }
 0x133   : > { %v1567_v11 = vadd.f32 %v4648_v53, %v4561_v19 }
 0x134   : > { %v4617_v12 = vpop.f32.mrf.mxu0  ;;  %v4619_v13 = vpop.f32.mrf.mxu1  ;;  %2019 = vmatmul.mubr.bf16.gmra.mxu1 %v4058_v6  ;;  %3764 = vmatmul.mubr.bf16.gmra.mxu0 %v4062_v7 }
 0x135   : > { %5490 = vst [vmem:[#allocation5_spill] sm:$0xff] %v4619_v13  ;;  %2026 = vmatprep.mubr.bf16.mxu1 %v4065_v8  ;;  %3767 = vmatprep.mubr.bf16.mxu0 %v4066_v9 }
 0x136   : > { %v1605_v14 = vpop.f32.mrf.mxu0  ;;  %v1797_v15 = vpop.f32.mrf.mxu1 }
 0x138   : > { %v4621_v18 = vpop.f32.mrf.mxu0  ;;  %v4623_v1 = vpop.f32.mrf.mxu1 }
 0x139   : > { %5491 = vst [vmem:[#allocation6_spill] sm:$0xff] %v4623_v1 }
 0x13a   : > { %v1608_v25 = vpop.f32.mrf.mxu0  ;;  %v1800_v26 = vpop.f32.mrf.mxu1 }
 0x13c   : > { %v4629_v29 = vpop.f32.mrf.mxu0  ;;  %v4631_v30 = vpop.f32.mrf.mxu1  ;;  %2027 = vmatmul.mubr.bf16.gmra.mxu1 %v4063_v21  ;;  %3768 = vmatmul.mubr.bf16.gmra.mxu0 %v4067_v22  ;;  %v4082_v21 = vld [vmem:[%s4308_s28 + $0x308] ss:$20 sps:$4 sm:$0xff]  }
 0x13d   : > { %5492 = vst [vmem:[#allocation7_spill] sm:$0xff] %v4631_v30  ;;  %2034 = vmatprep.mubr.bf16.mxu1 %v4070_v23  ;;  %3771 = vmatprep.mubr.bf16.mxu0 %v4071_v24  ;;  %v4085_v23 = vld [vmem:[%s4308_s28 + $0x41c] ss:$20 sps:$4 sm:$0xff]  }
 0x13e   : > { %v1613_v33 = vpop.f32.mrf.mxu0  ;;  %v1805_v34 = vpop.f32.mrf.mxu1  ;;  %v4086_v24 = vld [vmem:[%s4308_s28 + $0x330] ss:$20 sps:$4 sm:$0xff]  }
 0x13f   : > { %v1572_v33 = vadd.f32 %v4648_v53, %v4569_v27  ;;  %v4083_v27 = vld [vmem:[%s4308_s28 + $0x418] ss:$20 sps:$4 sm:$0xff]  }
 0x140   : > { %v4633_v35 = vpop.f32.mrf.mxu0  ;;  %v4635_v36 = vpop.f32.mrf.mxu1 }
 0x141   : > { %5493 = vst [vmem:[#allocation8_spill] sm:$0xff] %v4635_v36 }
 0x142   : > { %v1616_v45 = vpop.f32.mrf.mxu0  ;;  %v1808_v46 = vpop.f32.mrf.mxu1 }
 0x144   : > { %v4641_v47 = vpop.f32.mrf.mxu0  ;;  %v4643_v48 = vpop.f32.mrf.mxu1  ;;  %2035 = vmatmul.mubr.bf16.gmra.mxu1 %v4068_v37  ;;  %3772 = vmatmul.mubr.bf16.gmra.mxu0 %v4072_v38 }
 0x145   : > { %5494 = vst [vmem:[#allocation9_spill] sm:$0xff] %v4643_v48  ;;  %2042 = vmatprep.mubr.bf16.mxu1 %v4075_v41  ;;  %3775 = vmatprep.mubr.bf16.mxu0 %v4076_v42  ;;  %v1575_v42 = vadd.f32 %v4648_v53, %v4573_v31 }
 0x146   : > { %v1621_v49 = vpop.f32.mrf.mxu0  ;;  %v1813_v50 = vpop.f32.mrf.mxu1 }
 0x147   : > { %v4087_v49 = vld [vmem:[%s4308_s28 + $0x358] ss:$20 sps:$4 sm:$0xff]  }
 0x148   : > { %v4650_v54 = vpop.f32.mrf.mxu0  ;;  %v4652_v57 = vpop.f32.mrf.mxu1 }
 0x149   : > { %5495 = vst [vmem:[#allocation10_spill] sm:$0xff] %v4652_v57 }
 0x14a   : > { %v1624_v62 = vpop.f32.mrf.mxu0  ;;  %v1816_v2 = vpop.f32.mrf.mxu1 }
 0x14b   : > { %v1580_v62 = vadd.f32 %v4648_v53, %v4581_v39  ;;  %v4088_v39 = vld [vmem:[%s4308_s28 + $0x440] ss:$20 sps:$4 sm:$0xff]  }
 0x14c   : > { %v4660_v6 = vpop.f32.mrf.mxu0  ;;  %v1852_v7 = vpop.f32.mrf.mxu1  ;;  %2043 = vmatmul.mubr.bf16.gmra.mxu1 %v4073_v58  ;;  %3776 = vmatmul.mubr.bf16.gmra.mxu0 %v4077_v59  ;;  %v4090_v58 = vld [vmem:[%s4308_s28 + $0x444] ss:$20 sps:$4 sm:$0xff]   ;;  %v4091_v59 = vld [vmem:[%s4308_s28 + $0x380] ss:$20 sps:$4 sm:$0xff]  }
 0x14d   : > { %v4662_v8 = vadd.f32 %v1852_v7, %v1564_v3  ;;  %2050 = vmatprep.mubr.bf16.mxu1 %v4080_v60  ;;  %3779 = vmatprep.mubr.bf16.mxu0 %v4081_v61 }
 0x14e   : > { %v1629_v9 = vpop.f32.mrf.mxu0  ;;  %v1854_v10 = vpop.f32.mrf.mxu1 }
 0x14f   : > { %v1583_v10 = vadd.f32 %v4648_v53, %v4585_v43 }
 0x150   : > { %v4666_v14 = vpop.f32.mrf.mxu0  ;;  %v1855_v15 = vpop.f32.mrf.mxu1 }
 0x151   : > { %v4670_v22 = vadd.f32 %v1855_v15, %v1567_v11 }
 0x152   : > { %v1632_v25 = vpop.f32.mrf.mxu0  ;;  %v1857_v26 = vpop.f32.mrf.mxu1 }
 0x154   : > { %v4676_v34 = vpop.f32.mrf.mxu0  ;;  %v1860_v19 = vpop.f32.mrf.mxu1  ;;  %2051 = vmatmul.mubr.bf16.gmra.mxu1 %v4078_v16  ;;  %3780 = vmatmul.mubr.bf16.gmra.mxu0 %v4082_v21  ;;  %v4092_v16 = vld [vmem:[%s4308_s28 + $0x3a8] ss:$20 sps:$4 sm:$0xff]  }
 0x155   : > { %v4678_v37 = vadd.f32 %v1860_v19, %v1572_v33  ;;  %2058 = vmatprep.mubr.bf16.mxu1 %v4085_v23  ;;  %3783 = vmatprep.mubr.bf16.mxu0 %v4086_v24  ;;  %v4095_v23 = vld [vmem:[%s4308_s28 + $0x46c] ss:$20 sps:$4 sm:$0xff]   ;;  %v4096_v24 = vld [vmem:[%s4308_s28 + $0x3d0] ss:$20 sps:$4 sm:$0xff]   ;;  %v1588_v33 = vadd.f32 %v4648_v53, %v4593_v51  ;;  %v4093_v51 = vld [vmem:[%s4308_s28 + $0x468] ss:$20 sps:$4 sm:$0xff]  }
 0x156   : > { %v1637_v38 = vpop.f32.mrf.mxu0  ;;  %v1862_v41 = vpop.f32.mrf.mxu1 }
 0x158   : > { %v4682_v45 = vpop.f32.mrf.mxu0  ;;  %v1863_v46 = vpop.f32.mrf.mxu1 }
 0x159   : > { %v4686_v50 = vadd.f32 %v1863_v46, %v1575_v42  ;;  %v1591_v46 = vadd.f32 %v4648_v53, %v4597_v55 }
 0x15a   : > { %v1640_v60 = vpop.f32.mrf.mxu0  ;;  %v1865_v61 = vpop.f32.mrf.mxu1 }
 0x15b   : > { %v4100_v60 = vld [vmem:[%s4308_s28 + $0x494] ss:$20 sps:$4 sm:$0xff]  }
 0x15c   : > { %v4692_v2 = vpop.f32.mrf.mxu0  ;;  %v1868_v31 = vpop.f32.mrf.mxu1  ;;  %2059 = vmatmul.mubr.bf16.gmra.mxu1 %v4083_v27  ;;  %3784 = vmatmul.mubr.bf16.gmra.mxu0 %v4087_v49  ;;  %v4101_v61 = vld [vmem:[%s4308_s28 + $0x420] ss:$20 sps:$4 sm:$0xff]  }
 0x15d   : > { %v4694_v3 = vadd.f32 %v1868_v31, %v1580_v62  ;;  %2066 = vmatprep.mubr.bf16.mxu1 %v4090_v58  ;;  %3787 = vmatprep.mubr.bf16.mxu0 %v4091_v59  ;;  %v4097_v58 = vld [vmem:[%s4308_s28 + $0x3f8] ss:$20 sps:$4 sm:$0xff]  }
 0x15e   : > { %v1645_v7 = vpop.f32.mrf.mxu0  ;;  %v1870_v9 = vpop.f32.mrf.mxu1 }
 0x15f   : > { %v1596_v7 = vadd.f32 %v4648_v53, %v4605_v63  ;;  %v4098_v63 = vld [vmem:[%s4308_s28 + $0x490] ss:$20 sps:$4 sm:$0xff]  }
 0x160   : > { %v4698_v11 = vpop.f32.mrf.mxu0  ;;  %v1871_v15 = vpop.f32.mrf.mxu1 }
 0x161   : > { %v4702_v21 = vadd.f32 %v1871_v15, %v1583_v10 }
 0x162   : > { %v1648_v25 = vpop.f32.mrf.mxu0  ;;  %v1873_v26 = vpop.f32.mrf.mxu1 }
 0x163   : > { %v4102_v25 = vld [vmem:[%s4308_s28 + $0x448] ss:$20 sps:$4 sm:$0xff]  }
 0x164   : > { %v4708_v19 = vpop.f32.mrf.mxu0  ;;  %v1876_v43 = vpop.f32.mrf.mxu1  ;;  %2067 = vmatmul.mubr.bf16.gmra.mxu1 %v4088_v39  ;;  %3788 = vmatmul.mubr.bf16.gmra.mxu0 %v4092_v16  ;;  %v1599_v16 = vadd.f32 %v4648_v53, %v4609_v4 }
 0x165   : > { %v4710_v38 = vadd.f32 %v1876_v43, %v1588_v33  ;;  %2074 = vmatprep.mubr.bf16.mxu1 %v4095_v23  ;;  %3791 = vmatprep.mubr.bf16.mxu0 %v4096_v24  ;;  %v4105_v33 = vld [vmem:[%s4308_s28 + $0x4bc] ss:$20 sps:$4 sm:$0xff]  }
 0x166   : > { %v1653_v41 = vpop.f32.mrf.mxu0  ;;  %v1878_v42 = vpop.f32.mrf.mxu1  ;;  %v4106_v43 = vld [vmem:[%s4308_s28 + $0x470] ss:$20 sps:$4 sm:$0xff]  }
 0x168   : > { %v4714_v27 = vpop.f32.mrf.mxu0  ;;  %v1879_v49 = vpop.f32.mrf.mxu1 }
 0x169   : > { %v4718_v59 = vadd.f32 %v1879_v49, %v1591_v46  ;;  %v1604_v46 = vadd.f32 %v4648_v53, %v4617_v12  ;;  %v4103_v12 = vld [vmem:[%s4308_s28 + $0x4b8] ss:$20 sps:$4 sm:$0xff]  }
 0x16a   : > { %v1656_v62 = vpop.f32.mrf.mxu0  ;;  %v1881_v31 = vpop.f32.mrf.mxu1 }
 0x16c   : > { %v4724_v9 = vpop.f32.mrf.mxu0  ;;  %v1884_v55 = vpop.f32.mrf.mxu1  ;;  %2075 = vmatmul.mubr.bf16.gmra.mxu1 %v4093_v51  ;;  %3792 = vmatmul.mubr.bf16.gmra.mxu0 %v4097_v58 }
 0x16d   : > { %v4726_v10 = vadd.f32 %v1884_v55, %v1596_v7  ;;  %2082 = vmatprep.mubr.bf16.mxu1 %v4100_v60  ;;  %3795 = vmatprep.mubr.bf16.mxu0 %v4101_v61  ;;  %v1607_v61 = vadd.f32 %v4648_v53, %v4621_v18  ;;  %v4107_v7 = vld [vmem:[%s4308_s28 + $0x498] ss:$20 sps:$4 sm:$0xff]  }
 0x16e   : > { %v1661_v15 = vpop.f32.mrf.mxu0  ;;  %v1886_v39 = vpop.f32.mrf.mxu1 }
 0x16f   : > { %v4110_v15 = vld [vmem:[%s4308_s28 + $0x4e4] ss:$20 sps:$4 sm:$0xff]   ;;  %v4111_v39 = vld [vmem:[%s4308_s28 + $0x4c0] ss:$20 sps:$4 sm:$0xff]  }
 0x170   : > { %v4730_v23 = vpop.f32.mrf.mxu0  ;;  %v1887_v24 = vpop.f32.mrf.mxu1 }
 0x171   : > { %v4734_v26 = vadd.f32 %v1887_v24, %v1599_v16 }
 0x172   : > { %v1664_v41 = vpop.f32.mrf.mxu0  ;;  %v1889_v42 = vpop.f32.mrf.mxu1 }
 0x173   : > { %v1615_v42 = vadd.f32 %v4648_v53, %v4633_v35 }
 0x174   : > { %v4740_v49 = vpop.f32.mrf.mxu0  ;;  %v1892_v4 = vpop.f32.mrf.mxu1  ;;  %2083 = vmatmul.mubr.bf16.gmra.mxu1 %v4098_v63  ;;  %3796 = vmatmul.mubr.bf16.gmra.mxu0 %v4102_v25  ;;  %v1612_v63 = vadd.f32 %v4648_v53, %v4629_v29 }
 0x175   : > { %v4742_v51 = vadd.f32 %v1892_v4, %v1604_v46  ;;  %2090 = vmatprep.mubr.bf16.mxu1 %v4105_v33  ;;  %3799 = vmatprep.mubr.bf16.mxu0 %v4106_v43 }
 0x176   : > { %v1669_v58 = vpop.f32.mrf.mxu0  ;;  %v1894_v60 = vpop.f32.mrf.mxu1 }
 0x177   : > { %v4108_v58 = vld [vmem:[%s4308_s28 + $0x4e0] ss:$20 sps:$4 sm:$0xff]   ;;  %v4112_v60 = vld [vmem:[%s4308_s28 + $0x4e8] ss:$20 sps:$4 sm:$0xff]   ;;  %s3100_s28 = sshll.u32 %s5534_s16, 2 }
 0x178   : > { %v4746_v62 = vpop.f32.mrf.mxu0  ;;  %v1895_v31 = vpop.f32.mrf.mxu1  ;;  %s4949_s30 = scalar_lea.vmem %s5486_s3, %s3100_s28 }
 0x179   : > { %v4750_v55 = vadd.f32 %v1895_v31, %v1607_v61 }
 0x17a   : > { %v1672_v16 = vpop.f32.mrf.mxu0  ;;  %v1897_v24 = vpop.f32.mrf.mxu1 }
 0x17b   : > { %v1623_v24 = vadd.f32 %v4648_v53, %v4650_v54  ;;  %v1631_v54 = vadd.f32 %v4648_v53, %v4666_v14  ;;  %v1639_v14 = vadd.f32 %v4648_v53, %v4682_v45  ;;  %v1647_v45 = vadd.f32 %v4648_v53, %v4698_v11 }
 0x17c   : > { %v4756_v25 = vpop.f32.mrf.mxu0  ;;  %v1900_v33 = vpop.f32.mrf.mxu1  ;;  %2091 = vmatmul.mubr.bf16.gmra.mxu1 %v4103_v12  ;;  %3800 = vmatmul.mubr.bf16.gmra.mxu0 %v4107_v7  ;;  %v1620_v12 = vadd.f32 %v4648_v53, %v4641_v47  ;;  %v1628_v47 = vadd.f32 %v4648_v53, %v4660_v6  ;;  %v1636_v6 = vadd.f32 %v4648_v53, %v4676_v34 }
 0x17d   : > { %v4758_v18 = vadd.f32 %v1900_v33, %v1612_v63  ;;  %2098 = vmatprep.mubr.bf16.mxu1 %v4110_v15  ;;  %3803 = vmatprep.mubr.bf16.mxu0 %v4111_v39  ;;  %v1644_v34 = vadd.f32 %v4648_v53, %v4692_v2  ;;  %v1652_v2 = vadd.f32 %v4648_v53, %v4708_v19 }
 0x17e   : > { %v1677_v43 = vpop.f32.mrf.mxu0  ;;  %v1902_v41 = vpop.f32.mrf.mxu1  ;;  %v1655_v11 = vadd.f32 %v4648_v53, %v4714_v27  ;;  %v1660_v19 = vadd.f32 %v4648_v53, %v4724_v9  ;;  %v1663_v27 = vadd.f32 %v4648_v53, %v4730_v23  ;;  %v1668_v9 = vadd.f32 %v4648_v53, %v4740_v49 }
 0x17f   : > { %v1671_v23 = vadd.f32 %v4648_v53, %v4746_v62  ;;  %v1676_v49 = vadd.f32 %v4648_v53, %v4756_v25 }
 0x180   : > { %v4762_v46 = vpop.f32.mrf.mxu0  ;;  %v1903_v4 = vpop.f32.mrf.mxu1 }
 0x181   : > { %v4766_v29 = vadd.f32 %v1903_v4, %v1615_v42  ;;  %v1679_v62 = vadd.f32 %v4648_v53, %v4762_v46 }
 0x182   : > { %v1680_v61 = vpop.f32.mrf.mxu0  ;;  %v1905_v31 = vpop.f32.mrf.mxu1 }
 0x184   : > { %v4770_v7 = vpop.f32.mrf.mxu0  ;;  %v1908_v15 = vpop.f32.mrf.mxu1  ;;  %2099 = vmatmul.mubr.bf16.gmra.mxu1 %v4108_v58  ;;  %3804 = vmatmul.mubr.bf16.gmra.mxu0 %v4112_v60 }
 0x185   : > { %v4772_v39 = vadd.f32 %v1908_v15, %v1620_v12  ;;  %v1684_v25 = vadd.f32 %v4648_v53, %v4770_v7 }
 0x186   : > { %v1685_v35 = vpop.f32.mrf.mxu0  ;;  %v1910_v16 = vpop.f32.mrf.mxu1 }
 0x188   : > { %v4776_v63 = vpop.f32.mrf.mxu0  ;;  %v1911_v33 = vpop.f32.mrf.mxu1 }
 0x189   : > { %v4778_v43 = vadd.f32 %v1911_v33, %v1623_v24 }
 0x18a   : > { %v1688_v41 = vpop.f32.mrf.mxu0  ;;  %v1913_v42 = vpop.f32.mrf.mxu1 }
 0x18c   : > { %v4782_v4 = vpop.f32.mrf.mxu0  ;;  %v1916_v58 = vpop.f32.mrf.mxu1 }
 0x18d   : > { %v4784_v60 = vadd.f32 %v1916_v58, %v1628_v47 }
 0x18e   : > { %v1693_v61 = vpop.f32.mrf.mxu0  ;;  %v1918_v31 = vpop.f32.mrf.mxu1 }
 0x190   : > { %v4788_v12 = vpop.f32.mrf.mxu0  ;;  %v1919_v15 = vpop.f32.mrf.mxu1 }
 0x191   : > { %v4790_v35 = vadd.f32 %v1919_v15, %v1631_v54 }
 0x192   : > { %v1696_v16 = vpop.f32.mrf.mxu0  ;;  %v1921_v24 = vpop.f32.mrf.mxu1 }
 0x194   : > { %v4794_v33 = vpop.f32.mrf.mxu0  ;;  %v1924_v41 = vpop.f32.mrf.mxu1 }
 0x195   : > { %v4796_v42 = vadd.f32 %v1924_v41, %v1636_v6 }
 0x196   : > { %v1701_v47 = vpop.f32.mrf.mxu0  ;;  %v1926_v58 = vpop.f32.mrf.mxu1 }
 0x198   : > { %v4800_v61 = vpop.f32.mrf.mxu0  ;;  %v1927_v31 = vpop.f32.mrf.mxu1 }
 0x199   : > { %v4802_v54 = vadd.f32 %v1927_v31, %v1639_v14 }
 0x19a   : > { %v1704_v15 = vpop.f32.mrf.mxu0  ;;  %v1929_v16 = vpop.f32.mrf.mxu1 }
 0x19c   : > { %v4806_v24 = vpop.f32.mrf.mxu0  ;;  %v1932_v57 = vpop.f32.mrf.mxu1 }
 0x19d   : > { %v4808_v6 = vadd.f32 %v1932_v57, %v1644_v34 }
 0x19e   : > { %v1709_v41 = vpop.f32.mrf.mxu0  ;;  %v1934_v47 = vpop.f32.mrf.mxu1 }
 0x1a0   : > { %v4812_v58 = vpop.f32.mrf.mxu0  ;;  %v1935_v48 = vpop.f32.mrf.mxu1 }
 0x1a1   : > { %v4814_v14 = vadd.f32 %v1935_v48, %v1647_v45 }
 0x1a2   : > { %v1712_v31 = vpop.f32.mrf.mxu0  ;;  %v1937_v15 = vpop.f32.mrf.mxu1 }
 0x1a4   : > { %v4818_v16 = vpop.f32.mrf.mxu0  ;;  %v1940_v36 = vpop.f32.mrf.mxu1 }
 0x1a5   : > { %v4820_v57 = vadd.f32 %v1940_v36, %v1652_v2 }
 0x1a6   : > { %v1717_v34 = vpop.f32.mrf.mxu0  ;;  %v1942_v41 = vpop.f32.mrf.mxu1 }
 0x1a8   : > { %v4824_v47 = vpop.f32.mrf.mxu0  ;;  %v1943_v30 = vpop.f32.mrf.mxu1 }
 0x1a9   : > { %v4826_v48 = vadd.f32 %v1943_v30, %v1655_v11 }
 0x1aa   : > { %v1720_v45 = vpop.f32.mrf.mxu0  ;;  %v1945_v31 = vpop.f32.mrf.mxu1 }
 0x1ac   : > { %v4830_v15 = vpop.f32.mrf.mxu0  ;;  %v1948_v1 = vpop.f32.mrf.mxu1 }
 0x1ad   : > { %v4832_v36 = vadd.f32 %v1948_v1, %v1660_v19 }
 0x1ae   : > { %v1725_v2 = vpop.f32.mrf.mxu0  ;;  %v1950_v34 = vpop.f32.mrf.mxu1 }
 0x1b0   : > { %v4836_v41 = vpop.f32.mrf.mxu0  ;;  %v1951_v13 = vpop.f32.mrf.mxu1 }
 0x1b1   : > { %v4838_v30 = vadd.f32 %v1951_v13, %v1663_v27 }
 0x1b2   : > { %v1728_v11 = vpop.f32.mrf.mxu0  ;;  %v1953_v45 = vpop.f32.mrf.mxu1 }
 0x1b4   : > { %v4842_v31 = vpop.f32.mrf.mxu0  ;;  %v1956_v5 = vpop.f32.mrf.mxu1 }
 0x1b5   : > { %5496 = vst [vmem:[#allocation11_spill] sm:$0xff] %v4842_v31  ;;  %v4844_v1 = vadd.f32 %v1956_v5, %v1668_v9 }
 0x1b6   : > { %v1733_v19 = vpop.f32.mrf.mxu0  ;;  %v1958_v2 = vpop.f32.mrf.mxu1 }
 0x1b8   : > { %v4848_v34 = vpop.f32.mrf.mxu0  ;;  %v1959_v0 = vpop.f32.mrf.mxu1 }
 0x1b9   : > { %5497 = vst [vmem:[#allocation12_spill] sm:$0xff] %v4848_v34  ;;  %v4850_v13 = vadd.f32 %v1959_v0, %v1671_v23 }
 0x1ba   : > { %v1736_v27 = vpop.f32.mrf.mxu0  ;;  %v1961_v11 = vpop.f32.mrf.mxu1 }
 0x1bc   : > { %v4854_v45 = vpop.f32.mrf.mxu0  ;;  %v1964_v56 = vpop.f32.mrf.mxu1 }
 0x1bd   : > { %5498 = vst [vmem:[#allocation13_spill] sm:$0xff] %v4854_v45  ;;  %v4856_v5 = vadd.f32 %v1964_v56, %v1676_v49 }
 0x1be   : > { %v1741_v9 = vpop.f32.mrf.mxu0  ;;  %v1966_v19 = vpop.f32.mrf.mxu1 }
 0x1c0   : > { %v4860_v2 = vpop.f32.mrf.mxu0  ;;  %v1967_v34 = vpop.f32.mrf.mxu1 }
 0x1c1   : > { %5499 = vst [vmem:[#allocation14_spill] sm:$0xff] %v4860_v2  ;;  %v4862_v0 = vadd.f32 %v1967_v34, %v1679_v62  ;;  %v1692_v34 = vadd.f32 %v4648_v53, %v4782_v4 }
 0x1c2   : > { %v1744_v23 = vpop.f32.mrf.mxu0  ;;  %v1969_v27 = vpop.f32.mrf.mxu1 }
 0x1c3   : > { %5500 = vst [vmem:[#allocation15_spill] sm:$0xff] %v4862_v0 }
 0x1c4   : > { %v4866_v11 = vpop.f32.mrf.mxu0  ;;  %v1972_v45 = vpop.f32.mrf.mxu1 }
 0x1c5   : > { %5501 = vst [vmem:[#allocation16_spill] sm:$0xff] %v4866_v11  ;;  %v4868_v56 = vadd.f32 %v1972_v45, %v1684_v25 }
 0x1c6   : > { %v1749_v49 = vpop.f32.mrf.mxu0  ;;  %v1974_v9 = vpop.f32.mrf.mxu1 }
 0x1c7   : > { %v1695_v49 = vadd.f32 %v4648_v53, %v4788_v12 }
 0x1c8   : > { %v4870_v19 = vpop.f32.mrf.mxu0  ;;  %v4872_v46 = vpop.f32.mrf.mxu1 }
 0x1c9   : > { %5502 = vst [vmem:[#allocation17_spill] sm:$0xff] %v4870_v19 }
 0x1ca   : > { %v1752_v2 = vpop.f32.mrf.mxu0  ;;  %v1977_v31 = vpop.f32.mrf.mxu1 }
 0x1cc   : > { %v1980_v62 = vpop.f32.mrf.mxu1  ;;  %v3745_v23 = vpop.f32.mrf.mxu0 }
 0x1cd   : > { %v4876_v27 = vadd.f32 %v1980_v62, %v1692_v34  ;;  %v4879_v7 = vadd.f32 %v3745_v23, %v4678_v37 }
 0x1ce   : > { %v1982_v45 = vpop.f32.mrf.mxu1  ;;  %v2141_v25 = vpop.f32.mrf.mxu0 }
 0x1cf   : > { %5503 = vst [vmem:[#allocation18_spill] sm:$0xff] %v4876_v27  ;;  %v2464_v9 = vmul.f32 1.442695, %v4879_v7  ;;  %v4885_v2 = vadd.f32 %v2141_v25, %v4662_v8  ;;  %vm2398_vm0 = vcmp.gt.f32.partialorder %v4879_v7, 0.0 }
 0x1d0   : > { %v1983_v31 = vpop.f32.mrf.mxu1  ;;  %v3746_v19 = vpop.f32.mrf.mxu0 }
 0x1d1   : > { %v2460_v4 = vmul.f32 1.442695, %v4885_v2  ;;  %v4888_v11 = vadd.f32 %v1983_v31, %v1695_v49  ;;  %4113 = vpow2.f32 %v2464_v9  ;;  %v4891_v37 = vadd.f32 %v3746_v19, %v4686_v50 }
 0x1d2   : > { %v1985_v34 = vpop.f32.mrf.mxu1  ;;  %v2144_v62 = vpop.f32.mrf.mxu0  ;;  %vm2396_vm1 = vcmp.gt.f32.partialorder %v4885_v2, 0.0 }
 0x1d3   : > { %5504 = vst [vmem:[#allocation19_spill] sm:$0xff] %v4888_v11  ;;  %4115 = vpow2.f32 %v2460_v4  ;;  %v4894_v12 = vadd.f32 %v2144_v62, %v4670_v22  ;;  %v2466_v23 = vmul.f32 1.442695, %v4891_v37  ;;  %vm2399_vm2 = vcmp.gt.f32.partialorder %v4891_v37, 0.0 }
 0x1d4   : > { %v4897_v8 = vpop.f32.mrf.mxu1  ;;  %v3749_v45 = vpop.f32.mrf.mxu0 }
 0x1d5   : > { %5505 = vst [vmem:[#allocation20_spill] sm:$0xff] %v4897_v8  ;;  %v2462_v25 = vmul.f32 1.442695, %v4894_v12  ;;  %v4901_v49 = vadd.f32 %v3749_v45, %v4710_v38  ;;  %4117 = vpow2.f32 %v2466_v23  ;;  %vm2397_vm3 = vcmp.gt.f32.partialorder %v4894_v12, 0.0 }
 0x1d6   : > { %v1990_v9 = vpop.f32.mrf.mxu1  ;;  %v2157_v50 = vpop.f32.mrf.mxu0 }
 0x1d7   : > { %4119 = vpow2.f32 %v2462_v25  ;;  %v2472_v19 = vmul.f32 1.442695, %v4901_v49  ;;  %v4905_v31 = vadd.f32 %v2157_v50, %v4694_v3  ;;  %vm2402_vm4 = vcmp.gt.f32.partialorder %v4901_v49, 0.0 }
 0x1d8   : > { %v4907_v22 = vpop.f32.mrf.mxu1  ;;  %v3750_v4 = vpop.f32.mrf.mxu0 }
 0x1d9   : > { %5506 = vst [vmem:[#allocation21_spill] sm:$0xff] %v4907_v22  ;;  %v2468_v34 = vmul.f32 1.442695, %v4905_v31  ;;  %4121 = vpow2.f32 %v2472_v19  ;;  %v4911_v62 = vadd.f32 %v3750_v4, %v4718_v59  ;;  %vm2400_vm5 = vcmp.gt.f32.partialorder %v4905_v31, 0.0 }
 0x1da   : > { %v1993_v38 = vpop.f32.mrf.mxu1  ;;  %v2160_v45 = vpop.f32.mrf.mxu0 }
 0x1db   : > { %4123 = vpow2.f32 %v2468_v34  ;;  %v4914_v23 = vadd.f32 %v2160_v45, %v4702_v21  ;;  %v2474_v25 = vmul.f32 1.442695, %v4911_v62  ;;  %vm2403_vm6 = vcmp.gt.f32.partialorder %v4911_v62, 0.0 }
 0x1dc   : > { %v4917_v9 = vpop.f32.mrf.mxu1  ;;  %v3753_v3 = vpop.f32.mrf.mxu0 }
 0x1dd   : > { %5507 = vst [vmem:[#allocation22_spill] sm:$0xff] %v4917_v9  ;;  %v2470_v50 = vmul.f32 1.442695, %v4914_v23  ;;  %v4921_v11 = vadd.f32 %v3753_v3, %v4742_v51  ;;  %4125 = vpow2.f32 %v2474_v25  ;;  %vm2401_vm7 = vcmp.gt.f32.partialorder %v4914_v23, 0.0 }
 0x1de   : > { %v1998_v19 = vpop.f32.mrf.mxu1  ;;  %v2173_v59 = vpop.f32.mrf.mxu0 }
 0x1df   : > { %v4114_v4 = vpop.eup %4113  ;;  %4127 = vpow2.f32 %v2470_v50  ;;  %v2480_v34 = vmul.f32 1.442695, %v4921_v11  ;;  %v4925_v38 = vadd.f32 %v2173_v59, %v4726_v10  ;;  %vm2406_vm8 = vcmp.gt.f32.partialorder %v4921_v11, 0.0 }
 0x1e0   : > { %v4116_v21 = vpop.eup %4115  ;;  %v4927_v45 = vpop.f32.mrf.mxu1  ;;  %v3304_v22 = vadd.f32 -1.0, %v4114_v4 }
 0x1e1   : > { %5508 = vst [vmem:[#allocation23_spill] sm:$0xff] %v4927_v45  ;;  %v3754_v9 = vpop.f32.mrf.mxu0  ;;  %4129 = vpow2.f32 %v2480_v34  ;;  %v2476_v51 = vmul.f32 1.442695, %v4925_v38  ;;  %v3302_v50 = vadd.f32 -1.0, %v4116_v21  ;;  %vm2404_vm9 = vcmp.gt.f32.partialorder %v4925_v38, 0.0 }
 0x1e2   : > { %v4931_v25 = vadd.f32 %v3754_v9, %v4750_v55  ;;  %v2001_v3 = vpop.f32.mrf.mxu1  ;;  %v4118_v27 = vpop.eup %4117 }
 0x1e3   : > { %v2176_v19 = vpop.f32.mrf.mxu0  ;;  %v3305_v4 = vadd.f32 -1.0, %v4118_v27  ;;  %4131 = vpow2.f32 %v2476_v51 }
 0x1e4   : > { %v4936_v10 = vadd.f32 %v2176_v19, %v4734_v26  ;;  %v4120_v59 = vpop.eup %4119  ;;  %v2482_v34 = vmul.f32 1.442695, %v4931_v25  ;;  %v4940_v45 = vpop.f32.mrf.mxu1  ;;  %v2654_v26 = vsel %vm2398_vm0, %v4879_v7, %v3304_v22  ;;  %v2652_v7 = vsel %vm2396_vm1, %v4885_v2, %v3302_v50 }
 0x1e5   : > { %5509 = vst [vmem:[#allocation24_spill] sm:$0xff] %v4940_v45  ;;  %v3757_v55 = vpop.f32.mrf.mxu0  ;;  %v3303_v9 = vadd.f32 -1.0, %v4120_v59  ;;  %v2655_v27 = vsel %vm2399_vm2, %v4891_v37, %v3305_v4  ;;  %vm2407_vm10 = vcmp.gt.f32.partialorder %v4931_v25, 0.0 }
 0x1e6   : > { %v2478_v21 = vmul.f32 1.442695, %v4936_v10  ;;  %4133 = vpow2.f32 %v2482_v34  ;;  %v4953_v51 = vadd.f32 %v3757_v55, %v4772_v39  ;;  %v2006_v3 = vpop.f32.mrf.mxu1  ;;  %v4122_v59 = vpop.eup %4121  ;;  %v3504_v22 = vpack.c.bf16 %v2655_v27, %v2654_v26 }
 0x1e7   : > { %v2189_v19 = vpop.f32.mrf.mxu0  ;;  %v2653_v45 = vsel %vm2397_vm3, %v4894_v12, %v3303_v9  ;;  %v3308_v2 = vadd.f32 -1.0, %v4122_v59  ;;  %vm2405_vm11 = vcmp.gt.f32.partialorder %v4936_v10, 0.0 }
 0x1e8   : > { %4135 = vpow2.f32 %v2478_v21  ;;  %v4124_v0 = vpop.eup %4123  ;;  %v3499_v8 = vpack.c.bf16 %v2653_v45, %v2652_v7  ;;  %v2488_v37 = vmul.f32 1.442695, %v4953_v51  ;;  %v4961_v4 = vadd.f32 %v2189_v19, %v4758_v18  ;;  %v4963_v39 = vpop.f32.mrf.mxu1  ;;  %3656 = vst [vmem:[%s4949_s30 + $0x8] sm:$0xff] %v3504_v22  }
 0x1e9   : > { %v3758_v34 = vpop.f32.mrf.mxu0  ;;  %v3306_v21 = vadd.f32 -1.0, %v4124_v0  ;;  %v2658_v59 = vsel %vm2402_vm4, %v4901_v49, %v3308_v2  ;;  %vm2410_vm12 = vcmp.gt.f32.partialorder %v4953_v51, 0.0 }
 0x1ea   : > { %v4967_v55 = vadd.f32 %v3758_v34, %v4778_v43  ;;  %3500 = vst [vmem:[%s4949_s30] sm:$0xff] %v3499_v8   ;;  %4137 = vpow2.f32 %v2488_v37  ;;  %v2484_v12 = vmul.f32 1.442695, %v4961_v4  ;;  %v2009_v50 = vpop.f32.mrf.mxu1  ;;  %v4126_v45 = vpop.eup %4125  ;;  %vm2408_vm13 = vcmp.gt.f32.partialorder %v4961_v4, 0.0 }
 0x1eb   : > { %v2192_v9 = vpop.f32.mrf.mxu0  ;;  %v3309_v43 = vadd.f32 -1.0, %v4126_v45 }
 0x1ec   : > { %v2490_v26 = vmul.f32 1.442695, %v4967_v55  ;;  %v4973_v18 = vadd.f32 %v2192_v9, %v4766_v29  ;;  %v4128_v27 = vpop.eup %4127  ;;  %4139 = vpow2.f32 %v2484_v12  ;;  %v4977_v8 = vpop.f32.mrf.mxu1  ;;  %v2656_v12 = vsel %vm2400_vm5, %v4905_v31, %v3306_v21 }
 0x1ed   : > { %v3761_v3 = vpop.f32.mrf.mxu0  ;;  %v3307_v19 = vadd.f32 -1.0, %v4128_v27  ;;  %v2659_v29 = vsel %vm2403_vm6, %v4911_v62, %v3309_v43  ;;  %vm2411_vm14 = vcmp.gt.f32.partialorder %v4967_v55, 0.0 }
 0x1ee   : > { %4141 = vpow2.f32 %v2490_v26  ;;  %v2486_v0 = vmul.f32 1.442695, %v4973_v18  ;;  %v4985_v7 = vadd.f32 %v3761_v3, %v4796_v42  ;;  %v2014_v22 = vpop.f32.mrf.mxu1  ;;  %v4130_v34 = vpop.eup %4129  ;;  %v3514_v50 = vpack.c.bf16 %v2659_v29, %v2658_v59 }
 0x1ef   : > { %v2205_v37 = vpop.f32.mrf.mxu0  ;;  %v2657_v9 = vsel %vm2401_vm7, %v4914_v23, %v3307_v19  ;;  %v3312_v31 = vadd.f32 -1.0, %v4130_v34  ;;  %vm2409_vm15 = vcmp.gt.f32.partialorder %v4973_v18, 0.0 }
 0x1f0   : > { %4143 = vpow2.f32 %v2486_v0  ;;  %v3509_v49 = vpack.c.bf16 %v2657_v9, %v2656_v12  ;;  %v2496_v62 = vmul.f32 1.442695, %v4985_v7  ;;  %v4993_v2 = vadd.f32 %v2205_v37, %v4784_v60  ;;  %v4995_v42 = vpop.f32.mrf.mxu1  ;;  %v4132_v26 = vpop.eup %4131  ;;  %3658 = vst [vmem:[%s4949_s30 + $0x18] sm:$0xff] %v3514_v50  }
 0x1f1   : > { %v3762_v45 = vpop.f32.mrf.mxu0  ;;  %v3310_v21 = vadd.f32 -1.0, %v4132_v26  ;;  %v2662_v12 = vsel %vm2406_vm8, %v4921_v11, %v3312_v31  ;;  %v5026_v11 = vadd.f32 %v4648_v53, %v4559_v17  ;;  %vm2414_vm0 = vcmp.gt.f32.partialorder %v4985_v7, 0.0 }
 0x1f2   : > { %v4999_v27 = vadd.f32 %v3762_v45, %v4802_v54  ;;  %3657 = vst [vmem:[%s4949_s30 + $0x10] sm:$0xff] %v3509_v49   ;;  %4145 = vpow2.f32 %v2496_v62  ;;  %v2492_v23 = vmul.f32 1.442695, %v4993_v2  ;;  %v2017_v43 = vpop.f32.mrf.mxu1  ;;  %vm2412_vm1 = vcmp.gt.f32.partialorder %v4993_v2, 0.0 }
 0x1f3   : > { %v2208_v3 = vpop.f32.mrf.mxu0  ;;  %v4134_v19 = vpop.eup %4133 }
 0x1f4   : > { %v2498_v60 = vmul.f32 1.442695, %v4999_v27  ;;  %v5006_v0 = vadd.f32 %v2208_v3, %v4790_v35  ;;  %v3313_v54 = vadd.f32 -1.0, %v4134_v19  ;;  %4147 = vpow2.f32 %v2492_v23  ;;  %v5010_v29 = vpop.f32.mrf.mxu1 }
 0x1f5   : > { %v4136_v59 = vpop.eup %4135  ;;  %v3765_v22 = vpop.f32.mrf.mxu0  ;;  %v2660_v35 = vsel %vm2404_vm9, %v4925_v38, %v3310_v21  ;;  %v5033_v3 = vadd.f32 %v4648_v53, %v4563_v20  ;;  %v5050_v20 = vadd.f32 %v4648_v53, %v4583_v40  ;;  %vm2415_vm2 = vcmp.gt.f32.partialorder %v4999_v27, 0.0 }
 0x1f6   : > { %v3311_v37 = vadd.f32 -1.0, %v4136_v59  ;;  %4149 = vpow2.f32 %v2498_v60  ;;  %v2494_v34 = vmul.f32 1.442695, %v5006_v0  ;;  %v2663_v50 = vsel %vm2407_vm10, %v4931_v25, %v3313_v54  ;;  %v2022_v49 = vpop.f32.mrf.mxu1 }
 0x1f7   : > { %v5018_v9 = vadd.f32 %v3765_v22, %v4820_v57  ;;  %v2221_v62 = vpop.f32.mrf.mxu0  ;;  %v4138_v45 = vpop.eup %4137  ;;  %v3524_v26 = vpack.c.bf16 %v2663_v50, %v2662_v12  ;;  %v5042_v60 = vadd.f32 %v4648_v53, %v4571_v28  ;;  %v5046_v59 = vadd.f32 %v4648_v53, %v4575_v32 }
 0x1f8   : > { %v2661_v23 = vsel %vm2405_vm11, %v4936_v10, %v3311_v37  ;;  %4151 = vpow2.f32 %v2494_v34  ;;  %v5022_v43 = vadd.f32 %v2221_v62, %v4808_v6  ;;  %v5029_v57 = vpop.f32.mrf.mxu1  ;;  %v3316_v10 = vadd.f32 -1.0, %v4138_v45 }
 0x1f9   : > { %v3519_v38 = vpack.c.bf16 %v2661_v23, %v2660_v35  ;;  %v2504_v25 = vmul.f32 1.442695, %v5018_v9  ;;  %v3766_v31 = vpop.f32.mrf.mxu0  ;;  %v4140_v21 = vpop.eup %4139  ;;  %3660 = vst [vmem:[%s4949_s30 + $0x28] sm:$0xff] %v3524_v26   ;;  %vm2413_vm3 = vcmp.gt.f32.partialorder %v5006_v0, 0.0  ;;  %vm2418_vm4 = vcmp.gt.f32.partialorder %v5018_v9, 0.0 }
 0x1fa   : > { %v2500_v6 = vmul.f32 1.442695, %v5022_v43  ;;  %v5038_v19 = vadd.f32 %v3766_v31, %v4826_v48  ;;  %v2025_v54 = vpop.f32.mrf.mxu1  ;;  %v3314_v48 = vadd.f32 -1.0, %v4140_v21  ;;  %v2666_v35 = vsel %vm2410_vm12, %v4953_v51, %v3316_v10 }
 0x1fb   : > { %v4142_v17 = vpop.eup %4141  ;;  %3659 = vst [vmem:[%s4949_s30 + $0x20] sm:$0xff] %v3519_v38   ;;  %4153 = vpow2.f32 %v2504_v25  ;;  %v2224_v22 = vpop.f32.mrf.mxu0  ;;  %v5071_v25 = vadd.f32 %v4648_v53, %v4587_v44  ;;  %v1687_v21 = vadd.f32 %v4648_v53, %v4776_v63  ;;  %v5099_v63 = vadd.f32 %v4648_v53, %v4806_v24 }
 0x1fc   : > { %v3317_v37 = vadd.f32 -1.0, %v4142_v17  ;;  %v2506_v34 = vmul.f32 1.442695, %v5038_v19  ;;  %4155 = vpow2.f32 %v2500_v6  ;;  %v5058_v32 = vadd.f32 %v2224_v22, %v4814_v14  ;;  %v5060_v40 = vpop.f32.mrf.mxu1 }
 0x1fd   : > { %v4144_v28 = vpop.eup %4143  ;;  %v3769_v12 = vpop.f32.mrf.mxu0  ;;  %v2664_v51 = vsel %vm2408_vm13, %v4961_v4, %v3314_v48  ;;  %v5095_v22 = vadd.f32 %v4648_v53, %v4800_v61  ;;  %vm2419_vm5 = vcmp.gt.f32.partialorder %v5038_v19, 0.0  ;;  %vm2416_vm6 = vcmp.gt.f32.partialorder %v5022_v43, 0.0 }
 0x1fe   : > { %v2667_v50 = vsel %vm2411_vm14, %v4967_v55, %v3317_v37  ;;  %v3315_v49 = vadd.f32 -1.0, %v4144_v28  ;;  %4157 = vpow2.f32 %v2506_v34  ;;  %v2502_v45 = vmul.f32 1.442695, %v5058_v32  ;;  %v2030_v14 = vpop.f32.mrf.mxu1 }
 0x1ff   : > { %v3534_v62 = vpack.c.bf16 %v2667_v50, %v2666_v35  ;;  %v5067_v26 = vadd.f32 %v3769_v12, %v4844_v1  ;;  %v2237_v23 = vpop.f32.mrf.mxu0  ;;  %v4146_v38 = vpop.eup %4145  ;;  %v5082_v1 = vadd.f32 %v4648_v53, %v4595_v52  ;;  %vm2417_vm7 = vcmp.gt.f32.partialorder %v5058_v32, 0.0 }
 0x200   : > { %v2665_v55 = vsel %vm2409_vm15, %v4973_v18, %v3315_v49  ;;  %v5078_v31 = vadd.f32 %v2237_v23, %v4832_v36  ;;  %4159 = vpow2.f32 %v2502_v45  ;;  %v5087_v10 = vpop.f32.mrf.mxu1  ;;  %v1700_v18 = vadd.f32 %v4648_v53, %v4794_v33 }
 0x201   : > { %3662 = vst [vmem:[%s4949_s30 + $0x38] sm:$0xff] %v3534_v62   ;;  %v3529_v44 = vpack.c.bf16 %v2665_v55, %v2664_v51  ;;  %v3770_v6 = vpop.f32.mrf.mxu0  ;;  %v4148_v4 = vpop.eup %4147  ;;  %v3320_v36 = vadd.f32 -1.0, %v4146_v38  ;;  %v2512_v17 = vmul.f32 1.442695, %v5067_v26  ;;  %v5131_v55 = vld [vmem:[%s5485_s2] ss:$0 sm:$0xff] }
 0x202   : > { %v2508_v54 = vmul.f32 1.442695, %v5078_v31  ;;  %v5104_v48 = vadd.f32 %v3770_v6, %v4850_v13  ;;  %v2033_v33 = vpop.f32.mrf.mxu1  ;;  %v3318_v34 = vadd.f32 -1.0, %v4148_v4  ;;  %vm2422_vm8 = vcmp.gt.f32.partialorder %v5067_v26, 0.0 }
 0x203   : > { %v4150_v52 = vpop.eup %4149  ;;  %3661 = vst [vmem:[%s4949_s30 + $0x30] sm:$0xff] %v3529_v44   ;;  %v2240_v37 = vpop.f32.mrf.mxu0  ;;  %4161 = vpow2.f32 %v2512_v17  ;;  %v2670_v35 = vsel %vm2414_vm0, %v4985_v7, %v3320_v36  ;;  %v1976_v44 = vadd.f32 %v4872_v46, %v1687_v21  ;;  %v1716_v36 = vadd.f32 %v5131_v55, %v4818_v16 }
 0x204   : > { %v3321_v28 = vadd.f32 -1.0, %v4150_v52  ;;  %v5107_v12 = vadd.f32 %v2240_v37, %v4838_v30  ;;  %4163 = vpow2.f32 %v2508_v54  ;;  %v2514_v53 = vmul.f32 1.442695, %v5104_v48  ;;  %v5112_v24 = vpop.f32.mrf.mxu1 }
 0x205   : > { %v4152_v61 = vpop.eup %4151  ;;  %v3773_v13 = vpop.f32.mrf.mxu0  ;;  %v2668_v7 = vsel %vm2412_vm1, %v4993_v2, %v3318_v34  ;;  %v5146_v17 = vadd.f32 %v5131_v55, %v4824_v47  ;;  %v5151_v46 = vadd.f32 %v5131_v55, %v4830_v15  ;;  %v5155_v21 = vadd.f32 %v5131_v55, %v4836_v41  ;;  %v5510_v47 = vld [vmem:[#allocation20_spill] sm:$0xff] }
 0x206   : > { %v2671_v50 = vsel %vm2415_vm2, %v4999_v27, %v3321_v28  ;;  %v3319_v49 = vadd.f32 -1.0, %v4152_v61  ;;  %v2510_v30 = vmul.f32 1.442695, %v5107_v12  ;;  %4165 = vpow2.f32 %v2514_v53  ;;  %v2038_v14 = vpop.f32.mrf.mxu1  ;;  %v5511_v61 = vld [vmem:[#allocation15_spill] sm:$0xff] }
 0x207   : > { %v3544_v62 = vpack.c.bf16 %v2671_v50, %v2670_v35  ;;  %v5119_v45 = vadd.f32 %v3773_v13, %v4868_v56  ;;  %v2253_v23 = vpop.f32.mrf.mxu0  ;;  %v5135_v56 = vadd.f32 %v5131_v55, %v4812_v58  ;;  %v1989_v34 = vadd.f32 %v5510_v47, %v1700_v18  ;;  %v5515_v47 = vld [vmem:[#allocation12_spill] sm:$0xff] }
 0x208   : > { %v4154_v38 = vpop.eup %4153  ;;  %v2669_v27 = vsel %vm2413_vm3, %v5006_v0, %v3319_v49  ;;  %4167 = vpow2.f32 %v2510_v30  ;;  %v5126_v51 = vadd.f32 %v2253_v23, %v4856_v5  ;;  %v5140_v6 = vpop.f32.mrf.mxu1  ;;  %v5512_v49 = vld [vmem:[#allocation11_spill] sm:$0xff]  ;;  %vm2420_vm9 = vcmp.gt.f32.partialorder %v5078_v31, 0.0 }
 0x209   : > { %3664 = vst [vmem:[%s4949_s30 + $0x48] sm:$0xff] %v3544_v62   ;;  %v3539_v2 = vpack.c.bf16 %v2669_v27, %v2668_v7  ;;  %v2520_v0 = vmul.f32 1.442695, %v5119_v45  ;;  %v3774_v5 = vpop.f32.mrf.mxu0  ;;  %v4156_v4 = vpop.eup %4155  ;;  %v3324_v54 = vadd.f32 -1.0, %v4154_v38  ;;  %v5171_v30 = vadd.f32 %v5131_v55, %v5512_v49 }
 0x20a   : > { %v2516_v58 = vmul.f32 1.442695, %v5126_v51  ;;  %v5158_v33 = vadd.f32 %v3774_v5, %v1976_v44  ;;  %v2041_v16 = vpop.f32.mrf.mxu1  ;;  %v3322_v15 = vadd.f32 -1.0, %v4156_v4  ;;  %vm2423_vm10 = vcmp.gt.f32.partialorder %v5104_v48, 0.0 }
 0x20b   : > { %v4158_v52 = vpop.eup %4157  ;;  %3663 = vst [vmem:[%s4949_s30 + $0x40] sm:$0xff] %v3539_v2   ;;  %4169 = vpow2.f32 %v2520_v0  ;;  %v2256_v37 = vpop.f32.mrf.mxu0  ;;  %v2674_v18 = vsel %vm2418_vm4, %v5018_v9, %v3324_v54  ;;  %v5513_v2 = vld [vmem:[#allocation18_spill] sm:$0xff]  ;;  %vm2421_vm11 = vcmp.gt.f32.partialorder %v5107_v12, 0.0  ;;  %vm2426_vm12 = vcmp.gt.f32.partialorder %v5119_v45, 0.0 }
 0x20c   : > { %v3325_v28 = vadd.f32 -1.0, %v4158_v52  ;;  %4171 = vpow2.f32 %v2516_v58  ;;  %v5162_v53 = vadd.f32 %v2256_v37, %v5511_v61  ;;  %v2522_v41 = vmul.f32 1.442695, %v5158_v33  ;;  %v5167_v13 = vpop.f32.mrf.mxu1 }
 0x20d   : > { %v3777_v35 = vpop.f32.mrf.mxu0  ;;  %v4160_v50 = vpop.eup %4159  ;;  %v2672_v4 = vsel %vm2416_vm6, %v5022_v43, %v3322_v15  ;;  %v5516_v43 = vld [vmem:[#allocation22_spill] sm:$0xff]  ;;  %vm2424_vm13 = vcmp.gt.f32.partialorder %v5126_v51, 0.0  ;;  %vm2427_vm14 = vcmp.gt.f32.partialorder %v5158_v33, 0.0 }
 0x20e   : > { %v2675_v62 = vsel %vm2419_vm5, %v5038_v19, %v3325_v28  ;;  %v2518_v14 = vmul.f32 1.442695, %v5162_v53  ;;  %v3323_v38 = vadd.f32 -1.0, %v4160_v50  ;;  %4173 = vpow2.f32 %v2522_v41  ;;  %v2046_v27 = vpop.f32.mrf.mxu1  ;;  %v5514_v19 = vld [vmem:[#allocation21_spill] sm:$0xff] }
 0x20f   : > { %v3554_v23 = vpack.c.bf16 %v2675_v62, %v2674_v18  ;;  %v5176_v7 = vadd.f32 %v3777_v35, %v1989_v34  ;;  %v2269_v44 = vpop.f32.mrf.mxu0  ;;  %v1992_v5 = vadd.f32 %v5514_v19, %v5095_v22  ;;  %v5193_v34 = vadd.f32 %v5131_v55, %v5515_v47  ;;  %v5517_v18 = vld [vmem:[#allocation24_spill] sm:$0xff] }
 0x210   : > { %4175 = vpow2.f32 %v2518_v14  ;;  %v5181_v0 = vadd.f32 %v2269_v44, %v5513_v2  ;;  %v4162_v9 = vpop.eup %4161  ;;  %v2673_v54 = vsel %vm2417_vm7, %v5058_v32, %v3323_v38  ;;  %v5189_v52 = vpop.f32.mrf.mxu1  ;;  %v1997_v15 = vadd.f32 %v5516_v43, %v5099_v63  ;;  %v5518_v14 = vld [vmem:[#allocation19_spill] sm:$0xff] }
 0x211   : > { %3666 = vst [vmem:[%s4949_s30 + $0x58] sm:$0xff] %v3554_v23   ;;  %v2528_v58 = vmul.f32 1.442695, %v5176_v7  ;;  %v3778_v16 = vpop.f32.mrf.mxu0  ;;  %v4164_v37 = vpop.eup %4163  ;;  %v3549_v28 = vpack.c.bf16 %v2673_v54, %v2672_v4  ;;  %v3328_v61 = vadd.f32 -1.0, %v4162_v9  ;;  %v2005_v62 = vadd.f32 %v5517_v18, %v1716_v36 }
 0x212   : > { %v2524_v22 = vmul.f32 1.442695, %v5181_v0  ;;  %v3326_v41 = vadd.f32 -1.0, %v4164_v37  ;;  %v5198_v32 = vadd.f32 %v3778_v16, %v1992_v5  ;;  %v2049_v35 = vpop.f32.mrf.mxu1  ;;  %vm2425_vm15 = vcmp.gt.f32.partialorder %v5162_v53, 0.0 }
 0x213   : > { %4177 = vpow2.f32 %v2528_v58  ;;  %v2272_v50 = vpop.f32.mrf.mxu0  ;;  %v4166_v49 = vpop.eup %4165  ;;  %3665 = vst [vmem:[%s4949_s30 + $0x50] sm:$0xff] %v3549_v28   ;;  %v2678_v36 = vsel %vm2422_vm8, %v5067_v26, %v3328_v61  ;;  %vm2430_vm0 = vcmp.gt.f32.partialorder %v5176_v7, 0.0  ;;  %vm2428_vm1 = vcmp.gt.f32.partialorder %v5181_v0, 0.0 }
 0x214   : > { %4179 = vpow2.f32 %v2524_v22  ;;  %v5204_v23 = vadd.f32 %v2272_v50, %v5518_v14  ;;  %v3329_v63 = vadd.f32 -1.0, %v4166_v49  ;;  %v2530_v27 = vmul.f32 1.442695, %v5198_v32  ;;  %v5209_v44 = vpop.f32.mrf.mxu1  ;;  %v5519_v22 = vld [vmem:[#allocation13_spill] sm:$0xff]  ;;  %v5520_v49 = vld [vmem:[#allocation14_spill] sm:$0xff] }
 0x215   : > { %v4168_v38 = vpop.eup %4167  ;;  %v3781_v2 = vpop.f32.mrf.mxu0  ;;  %v2676_v5 = vsel %vm2420_vm9, %v5078_v31, %v3326_v41  ;;  %v1740_v31 = vadd.f32 %v5131_v55, %v5519_v22  ;;  %vm2431_vm2 = vcmp.gt.f32.partialorder %v5198_v32, 0.0 }
 0x216   : > { %v3327_v9 = vadd.f32 -1.0, %v4168_v38  ;;  %v2526_v19 = vmul.f32 1.442695, %v5204_v23  ;;  %v2679_v4 = vsel %vm2423_vm10, %v5104_v48, %v3329_v63  ;;  %4181 = vpow2.f32 %v2530_v27  ;;  %v2054_v58 = vpop.f32.mrf.mxu1 }
 0x217   : > { %v5216_v54 = vadd.f32 %v3781_v2, %v2005_v62  ;;  %v2285_v16 = vpop.f32.mrf.mxu0  ;;  %v3564_v47 = vpack.c.bf16 %v2679_v4, %v2678_v36  ;;  %v2008_v48 = vadd.f32 %v4963_v39, %v5146_v17  ;;  %v2013_v39 = vadd.f32 %v4977_v8, %v5151_v46 }
 0x218   : > { %v4170_v37 = vpop.eup %4169  ;;  %v2677_v28 = vsel %vm2421_vm11, %v5107_v12, %v3327_v9  ;;  %4183 = vpow2.f32 %v2526_v19  ;;  %v5219_v26 = vadd.f32 %v2285_v16, %v1997_v15  ;;  %v5226_v35 = vpop.f32.mrf.mxu1  ;;  %v5230_v12 = vadd.f32 %v5131_v55, %v5520_v49  ;;  %v5521_v15 = vld [vmem:[#allocation23_spill] sm:$0xff] }
 0x219   : > { %v4172_v61 = vpop.eup %4171  ;;  %v3559_v43 = vpack.c.bf16 %v2677_v28, %v2676_v5  ;;  %v2536_v41 = vmul.f32 1.442695, %v5216_v54  ;;  %v3782_v50 = vpop.f32.mrf.mxu0  ;;  %v2000_v18 = vadd.f32 %v5521_v15, %v5135_v56  ;;  %3668 = vst [vmem:[%s4949_s30 + $0x68] sm:$0xff] %v3564_v47   ;;  %v3332_v62 = vadd.f32 -1.0, %v4170_v37 }
 0x21a   : > { %v2532_v14 = vmul.f32 1.442695, %v5219_v26  ;;  %v3330_v17 = vadd.f32 -1.0, %v4172_v61  ;;  %v5239_v38 = vadd.f32 %v3782_v50, %v2008_v48  ;;  %v2057_v63 = vpop.f32.mrf.mxu1  ;;  %v2021_v36 = vadd.f32 %v5010_v29, %v5171_v30 }
 0x21b   : > { %3667 = vst [vmem:[%s4949_s30 + $0x60] sm:$0xff] %v3559_v43   ;;  %4185 = vpow2.f32 %v2536_v41  ;;  %v2288_v27 = vpop.f32.mrf.mxu0  ;;  %v4174_v2 = vpop.eup %4173  ;;  %v2682_v4 = vsel %vm2426_vm12, %v5119_v45, %v3332_v62  ;;  %v5522_v41 = vld [vmem:[#allocation16_spill] sm:$0xff]  ;;  %v5523_v62 = vld [vmem:[#allocation17_spill] sm:$0xff]  ;;  %v2029_v63 = vadd.f32 %v5060_v40, %v1740_v31  ;;  %vm2429_vm3 = vcmp.gt.f32.partialorder %v5204_v23, 0.0 }
 0x21c   : > { %4187 = vpow2.f32 %v2532_v14  ;;  %v5244_v56 = vadd.f32 %v2288_v27, %v2000_v18  ;;  %v3333_v8 = vadd.f32 -1.0, %v4174_v2  ;;  %v2538_v46 = vmul.f32 1.442695, %v5239_v38  ;;  %v5249_v19 = vpop.f32.mrf.mxu1 }
 0x21d   : > { %v4176_v9 = vpop.eup %4175  ;;  %v3785_v5 = vpop.f32.mrf.mxu0  ;;  %v2680_v58 = vsel %vm2424_vm13, %v5126_v51, %v3330_v17  ;;  %v1748_v51 = vadd.f32 %v5131_v55, %v5522_v41  ;;  %v2016_v14 = vadd.f32 %v4995_v42, %v5155_v21  ;;  %vm2434_vm4 = vcmp.gt.f32.partialorder %v5216_v54, 0.0 }
 0x21e   : > { %v3331_v29 = vadd.f32 -1.0, %v4176_v9  ;;  %v2534_v30 = vmul.f32 1.442695, %v5244_v56  ;;  %v2683_v16 = vsel %vm2427_vm14, %v5158_v33, %v3333_v8  ;;  %4189 = vpow2.f32 %v2538_v46  ;;  %v2062_v47 = vpop.f32.mrf.mxu1 }
 0x21f   : > { %v5256_v37 = vadd.f32 %v3785_v5, %v2021_v36  ;;  %v2301_v28 = vpop.f32.mrf.mxu0  ;;  %v3574_v22 = vpack.c.bf16 %v2683_v16, %v2682_v4  ;;  %v2024_v33 = vadd.f32 %v5029_v57, %v5193_v34  ;;  %v2037_v9 = vadd.f32 %v5112_v24, %v1748_v51 }
 0x220   : > { %v4178_v61 = vpop.eup %4177  ;;  %v2681_v48 = vsel %vm2425_vm15, %v5162_v53, %v3331_v29  ;;  %4191 = vpow2.f32 %v2534_v30  ;;  %v5259_v45 = vadd.f32 %v2301_v28, %v2013_v39  ;;  %v5266_v15 = vpop.f32.mrf.mxu1  ;;  %v1751_v53 = vadd.f32 %v5131_v55, %v5523_v62 }
 0x221   : > { %v4180_v43 = vpop.eup %4179  ;;  %v3569_v50 = vpack.c.bf16 %v2681_v48, %v2680_v58  ;;  %v2544_v49 = vmul.f32 1.442695, %v5256_v37  ;;  %v3786_v18 = vpop.f32.mrf.mxu0  ;;  %3670 = vst [vmem:[%s4949_s30 + $0x78] sm:$0xff] %v3574_v22   ;;  %v3336_v39 = vadd.f32 -1.0, %v4178_v61  ;;  %vm2432_vm5 = vcmp.gt.f32.partialorder %v5219_v26, 0.0 }
 0x222   : > { %v2540_v17 = vmul.f32 1.442695, %v5259_v45  ;;  %v3334_v57 = vadd.f32 -1.0, %v4180_v43  ;;  %v5276_v34 = vadd.f32 %v3786_v18, %v2024_v33  ;;  %v2065_v27 = vpop.f32.mrf.mxu1  ;;  %v5524_v43 = vld [vmem:[#allocation2_spill] sm:$0xff]  ;;  %v2032_v18 = vadd.f32 %v5087_v10, %v5230_v12 }
 0x223   : > { %3669 = vst [vmem:[%s4949_s30 + $0x70] sm:$0xff] %v3569_v50   ;;  %4193 = vpow2.f32 %v2544_v49  ;;  %v2304_v2 = vpop.f32.mrf.mxu0  ;;  %v4182_v36 = vpop.eup %4181  ;;  %v2686_v5 = vsel %vm2430_vm0, %v5176_v7, %v3336_v39  ;;  %v5525_v49 = vld [vmem:[#allocation3_spill] sm:$0xff]  ;;  %v2053_v27 = vadd.f32 %v5209_v44, %v5042_v60  ;;  %vm2435_vm6 = vcmp.gt.f32.partialorder %v5239_v38, 0.0 }
 0x224   : > { %4195 = vpow2.f32 %v2540_v17  ;;  %v5280_v42 = vadd.f32 %v2304_v2, %v2016_v14  ;;  %v3337_v40 = vadd.f32 -1.0, %v4182_v36  ;;  %v2546_v31 = vmul.f32 1.442695, %v5276_v34  ;;  %v5285_v8 = vpop.f32.mrf.mxu1 }
 0x225   : > { %v4184_v21 = vpop.eup %4183  ;;  %v3789_v46 = vpop.f32.mrf.mxu0  ;;  %v2684_v29 = vsel %vm2428_vm1, %v5181_v0, %v3334_v57  ;;  %v5299_v0 = vadd.f32 %v5131_v55, %v5524_v43  ;;  %vm2433_vm7 = vcmp.gt.f32.partialorder %v5244_v56, 0.0  ;;  %v2048_v43 = vadd.f32 %v5189_v52, %v5033_v3 }
 0x226   : > { %v3335_v24 = vadd.f32 -1.0, %v4184_v21  ;;  %v2542_v4 = vmul.f32 1.442695, %v5280_v42  ;;  %v2687_v30 = vsel %vm2431_vm2, %v5198_v32, %v3337_v40  ;;  %4197 = vpow2.f32 %v2546_v31  ;;  %v2070_v16 = vpop.f32.mrf.mxu1 }
 0x227   : > { %v5292_v58 = vadd.f32 %v3789_v46, %v2037_v9  ;;  %v2317_v47 = vpop.f32.mrf.mxu0  ;;  %v3584_v61 = vpack.c.bf16 %v2687_v30, %v2686_v5  ;;  %v2040_v32 = vadd.f32 %v5140_v6, %v1751_v53  ;;  %v2045_v6 = vadd.f32 %v5167_v13, %v5026_v11  ;;  %v5526_v16 = vld [vmem:[#allocation4_spill] sm:$0xff] }
 0x228   : > { %v4186_v28 = vpop.eup %4185  ;;  %v2685_v22 = vsel %vm2429_vm3, %v5204_v23, %v3335_v24  ;;  %4199 = vpow2.f32 %v2542_v4  ;;  %v5295_v7 = vadd.f32 %v2317_v47, %v2029_v63  ;;  %v5303_v33 = vpop.f32.mrf.mxu1  ;;  %v5307_v23 = vadd.f32 %v5131_v55, %v5525_v49 }
 0x229   : > { %v4188_v48 = vpop.eup %4187  ;;  %v3579_v41 = vpack.c.bf16 %v2685_v22, %v2684_v29  ;;  %v2552_v51 = vmul.f32 1.442695, %v5292_v58  ;;  %v3790_v50 = vpop.f32.mrf.mxu0  ;;  %3672 = vst [vmem:[%s4949_s30 + $0x88] sm:$0xff] %v3584_v61   ;;  %v3340_v62 = vadd.f32 -1.0, %v4186_v28  ;;  %vm2438_vm8 = vcmp.gt.f32.partialorder %v5256_v37, 0.0 }
 0x22a   : > { %v2548_v14 = vmul.f32 1.442695, %v5295_v7  ;;  %v3338_v53 = vadd.f32 -1.0, %v4188_v48  ;;  %v5316_v39 = vadd.f32 %v3790_v50, %v2040_v32  ;;  %v2073_v17 = vpop.f32.mrf.mxu1  ;;  %v5527_v48 = vld [vmem:[#allocation5_spill] sm:$0xff]  ;;  %vm2436_vm9 = vcmp.gt.f32.partialorder %v5259_v45, 0.0 }
 0x22b   : > { %3671 = vst [vmem:[%s4949_s30 + $0x80] sm:$0xff] %v3579_v41   ;;  %4201 = vpow2.f32 %v2552_v51  ;;  %v2320_v63 = vpop.f32.mrf.mxu0  ;;  %v4190_v57 = vpop.eup %4189  ;;  %v2690_v9 = vsel %vm2434_vm4, %v5216_v54, %v3340_v62  ;;  %vm2439_vm10 = vcmp.gt.f32.partialorder %v5276_v34, 0.0  ;;  %vm2437_vm11 = vcmp.gt.f32.partialorder %v5280_v42, 0.0 }
 0x22c   : > { %4203 = vpow2.f32 %v2548_v14  ;;  %v5321_v10 = vadd.f32 %v2320_v63, %v2032_v18  ;;  %v3341_v11 = vadd.f32 -1.0, %v4190_v57  ;;  %v2554_v13 = vmul.f32 1.442695, %v5316_v39  ;;  %v5326_v2 = vpop.f32.mrf.mxu1 }
 0x22d   : > { %v4192_v12 = vpop.eup %4191  ;;  %v3793_v36 = vpop.f32.mrf.mxu0  ;;  %v2688_v21 = vsel %vm2432_vm5, %v5219_v26, %v3338_v53  ;;  %v5340_v26 = vadd.f32 %v5131_v55, %v5526_v16  ;;  %vm2442_vm12 = vcmp.gt.f32.partialorder %v5292_v58, 0.0  ;;  %vm2440_vm13 = vcmp.gt.f32.partialorder %v5295_v7, 0.0 }
 0x22e   : > { %v3339_v60 = vadd.f32 -1.0, %v4192_v12  ;;  %v2550_v44 = vmul.f32 1.442695, %v5321_v10  ;;  %v2691_v40 = vsel %vm2435_vm6, %v5239_v38, %v3341_v11  ;;  %4205 = vpow2.f32 %v2554_v13  ;;  %v2078_v46 = vpop.f32.mrf.mxu1 }
 0x22f   : > { %v5333_v31 = vadd.f32 %v3793_v36, %v2053_v27  ;;  %v2333_v5 = vpop.f32.mrf.mxu0  ;;  %v3594_v4 = vpack.c.bf16 %v2691_v40, %v2690_v9  ;;  %v2056_v38 = vadd.f32 %v5226_v35, %v5046_v59  ;;  %v2061_v59 = vadd.f32 %v5249_v19, %v5050_v20 }
 0x230   : > { %v4194_v24 = vpop.eup %4193  ;;  %v2689_v54 = vsel %vm2433_vm7, %v5244_v56, %v3339_v60  ;;  %4207 = vpow2.f32 %v2550_v44  ;;  %v5336_v29 = vadd.f32 %v2333_v5, %v2045_v6  ;;  %v5345_v61 = vpop.f32.mrf.mxu1  ;;  %v5349_v56 = vadd.f32 %v5131_v55, %v5527_v48  ;;  %v5528_v60 = vld [vmem:[#allocation6_spill] sm:$0xff]  ;;  %v5529_v5 = vld [vmem:[#allocation7_spill] sm:$0xff] }
 0x231   : > { %v4196_v30 = vpop.eup %4195  ;;  %v3589_v47 = vpack.c.bf16 %v2689_v54, %v2688_v21  ;;  %v2560_v28 = vmul.f32 1.442695, %v5333_v31  ;;  %v3794_v22 = vpop.f32.mrf.mxu0  ;;  %3674 = vst [vmem:[%s4949_s30 + $0x98] sm:$0xff] %v3594_v4   ;;  %v3344_v32 = vadd.f32 -1.0, %v4194_v24  ;;  %v2069_v20 = vadd.f32 %v5285_v8, %v5082_v1 }
 0x232   : > { %v2556_v41 = vmul.f32 1.442695, %v5336_v29  ;;  %v3342_v35 = vadd.f32 -1.0, %v4196_v30  ;;  %v5358_v51 = vadd.f32 %v3794_v22, %v2056_v38  ;;  %v2081_v50 = vpop.f32.mrf.mxu1  ;;  %v5385_v24 = vadd.f32 %v5131_v55, %v5529_v5 }
 0x233   : > { %3673 = vst [vmem:[%s4949_s30 + $0x90] sm:$0xff] %v3589_v47   ;;  %4209 = vpow2.f32 %v2560_v28  ;;  %v2336_v49 = vpop.f32.mrf.mxu0  ;;  %v4198_v18 = vpop.eup %4197  ;;  %v2694_v53 = vsel %vm2438_vm8, %v5256_v37, %v3344_v32  ;;  %vm2443_vm14 = vcmp.gt.f32.partialorder %v5316_v39, 0.0  ;;  %vm2441_vm15 = vcmp.gt.f32.partialorder %v5321_v10, 0.0 }
 0x234   : > { %4211 = vpow2.f32 %v2556_v41  ;;  %v5362_v3 = vadd.f32 %v2336_v49, %v2048_v43  ;;  %v3345_v62 = vadd.f32 -1.0, %v4198_v18  ;;  %v2562_v19 = vmul.f32 1.442695, %v5358_v51  ;;  %v2084_v14 = vpop.f32.mrf.mxu1 }
 0x235   : > { %v4200_v52 = vpop.eup %4199  ;;  %v3797_v6 = vpop.f32.mrf.mxu0  ;;  %v2692_v57 = vsel %vm2436_vm9, %v5259_v45, %v3342_v35  ;;  %v1799_v45 = vadd.f32 %v5131_v55, %v5528_v60  ;;  %v2085_v28 = vadd.f32 %v2084_v14, %v5349_v56  ;;  %vm2446_vm0 = vcmp.gt.f32.partialorder %v5333_v31, 0.0 }
 0x236   : > { %v3343_v17 = vadd.f32 -1.0, %v4200_v52  ;;  %v2558_v63 = vmul.f32 1.442695, %v5362_v3  ;;  %v2695_v27 = vsel %vm2439_vm10, %v5276_v34, %v3345_v62  ;;  %4213 = vpow2.f32 %v2562_v19  ;;  %v2086_v11 = vpop.f32.mrf.mxu1 }
 0x237   : > { %v5373_v12 = vadd.f32 %v3797_v6, %v2069_v20  ;;  %v2349_v1 = vpop.f32.mrf.mxu0  ;;  %v3604_v13 = vpack.c.bf16 %v2695_v27, %v2694_v53  ;;  %v2072_v34 = vadd.f32 %v5303_v33, %v5299_v0  ;;  %v5532_v27 = vld [vmem:[#allocation10_spill] sm:$0xff]  ;;  %vm2444_vm1 = vcmp.gt.f32.partialorder %v5336_v29, 0.0 }
 0x238   : > { %v4202_v8 = vpop.eup %4201  ;;  %v2693_v37 = vsel %vm2437_vm11, %v5280_v42, %v3343_v17  ;;  %4215 = vpow2.f32 %v2558_v63  ;;  %v5376_v36 = vadd.f32 %v2349_v1, %v2061_v59  ;;  %v2087_v40 = vpop.f32.mrf.mxu1  ;;  %v2064_v42 = vadd.f32 %v5266_v15, %v5071_v25  ;;  %v5531_v63 = vld [vmem:[#allocation9_spill] sm:$0xff] }
 0x239   : > { %v4204_v9 = vpop.eup %4203  ;;  %v3599_v44 = vpack.c.bf16 %v2693_v37, %v2692_v57  ;;  %v2568_v21 = vmul.f32 1.442695, %v5373_v12  ;;  %v3798_v46 = vpop.f32.mrf.mxu0  ;;  %3676 = vst [vmem:[%s4949_s30 + $0xa8] sm:$0xff] %v3604_v13   ;;  %v3348_v4 = vadd.f32 -1.0, %v4202_v8  ;;  %v2077_v59 = vadd.f32 %v5326_v2, %v5307_v23 }
 0x23a   : > { %v2564_v54 = vmul.f32 1.442695, %v5376_v36  ;;  %v3346_v30 = vadd.f32 -1.0, %v4204_v9  ;;  %v5393_v0 = vadd.f32 %v3798_v46, %v2072_v34  ;;  %v2089_v33 = vpop.f32.mrf.mxu1  ;;  %v2088_v14 = vadd.f32 %v2087_v40, %v1799_v45 }
 0x23b   : > { %3675 = vst [vmem:[%s4949_s30 + $0xa0] sm:$0xff] %v3599_v44   ;;  %4217 = vpow2.f32 %v2568_v21  ;;  %v2352_v16 = vpop.f32.mrf.mxu0  ;;  %v4206_v38 = vpop.eup %4205  ;;  %v2698_v32 = vsel %vm2442_vm12, %v5292_v58, %v3348_v4  ;;  %v1812_v57 = vadd.f32 %v5131_v55, %v5531_v63  ;;  %v1815_v11 = vadd.f32 %v5131_v55, %v5532_v27 }
 0x23c   : > { %4219 = vpow2.f32 %v2564_v54  ;;  %v5397_v25 = vadd.f32 %v2352_v16, %v2064_v42  ;;  %v3349_v47 = vadd.f32 -1.0, %v4206_v38  ;;  %v2570_v22 = vmul.f32 1.442695, %v5393_v0  ;;  %v2092_v48 = vpop.f32.mrf.mxu1 }
 0x23d   : > { %v4208_v15 = vpop.eup %4207  ;;  %v3801_v43 = vpop.f32.mrf.mxu0  ;;  %v2696_v50 = vsel %vm2440_vm13, %v5295_v7, %v3346_v30  ;;  %v5530_v7 = vld [vmem:[#allocation8_spill] sm:$0xff]  ;;  %vm2447_vm2 = vcmp.gt.f32.partialorder %v5358_v51, 0.0  ;;  %vm2445_vm3 = vcmp.gt.f32.partialorder %v5362_v3, 0.0  ;;  %v2093_v46 = vadd.f32 %v2092_v48, %v5385_v24 }
 0x23e   : > { %v3347_v41 = vadd.f32 -1.0, %v4208_v15  ;;  %v2566_v35 = vmul.f32 1.442695, %v5397_v25  ;;  %v2699_v49 = vsel %vm2443_vm14, %v5316_v39, %v3349_v47  ;;  %4221 = vpow2.f32 %v2570_v22  ;;  %v2094_v18 = vpop.f32.mrf.mxu1 }
 0x23f   : > { %v5410_v56 = vadd.f32 %v3801_v43, %v2085_v28  ;;  %v2365_v52 = vpop.f32.mrf.mxu0  ;;  %v3614_v20 = vpack.c.bf16 %v2699_v49, %v2698_v32  ;;  %v1807_v39 = vadd.f32 %v5131_v55, %v5530_v7  ;;  %vm2450_vm4 = vcmp.gt.f32.partialorder %v5373_v12, 0.0 }
 0x240   : > { %v4210_v62 = vpop.eup %4209  ;;  %v2697_v58 = vsel %vm2441_vm15, %v5321_v10, %v3347_v41  ;;  %4223 = vpow2.f32 %v2566_v35  ;;  %v5415_v23 = vadd.f32 %v2365_v52, %v2077_v59  ;;  %v2095_v53 = vpop.f32.mrf.mxu1  ;;  %v2080_v10 = vadd.f32 %v5345_v61, %v5340_v26 }
 0x241   : > { %v4212_v2 = vpop.eup %4211  ;;  %v3609_v19 = vpack.c.bf16 %v2697_v58, %v2696_v50  ;;  %v2576_v6 = vmul.f32 1.442695, %v5410_v56  ;;  %v3802_v17 = vpop.f32.mrf.mxu0  ;;  %3678 = vst [vmem:[%s4949_s30 + $0xb8] sm:$0xff] %v3614_v20   ;;  %v3352_v8 = vadd.f32 -1.0, %v4210_v62  ;;  %vm2448_vm5 = vcmp.gt.f32.partialorder %v5376_v36, 0.0 }
 0x242   : > { %v2572_v1 = vmul.f32 1.442695, %v5415_v23  ;;  %v3350_v13 = vadd.f32 -1.0, %v4212_v2  ;;  %v5429_v37 = vadd.f32 %v3802_v17, %v2088_v14  ;;  %v2097_v9 = vpop.f32.mrf.mxu1  ;;  %vm2451_vm6 = vcmp.gt.f32.partialorder %v5393_v0, 0.0 }
 0x243   : > { %3677 = vst [vmem:[%s4949_s30 + $0xb0] sm:$0xff] %v3609_v19   ;;  %4225 = vpow2.f32 %v2576_v6  ;;  %v2368_v60 = vpop.f32.mrf.mxu0  ;;  %v4214_v45 = vpop.eup %4213  ;;  %v2702_v4 = vsel %vm2446_vm0, %v5333_v31, %v3352_v8  ;;  %vm2449_vm7 = vcmp.gt.f32.partialorder %v5397_v25, 0.0  ;;  %vm2454_vm8 = vcmp.gt.f32.partialorder %v5410_v56, 0.0 }
 0x244   : > { %4227 = vpow2.f32 %v2572_v1  ;;  %v5433_v55 = vadd.f32 %v2368_v60, %v2080_v10  ;;  %v3353_v26 = vadd.f32 -1.0, %v4214_v45  ;;  %v2578_v61 = vmul.f32 1.442695, %v5429_v37  ;;  %v2100_v34 = vpop.f32.mrf.mxu1 }
 0x245   : > { %v4216_v44 = vpop.eup %4215  ;;  %v3805_v21 = vpop.f32.mrf.mxu0  ;;  %v2101_v42 = vadd.f32 %v2100_v34, %v1812_v57  ;;  %v2700_v54 = vsel %vm2444_vm1, %v5336_v29, %v3350_v13  ;;  %vm2455_vm9 = vcmp.gt.f32.partialorder %v5429_v37, 0.0  ;;  %vm2452_vm10 = vcmp.gt.f32.partialorder %v5415_v23, 0.0 }
 0x246   : > { %v3351_v40 = vadd.f32 -1.0, %v4216_v44  ;;  %v2574_v5 = vmul.f32 1.442695, %v5433_v55  ;;  %v2703_v30 = vsel %vm2447_vm2, %v5358_v51, %v3353_v26  ;;  %4229 = vpow2.f32 %v2578_v61  ;;  %v2102_v33 = vpop.f32.mrf.mxu1 }
 0x247   : > { %v2381_v16 = vpop.f32.mrf.mxu0  ;;  %v3624_v15 = vpack.c.bf16 %v2703_v30, %v2702_v4  ;;  %v5446_v47 = vadd.f32 %v3805_v21, %v2101_v42  ;;  %v2096_v51 = vadd.f32 %v2095_v53, %v1807_v39  ;;  %vm2453_vm11 = vcmp.gt.f32.partialorder %v5433_v55, 0.0 }
 0x248   : > { %v4218_v38 = vpop.eup %4217  ;;  %v2701_v24 = vsel %vm2445_vm3, %v5362_v3, %v3351_v40  ;;  %4231 = vpow2.f32 %v2574_v5  ;;  %v5448_v22 = vadd.f32 %v2381_v16, %v2093_v46  ;;  %v2103_v29 = vpop.f32.mrf.mxu1 }
 0x249   : > { %v4220_v28 = vpop.eup %4219  ;;  %v3619_v31 = vpack.c.bf16 %v2701_v24, %v2700_v54  ;;  %v3806_v48 = vpop.f32.mrf.mxu0  ;;  %3680 = vst [vmem:[%s4949_s30 + $0xc8] sm:$0xff] %v3624_v15   ;;  %v2584_v43 = vmul.f32 1.442695, %v5446_v47  ;;  %v2104_v32 = vadd.f32 %v2103_v29, %v1815_v11  ;;  %v3356_v41 = vadd.f32 -1.0, %v4218_v38 }
 0x24a   : > { %v2580_v59 = vmul.f32 1.442695, %v5448_v22  ;;  %v2105_v35 = vpop.f32.mrf.mxu1  ;;  %v3354_v49 = vadd.f32 -1.0, %v4220_v28  ;;  %vm2458_vm12 = vcmp.gt.f32.partialorder %v5446_v47, 0.0  ;;  %vm2456_vm14 = vcmp.gt.f32.partialorder %v5448_v22, 0.0 }
 0x24b   : > { %3679 = vst [vmem:[%s4949_s30 + $0xc0] sm:$0xff] %v3619_v31   ;;  %v2384_v3 = vpop.f32.mrf.mxu0  ;;  %v4222_v50 = vpop.eup %4221  ;;  %4233 = vpow2.f32 %v2584_v43  ;;  %v2393_v18 = vadd.f32 %v3806_v48, %v2104_v32  ;;  %v2706_v7 = vsel %vm2450_vm4, %v5373_v12, %v3356_v41 }
 0x24c   : > { %v2385_v52 = vadd.f32 %v2384_v3, %v2096_v51  ;;  %v3357_v20 = vadd.f32 -1.0, %v4222_v50  ;;  %4235 = vpow2.f32 %v2580_v59  ;;  %v2704_v6 = vsel %vm2448_vm5, %v5376_v36, %v3354_v49 }
 0x24d   : > { %v4224_v62 = vpop.eup %4223  ;;  %v2586_v2 = vmul.f32 1.442695, %v2393_v18  ;;  %vm2459_vm13 = vcmp.gt.f32.partialorder %v2393_v18, 0.0 }
 0x24e   : > { %v3355_v58 = vadd.f32 -1.0, %v4224_v62  ;;  %v2707_v39 = vsel %vm2451_vm6, %v5393_v0, %v3357_v20  ;;  %v2582_v19 = vmul.f32 1.442695, %v2385_v52  ;;  %vm2457_vm15 = vcmp.gt.f32.partialorder %v2385_v52, 0.0 }
 0x24f   : > { %v3634_v53 = vpack.c.bf16 %v2707_v39, %v2706_v7  ;;  %4237 = vpow2.f32 %v2586_v2 }
 0x250   : > { %v4226_v14 = vpop.eup %4225  ;;  %v2705_v17 = vsel %vm2449_vm7, %v5397_v25, %v3355_v58  ;;  %4239 = vpow2.f32 %v2582_v19 }
 0x251   : > { %v4228_v63 = vpop.eup %4227  ;;  %v3629_v57 = vpack.c.bf16 %v2705_v17, %v2704_v6  ;;  %3682 = vst [vmem:[%s4949_s30 + $0xd8] sm:$0xff] %v3634_v53   ;;  %v3360_v27 = vadd.f32 -1.0, %v4226_v14 }
 0x252   : > { %v3358_v12 = vadd.f32 -1.0, %v4228_v63 }
 0x253   : > { %3681 = vst [vmem:[%s4949_s30 + $0xd0] sm:$0xff] %v3629_v57   ;;  %v4230_v11 = vpop.eup %4229  ;;  %v2710_v25 = vsel %vm2454_vm8, %v5410_v56, %v3360_v27 }
 0x254   : > { %v3361_v10 = vadd.f32 -1.0, %v4230_v11  ;;  %v2708_v8 = vsel %vm2452_vm10, %v5415_v23, %v3358_v12 }
 0x255   : > { %v4232_v0 = vpop.eup %4231 }
 0x256   : > { %v3359_v36 = vadd.f32 -1.0, %v4232_v0  ;;  %v2711_v1 = vsel %vm2455_vm9, %v5429_v37, %v3361_v10 }
 0x257   : > { %v3644_v13 = vpack.c.bf16 %v2711_v1, %v2710_v25 }
 0x258   : > { %v2709_v9 = vsel %vm2453_vm11, %v5433_v55, %v3359_v36  ;;  %v4234_v60 = vpop.eup %4233 }
 0x259   : > { %v3639_v45 = vpack.c.bf16 %v2709_v9, %v2708_v8  ;;  %v4236_v44 = vpop.eup %4235  ;;  %3684 = vst [vmem:[%s4949_s30 + $0xe8] sm:$0xff] %v3644_v13   ;;  %v3364_v26 = vadd.f32 -1.0, %v4234_v60 }
 0x25a   : > { %v3362_v56 = vadd.f32 -1.0, %v4236_v44 }
 0x25b   : > { %3683 = vst [vmem:[%s4949_s30 + $0xe0] sm:$0xff] %v3639_v45   ;;  %v2714_v23 = vsel %vm2458_vm12, %v5446_v47, %v3364_v26 }
 0x25c   : > { %v4238_v61 = vpop.eup %4237  ;;  %v2712_v40 = vsel %vm2456_vm14, %v5448_v22, %v3362_v56 }
 0x25d   : > { %v4240_v34 = vpop.eup %4239  ;;  %v3365_v21 = vadd.f32 -1.0, %v4238_v61 }
 0x25e   : > { %v3363_v37 = vadd.f32 -1.0, %v4240_v34 }
 0x25f   : > { %v2715_v55 = vsel %vm2459_vm13, %v2393_v18, %v3365_v21 }
 0x260   : > { %v3654_v46 = vpack.c.bf16 %v2715_v55, %v2714_v23  ;;  %v2713_v5 = vsel %vm2457_vm15, %v2385_v52, %v3363_v37 }
 0x261   : > { %v3649_v42 = vpack.c.bf16 %v2713_v5, %v2712_v40 }
 0x262   : > { %3686 = vst [vmem:[%s4949_s30 + $0xf8] sm:$0xff] %v3654_v46  }
 0x263   : > { %3685 = vst [vmem:[%s4949_s30 + $0xf0] sm:$0xff] %v3649_v42  }
 0x264 PF: > { %s13_s12 = sadd.s32 1, %s4248_s12  }
 0x265   : > { %p10_p4 = scmp.ge.s32.totalorder %s13_s12, 7  }
 0x267   :  { %12 = sbr.rel (!%p10_p4) target bundleno = 1 (0x1), region = 62 }

// kernel: nvidia_forward.8
= control target key start
LH: loop header
LB: loop body
LE: loop exit
PB: predicated region body
PF: predicated region fallthrough
CT: control target
= control target key end

     0   :  { %s3196_s12 = smov 0   ;;  %s3773_s0 = inlined_call_operand.vmem [shape: bf16[448,1024], index: 0, kind: input, shape index: {}]   ;;  %s3774_s1 = inlined_call_operand.vmem [shape: bf16[1024,128], index: 1, kind: input, shape index: {}]   ;;  %s3775_s2 = inlined_call_operand.vmem [shape: f32[1,128], index: 2, kind: input, shape index: {}]   ;;  %s3776_s3 = inlined_call_operand.vmem [shape: bf16[448,128], index: 3, kind: output, shape index: {}]  }
   0x1 LB: > { %s2285_s13 = sadd.s32 4294967295, %s3174_s12   ;;  %p2289_p0 = scmp.ge.s32.totalorder %s3174_s12, 1  ;;  %s3174_s12 = sphi %s3196_s12, %s13_s12  }
   0x2   : > { %p139_p1 = scmp.lt.s32.totalorder %s3174_s12, 3 }
   0x4   : > { %p140_p2 = pnand %p2289_p0, %p139_p1 }
   0x5   : > { %s164_s19 = smul.u32 (!%p140_p2), 28, %s2285_s13 }
   0x6   : > { %143 = sbr.rel (%p140_p2) target bundleno = 488 (0x1e8), region = 32 }
   0x7   : > { %p165_p3 = scmp.lt.s32.totalorder (!%p140_p2), %s164_s19, 55 }
   0xb   : > { %v3048_v0 = vld [vmem:[%s3774_s1 + $0x78] sm:$0xff]   ;;  %v3052_v4 = vld [vmem:[%s3774_s1 + $0x70] sm:$0xff]   ;;  %v3056_v8 = vld [vmem:[%s3774_s1 + $0x68] sm:$0xff]   ;;  %s3778_s19 = smov (!%p165_p3, %s164_s19), 55 }
   0xc   : > { %v3049_v1 = vld [vmem:[%s3774_s1 + $0xf8] sm:$0xff]   ;;  %2640 = vmatprep.subr.bf16.mxu0 %v3048_v0  ;;  %v3053_v5 = vld [vmem:[%s3774_s1 + $0xf0] sm:$0xff]   ;;  %v3057_v9 = vld [vmem:[%s3774_s1 + $0xe8] sm:$0xff]   ;;  %s2528_s18 = sshll.u32 %s3778_s19, 5 }
   0xd   : > { %v3050_v2 = vld [vmem:[%s3774_s1 + $0x38] sm:$0xff]   ;;  %2740 = vmatprep.subr.bf16.mxu1 %v3049_v1  ;;  %v3054_v6 = vld [vmem:[%s3774_s1 + $0x30] sm:$0xff]   ;;  %v3058_v10 = vld [vmem:[%s3774_s1 + $0x28] sm:$0xff]   ;;  %s3302_s13 = scalar_lea.vmem %s3773_s0, %s2528_s18 }
   0xe   : > { %v3051_v3 = vld [vmem:[%s3774_s1 + $0xb8] sm:$0xff]   ;;  %2641 = vmatpush3.bf16.msra.mxu0 %v3050_v2  ;;  %v3055_v7 = vld [vmem:[%s3774_s1 + $0xb0] sm:$0xff]   ;;  %v3059_v11 = vld [vmem:[%s3774_s1 + $0xa8] sm:$0xff]  }
   0xf   : > { %2741 = vmatpush3.bf16.msra.mxu1 %v3051_v3  ;;  %2642 = vmatprep.subr.bf16.mxu0 %v3052_v4  ;;  %v3060_v12 = vld [vmem:[%s3774_s1 + $0x60] sm:$0xff]   ;;  %v3064_v16 = vld [vmem:[%s3774_s1 + $0x58] sm:$0xff]   ;;  %v3068_v20 = vld [vmem:[%s3774_s1 + $0x50] sm:$0xff]  }
  0x10   : > { %2742 = vmatprep.subr.bf16.mxu1 %v3053_v5  ;;  %v3061_v13 = vld [vmem:[%s3774_s1 + $0xe0] sm:$0xff]   ;;  %v3065_v17 = vld [vmem:[%s3774_s1 + $0xd8] sm:$0xff]   ;;  %v3069_v21 = vld [vmem:[%s3774_s1 + $0xd0] sm:$0xff]  }
  0x11   : > { %v3062_v14 = vld [vmem:[%s3774_s1 + $0x20] sm:$0xff]   ;;  %v3066_v18 = vld [vmem:[%s3774_s1 + $0x18] sm:$0xff]   ;;  %v3070_v22 = vld [vmem:[%s3774_s1 + $0x10] sm:$0xff]  }
  0x12   : > { %2643 = vmatpush3.bf16.msra.mxu0 %v3054_v6  ;;  %v3063_v15 = vld [vmem:[%s3774_s1 + $0xa0] sm:$0xff]   ;;  %v3067_v19 = vld [vmem:[%s3774_s1 + $0x98] sm:$0xff]   ;;  %v3071_v23 = vld [vmem:[%s3774_s1 + $0x90] sm:$0xff]  }
  0x13   : > { %2743 = vmatpush3.bf16.msra.mxu1 %v3055_v7  ;;  %2644 = vmatprep.subr.bf16.mxu0 %v3056_v8  ;;  %v3072_v24 = vld [vmem:[%s3774_s1 + $0x48] sm:$0xff]   ;;  %v3076_v28 = vld [vmem:[%s3774_s1 + $0x40] sm:$0xff]   ;;  %v3080_v40 = vld [vmem:[%s3774_s1 + $0x178] sm:$0xff]  }
  0x14   : > { %2744 = vmatprep.subr.bf16.mxu1 %v3057_v9  ;;  %v3073_v25 = vld [vmem:[%s3774_s1 + $0xc8] sm:$0xff]   ;;  %v3077_v29 = vld [vmem:[%s3774_s1 + $0xc0] sm:$0xff]   ;;  %v3081_v41 = vld [vmem:[%s3774_s1 + $0x138] sm:$0xff]  }
  0x15   : > { %v3074_v26 = vld [vmem:[%s3774_s1 + $0x8] sm:$0xff]   ;;  %v3078_v30 = vld [vmem:[%s3774_s1] sm:$0xff]   ;;  %v3082_v42 = vld [vmem:[%s3774_s1 + $0x1f8] sm:$0xff]  }
  0x16   : > { %2645 = vmatpush3.bf16.msra.mxu0 %v3058_v10  ;;  %v3075_v27 = vld [vmem:[%s3774_s1 + $0x88] sm:$0xff]   ;;  %v3079_v31 = vld [vmem:[%s3774_s1 + $0x80] sm:$0xff]   ;;  %v3083_v43 = vld [vmem:[%s3774_s1 + $0x1b8] sm:$0xff]  }
  0x17   : > { %2745 = vmatpush3.bf16.msra.mxu1 %v3059_v11  ;;  %2646 = vmatprep.subr.bf16.mxu0 %v3060_v12  ;;  %v178_v32 = vld [vmem:[%s3302_s13] sm:$0xff]  ;;  %v179_v34 = vld [vmem:[%s3302_s13 + $0x8] sm:$0xff]  ;;  %v3084_v50 = vld [vmem:[%s3774_s1 + $0x170] sm:$0xff]  }
  0x18   : > { %2746 = vmatprep.subr.bf16.mxu1 %v3061_v13  ;;  %v182_v33 = vld [vmem:[%s3302_s13 + $0x20] sm:$0xff]  ;;  %v183_v37 = vld [vmem:[%s3302_s13 + $0x28] sm:$0xff]  ;;  %v3085_v58 = vld [vmem:[%s3774_s1 + $0x130] sm:$0xff]  }
  0x19   : > { %v2294_v35 = vcombine.low %v178_v32, %v182_v33  ;;  %v2295_v36 = vcombine.high %v178_v32, %v182_v33  ;;  %v2296_v38 = vcombine.low %v179_v34, %v183_v37  ;;  %v2297_v39 = vcombine.high %v179_v34, %v183_v37  ;;  %v186_v44 = vld [vmem:[%s3302_s13 + $0x40] sm:$0xff]  ;;  %v187_v47 = vld [vmem:[%s3302_s13 + $0x48] sm:$0xff]  ;;  %v3086_v60 = vld [vmem:[%s3774_s1 + $0x1f0] sm:$0xff]  }
  0x1a   : > { %2647 = vmatpush3.bf16.msra.mxu0 %v3062_v14  ;;  %v190_v45 = vld [vmem:[%s3302_s13 + $0x60] sm:$0xff]  ;;  %v191_v48 = vld [vmem:[%s3302_s13 + $0x68] sm:$0xff]  ;;  %v3087_v61 = vld [vmem:[%s3774_s1 + $0x1b0] sm:$0xff]  }
  0x1b   : > { %2747 = vmatpush3.bf16.msra.mxu1 %v3063_v15  ;;  %2648 = vmatprep.subr.bf16.mxu0 %v3064_v16  ;;  %v2303_v46 = vcombine.high %v186_v44, %v190_v45  ;;  %v2305_v49 = vcombine.high %v187_v47, %v191_v48  ;;  %v194_v51 = vld [vmem:[%s3302_s13 + $0x80] sm:$0xff]  ;;  %v2302_v52 = vcombine.low %v186_v44, %v190_v45  ;;  %v195_v54 = vld [vmem:[%s3302_s13 + $0x88] sm:$0xff] }
  0x1c   : > { %2748 = vmatprep.subr.bf16.mxu1 %v3065_v17  ;;  %1401 = vmatprep.mubr.bf16.mxu0 %v2295_v36  ;;  %v198_v53 = vld [vmem:[%s3302_s13 + $0xa0] sm:$0xff]  ;;  %v199_v55 = vld [vmem:[%s3302_s13 + $0xa8] sm:$0xff]  ;;  %v2304_v56 = vcombine.low %v187_v47, %v191_v48  ;;  %v3102_v36 = vld [vmem:[%s3774_s1 + $0x1d0] sm:$0xff]  }
  0x1d   : > { %1546 = vmatprep.mubr.bf16.mxu1 %v2297_v39  ;;  %v2311_v57 = vcombine.high %v194_v51, %v198_v53  ;;  %v2313_v59 = vcombine.high %v195_v54, %v199_v55  ;;  %v202_v62 = vld [vmem:[%s3302_s13 + $0xc0] sm:$0xff]  ;;  %v203_v0 = vld [vmem:[%s3302_s13 + $0xc8] sm:$0xff]  ;;  %v2310_v4 = vcombine.low %v194_v51, %v198_v53  ;;  %v2312_v6 = vcombine.low %v195_v54, %v199_v55  ;;  %v3103_v39 = vld [vmem:[%s3774_s1 + $0x190] sm:$0xff]  }
  0x1e   : > { %2649 = vmatpush3.bf16.msra.mxu0 %v3066_v18  ;;  %v206_v63 = vld [vmem:[%s3302_s13 + $0xe0] sm:$0xff]  ;;  %v207_v1 = vld [vmem:[%s3302_s13 + $0xe8] sm:$0xff] }
  0x1f   : > { %2749 = vmatpush3.bf16.msra.mxu1 %v3067_v19  ;;  %2650 = vmatprep.subr.bf16.mxu0 %v3068_v20  ;;  %v3088_v2 = vld [vmem:[%s3774_s1 + $0x168] sm:$0xff]   ;;  %v2319_v7 = vcombine.high %v202_v62, %v206_v63  ;;  %v2321_v8 = vcombine.high %v203_v0, %v207_v1  ;;  %v210_v10 = vld [vmem:[%s3302_s13 + $0x100] sm:$0xff]  ;;  %v2318_v18 = vcombine.low %v202_v62, %v206_v63 }
  0x20   : > { %2750 = vmatprep.subr.bf16.mxu1 %v3069_v21  ;;  %v3089_v3 = vld [vmem:[%s3774_s1 + $0x128] sm:$0xff]   ;;  %v214_v11 = vld [vmem:[%s3302_s13 + $0x120] sm:$0xff]  ;;  %v2320_v19 = vcombine.low %v203_v0, %v207_v1 }
  0x21   : > { %v3090_v5 = vld [vmem:[%s3774_s1 + $0x1e8] sm:$0xff]   ;;  %v3092_v12 = vld [vmem:[%s3774_s1 + $0x160] sm:$0xff]   ;;  %v2327_v20 = vcombine.high %v210_v10, %v214_v11 }
  0x22   : > { %2651 = vmatpush3.bf16.msra.mxu0 %v3070_v22  ;;  %v3091_v9 = vld [vmem:[%s3774_s1 + $0x1a8] sm:$0xff]   ;;  %v3093_v15 = vld [vmem:[%s3774_s1 + $0x120] sm:$0xff]   ;;  %v3096_v22 = vld [vmem:[%s3774_s1 + $0x158] sm:$0xff]  }
  0x23   : > { %2751 = vmatpush3.bf16.msra.mxu1 %v3071_v23  ;;  %2652 = vmatprep.subr.bf16.mxu0 %v3072_v24  ;;  %v211_v13 = vld [vmem:[%s3302_s13 + $0x108] sm:$0xff]  ;;  %v3094_v16 = vld [vmem:[%s3774_s1 + $0x1e0] sm:$0xff]   ;;  %v3097_v24 = vld [vmem:[%s3774_s1 + $0x118] sm:$0xff]  }
  0x24   : > { %2752 = vmatprep.subr.bf16.mxu1 %v3073_v25  ;;  %v215_v14 = vld [vmem:[%s3302_s13 + $0x128] sm:$0xff]  ;;  %v3095_v17 = vld [vmem:[%s3774_s1 + $0x1a0] sm:$0xff]   ;;  %v3098_v25 = vld [vmem:[%s3774_s1 + $0x1d8] sm:$0xff]  }
  0x25   : > { %v2329_v21 = vcombine.high %v211_v13, %v215_v14  ;;  %v218_v23 = vld [vmem:[%s3302_s13 + $0x140] sm:$0xff]  ;;  %v2328_v32 = vcombine.low %v211_v13, %v215_v14  ;;  %v3105_v44 = vld [vmem:[%s3774_s1 + $0x108] sm:$0xff]  }
  0x26   : > { %2653 = vmatpush3.bf16.msra.mxu0 %v3074_v26  ;;  %v222_v26 = vld [vmem:[%s3302_s13 + $0x160] sm:$0xff]  ;;  %v3106_v47 = vld [vmem:[%s3774_s1 + $0x1c8] sm:$0xff]  }
  0x27   : > { %2753 = vmatpush3.bf16.msra.mxu1 %v3075_v27  ;;  %2654 = vmatprep.subr.bf16.mxu0 %v3076_v28  ;;  %v3099_v27 = vld [vmem:[%s3774_s1 + $0x198] sm:$0xff]   ;;  %v219_v28 = vld [vmem:[%s3302_s13 + $0x148] sm:$0xff]  ;;  %v2335_v33 = vcombine.high %v218_v23, %v222_v26  ;;  %v226_v37 = vld [vmem:[%s3302_s13 + $0x180] sm:$0xff] }
  0x28   : > { %2754 = vmatprep.subr.bf16.mxu1 %v3077_v29  ;;  %v223_v29 = vld [vmem:[%s3302_s13 + $0x168] sm:$0xff]  ;;  %v238_v51 = vld [vmem:[%s3302_s13 + $0x1e0] sm:$0xff] }
  0x29   : > { %v2337_v34 = vcombine.high %v219_v28, %v223_v29  ;;  %v2336_v45 = vcombine.low %v219_v28, %v223_v29  ;;  %v239_v53 = vld [vmem:[%s3302_s13 + $0x1e8] sm:$0xff]  ;;  %v3108_v54 = vld [vmem:[%s3774_s1 + $0x140] sm:$0xff]  }
  0x2a   : > { %2655 = vmatpush3.bf16.msra.mxu0 %v3078_v30  ;;  %v2326_v30 = vcombine.low %v210_v10, %v214_v11  ;;  %v3109_v55 = vld [vmem:[%s3774_s1 + $0x100] sm:$0xff]   ;;  %v243_v0 = vld [vmem:[%s3302_s13 + $0x208] sm:$0xff] }
  0x2b   : > { %2755 = vmatpush3.bf16.msra.mxu1 %v3079_v31  ;;  %2840 = vmatprep.subr.bf16.mxu0 %v3080_v40  ;;  %v3100_v31 = vld [vmem:[%s3774_s1 + $0x150] sm:$0xff]   ;;  %v227_v40 = vld [vmem:[%s3302_s13 + $0x188] sm:$0xff]  ;;  %v242_v62 = vld [vmem:[%s3302_s13 + $0x200] sm:$0xff] }
  0x2c   : > { %2940 = vmatprep.subr.bf16.mxu1 %v3082_v42  ;;  %v3104_v42 = vld [vmem:[%s3774_s1 + $0x148] sm:$0xff]   ;;  %v246_v63 = vld [vmem:[%s3302_s13 + $0x220] sm:$0xff] }
  0x2d   : > { %1402 = vmatmul.mubr.bf16.vlgmr.msra.gmra.mxu0 %v2294_v35  ;;  %v3101_v35 = vld [vmem:[%s3774_s1 + $0x110] sm:$0xff]   ;;  %v247_v1 = vld [vmem:[%s3302_s13 + $0x228] sm:$0xff]  ;;  %v2358_v10 = vcombine.low %v242_v62, %v246_v63  ;;  %v258_v14 = vld [vmem:[%s3302_s13 + $0x280] sm:$0xff] }
  0x2e   : > { %1547 = vmatmul.mubr.bf16.vlgmr.msra.gmra.mxu1 %v2296_v38  ;;  %2841 = vmatpush3.bf16.msra.mxu0 %v3081_v41  ;;  %v230_v38 = vld [vmem:[%s3302_s13 + $0x1a0] sm:$0xff]  ;;  %v231_v41 = vld [vmem:[%s3302_s13 + $0x1a8] sm:$0xff]  ;;  %v2360_v11 = vcombine.low %v243_v0, %v247_v1 }
  0x2f   : > { %2941 = vmatpush3.bf16.msra.mxu1 %v3083_v43  ;;  %1409 = vmatprep.mubr.bf16.mxu0 %v2303_v46  ;;  %v2334_v43 = vcombine.low %v218_v23, %v222_v26  ;;  %v2343_v46 = vcombine.high %v226_v37, %v230_v38  ;;  %v2345_v48 = vcombine.high %v227_v40, %v231_v41  ;;  %v270_v23 = vld [vmem:[%s3302_s13 + $0x2e0] sm:$0xff] }
  0x30   : > { %1554 = vmatprep.mubr.bf16.mxu1 %v2305_v49  ;;  %2842 = vmatprep.subr.bf16.mxu0 %v3084_v50  ;;  %v3107_v49 = vld [vmem:[%s3774_s1 + $0x188] sm:$0xff]   ;;  %v234_v50 = vld [vmem:[%s3302_s13 + $0x1c0] sm:$0xff] }
  0x31   : > { %2942 = vmatprep.subr.bf16.mxu1 %v3086_v60  ;;  %v3111_v60 = vld [vmem:[%s3774_s1 + $0x180] sm:$0xff]  }
  0x32   : > { %2843 = vmatpush3.bf16.msra.mxu0 %v3085_v58  ;;  %v2344_v58 = vcombine.low %v227_v40, %v231_v41  ;;  %v283_v40 = vld [vmem:[%s3302_s13 + $0x348] sm:$0xff] }
  0x33   : > { %2943 = vmatpush3.bf16.msra.mxu1 %v3087_v61  ;;  %2844 = vmatprep.subr.bf16.mxu0 %v3088_v2  ;;  %v2350_v2 = vcombine.low %v234_v50, %v238_v51  ;;  %v287_v41 = vld [vmem:[%s3302_s13 + $0x368] sm:$0xff] }
  0x34   : > { %2944 = vmatprep.subr.bf16.mxu1 %v3090_v5  ;;  %v2361_v5 = vcombine.high %v243_v0, %v247_v1  ;;  %v197_v0 = vld [vmem:[%s3302_s13 + $0x98] sm:$0xff] }
  0x35   : > { %1410 = vmatmul.mubr.bf16.gmra.mxu0 %v2302_v52  ;;  %v235_v52 = vld [vmem:[%s3302_s13 + $0x1c8] sm:$0xff]  ;;  %v201_v1 = vld [vmem:[%s3302_s13 + $0xb8] sm:$0xff] }
  0x36   : > { %1555 = vmatmul.mubr.bf16.gmra.mxu1 %v2304_v56  ;;  %1417 = vmatprep.mubr.bf16.mxu0 %v2311_v57  ;;  %v2342_v56 = vcombine.low %v226_v37, %v230_v38  ;;  %v3110_v57 = vld [vmem:[%s3774_s1 + $0x1c0] sm:$0xff]   ;;  %v2353_v61 = vcombine.high %v235_v52, %v239_v53 }
  0x37   : > { %1562 = vmatprep.mubr.bf16.mxu1 %v2313_v59  ;;  %2845 = vmatpush3.bf16.msra.mxu0 %v3089_v3  ;;  %v2351_v59 = vcombine.high %v234_v50, %v238_v51  ;;  %v2352_v3 = vcombine.low %v235_v52, %v239_v53  ;;  %v282_v38 = vld [vmem:[%s3302_s13 + $0x340] sm:$0xff]  ;;  %v2400_v51 = vcombine.low %v283_v40, %v287_v41 }
  0x38   : > { %2945 = vmatpush3.bf16.msra.mxu1 %v3091_v9  ;;  %2846 = vmatprep.subr.bf16.mxu0 %v3092_v12  ;;  %v255_v9 = vld [vmem:[%s3302_s13 + $0x268] sm:$0xff] }
  0x39   : > { %2946 = vmatprep.subr.bf16.mxu1 %v3094_v16  ;;  %v259_v16 = vld [vmem:[%s3302_s13 + $0x288] sm:$0xff] }
  0x3b   : > { %2847 = vmatpush3.bf16.msra.mxu0 %v3093_v15  ;;  %v262_v15 = vld [vmem:[%s3302_s13 + $0x2a0] sm:$0xff] }
  0x3c   : > { %2947 = vmatpush3.bf16.msra.mxu1 %v3095_v17  ;;  %2848 = vmatprep.subr.bf16.mxu0 %v3096_v22  ;;  %v263_v17 = vld [vmem:[%s3302_s13 + $0x2a8] sm:$0xff]  ;;  %v266_v22 = vld [vmem:[%s3302_s13 + $0x2c0] sm:$0xff]  ;;  %v2374_v26 = vcombine.low %v258_v14, %v262_v15 }
  0x3d   : > { %1418 = vmatmul.mubr.bf16.gmra.mxu0 %v2310_v4  ;;  %2948 = vmatprep.subr.bf16.mxu1 %v3098_v25  ;;  %v2359_v4 = vcombine.high %v242_v62, %v246_v63  ;;  %v271_v25 = vld [vmem:[%s3302_s13 + $0x2e8] sm:$0xff]  ;;  %v2383_v28 = vcombine.high %v266_v22, %v270_v23  ;;  %v196_v62 = vld [vmem:[%s3302_s13 + $0x90] sm:$0xff] }
  0x3e   : > { %1563 = vmatmul.mubr.bf16.gmra.mxu1 %v2312_v6  ;;  %1425 = vmatprep.mubr.bf16.mxu0 %v2319_v7  ;;  %v250_v6 = vld [vmem:[%s3302_s13 + $0x240] sm:$0xff]  ;;  %v200_v63 = vld [vmem:[%s3302_s13 + $0xb0] sm:$0xff] }
  0x3f   : > { %1570 = vmatprep.mubr.bf16.mxu1 %v2321_v8  ;;  %2849 = vmatpush3.bf16.msra.mxu0 %v3097_v24  ;;  %v254_v7 = vld [vmem:[%s3302_s13 + $0x260] sm:$0xff]  ;;  %v251_v8 = vld [vmem:[%s3302_s13 + $0x248] sm:$0xff] }
  0x40   : > { %2949 = vmatpush3.bf16.msra.mxu1 %v3099_v27  ;;  %2850 = vmatprep.subr.bf16.mxu0 %v3100_v31  ;;  %v2367_v12 = vcombine.high %v250_v6, %v254_v7  ;;  %v2369_v13 = vcombine.high %v251_v8, %v255_v9  ;;  %v267_v24 = vld [vmem:[%s3302_s13 + $0x2c8] sm:$0xff]  ;;  %v2376_v27 = vcombine.low %v259_v16, %v263_v17  ;;  %v278_v31 = vld [vmem:[%s3302_s13 + $0x320] sm:$0xff] }
  0x41   : > { %2950 = vmatprep.subr.bf16.mxu1 %v3102_v36  ;;  %v2385_v29 = vcombine.high %v267_v24, %v271_v25 }
  0x43   : > { %2851 = vmatpush3.bf16.msra.mxu0 %v3101_v35  ;;  %v2384_v35 = vcombine.low %v267_v24, %v271_v25  ;;  %v221_v24 = vld [vmem:[%s3302_s13 + $0x158] sm:$0xff] }
  0x44   : > { %2951 = vmatpush3.bf16.msra.mxu1 %v3103_v39  ;;  %2852 = vmatprep.subr.bf16.mxu0 %v3104_v42  ;;  %v286_v39 = vld [vmem:[%s3302_s13 + $0x360] sm:$0xff]  ;;  %v225_v25 = vld [vmem:[%s3302_s13 + $0x178] sm:$0xff] }
  0x45   : > { %1426 = vmatmul.mubr.bf16.gmra.mxu0 %v2318_v18  ;;  %2952 = vmatprep.subr.bf16.mxu1 %v3106_v47  ;;  %v2366_v18 = vcombine.low %v250_v6, %v254_v7  ;;  %v184_v47 = vld [vmem:[%s3302_s13 + $0x30] sm:$0xff]  ;;  %v2398_v50 = vcombine.low %v282_v38, %v286_v39 }
  0x46   : > { %1571 = vmatmul.mubr.bf16.gmra.mxu1 %v2320_v19  ;;  %1433 = vmatprep.mubr.bf16.mxu0 %v2327_v20  ;;  %v2368_v19 = vcombine.low %v251_v8, %v255_v9  ;;  %v2375_v20 = vcombine.high %v258_v14, %v262_v15  ;;  %v204_v6 = vld [vmem:[%s3302_s13 + $0xd0] sm:$0xff]  ;;  %v205_v8 = vld [vmem:[%s3302_s13 + $0xd8] sm:$0xff] }
  0x47   : > { %1578 = vmatprep.mubr.bf16.mxu1 %v2329_v21  ;;  %2853 = vmatpush3.bf16.msra.mxu0 %v3105_v44  ;;  %v2377_v21 = vcombine.high %v259_v16, %v263_v17  ;;  %v2399_v44 = vcombine.high %v282_v38, %v286_v39  ;;  %v208_v7 = vld [vmem:[%s3302_s13 + $0xf0] sm:$0xff]  ;;  %v209_v9 = vld [vmem:[%s3302_s13 + $0xf8] sm:$0xff] }
  0x48   : > { %2953 = vmatpush3.bf16.msra.mxu1 %v3107_v49  ;;  %2854 = vmatprep.subr.bf16.mxu0 %v3108_v54  ;;  %v185_v49 = vld [vmem:[%s3302_s13 + $0x38] sm:$0xff]  ;;  %v188_v54 = vld [vmem:[%s3302_s13 + $0x50] sm:$0xff] }
  0x49   : > { %2954 = vmatprep.subr.bf16.mxu1 %v3110_v57  ;;  %v193_v57 = vld [vmem:[%s3302_s13 + $0x78] sm:$0xff]  ;;  %v212_v14 = vld [vmem:[%s3302_s13 + $0x110] sm:$0xff] }
  0x4a   : > { %v216_v15 = vld [vmem:[%s3302_s13 + $0x130] sm:$0xff]  ;;  %v213_v16 = vld [vmem:[%s3302_s13 + $0x118] sm:$0xff] }
  0x4b   : > { %2855 = vmatpush3.bf16.msra.mxu0 %v3109_v55  ;;  %v192_v55 = vld [vmem:[%s3302_s13 + $0x70] sm:$0xff]  ;;  %v217_v17 = vld [vmem:[%s3302_s13 + $0x138] sm:$0xff] }
  0x4c   : > { %2955 = vmatpush3.bf16.msra.mxu1 %v3111_v60  ;;  %v2307_v60 = vcombine.high %v188_v54, %v192_v55  ;;  %v236_v38 = vld [vmem:[%s3302_s13 + $0x1d0] sm:$0xff] }
  0x4d   : > { %1434 = vmatmul.mubr.bf16.gmra.mxu0 %v2326_v30  ;;  %v274_v30 = vld [vmem:[%s3302_s13 + $0x300] sm:$0xff]  ;;  %v240_v39 = vld [vmem:[%s3302_s13 + $0x1f0] sm:$0xff] }
  0x4e   : > { %1579 = vmatmul.mubr.bf16.gmra.mxu1 %v2328_v32  ;;  %1441 = vmatprep.mubr.bf16.mxu0 %v2335_v33  ;;  %v275_v32 = vld [vmem:[%s3302_s13 + $0x308] sm:$0xff]  ;;  %v2391_v36 = vcombine.high %v274_v30, %v278_v31  ;;  %v2390_v42 = vcombine.low %v274_v30, %v278_v31  ;;  %v228_v30 = vld [vmem:[%s3302_s13 + $0x190] sm:$0xff] }
  0x4f   : > { %1586 = vmatprep.mubr.bf16.mxu1 %v2337_v34  ;;  %v279_v33 = vld [vmem:[%s3302_s13 + $0x328] sm:$0xff]  ;;  %v2382_v34 = vcombine.low %v266_v22, %v270_v23  ;;  %v220_v22 = vld [vmem:[%s3302_s13 + $0x150] sm:$0xff] }
  0x50   : > { %v2393_v37 = vcombine.high %v275_v32, %v279_v33  ;;  %v224_v23 = vld [vmem:[%s3302_s13 + $0x170] sm:$0xff] }
  0x51   : > { %v232_v31 = vld [vmem:[%s3302_s13 + $0x1b0] sm:$0xff] }
  0x55   : > { %1442 = vmatmul.mubr.bf16.gmra.mxu0 %v2334_v43  ;;  %v2392_v43 = vcombine.low %v275_v32, %v279_v33  ;;  %v229_v32 = vld [vmem:[%s3302_s13 + $0x198] sm:$0xff] }
  0x56   : > { %1587 = vmatmul.mubr.bf16.gmra.mxu1 %v2336_v45  ;;  %1449 = vmatprep.mubr.bf16.mxu0 %v2343_v46  ;;  %v2401_v45 = vcombine.high %v283_v40, %v287_v41  ;;  %v180_v46 = vld [vmem:[%s3302_s13 + $0x10] sm:$0xff]  ;;  %v233_v33 = vld [vmem:[%s3302_s13 + $0x1b8] sm:$0xff] }
  0x57   : > { %1594 = vmatprep.mubr.bf16.mxu1 %v2345_v48  ;;  %v181_v48 = vld [vmem:[%s3302_s13 + $0x18] sm:$0xff]  ;;  %v2299_v52 = vcombine.high %v180_v46, %v184_v47 }
  0x58   : > { %v2301_v53 = vcombine.high %v181_v48, %v185_v49  ;;  %v237_v40 = vld [vmem:[%s3302_s13 + $0x1d8] sm:$0xff] }
  0x59   : > { %v241_v41 = vld [vmem:[%s3302_s13 + $0x1f8] sm:$0xff] }
  0x5d   : > { %1450 = vmatmul.mubr.bf16.gmra.mxu0 %v2342_v56  ;;  %v189_v56 = vld [vmem:[%s3302_s13 + $0x58] sm:$0xff] }
  0x5e   : > { %1595 = vmatmul.mubr.bf16.gmra.mxu1 %v2344_v58  ;;  %1457 = vmatprep.mubr.bf16.mxu0 %v2351_v59  ;;  %v2298_v58 = vcombine.low %v180_v46, %v184_v47  ;;  %v2300_v59 = vcombine.low %v181_v48, %v185_v49  ;;  %v244_v46 = vld [vmem:[%s3302_s13 + $0x210] sm:$0xff]  ;;  %v245_v48 = vld [vmem:[%s3302_s13 + $0x218] sm:$0xff] }
  0x5f   : > { %1602 = vmatprep.mubr.bf16.mxu1 %v2353_v61  ;;  %v2309_v61 = vcombine.high %v189_v56, %v193_v57  ;;  %v248_v47 = vld [vmem:[%s3302_s13 + $0x230] sm:$0xff]  ;;  %v249_v49 = vld [vmem:[%s3302_s13 + $0x238] sm:$0xff] }
  0x65   : > { %1458 = vmatmul.mubr.bf16.gmra.mxu0 %v2350_v2  ;;  %v2306_v2 = vcombine.low %v188_v54, %v192_v55  ;;  %v252_v54 = vld [vmem:[%s3302_s13 + $0x250] sm:$0xff] }
  0x66   : > { %1603 = vmatmul.mubr.bf16.gmra.mxu1 %v2352_v3  ;;  %1465 = vmatprep.mubr.bf16.mxu0 %v2359_v4  ;;  %v2308_v3 = vcombine.low %v189_v56, %v193_v57  ;;  %v2315_v4 = vcombine.high %v196_v62, %v200_v63  ;;  %v256_v55 = vld [vmem:[%s3302_s13 + $0x270] sm:$0xff]  ;;  %v253_v56 = vld [vmem:[%s3302_s13 + $0x258] sm:$0xff] }
  0x67   : > { %1610 = vmatprep.mubr.bf16.mxu1 %v2361_v5  ;;  %v2317_v5 = vcombine.high %v197_v0, %v201_v1  ;;  %v257_v57 = vld [vmem:[%s3302_s13 + $0x278] sm:$0xff] }
  0x6d   : > { %1466 = vmatmul.mubr.bf16.gmra.mxu0 %v2358_v10  ;;  %v2314_v10 = vcombine.low %v196_v62, %v200_v63  ;;  %v260_v62 = vld [vmem:[%s3302_s13 + $0x290] sm:$0xff] }
  0x6e   : > { %1611 = vmatmul.mubr.bf16.gmra.mxu1 %v2360_v11  ;;  %1473 = vmatprep.mubr.bf16.mxu0 %v2367_v12  ;;  %v2316_v11 = vcombine.low %v197_v0, %v201_v1  ;;  %v2323_v12 = vcombine.high %v204_v6, %v208_v7  ;;  %v264_v63 = vld [vmem:[%s3302_s13 + $0x2b0] sm:$0xff]  ;;  %v261_v0 = vld [vmem:[%s3302_s13 + $0x298] sm:$0xff] }
  0x6f   : > { %1618 = vmatprep.mubr.bf16.mxu1 %v2369_v13  ;;  %v2325_v13 = vcombine.high %v205_v8, %v209_v9  ;;  %v265_v1 = vld [vmem:[%s3302_s13 + $0x2b8] sm:$0xff] }
  0x75   : > { %1474 = vmatmul.mubr.bf16.gmra.mxu0 %v2366_v18  ;;  %v2322_v18 = vcombine.low %v204_v6, %v208_v7  ;;  %v268_v6 = vld [vmem:[%s3302_s13 + $0x2d0] sm:$0xff] }
  0x76   : > { %1619 = vmatmul.mubr.bf16.gmra.mxu1 %v2368_v19  ;;  %1481 = vmatprep.mubr.bf16.mxu0 %v2375_v20  ;;  %v2324_v19 = vcombine.low %v205_v8, %v209_v9  ;;  %v2331_v20 = vcombine.high %v212_v14, %v216_v15  ;;  %v272_v7 = vld [vmem:[%s3302_s13 + $0x2f0] sm:$0xff]  ;;  %v269_v8 = vld [vmem:[%s3302_s13 + $0x2d8] sm:$0xff] }
  0x77   : > { %1626 = vmatprep.mubr.bf16.mxu1 %v2377_v21  ;;  %v2333_v21 = vcombine.high %v213_v16, %v217_v17  ;;  %v273_v9 = vld [vmem:[%s3302_s13 + $0x2f8] sm:$0xff] }
  0x7d   : > { %1482 = vmatmul.mubr.bf16.gmra.mxu0 %v2374_v26  ;;  %v2330_v26 = vcombine.low %v212_v14, %v216_v15 }
  0x7e   : > { %1627 = vmatmul.mubr.bf16.gmra.mxu1 %v2376_v27  ;;  %1489 = vmatprep.mubr.bf16.mxu0 %v2383_v28  ;;  %v2332_v27 = vcombine.low %v213_v16, %v217_v17  ;;  %v2339_v28 = vcombine.high %v220_v22, %v224_v23  ;;  %v3513_v16 = vld [vmem:[%s3775_s2] ss:$0 sm:$0xff] }
  0x7f   : > { %1634 = vmatprep.mubr.bf16.mxu1 %v2385_v29  ;;  %v2341_v29 = vcombine.high %v221_v24, %v225_v25 }
  0x85   : > { %1490 = vmatmul.mubr.bf16.gmra.mxu0 %v2382_v34  ;;  %v2338_v34 = vcombine.low %v220_v22, %v224_v23  ;;  %v277_v22 = vld [vmem:[%s3302_s13 + $0x318] sm:$0xff] }
  0x86   : > { %1635 = vmatmul.mubr.bf16.gmra.mxu1 %v2384_v35  ;;  %1497 = vmatprep.mubr.bf16.mxu0 %v2391_v36  ;;  %v2340_v35 = vcombine.low %v221_v24, %v225_v25  ;;  %v2347_v36 = vcombine.high %v228_v30, %v232_v31  ;;  %v281_v23 = vld [vmem:[%s3302_s13 + $0x338] sm:$0xff] }
  0x87   : > { %1642 = vmatprep.mubr.bf16.mxu1 %v2393_v37  ;;  %v2349_v37 = vcombine.high %v229_v32, %v233_v33 }
  0x8d   : > { %1498 = vmatmul.mubr.bf16.gmra.mxu0 %v2390_v42  ;;  %v2346_v42 = vcombine.low %v228_v30, %v232_v31 }
  0x8e   : > { %1643 = vmatmul.mubr.bf16.gmra.mxu1 %v2392_v43  ;;  %1505 = vmatprep.mubr.bf16.mxu0 %v2399_v44  ;;  %v2348_v43 = vcombine.low %v229_v32, %v233_v33  ;;  %v2355_v44 = vcombine.high %v236_v38, %v240_v39  ;;  %v2397_v32 = vcombine.high %v277_v22, %v281_v23 }
  0x8f   : > { %1650 = vmatprep.mubr.bf16.mxu1 %v2401_v45  ;;  %v2357_v45 = vcombine.high %v237_v40, %v241_v41 }
  0x95   : > { %1506 = vmatmul.mubr.bf16.gmra.mxu0 %v2398_v50  ;;  %v2354_v50 = vcombine.low %v236_v38, %v240_v39 }
  0x96   : > { %1651 = vmatmul.mubr.bf16.gmra.mxu1 %v2400_v51  ;;  %1691 = vmatprep.mubr.bf16.mxu0 %v2299_v52  ;;  %v2356_v51 = vcombine.low %v237_v40, %v241_v41  ;;  %v2363_v52 = vcombine.high %v244_v46, %v248_v47  ;;  %v284_v41 = vld [vmem:[%s3302_s13 + $0x350] sm:$0xff] }
  0x97   : > { %1836 = vmatprep.mubr.bf16.mxu1 %v2301_v53  ;;  %v2365_v53 = vcombine.high %v245_v48, %v249_v49 }
  0x9d   : > { %1692 = vmatmul.mubr.bf16.vlgmr.msra.gmra.mxu0 %v2298_v58  ;;  %v2362_v58 = vcombine.low %v244_v46, %v248_v47  ;;  %v285_v46 = vld [vmem:[%s3302_s13 + $0x358] sm:$0xff] }
  0x9e   : > { %1837 = vmatmul.mubr.bf16.vlgmr.msra.gmra.mxu1 %v2300_v59  ;;  %1699 = vmatprep.mubr.bf16.mxu0 %v2307_v60  ;;  %v2364_v59 = vcombine.low %v245_v48, %v249_v49  ;;  %v2371_v60 = vcombine.high %v252_v54, %v256_v55  ;;  %v289_v47 = vld [vmem:[%s3302_s13 + $0x378] sm:$0xff] }
  0x9f   : > { %1844 = vmatprep.mubr.bf16.mxu1 %v2309_v61  ;;  %v2373_v61 = vcombine.high %v253_v56, %v257_v57 }
  0xa5   : > { %1700 = vmatmul.mubr.bf16.gmra.mxu0 %v2306_v2  ;;  %v2370_v2 = vcombine.low %v252_v54, %v256_v55 }
  0xa6   : > { %1845 = vmatmul.mubr.bf16.gmra.mxu1 %v2308_v3  ;;  %1707 = vmatprep.mubr.bf16.mxu0 %v2315_v4  ;;  %v2372_v3 = vcombine.low %v253_v56, %v257_v57  ;;  %v2379_v4 = vcombine.high %v260_v62, %v264_v63  ;;  %v2405_v56 = vcombine.high %v285_v46, %v289_v47 }
  0xa7   : > { %1852 = vmatprep.mubr.bf16.mxu1 %v2317_v5  ;;  %v2381_v5 = vcombine.high %v261_v0, %v265_v1 }
  0xad   : > { %1708 = vmatmul.mubr.bf16.gmra.mxu0 %v2314_v10  ;;  %v2378_v10 = vcombine.low %v260_v62, %v264_v63 }
  0xae   : > { %1853 = vmatmul.mubr.bf16.gmra.mxu1 %v2316_v11  ;;  %1715 = vmatprep.mubr.bf16.mxu0 %v2323_v12  ;;  %v2380_v11 = vcombine.low %v261_v0, %v265_v1  ;;  %v2387_v12 = vcombine.high %v268_v6, %v272_v7 }
  0xaf   : > { %1860 = vmatprep.mubr.bf16.mxu1 %v2325_v13  ;;  %v2389_v13 = vcombine.high %v269_v8, %v273_v9 }
  0xb5   : > { %1716 = vmatmul.mubr.bf16.gmra.mxu0 %v2322_v18  ;;  %v276_v18 = vld [vmem:[%s3302_s13 + $0x310] sm:$0xff] }
  0xb6   : > { %1861 = vmatmul.mubr.bf16.gmra.mxu1 %v2324_v19  ;;  %1723 = vmatprep.mubr.bf16.mxu0 %v2331_v20  ;;  %v280_v19 = vld [vmem:[%s3302_s13 + $0x330] sm:$0xff] }
  0xb7   : > { %1868 = vmatprep.mubr.bf16.mxu1 %v2333_v21  ;;  %v2395_v30 = vcombine.high %v276_v18, %v280_v19 }
  0xbd   : > { %1724 = vmatmul.mubr.bf16.gmra.mxu0 %v2330_v26  ;;  %v2386_v26 = vcombine.low %v268_v6, %v272_v7 }
  0xbe   : > { %1869 = vmatmul.mubr.bf16.gmra.mxu1 %v2332_v27  ;;  %1731 = vmatprep.mubr.bf16.mxu0 %v2339_v28 }
  0xbf   : > { %1876 = vmatprep.mubr.bf16.mxu1 %v2341_v29  ;;  %v2388_v29 = vcombine.low %v269_v8, %v273_v9  ;;  %v2404_v9 = vcombine.low %v285_v46, %v289_v47 }
  0xc5   : > { %1732 = vmatmul.mubr.bf16.gmra.mxu0 %v2338_v34 }
  0xc6   : > { %1877 = vmatmul.mubr.bf16.gmra.mxu1 %v2340_v35  ;;  %1739 = vmatprep.mubr.bf16.mxu0 %v2347_v36 }
  0xc7   : > { %1884 = vmatprep.mubr.bf16.mxu1 %v2349_v37 }
  0xcd   : > { %1740 = vmatmul.mubr.bf16.gmra.mxu0 %v2346_v42  ;;  %v288_v42 = vld [vmem:[%s3302_s13 + $0x370] sm:$0xff]  ;;  %s2292_s13 = sshll.u32 %s3778_s19, 2 }
  0xce   : > { %1885 = vmatmul.mubr.bf16.gmra.mxu1 %v2348_v43  ;;  %1747 = vmatprep.mubr.bf16.mxu0 %v2355_v44  ;;  %v2403_v54 = vcombine.high %v284_v41, %v288_v42  ;;  %v2402_v6 = vcombine.low %v284_v41, %v288_v42  ;;  %s3635_s28 = scalar_lea.vmem %s3776_s3, %s2292_s13 }
  0xcf   : > { %1892 = vmatprep.mubr.bf16.mxu1 %v2357_v45 }
  0xd5   : > { %1748 = vmatmul.mubr.bf16.gmra.mxu0 %v2354_v50  ;;  %v2394_v50 = vcombine.low %v276_v18, %v280_v19 }
  0xd6   : > { %1893 = vmatmul.mubr.bf16.gmra.mxu1 %v2356_v51  ;;  %1755 = vmatprep.mubr.bf16.mxu0 %v2363_v52 }
  0xd7   : > { %1900 = vmatprep.mubr.bf16.mxu1 %v2365_v53  ;;  %v2396_v53 = vcombine.low %v277_v22, %v281_v23 }
  0xdd   : > { %1756 = vmatmul.mubr.bf16.gmra.mxu0 %v2362_v58 }
  0xde   : > { %1901 = vmatmul.mubr.bf16.gmra.mxu1 %v2364_v59  ;;  %1763 = vmatprep.mubr.bf16.mxu0 %v2371_v60 }
  0xdf   : > { %1908 = vmatprep.mubr.bf16.mxu1 %v2373_v61 }
  0xe5   : > { %1764 = vmatmul.mubr.bf16.gmra.mxu0 %v2370_v2 }
  0xe6   : > { %1909 = vmatmul.mubr.bf16.gmra.mxu1 %v2372_v3  ;;  %1771 = vmatprep.mubr.bf16.mxu0 %v2379_v4 }
  0xe7   : > { %1916 = vmatprep.mubr.bf16.mxu1 %v2381_v5 }
  0xed   : > { %v2656_v14 = vpop.f32.mrf.mxu0  ;;  %1772 = vmatmul.mubr.bf16.gmra.mxu0 %v2378_v10 }
  0xee   : > { %v2756_v15 = vpop.f32.mrf.mxu1  ;;  %1917 = vmatmul.mubr.bf16.gmra.mxu1 %v2380_v11  ;;  %1779 = vmatprep.mubr.bf16.mxu0 %v2387_v12 }
  0xef   : > { %v2657_v17 = vpop.f32.mrf.mxu0  ;;  %1924 = vmatprep.mubr.bf16.mxu1 %v2389_v13 }
  0xf0   : > { %v2658_v20 = vadd.f32 %v2657_v17, %v2656_v14  ;;  %v2757_v21 = vpop.f32.mrf.mxu1 }
  0xf1   : > { %v2758_v24 = vadd.f32 %v2757_v21, %v2756_v15  ;;  %v2659_v25 = vpop.f32.mrf.mxu0 }
  0xf2   : > { %v1404_v27 = vadd.f32 %v2658_v20, %v3513_v16  ;;  %v2759_v28 = vpop.f32.mrf.mxu1 }
  0xf3   : > { %v2660_v31 = vpop.f32.mrf.mxu0 }
  0xf4   : > { %v3520_v33 = vadd.f32 %v2758_v24, %v1404_v27  ;;  %v2661_v34 = vadd.f32 %v2660_v31, %v2659_v25  ;;  %v2760_v35 = vpop.f32.mrf.mxu1 }
  0xf5   : > { %v2761_v36 = vadd.f32 %v2760_v35, %v2759_v28  ;;  %v2662_v37 = vpop.f32.mrf.mxu0  ;;  %1780 = vmatmul.mubr.bf16.gmra.mxu0 %v2386_v26 }
  0xf6   : > { %v1407_v38 = vadd.f32 %v2661_v34, %v3513_v16  ;;  %v2762_v39 = vpop.f32.mrf.mxu1  ;;  %1925 = vmatmul.mubr.bf16.gmra.mxu1 %v2388_v29  ;;  %1787 = vmatprep.mubr.bf16.mxu0 %v2395_v30 }
  0xf7   : > { %v2663_v40 = vpop.f32.mrf.mxu0  ;;  %1932 = vmatprep.mubr.bf16.mxu1 %v2397_v32 }
  0xf8   : > { %v3525_v43 = vadd.f32 %v2761_v36, %v1407_v38  ;;  %v2664_v44 = vadd.f32 %v2663_v40, %v2662_v37  ;;  %v2763_v45 = vpop.f32.mrf.mxu1 }
  0xf9   : > { %v2764_v48 = vadd.f32 %v2763_v45, %v2762_v39  ;;  %v2665_v49 = vpop.f32.mrf.mxu0 }
  0xfa   : > { %v1412_v51 = vadd.f32 %v2664_v44, %v3513_v16  ;;  %v2765_v52 = vpop.f32.mrf.mxu1 }
  0xfb   : > { %v2666_v55 = vpop.f32.mrf.mxu0 }
  0xfc   : > { %v3530_v57 = vadd.f32 %v2764_v48, %v1412_v51  ;;  %v2667_v58 = vadd.f32 %v2666_v55, %v2665_v49  ;;  %v2766_v59 = vpop.f32.mrf.mxu1 }
  0xfd   : > { %v2767_v60 = vadd.f32 %v2766_v59, %v2765_v52  ;;  %v2668_v61 = vpop.f32.mrf.mxu0  ;;  %1788 = vmatmul.mubr.bf16.gmra.mxu0 %v2394_v50 }
  0xfe   : > { %v1415_v62 = vadd.f32 %v2667_v58, %v3513_v16  ;;  %v2768_v63 = vpop.f32.mrf.mxu1  ;;  %1933 = vmatmul.mubr.bf16.gmra.mxu1 %v2396_v53  ;;  %1795 = vmatprep.mubr.bf16.mxu0 %v2403_v54 }
  0xff   : > { %v2669_v0 = vpop.f32.mrf.mxu0  ;;  %1940 = vmatprep.mubr.bf16.mxu1 %v2405_v56 }
 0x100   : > { %v3533_v1 = vadd.f32 %v2767_v60, %v1415_v62  ;;  %v2670_v2 = vadd.f32 %v2669_v0, %v2668_v61  ;;  %v2769_v3 = vpop.f32.mrf.mxu1 }
 0x101   : > { %v2770_v4 = vadd.f32 %v2769_v3, %v2768_v63  ;;  %v2671_v5 = vpop.f32.mrf.mxu0 }
 0x102   : > { %v1420_v7 = vadd.f32 %v2670_v2, %v3513_v16  ;;  %v2771_v8 = vpop.f32.mrf.mxu1 }
 0x103   : > { %v2672_v10 = vpop.f32.mrf.mxu0 }
 0x104   : > { %v3536_v11 = vadd.f32 %v2770_v4, %v1420_v7  ;;  %v2673_v12 = vadd.f32 %v2672_v10, %v2671_v5  ;;  %v2772_v13 = vpop.f32.mrf.mxu1 }
 0x105   : > { %v2773_v14 = vadd.f32 %v2772_v13, %v2771_v8  ;;  %v2674_v15 = vpop.f32.mrf.mxu0  ;;  %1796 = vmatmul.mubr.bf16.gmra.mxu0 %v2402_v6 }
 0x106   : > { %v1423_v17 = vadd.f32 %v2673_v12, %v3513_v16  ;;  %v2774_v18 = vpop.f32.mrf.mxu1  ;;  %1941 = vmatmul.mubr.bf16.gmra.mxu1 %v2404_v9 }
 0x107   : > { %v2675_v19 = vpop.f32.mrf.mxu0 }
 0x108   : > { %v3539_v20 = vadd.f32 %v2773_v14, %v1423_v17  ;;  %v2676_v21 = vadd.f32 %v2675_v19, %v2674_v15  ;;  %v2775_v22 = vpop.f32.mrf.mxu1 }
 0x109   : > { %v2776_v23 = vadd.f32 %v2775_v22, %v2774_v18  ;;  %v2677_v24 = vpop.f32.mrf.mxu0 }
 0x10a   : > { %v1428_v25 = vadd.f32 %v2676_v21, %v3513_v16  ;;  %v2777_v26 = vpop.f32.mrf.mxu1 }
 0x10b   : > { %v2678_v27 = vpop.f32.mrf.mxu0 }
 0x10c   : > { %v3542_v28 = vadd.f32 %v2776_v23, %v1428_v25  ;;  %v2679_v29 = vadd.f32 %v2678_v27, %v2677_v24  ;;  %v2778_v30 = vpop.f32.mrf.mxu1 }
 0x10d   : > { %v2779_v31 = vadd.f32 %v2778_v30, %v2777_v26  ;;  %v2680_v32 = vpop.f32.mrf.mxu0 }
 0x10e   : > { %v1431_v34 = vadd.f32 %v2679_v29, %v3513_v16  ;;  %v2780_v35 = vpop.f32.mrf.mxu1 }
 0x10f   : > { %v2681_v36 = vpop.f32.mrf.mxu0 }
 0x110   : > { %v3545_v37 = vadd.f32 %v2779_v31, %v1431_v34  ;;  %v2682_v38 = vadd.f32 %v2681_v36, %v2680_v32  ;;  %v2781_v39 = vpop.f32.mrf.mxu1 }
 0x111   : > { %v2782_v40 = vadd.f32 %v2781_v39, %v2780_v35  ;;  %v2683_v41 = vpop.f32.mrf.mxu0 }
 0x112   : > { %v1436_v42 = vadd.f32 %v2682_v38, %v3513_v16  ;;  %v2783_v44 = vpop.f32.mrf.mxu1 }
 0x113   : > { %v2684_v45 = vpop.f32.mrf.mxu0 }
 0x114   : > { %v3548_v46 = vadd.f32 %v2782_v40, %v1436_v42  ;;  %v2685_v47 = vadd.f32 %v2684_v45, %v2683_v41  ;;  %v2784_v48 = vpop.f32.mrf.mxu1 }
 0x115   : > { %v2785_v49 = vadd.f32 %v2784_v48, %v2783_v44  ;;  %v2686_v50 = vpop.f32.mrf.mxu0 }
 0x116   : > { %v1439_v51 = vadd.f32 %v2685_v47, %v3513_v16  ;;  %v2786_v52 = vpop.f32.mrf.mxu1 }
 0x117   : > { %v2687_v53 = vpop.f32.mrf.mxu0 }
 0x118   : > { %v3551_v54 = vadd.f32 %v2785_v49, %v1439_v51  ;;  %v2688_v55 = vadd.f32 %v2687_v53, %v2686_v50  ;;  %v2787_v56 = vpop.f32.mrf.mxu1 }
 0x119   : > { %v2788_v58 = vadd.f32 %v2787_v56, %v2786_v52  ;;  %v2689_v59 = vpop.f32.mrf.mxu0 }
 0x11a   : > { %v1444_v60 = vadd.f32 %v2688_v55, %v3513_v16  ;;  %v2789_v61 = vpop.f32.mrf.mxu1 }
 0x11b   : > { %v2690_v62 = vpop.f32.mrf.mxu0 }
 0x11c   : > { %v3554_v63 = vadd.f32 %v2788_v58, %v1444_v60  ;;  %v2691_v0 = vadd.f32 %v2690_v62, %v2689_v59  ;;  %v2790_v2 = vpop.f32.mrf.mxu1 }
 0x11d   : > { %v2791_v3 = vadd.f32 %v2790_v2, %v2789_v61  ;;  %v2692_v4 = vpop.f32.mrf.mxu0 }
 0x11e   : > { %v1447_v5 = vadd.f32 %v2691_v0, %v3513_v16  ;;  %v2792_v6 = vpop.f32.mrf.mxu1 }
 0x11f   : > { %v2693_v7 = vpop.f32.mrf.mxu0 }
 0x120   : > { %v3557_v8 = vadd.f32 %v2791_v3, %v1447_v5  ;;  %v2694_v9 = vadd.f32 %v2693_v7, %v2692_v4  ;;  %v2793_v10 = vpop.f32.mrf.mxu1 }
 0x121   : > { %v2794_v12 = vadd.f32 %v2793_v10, %v2792_v6  ;;  %v2695_v13 = vpop.f32.mrf.mxu0 }
 0x122   : > { %v1452_v14 = vadd.f32 %v2694_v9, %v3513_v16  ;;  %v2795_v15 = vpop.f32.mrf.mxu1 }
 0x123   : > { %v2696_v17 = vpop.f32.mrf.mxu0 }
 0x124   : > { %v3560_v18 = vadd.f32 %v2794_v12, %v1452_v14  ;;  %v2697_v19 = vadd.f32 %v2696_v17, %v2695_v13  ;;  %v2796_v21 = vpop.f32.mrf.mxu1 }
 0x125   : > { %v2797_v22 = vadd.f32 %v2796_v21, %v2795_v15  ;;  %v2698_v23 = vpop.f32.mrf.mxu0 }
 0x126   : > { %v1455_v24 = vadd.f32 %v2697_v19, %v3513_v16  ;;  %v2798_v25 = vpop.f32.mrf.mxu1 }
 0x127   : > { %v2699_v26 = vpop.f32.mrf.mxu0 }
 0x128   : > { %v3563_v27 = vadd.f32 %v2797_v22, %v1455_v24  ;;  %v2700_v29 = vadd.f32 %v2699_v26, %v2698_v23  ;;  %v2799_v30 = vpop.f32.mrf.mxu1 }
 0x129   : > { %v2800_v31 = vadd.f32 %v2799_v30, %v2798_v25  ;;  %v2701_v32 = vpop.f32.mrf.mxu0 }
 0x12a   : > { %v1460_v34 = vadd.f32 %v2700_v29, %v3513_v16  ;;  %v2801_v35 = vpop.f32.mrf.mxu1 }
 0x12b   : > { %v2702_v36 = vpop.f32.mrf.mxu0 }
 0x12c   : > { %v3566_v38 = vadd.f32 %v2800_v31, %v1460_v34  ;;  %v2703_v39 = vadd.f32 %v2702_v36, %v2701_v32  ;;  %v2802_v40 = vpop.f32.mrf.mxu1 }
 0x12d   : > { %v2803_v41 = vadd.f32 %v2802_v40, %v2801_v35  ;;  %v2704_v42 = vpop.f32.mrf.mxu0 }
 0x12e   : > { %v1463_v44 = vadd.f32 %v2703_v39, %v3513_v16  ;;  %v2804_v45 = vpop.f32.mrf.mxu1 }
 0x12f   : > { %v2705_v47 = vpop.f32.mrf.mxu0 }
 0x130   : > { %v3569_v48 = vadd.f32 %v2803_v41, %v1463_v44  ;;  %v2706_v49 = vadd.f32 %v2705_v47, %v2704_v42  ;;  %v2805_v50 = vpop.f32.mrf.mxu1 }
 0x131   : > { %v2806_v51 = vadd.f32 %v2805_v50, %v2804_v45  ;;  %v2707_v52 = vpop.f32.mrf.mxu0 }
 0x132   : > { %v1468_v53 = vadd.f32 %v2706_v49, %v3513_v16  ;;  %v2807_v55 = vpop.f32.mrf.mxu1 }
 0x133   : > { %v2708_v56 = vpop.f32.mrf.mxu0 }
 0x134   : > { %v3572_v58 = vadd.f32 %v2806_v51, %v1468_v53  ;;  %v2709_v59 = vadd.f32 %v2708_v56, %v2707_v52  ;;  %v2808_v60 = vpop.f32.mrf.mxu1 }
 0x135   : > { %v2809_v61 = vadd.f32 %v2808_v60, %v2807_v55  ;;  %v2710_v62 = vpop.f32.mrf.mxu0 }
 0x136   : > { %v1471_v0 = vadd.f32 %v2709_v59, %v3513_v16  ;;  %v2810_v2 = vpop.f32.mrf.mxu1 }
 0x137   : > { %v2711_v3 = vpop.f32.mrf.mxu0 }
 0x138   : > { %v3575_v4 = vadd.f32 %v2809_v61, %v1471_v0  ;;  %v2712_v5 = vadd.f32 %v2711_v3, %v2710_v62  ;;  %v2811_v6 = vpop.f32.mrf.mxu1 }
 0x139   : > { %v2812_v7 = vadd.f32 %v2811_v6, %v2810_v2  ;;  %v2713_v9 = vpop.f32.mrf.mxu0 }
 0x13a   : > { %v1476_v10 = vadd.f32 %v2712_v5, %v3513_v16  ;;  %v2813_v12 = vpop.f32.mrf.mxu1 }
 0x13b   : > { %v2714_v13 = vpop.f32.mrf.mxu0 }
 0x13c   : > { %v3578_v14 = vadd.f32 %v2812_v7, %v1476_v10  ;;  %v2715_v15 = vadd.f32 %v2714_v13, %v2713_v9  ;;  %v2814_v17 = vpop.f32.mrf.mxu1 }
 0x13d   : > { %v2815_v19 = vadd.f32 %v2814_v17, %v2813_v12  ;;  %v2716_v21 = vpop.f32.mrf.mxu0 }
 0x13e   : > { %v1479_v22 = vadd.f32 %v2715_v15, %v3513_v16  ;;  %v2816_v23 = vpop.f32.mrf.mxu1 }
 0x13f   : > { %v2717_v24 = vpop.f32.mrf.mxu0 }
 0x140   : > { %v3581_v25 = vadd.f32 %v2815_v19, %v1479_v22  ;;  %v2718_v26 = vadd.f32 %v2717_v24, %v2716_v21  ;;  %v2817_v29 = vpop.f32.mrf.mxu1 }
 0x141   : > { %v2818_v30 = vadd.f32 %v2817_v29, %v2816_v23  ;;  %v2719_v31 = vpop.f32.mrf.mxu0 }
 0x142   : > { %v1484_v32 = vadd.f32 %v2718_v26, %v3513_v16  ;;  %v2819_v34 = vpop.f32.mrf.mxu1 }
 0x143   : > { %v2720_v35 = vpop.f32.mrf.mxu0 }
 0x144   : > { %v3584_v36 = vadd.f32 %v2818_v30, %v1484_v32  ;;  %v2721_v39 = vadd.f32 %v2720_v35, %v2719_v31  ;;  %v2820_v40 = vpop.f32.mrf.mxu1 }
 0x145   : > { %v2821_v41 = vadd.f32 %v2820_v40, %v2819_v34  ;;  %v2722_v42 = vpop.f32.mrf.mxu0 }
 0x146   : > { %v1487_v44 = vadd.f32 %v2721_v39, %v3513_v16  ;;  %v2822_v45 = vpop.f32.mrf.mxu1 }
 0x147   : > { %v2723_v47 = vpop.f32.mrf.mxu0 }
 0x148   : > { %v3587_v49 = vadd.f32 %v2821_v41, %v1487_v44  ;;  %v2724_v50 = vadd.f32 %v2723_v47, %v2722_v42  ;;  %v2823_v51 = vpop.f32.mrf.mxu1 }
 0x149   : > { %v2824_v52 = vadd.f32 %v2823_v51, %v2822_v45  ;;  %v2725_v53 = vpop.f32.mrf.mxu0 }
 0x14a   : > { %v1492_v55 = vadd.f32 %v2724_v50, %v3513_v16  ;;  %v2825_v56 = vpop.f32.mrf.mxu1 }
 0x14b   : > { %v2726_v59 = vpop.f32.mrf.mxu0 }
 0x14c   : > { %v3590_v60 = vadd.f32 %v2824_v52, %v1492_v55  ;;  %v2727_v61 = vadd.f32 %v2726_v59, %v2725_v53  ;;  %v2826_v62 = vpop.f32.mrf.mxu1 }
 0x14d   : > { %v2827_v0 = vadd.f32 %v2826_v62, %v2825_v56  ;;  %v2728_v2 = vpop.f32.mrf.mxu0 }
 0x14e   : > { %v1495_v3 = vadd.f32 %v2727_v61, %v3513_v16  ;;  %v2828_v5 = vpop.f32.mrf.mxu1 }
 0x14f   : > { %v2729_v6 = vpop.f32.mrf.mxu0 }
 0x150   : > { %v3593_v7 = vadd.f32 %v2827_v0, %v1495_v3  ;;  %v2730_v9 = vadd.f32 %v2729_v6, %v2728_v2  ;;  %v2829_v10 = vpop.f32.mrf.mxu1 }
 0x151   : > { %v2830_v12 = vadd.f32 %v2829_v10, %v2828_v5  ;;  %v2731_v13 = vpop.f32.mrf.mxu0 }
 0x152   : > { %v1500_v15 = vadd.f32 %v2730_v9, %v3513_v16  ;;  %v2831_v17 = vpop.f32.mrf.mxu1 }
 0x153   : > { %v2732_v19 = vpop.f32.mrf.mxu0 }
 0x154   : > { %v3596_v21 = vadd.f32 %v2830_v12, %v1500_v15  ;;  %v2733_v22 = vadd.f32 %v2732_v19, %v2731_v13  ;;  %v2832_v23 = vpop.f32.mrf.mxu1 }
 0x155   : > { %v2833_v24 = vadd.f32 %v2832_v23, %v2831_v17  ;;  %v2734_v26 = vpop.f32.mrf.mxu0 }
 0x156   : > { %v1503_v29 = vadd.f32 %v2733_v22, %v3513_v16  ;;  %v2834_v30 = vpop.f32.mrf.mxu1 }
 0x157   : > { %v2735_v31 = vpop.f32.mrf.mxu0 }
 0x158   : > { %v3599_v32 = vadd.f32 %v2833_v24, %v1503_v29  ;;  %v2736_v34 = vadd.f32 %v2735_v31, %v2734_v26  ;;  %v2835_v35 = vpop.f32.mrf.mxu1 }
 0x159   : > { %v2836_v39 = vadd.f32 %v2835_v35, %v2834_v30  ;;  %v2737_v40 = vpop.f32.mrf.mxu0 }
 0x15a   : > { %v1508_v41 = vadd.f32 %v2736_v34, %v3513_v16  ;;  %v2837_v42 = vpop.f32.mrf.mxu1 }
 0x15b   : > { %v2738_v44 = vpop.f32.mrf.mxu0 }
 0x15c   : > { %v3602_v45 = vadd.f32 %v2836_v39, %v1508_v41  ;;  %v2739_v47 = vadd.f32 %v2738_v44, %v2737_v40  ;;  %v2838_v50 = vpop.f32.mrf.mxu1 }
 0x15d   : > { %v2839_v51 = vadd.f32 %v2838_v50, %v2837_v42  ;;  %v2856_v52 = vpop.f32.mrf.mxu0 }
 0x15e   : > { %v1511_v53 = vadd.f32 %v2739_v47, %v3513_v16  ;;  %v2956_v55 = vpop.f32.mrf.mxu1 }
 0x15f   : > { %v2857_v56 = vpop.f32.mrf.mxu0 }
 0x160   : > { %v3605_v59 = vadd.f32 %v2839_v51, %v1511_v53  ;;  %v2858_v61 = vadd.f32 %v2857_v56, %v2856_v52  ;;  %v2957_v62 = vpop.f32.mrf.mxu1 }
 0x161   : > { %v2859_v0 = vpop.f32.mrf.mxu0  ;;  %v2958_v3 = vadd.f32 %v2957_v62, %v2956_v55 }
 0x162   : > { %v1694_v2 = vadd.f32 %v2858_v61, %v3520_v33  ;;  %v2959_v5 = vpop.f32.mrf.mxu1 }
 0x163   : > { %v2860_v6 = vpop.f32.mrf.mxu0 }
 0x164   : > { %v3608_v9 = vadd.f32 %v2958_v3, %v1694_v2  ;;  %v2861_v10 = vadd.f32 %v2860_v6, %v2859_v0  ;;  %v2960_v12 = vpop.f32.mrf.mxu1 }
 0x165   : > { %v2862_v13 = vpop.f32.mrf.mxu0  ;;  %v2961_v17 = vadd.f32 %v2960_v12, %v2959_v5 }
 0x166   : > { %v1977_v15 = vmul.f32 1.442695, %v3608_v9  ;;  %v1697_v16 = vadd.f32 %v2861_v10, %v3525_v43  ;;  %v2962_v19 = vpop.f32.mrf.mxu1  ;;  %vm1949_vm0 = vcmp.gt.f32.partialorder %v3608_v9, 0.0 }
 0x167   : > { %v2863_v22 = vpop.f32.mrf.mxu0 }
 0x168   : > { %3112 = vpow2.f32 %v1977_v15  ;;  %v1842_v23 = vadd.f32 %v2961_v17, %v1697_v16  ;;  %v2864_v24 = vadd.f32 %v2863_v22, %v2862_v13  ;;  %v2963_v26 = vpop.f32.mrf.mxu1 }
 0x169   : > { %v2865_v33 = vpop.f32.mrf.mxu0  ;;  %v2964_v31 = vadd.f32 %v2963_v26, %v2962_v19 }
 0x16a   : > { %v1979_v29 = vmul.f32 1.442695, %v1842_v23  ;;  %v1702_v30 = vadd.f32 %v2864_v24, %v3530_v57  ;;  %v2965_v34 = vpop.f32.mrf.mxu1  ;;  %vm1950_vm1 = vcmp.gt.f32.partialorder %v1842_v23, 0.0 }
 0x16b   : > { %v2866_v35 = vpop.f32.mrf.mxu0 }
 0x16c   : > { %3114 = vpow2.f32 %v1979_v29  ;;  %v3613_v39 = vadd.f32 %v2964_v31, %v1702_v30  ;;  %v2867_v40 = vadd.f32 %v2866_v35, %v2865_v33  ;;  %v2966_v41 = vpop.f32.mrf.mxu1 }
 0x16d   : > { %v2868_v43 = vpop.f32.mrf.mxu0  ;;  %v2967_v47 = vadd.f32 %v2966_v41, %v2965_v34 }
 0x16e   : > { %v1981_v42 = vmul.f32 1.442695, %v3613_v39  ;;  %v1705_v44 = vadd.f32 %v2867_v40, %v3533_v1  ;;  %v2968_v50 = vpop.f32.mrf.mxu1  ;;  %vm1951_vm2 = vcmp.gt.f32.partialorder %v3613_v39, 0.0 }
 0x16f   : > { %v2869_v51 = vpop.f32.mrf.mxu0 }
 0x170   : > { %3116 = vpow2.f32 %v1981_v42  ;;  %v3617_v52 = vadd.f32 %v2967_v47, %v1705_v44  ;;  %v2870_v57 = vadd.f32 %v2869_v51, %v2868_v43  ;;  %v2969_v53 = vpop.f32.mrf.mxu1 }
 0x171   : > { %v2871_v55 = vpop.f32.mrf.mxu0  ;;  %v2970_v62 = vadd.f32 %v2969_v53, %v2968_v50 }
 0x172   : > { %v1983_v56 = vmul.f32 1.442695, %v3617_v52  ;;  %v1710_v61 = vadd.f32 %v2870_v57, %v3536_v11  ;;  %v2971_v0 = vpop.f32.mrf.mxu1  ;;  %vm1952_vm3 = vcmp.gt.f32.partialorder %v3617_v52, 0.0 }
 0x173   : > { %v2872_v2 = vpop.f32.mrf.mxu0 }
 0x174   : > { %3118 = vpow2.f32 %v1983_v56  ;;  %v3621_v3 = vadd.f32 %v2970_v62, %v1710_v61  ;;  %v2873_v1 = vadd.f32 %v2872_v2, %v2871_v55  ;;  %v2972_v5 = vpop.f32.mrf.mxu1 }
 0x175   : > { %v3113_v6 = vpop.eup %3112  ;;  %v2874_v10 = vpop.f32.mrf.mxu0  ;;  %v2973_v15 = vadd.f32 %v2972_v5, %v2971_v0 }
 0x176   : > { %v1985_v12 = vmul.f32 1.442695, %v3621_v3  ;;  %v1713_v13 = vadd.f32 %v2873_v1, %v3539_v20  ;;  %v2974_v16 = vpop.f32.mrf.mxu1  ;;  %v2470_v17 = vadd.f32 -1.0, %v3113_v6  ;;  %vm1953_vm4 = vcmp.gt.f32.partialorder %v3621_v3, 0.0 }
 0x177   : > { %v2875_v19 = vpop.f32.mrf.mxu0 }
 0x178   : > { %3120 = vpow2.f32 %v1985_v12  ;;  %v3625_v11 = vadd.f32 %v2973_v15, %v1713_v13  ;;  %v2876_v22 = vadd.f32 %v2875_v19, %v2874_v10  ;;  %v2975_v24 = vpop.f32.mrf.mxu1  ;;  %v2061_v35 = vsel %vm1949_vm0, %v3608_v9, %v2470_v17 }
 0x179   : > { %v3115_v26 = vpop.eup %3114  ;;  %v2877_v33 = vpop.f32.mrf.mxu0  ;;  %v2976_v20 = vadd.f32 %v2975_v24, %v2974_v16 }
 0x17a   : > { %v2471_v29 = vadd.f32 -1.0, %v3115_v26  ;;  %v1987_v30 = vmul.f32 1.442695, %v3625_v11  ;;  %v1718_v31 = vadd.f32 %v2876_v22, %v3542_v28  ;;  %v2977_v34 = vpop.f32.mrf.mxu1  ;;  %vm1954_vm5 = vcmp.gt.f32.partialorder %v3625_v11, 0.0 }
 0x17b   : > { %v2878_v40 = vpop.f32.mrf.mxu0 }
 0x17c   : > { %v2062_v41 = vsel %vm1950_vm1, %v1842_v23, %v2471_v29  ;;  %3122 = vpow2.f32 %v1987_v30  ;;  %v3637_v43 = vadd.f32 %v2976_v20, %v1718_v31  ;;  %v2879_v42 = vadd.f32 %v2878_v40, %v2877_v33  ;;  %v2978_v44 = vpop.f32.mrf.mxu1 }
 0x17d   : > { %v3117_v47 = vpop.eup %3116  ;;  %v2560_v28 = vpack.c.bf16 %v2062_v41, %v2061_v35  ;;  %v2880_v50 = vpop.f32.mrf.mxu0  ;;  %v2979_v57 = vadd.f32 %v2978_v44, %v2977_v34 }
 0x17e   : > { %v1989_v51 = vmul.f32 1.442695, %v3637_v43  ;;  %v1721_v9 = vadd.f32 %v2879_v42, %v3545_v37  ;;  %v2980_v53 = vpop.f32.mrf.mxu1  ;;  %v2472_v55 = vadd.f32 -1.0, %v3117_v47  ;;  %vm1955_vm6 = vcmp.gt.f32.partialorder %v3637_v43, 0.0 }
 0x17f   : > { %2561 = vst [vmem:[%s3635_s28] sm:$0xff] %v2560_v28   ;;  %v2881_v56 = vpop.f32.mrf.mxu0 }
 0x180   : > { %3124 = vpow2.f32 %v1989_v51  ;;  %v3642_v61 = vadd.f32 %v2979_v57, %v1721_v9  ;;  %v2882_v23 = vadd.f32 %v2881_v56, %v2880_v50  ;;  %v2981_v62 = vpop.f32.mrf.mxu1  ;;  %v2063_v12 = vsel %vm1951_vm2, %v3613_v39, %v2472_v55 }
 0x181   : > { %v3119_v0 = vpop.eup %3118  ;;  %v2883_v2 = vpop.f32.mrf.mxu0  ;;  %v2982_v37 = vadd.f32 %v2981_v62, %v2980_v53 }
 0x182   : > { %v2473_v1 = vadd.f32 -1.0, %v3119_v0  ;;  %v1991_v5 = vmul.f32 1.442695, %v3642_v61  ;;  %v1726_v6 = vadd.f32 %v2882_v23, %v3548_v46  ;;  %v2983_v10 = vpop.f32.mrf.mxu1  ;;  %vm1956_vm7 = vcmp.gt.f32.partialorder %v3642_v61, 0.0 }
 0x183   : > { %v2884_v13 = vpop.f32.mrf.mxu0 }
 0x184   : > { %v2064_v15 = vsel %vm1952_vm3, %v3617_v52, %v2473_v1  ;;  %3126 = vpow2.f32 %v1991_v5  ;;  %v3650_v16 = vadd.f32 %v2982_v37, %v1726_v6  ;;  %v2885_v17 = vadd.f32 %v2884_v13, %v2883_v2  ;;  %v2984_v19 = vpop.f32.mrf.mxu1 }
 0x185   : > { %v3121_v22 = vpop.eup %3120  ;;  %v2565_v24 = vpack.c.bf16 %v2064_v15, %v2063_v12  ;;  %v2886_v26 = vpop.f32.mrf.mxu0  ;;  %v2985_v29 = vadd.f32 %v2984_v19, %v2983_v10 }
 0x186   : > { %v1993_v46 = vmul.f32 1.442695, %v3650_v16  ;;  %v1729_v33 = vadd.f32 %v2885_v17, %v3551_v54  ;;  %v2986_v30 = vpop.f32.mrf.mxu1  ;;  %v2474_v39 = vadd.f32 -1.0, %v3121_v22  ;;  %vm1957_vm8 = vcmp.gt.f32.partialorder %v3650_v16, 0.0 }
 0x187   : > { %2627 = vst [vmem:[%s3635_s28 + $0x8] sm:$0xff] %v2565_v24   ;;  %v2887_v31 = vpop.f32.mrf.mxu0 }
 0x188   : > { %3128 = vpow2.f32 %v1993_v46  ;;  %v3655_v20 = vadd.f32 %v2985_v29, %v1729_v33  ;;  %v2888_v52 = vadd.f32 %v2887_v31, %v2886_v26  ;;  %v2987_v34 = vpop.f32.mrf.mxu1  ;;  %v2065_v28 = vsel %vm1953_vm4, %v3621_v3, %v2474_v39 }
 0x189   : > { %v3123_v35 = vpop.eup %3122  ;;  %v2889_v40 = vpop.f32.mrf.mxu0  ;;  %v2988_v54 = vadd.f32 %v2987_v34, %v2986_v30 }
 0x18a   : > { %v2475_v41 = vadd.f32 -1.0, %v3123_v35  ;;  %v1995_v42 = vmul.f32 1.442695, %v3655_v20  ;;  %v1734_v44 = vadd.f32 %v2888_v52, %v3554_v63  ;;  %v2989_v47 = vpop.f32.mrf.mxu1  ;;  %vm1958_vm9 = vcmp.gt.f32.partialorder %v3655_v20, 0.0 }
 0x18b   : > { %v2890_v50 = vpop.f32.mrf.mxu0 }
 0x18c   : > { %v2066_v51 = vsel %vm1954_vm5, %v3625_v11, %v2475_v41  ;;  %3130 = vpow2.f32 %v1995_v42  ;;  %v3663_v9 = vadd.f32 %v2988_v54, %v1734_v44  ;;  %v2891_v57 = vadd.f32 %v2890_v50, %v2889_v40  ;;  %v2990_v53 = vpop.f32.mrf.mxu1 }
 0x18d   : > { %v3125_v55 = vpop.eup %3124  ;;  %v2570_v56 = vpack.c.bf16 %v2066_v51, %v2065_v28  ;;  %v2892_v23 = vpop.f32.mrf.mxu0  ;;  %v2991_v0 = vadd.f32 %v2990_v53, %v2989_v47 }
 0x18e   : > { %v1997_v63 = vmul.f32 1.442695, %v3663_v9  ;;  %v1737_v62 = vadd.f32 %v2891_v57, %v3557_v8  ;;  %v2992_v2 = vpop.f32.mrf.mxu1  ;;  %v2476_v3 = vadd.f32 -1.0, %v3125_v55  ;;  %vm1959_vm10 = vcmp.gt.f32.partialorder %v3663_v9, 0.0 }
 0x18f   : > { %2628 = vst [vmem:[%s3635_s28 + $0x10] sm:$0xff] %v2570_v56   ;;  %v2893_v1 = vpop.f32.mrf.mxu0 }
 0x190   : > { %3132 = vpow2.f32 %v1997_v63  ;;  %v3668_v5 = vadd.f32 %v2991_v0, %v1737_v62  ;;  %v2894_v11 = vadd.f32 %v2893_v1, %v2892_v23  ;;  %v2993_v6 = vpop.f32.mrf.mxu1  ;;  %v2067_v19 = vsel %vm1955_vm6, %v3637_v43, %v2476_v3 }
 0x191   : > { %v3127_v37 = vpop.eup %3126  ;;  %v2895_v10 = vpop.f32.mrf.mxu0  ;;  %v2994_v8 = vadd.f32 %v2993_v6, %v2992_v2 }
 0x192   : > { %v2477_v12 = vadd.f32 -1.0, %v3127_v37  ;;  %v1999_v13 = vmul.f32 1.442695, %v3668_v5  ;;  %v1742_v15 = vadd.f32 %v2894_v11, %v3560_v18  ;;  %v2995_v17 = vpop.f32.mrf.mxu1  ;;  %vm1960_vm11 = vcmp.gt.f32.partialorder %v3668_v5, 0.0 }
 0x193   : > { %v2896_v22 = vpop.f32.mrf.mxu0 }
 0x194   : > { %v2068_v24 = vsel %vm1956_vm7, %v3642_v61, %v2477_v12  ;;  %3134 = vpow2.f32 %v1999_v13  ;;  %v3676_v26 = vadd.f32 %v2994_v8, %v1742_v15  ;;  %v2897_v46 = vadd.f32 %v2896_v22, %v2895_v10  ;;  %v2996_v33 = vpop.f32.mrf.mxu1 }
 0x195   : > { %v3129_v29 = vpop.eup %3128  ;;  %v2575_v30 = vpack.c.bf16 %v2068_v24, %v2067_v19  ;;  %v2898_v39 = vpop.f32.mrf.mxu0  ;;  %v2997_v52 = vadd.f32 %v2996_v33, %v2995_v17 }
 0x196   : > { %v2001_v18 = vmul.f32 1.442695, %v3676_v26  ;;  %v1745_v31 = vadd.f32 %v2897_v46, %v3563_v27  ;;  %v2998_v34 = vpop.f32.mrf.mxu1  ;;  %v2478_v43 = vadd.f32 -1.0, %v3129_v29  ;;  %vm1961_vm12 = vcmp.gt.f32.partialorder %v3676_v26, 0.0 }
 0x197   : > { %2629 = vst [vmem:[%s3635_s28 + $0x18] sm:$0xff] %v2575_v30   ;;  %v2899_v35 = vpop.f32.mrf.mxu0 }
 0x198   : > { %3136 = vpow2.f32 %v2001_v18  ;;  %v3681_v40 = vadd.f32 %v2997_v52, %v1745_v31  ;;  %v2900_v61 = vadd.f32 %v2899_v35, %v2898_v39  ;;  %v2999_v41 = vpop.f32.mrf.mxu1  ;;  %v2069_v51 = vsel %vm1957_vm8, %v3650_v16, %v2478_v43 }
 0x199   : > { %v3131_v42 = vpop.eup %3130  ;;  %v2901_v44 = vpop.f32.mrf.mxu0  ;;  %v3000_v27 = vadd.f32 %v2999_v41, %v2998_v34 }
 0x19a   : > { %v2479_v54 = vadd.f32 -1.0, %v3131_v42  ;;  %v2003_v47 = vmul.f32 1.442695, %v3681_v40  ;;  %v1750_v28 = vadd.f32 %v2900_v61, %v3566_v38  ;;  %v3001_v50 = vpop.f32.mrf.mxu1  ;;  %vm1962_vm13 = vcmp.gt.f32.partialorder %v3681_v40, 0.0 }
 0x19b   : > { %v2902_v57 = vpop.f32.mrf.mxu0 }
 0x19c   : > { %v2070_v53 = vsel %vm1958_vm9, %v3655_v20, %v2479_v54  ;;  %3138 = vpow2.f32 %v2003_v47  ;;  %v3689_v55 = vadd.f32 %v3000_v27, %v1750_v28  ;;  %v2903_v56 = vadd.f32 %v2902_v57, %v2901_v44  ;;  %v3002_v23 = vpop.f32.mrf.mxu1 }
 0x19d   : > { %v3133_v63 = vpop.eup %3132  ;;  %v2580_v62 = vpack.c.bf16 %v2070_v53, %v2069_v51  ;;  %v2904_v0 = vpop.f32.mrf.mxu0  ;;  %v3003_v3 = vadd.f32 %v3002_v23, %v3001_v50 }
 0x19e   : > { %v2005_v38 = vmul.f32 1.442695, %v3689_v55  ;;  %v1753_v2 = vadd.f32 %v2903_v56, %v3569_v48  ;;  %v3004_v1 = vpop.f32.mrf.mxu1  ;;  %v2480_v16 = vadd.f32 -1.0, %v3133_v63  ;;  %vm1963_vm14 = vcmp.gt.f32.partialorder %v3689_v55, 0.0 }
 0x19f   : > { %2630 = vst [vmem:[%s3635_s28 + $0x20] sm:$0xff] %v2580_v62   ;;  %v2905_v11 = vpop.f32.mrf.mxu0 }
 0x1a0   : > { %3140 = vpow2.f32 %v2005_v38  ;;  %v3694_v6 = vadd.f32 %v3003_v3, %v1753_v2  ;;  %v2906_v20 = vadd.f32 %v2905_v11, %v2904_v0  ;;  %v3005_v37 = vpop.f32.mrf.mxu1  ;;  %v2071_v19 = vsel %vm1959_vm10, %v3663_v9, %v2480_v16 }
 0x1a1   : > { %v3135_v10 = vpop.eup %3134  ;;  %v2907_v12 = vpop.f32.mrf.mxu0  ;;  %v3006_v48 = vadd.f32 %v3005_v37, %v3004_v1 }
 0x1a2   : > { %v2481_v13 = vadd.f32 -1.0, %v3135_v10  ;;  %v2007_v15 = vmul.f32 1.442695, %v3694_v6  ;;  %v1758_v8 = vadd.f32 %v2906_v20, %v3572_v58  ;;  %v3007_v17 = vpop.f32.mrf.mxu1  ;;  %vm1964_vm15 = vcmp.gt.f32.partialorder %v3694_v6, 0.0 }
 0x1a3   : > { %v2908_v22 = vpop.f32.mrf.mxu0 }
 0x1a4   : > { %v2072_v24 = vsel %vm1960_vm11, %v3668_v5, %v2481_v13  ;;  %3142 = vpow2.f32 %v2007_v15  ;;  %v3702_v46 = vadd.f32 %v3006_v48, %v1758_v8  ;;  %v2909_v33 = vadd.f32 %v2908_v22, %v2907_v12  ;;  %v3008_v29 = vpop.f32.mrf.mxu1 }
 0x1a5   : > { %v3137_v30 = vpop.eup %3136  ;;  %v2585_v39 = vpack.c.bf16 %v2072_v24, %v2071_v19  ;;  %v2910_v18 = vpop.f32.mrf.mxu0  ;;  %v3009_v52 = vadd.f32 %v3008_v29, %v3007_v17 }
 0x1a6   : > { %v2009_v58 = vmul.f32 1.442695, %v3702_v46  ;;  %v1761_v31 = vadd.f32 %v2909_v33, %v3575_v4  ;;  %v3010_v34 = vpop.f32.mrf.mxu1  ;;  %v2482_v9 = vadd.f32 -1.0, %v3137_v30  ;;  %vm1965_vm0 = vcmp.gt.f32.partialorder %v3702_v46, 0.0 }
 0x1a7   : > { %2631 = vst [vmem:[%s3635_s28 + $0x28] sm:$0xff] %v2585_v39   ;;  %v2911_v43 = vpop.f32.mrf.mxu0 }
 0x1a8   : > { %3144 = vpow2.f32 %v2009_v58  ;;  %v3707_v35 = vadd.f32 %v3009_v52, %v1761_v31  ;;  %v2912_v5 = vadd.f32 %v2911_v43, %v2910_v18  ;;  %v3011_v61 = vpop.f32.mrf.mxu1  ;;  %v2073_v27 = vsel %vm1961_vm12, %v3676_v26, %v2482_v9 }
 0x1a9   : > { %v3139_v41 = vpop.eup %3138  ;;  %v2913_v42 = vpop.f32.mrf.mxu0  ;;  %v3012_v4 = vadd.f32 %v3011_v61, %v3010_v34 }
 0x1aa   : > { %v2483_v44 = vadd.f32 -1.0, %v3139_v41  ;;  %v2011_v54 = vmul.f32 1.442695, %v3707_v35  ;;  %v1766_v47 = vadd.f32 %v2912_v5, %v3578_v14  ;;  %v3013_v28 = vpop.f32.mrf.mxu1  ;;  %vm1966_vm1 = vcmp.gt.f32.partialorder %v3707_v35, 0.0 }
 0x1ab   : > { %v2914_v50 = vpop.f32.mrf.mxu0 }
 0x1ac   : > { %v2074_v51 = vsel %vm1962_vm13, %v3681_v40, %v2483_v44  ;;  %3146 = vpow2.f32 %v2011_v54  ;;  %v3715_v57 = vadd.f32 %v3012_v4, %v1766_v47  ;;  %v2915_v53 = vadd.f32 %v2914_v50, %v2913_v42  ;;  %v3014_v56 = vpop.f32.mrf.mxu1 }
 0x1ad   : > { %v3141_v23 = vpop.eup %3140  ;;  %v2590_v63 = vpack.c.bf16 %v2074_v51, %v2073_v27  ;;  %v2916_v62 = vpop.f32.mrf.mxu0  ;;  %v3015_v38 = vadd.f32 %v3014_v56, %v3013_v28 }
 0x1ae   : > { %v2013_v14 = vmul.f32 1.442695, %v3715_v57  ;;  %v1769_v0 = vadd.f32 %v2915_v53, %v3581_v25  ;;  %v3016_v2 = vpop.f32.mrf.mxu1  ;;  %v2484_v26 = vadd.f32 -1.0, %v3141_v23  ;;  %vm1967_vm2 = vcmp.gt.f32.partialorder %v3715_v57, 0.0 }
 0x1af   : > { %2632 = vst [vmem:[%s3635_s28 + $0x30] sm:$0xff] %v2590_v63   ;;  %v2917_v3 = vpop.f32.mrf.mxu0 }
 0x1b0   : > { %3148 = vpow2.f32 %v2013_v14  ;;  %v3720_v1 = vadd.f32 %v3015_v38, %v1769_v0  ;;  %v2918_v40 = vadd.f32 %v2917_v3, %v2916_v62  ;;  %v3017_v16 = vpop.f32.mrf.mxu1  ;;  %v2075_v15 = vsel %vm1963_vm14, %v3689_v55, %v2484_v26 }
 0x1b1   : > { %v3143_v11 = vpop.eup %3142  ;;  %v2919_v20 = vpop.f32.mrf.mxu0  ;;  %v3018_v25 = vadd.f32 %v3017_v16, %v3016_v2 }
 0x1b2   : > { %v2485_v37 = vadd.f32 -1.0, %v3143_v11  ;;  %v2015_v10 = vmul.f32 1.442695, %v3720_v1  ;;  %v1774_v12 = vadd.f32 %v2918_v40, %v3584_v36  ;;  %v3019_v13 = vpop.f32.mrf.mxu1  ;;  %vm1968_vm3 = vcmp.gt.f32.partialorder %v3720_v1, 0.0 }
 0x1b3   : > { %v2920_v8 = vpop.f32.mrf.mxu0 }
 0x1b4   : > { %v2076_v48 = vsel %vm1964_vm15, %v3694_v6, %v2485_v37  ;;  %3150 = vpow2.f32 %v2015_v10  ;;  %v3728_v17 = vadd.f32 %v3018_v25, %v1774_v12  ;;  %v2921_v19 = vadd.f32 %v2920_v8, %v2919_v20  ;;  %v3020_v22 = vpop.f32.mrf.mxu1 }
 0x1b5   : > { %v3145_v24 = vpop.eup %3144  ;;  %v2595_v33 = vpack.c.bf16 %v2076_v48, %v2075_v15  ;;  %v2922_v29 = vpop.f32.mrf.mxu0  ;;  %v3021_v39 = vadd.f32 %v3020_v22, %v3019_v13 }
 0x1b6   : > { %v2017_v36 = vmul.f32 1.442695, %v3728_v17  ;;  %v1777_v30 = vadd.f32 %v2921_v19, %v3587_v49  ;;  %v3022_v18 = vpop.f32.mrf.mxu1  ;;  %v2486_v55 = vadd.f32 -1.0, %v3145_v24  ;;  %vm1969_vm4 = vcmp.gt.f32.partialorder %v3728_v17, 0.0 }
 0x1b7   : > { %2633 = vst [vmem:[%s3635_s28 + $0x38] sm:$0xff] %v2595_v33   ;;  %v2923_v58 = vpop.f32.mrf.mxu0 }
 0x1b8   : > { %3152 = vpow2.f32 %v2017_v36  ;;  %v3733_v31 = vadd.f32 %v3021_v39, %v1777_v30  ;;  %v2924_v6 = vadd.f32 %v2923_v58, %v2922_v29  ;;  %v3023_v52 = vpop.f32.mrf.mxu1  ;;  %v2077_v42 = vsel %vm1965_vm0, %v3702_v46, %v2486_v55 }
 0x1b9   : > { %v3147_v34 = vpop.eup %3146  ;;  %v2925_v9 = vpop.f32.mrf.mxu0  ;;  %v3024_v49 = vadd.f32 %v3023_v52, %v3022_v18 }
 0x1ba   : > { %v2487_v43 = vadd.f32 -1.0, %v3147_v34  ;;  %v2019_v5 = vmul.f32 1.442695, %v3733_v31  ;;  %v1782_v61 = vadd.f32 %v2924_v6, %v3590_v60  ;;  %v3025_v41 = vpop.f32.mrf.mxu1  ;;  %vm1970_vm5 = vcmp.gt.f32.partialorder %v3733_v31, 0.0 }
 0x1bb   : > { %v2926_v44 = vpop.f32.mrf.mxu0 }
 0x1bc   : > { %v2078_v54 = vsel %vm1966_vm1, %v3707_v35, %v2487_v43  ;;  %3154 = vpow2.f32 %v2019_v5  ;;  %v3741_v47 = vadd.f32 %v3024_v49, %v1782_v61  ;;  %v2927_v4 = vadd.f32 %v2926_v44, %v2925_v9  ;;  %v3026_v28 = vpop.f32.mrf.mxu1 }
 0x1bd   : > { %v3149_v27 = vpop.eup %3148  ;;  %v2600_v50 = vpack.c.bf16 %v2078_v54, %v2077_v42  ;;  %v2928_v51 = vpop.f32.mrf.mxu0  ;;  %v3027_v56 = vadd.f32 %v3026_v28, %v3025_v41 }
 0x1be   : > { %v2021_v60 = vmul.f32 1.442695, %v3741_v47  ;;  %v1785_v53 = vadd.f32 %v2927_v4, %v3593_v7  ;;  %v3028_v23 = vpop.f32.mrf.mxu1  ;;  %v2488_v46 = vadd.f32 -1.0, %v3149_v27  ;;  %vm1971_vm6 = vcmp.gt.f32.partialorder %v3741_v47, 0.0 }
 0x1bf   : > { %2634 = vst [vmem:[%s3635_s28 + $0x40] sm:$0xff] %v2600_v50   ;;  %v2929_v63 = vpop.f32.mrf.mxu0 }
 0x1c0   : > { %3156 = vpow2.f32 %v2021_v60  ;;  %v3746_v62 = vadd.f32 %v3027_v56, %v1785_v53  ;;  %v2930_v35 = vadd.f32 %v2929_v63, %v2928_v51  ;;  %v3029_v14 = vpop.f32.mrf.mxu1  ;;  %v2079_v16 = vsel %vm1967_vm2, %v3715_v57, %v2488_v46 }
 0x1c1   : > { %v3151_v0 = vpop.eup %3150  ;;  %v2931_v38 = vpop.f32.mrf.mxu0  ;;  %v3030_v7 = vadd.f32 %v3029_v14, %v3028_v23 }
 0x1c2   : > { %v2489_v2 = vadd.f32 -1.0, %v3151_v0  ;;  %v2023_v26 = vmul.f32 1.442695, %v3746_v62  ;;  %v1790_v3 = vadd.f32 %v2930_v35, %v3596_v21  ;;  %v3031_v40 = vpop.f32.mrf.mxu1  ;;  %vm1972_vm7 = vcmp.gt.f32.partialorder %v3746_v62, 0.0 }
 0x1c3   : > { %v2932_v11 = vpop.f32.mrf.mxu0 }
 0x1c4   : > { %v2080_v20 = vsel %vm1968_vm3, %v3720_v1, %v2489_v2  ;;  %3158 = vpow2.f32 %v2023_v26  ;;  %v1935_v37 = vadd.f32 %v3030_v7, %v1790_v3  ;;  %v2933_v10 = vadd.f32 %v2932_v11, %v2931_v38  ;;  %v3032_v12 = vpop.f32.mrf.mxu1 }
 0x1c5   : > { %v3153_v25 = vpop.eup %3152  ;;  %v2605_v13 = vpack.c.bf16 %v2080_v20, %v2079_v16  ;;  %v2934_v15 = vpop.f32.mrf.mxu0  ;;  %v3033_v48 = vadd.f32 %v3032_v12, %v3031_v40 }
 0x1c6   : > { %v2025_v8 = vmul.f32 1.442695, %v1935_v37  ;;  %v1793_v21 = vadd.f32 %v2933_v10, %v3599_v32  ;;  %v3034_v19 = vpop.f32.mrf.mxu1  ;;  %v2490_v22 = vadd.f32 -1.0, %v3153_v25  ;;  %vm1973_vm8 = vcmp.gt.f32.partialorder %v1935_v37, 0.0 }
 0x1c7   : > { %2635 = vst [vmem:[%s3635_s28 + $0x48] sm:$0xff] %v2605_v13   ;;  %v2935_v57 = vpop.f32.mrf.mxu0 }
 0x1c8   : > { %3160 = vpow2.f32 %v2025_v8  ;;  %v1938_v24 = vadd.f32 %v3033_v48, %v1793_v21  ;;  %v2936_v33 = vadd.f32 %v2935_v57, %v2934_v15  ;;  %v3035_v29 = vpop.f32.mrf.mxu1  ;;  %v2081_v58 = vsel %vm1969_vm4, %v3728_v17, %v2490_v22 }
 0x1c9   : > { %v3155_v1 = vpop.eup %3154  ;;  %v2937_v36 = vpop.f32.mrf.mxu0  ;;  %v3036_v55 = vadd.f32 %v3035_v29, %v3034_v19 }
 0x1ca   : > { %v2491_v30 = vadd.f32 -1.0, %v3155_v1  ;;  %v2027_v39 = vmul.f32 1.442695, %v1938_v24  ;;  %v1798_v18 = vadd.f32 %v2936_v33, %v3602_v45  ;;  %v3037_v32 = vpop.f32.mrf.mxu1  ;;  %vm1974_vm9 = vcmp.gt.f32.partialorder %v1938_v24, 0.0 }
 0x1cb   : > { %v2938_v6 = vpop.f32.mrf.mxu0 }
 0x1cc   : > { %v2082_v52 = vsel %vm1970_vm5, %v3733_v31, %v2491_v30  ;;  %3162 = vpow2.f32 %v2027_v39  ;;  %v1943_v34 = vadd.f32 %v3036_v55, %v1798_v18  ;;  %v2939_v9 = vadd.f32 %v2938_v6, %v2937_v36  ;;  %v3038_v43 = vpop.f32.mrf.mxu1 }
 0x1cd   : > { %v3157_v5 = vpop.eup %3156  ;;  %v2610_v61 = vpack.c.bf16 %v2082_v52, %v2081_v58  ;;  %v3039_v45 = vadd.f32 %v3038_v43, %v3037_v32 }
 0x1ce   : > { %v2029_v49 = vmul.f32 1.442695, %v1943_v34  ;;  %v1801_v41 = vadd.f32 %v2939_v9, %v3605_v59  ;;  %v2492_v42 = vadd.f32 -1.0, %v3157_v5  ;;  %vm1975_vm10 = vcmp.gt.f32.partialorder %v1943_v34, 0.0 }
 0x1cf   : > { %2636 = vst [vmem:[%s3635_s28 + $0x50] sm:$0xff] %v2610_v61  }
 0x1d0   : > { %3164 = vpow2.f32 %v2029_v49  ;;  %v1946_v17 = vadd.f32 %v3039_v45, %v1801_v41  ;;  %v2083_v31 = vsel %vm1971_vm6, %v3741_v47, %v2492_v42 }
 0x1d1   : > { %v3159_v44 = vpop.eup %3158 }
 0x1d2   : > { %v2493_v54 = vadd.f32 -1.0, %v3159_v44  ;;  %v2031_v4 = vmul.f32 1.442695, %v1946_v17  ;;  %vm1976_vm11 = vcmp.gt.f32.partialorder %v1946_v17, 0.0 }
 0x1d4   : > { %v2084_v28 = vsel %vm1972_vm7, %v3746_v62, %v2493_v54  ;;  %3166 = vpow2.f32 %v2031_v4 }
 0x1d5   : > { %v3161_v59 = vpop.eup %3160  ;;  %v2615_v27 = vpack.c.bf16 %v2084_v28, %v2083_v31 }
 0x1d6   : > { %v2494_v50 = vadd.f32 -1.0, %v3161_v59 }
 0x1d7   : > { %2637 = vst [vmem:[%s3635_s28 + $0x58] sm:$0xff] %v2615_v27  }
 0x1d8   : > { %v2085_v53 = vsel %vm1973_vm8, %v1935_v37, %v2494_v50 }
 0x1d9   : > { %v3163_v51 = vpop.eup %3162 }
 0x1da   : > { %v2495_v60 = vadd.f32 -1.0, %v3163_v51 }
 0x1dc   : > { %v2086_v56 = vsel %vm1974_vm9, %v1938_v24, %v2495_v60 }
 0x1dd   : > { %v3165_v23 = vpop.eup %3164  ;;  %v2620_v46 = vpack.c.bf16 %v2086_v56, %v2085_v53 }
 0x1de   : > { %v2496_v63 = vadd.f32 -1.0, %v3165_v23 }
 0x1df   : > { %2638 = vst [vmem:[%s3635_s28 + $0x60] sm:$0xff] %v2620_v46  }
 0x1e0   : > { %v2087_v62 = vsel %vm1975_vm10, %v1943_v34, %v2496_v63 }
 0x1e1   : > { %v3167_v35 = vpop.eup %3166 }
 0x1e2   : > { %v2497_v47 = vadd.f32 -1.0, %v3167_v35 }
 0x1e4   : > { %v2088_v14 = vsel %vm1976_vm11, %v1946_v17, %v2497_v47 }
 0x1e5   : > { %v2625_v0 = vpack.c.bf16 %v2088_v14, %v2087_v62 }
 0x1e7   : > { %2639 = vst [vmem:[%s3635_s28 + $0x68] sm:$0xff] %v2625_v0  }
 0x1e8 PF: > { %s13_s12 = sadd.s32 1, %s3174_s12  }
 0x1e9   : > { %p10_p4 = scmp.ge.s32.totalorder %s13_s12, 4  }
 0x1eb   :  { %12 = sbr.rel (!%p10_p4) target bundleno = 1 (0x1), region = 62 }

// kernel: nvidia_forward.9
= control target key start
LH: loop header
LB: loop body
LE: loop exit
PB: predicated region body
PF: predicated region fallthrough
CT: control target
= control target key end

     0   :  { %s1588_s12 = smov 0   ;;  %s1844_s0 = inlined_call_operand.vmem [shape: bf16[288,512], index: 0, kind: input, shape index: {}]   ;;  %s1845_s1 = inlined_call_operand.vmem [shape: bf16[512,128], index: 1, kind: input, shape index: {}]   ;;  %s1846_s2 = inlined_call_operand.vmem [shape: f32[1,128], index: 2, kind: input, shape index: {}]   ;;  %s1847_s3 = inlined_call_operand.vmem [shape: bf16[288,128], index: 3, kind: output, shape index: {}]  }
   0x1 LB: > { %s1103_s13 = sadd.s32 4294967295, %s1566_s12   ;;  %p1107_p0 = scmp.ge.s32.totalorder %s1566_s12, 1  ;;  %s1566_s12 = sphi %s1588_s12, %s13_s12  }
   0x2   : > { %p139_p1 = scmp.lt.s32.totalorder %s1566_s12, 3 }
   0x4   : > { %p140_p2 = pnand %p1107_p0, %p139_p1 }
   0x5   : > { %s164_s19 = smul.u32 (!%p140_p2), 18, %s1103_s13 }
   0x6   : > { %143 = sbr.rel (%p140_p2) target bundleno = 336 (0x150), region = 32 }
   0x7   : > { %p165_p3 = scmp.lt.s32.totalorder (!%p140_p2), %s164_s19, 35 }
   0xb   : > { %v1438_v0 = vld [vmem:[%s1845_s1 + $0x78] sm:$0xff]   ;;  %v1442_v4 = vld [vmem:[%s1845_s1 + $0x70] sm:$0xff]   ;;  %v1446_v8 = vld [vmem:[%s1845_s1 + $0x68] sm:$0xff]   ;;  %s1849_s19 = smov (!%p165_p3, %s164_s19), 35 }
   0xc   : > { %v1439_v1 = vld [vmem:[%s1845_s1 + $0xf8] sm:$0xff]   ;;  %1290 = vmatprep.subr.bf16.mxu0 %v1438_v0  ;;  %v1443_v5 = vld [vmem:[%s1845_s1 + $0xf0] sm:$0xff]   ;;  %v1447_v9 = vld [vmem:[%s1845_s1 + $0xe8] sm:$0xff]   ;;  %s1218_s18 = sshll.u32 %s1849_s19, 4  ;;  %s1110_s7 = sshll.u32 %s1849_s19, 2 }
   0xd   : > { %v1440_v2 = vld [vmem:[%s1845_s1 + $0x38] sm:$0xff]   ;;  %1360 = vmatprep.subr.bf16.mxu1 %v1439_v1  ;;  %v1444_v6 = vld [vmem:[%s1845_s1 + $0x30] sm:$0xff]   ;;  %v1448_v10 = vld [vmem:[%s1845_s1 + $0x28] sm:$0xff]   ;;  %s1694_s13 = scalar_lea.vmem %s1844_s0, %s1218_s18  ;;  %s1771_s10 = scalar_lea.vmem %s1847_s3, %s1110_s7 }
   0xe   : > { %v1441_v3 = vld [vmem:[%s1845_s1 + $0xb8] sm:$0xff]   ;;  %1291 = vmatpush3.bf16.msra.mxu0 %v1440_v2  ;;  %v1445_v7 = vld [vmem:[%s1845_s1 + $0xb0] sm:$0xff]   ;;  %v1449_v11 = vld [vmem:[%s1845_s1 + $0xa8] sm:$0xff]  }
   0xf   : > { %1361 = vmatpush3.bf16.msra.mxu1 %v1441_v3  ;;  %1292 = vmatprep.subr.bf16.mxu0 %v1442_v4  ;;  %v1450_v12 = vld [vmem:[%s1845_s1 + $0x60] sm:$0xff]   ;;  %v1454_v16 = vld [vmem:[%s1845_s1 + $0x58] sm:$0xff]   ;;  %v1458_v20 = vld [vmem:[%s1845_s1 + $0x50] sm:$0xff]  }
  0x10   : > { %1362 = vmatprep.subr.bf16.mxu1 %v1443_v5  ;;  %v1451_v13 = vld [vmem:[%s1845_s1 + $0xe0] sm:$0xff]   ;;  %v1455_v17 = vld [vmem:[%s1845_s1 + $0xd8] sm:$0xff]   ;;  %v1459_v21 = vld [vmem:[%s1845_s1 + $0xd0] sm:$0xff]  }
  0x11   : > { %v1452_v14 = vld [vmem:[%s1845_s1 + $0x20] sm:$0xff]   ;;  %v1456_v18 = vld [vmem:[%s1845_s1 + $0x18] sm:$0xff]   ;;  %v1460_v22 = vld [vmem:[%s1845_s1 + $0x10] sm:$0xff]  }
  0x12   : > { %1293 = vmatpush3.bf16.msra.mxu0 %v1444_v6  ;;  %v1453_v15 = vld [vmem:[%s1845_s1 + $0xa0] sm:$0xff]   ;;  %v1457_v19 = vld [vmem:[%s1845_s1 + $0x98] sm:$0xff]   ;;  %v1461_v23 = vld [vmem:[%s1845_s1 + $0x90] sm:$0xff]  }
  0x13   : > { %1363 = vmatpush3.bf16.msra.mxu1 %v1445_v7  ;;  %1294 = vmatprep.subr.bf16.mxu0 %v1446_v8  ;;  %v1462_v24 = vld [vmem:[%s1845_s1 + $0x48] sm:$0xff]   ;;  %v1466_v28 = vld [vmem:[%s1845_s1 + $0x40] sm:$0xff]  }
  0x14   : > { %1364 = vmatprep.subr.bf16.mxu1 %v1447_v9  ;;  %v1463_v25 = vld [vmem:[%s1845_s1 + $0xc8] sm:$0xff]   ;;  %v1467_v29 = vld [vmem:[%s1845_s1 + $0xc0] sm:$0xff]  }
  0x15   : > { %v1464_v26 = vld [vmem:[%s1845_s1 + $0x8] sm:$0xff]   ;;  %v1468_v30 = vld [vmem:[%s1845_s1] sm:$0xff]  }
  0x16   : > { %1295 = vmatpush3.bf16.msra.mxu0 %v1448_v10  ;;  %v1465_v27 = vld [vmem:[%s1845_s1 + $0x88] sm:$0xff]   ;;  %v1469_v31 = vld [vmem:[%s1845_s1 + $0x80] sm:$0xff]  }
  0x17   : > { %1365 = vmatpush3.bf16.msra.mxu1 %v1449_v11  ;;  %1296 = vmatprep.subr.bf16.mxu0 %v1450_v12  ;;  %v1470_v32 = vld [vmem:[%s1694_s13] ss:$16 sps:$4 sm:$0xff]   ;;  %v1472_v33 = vld [vmem:[%s1694_s13 + $0x4] ss:$16 sps:$4 sm:$0xff]   ;;  %v1473_v34 = vld [vmem:[%s1694_s13 + $0x8] ss:$16 sps:$4 sm:$0xff]  }
  0x18   : > { %1366 = vmatprep.subr.bf16.mxu1 %v1451_v13  ;;  %v1475_v35 = vld [vmem:[%s1694_s13 + $0xc] ss:$16 sps:$4 sm:$0xff]   ;;  %689 = vmatprep.mubr.bf16.mxu0 %v1472_v33  ;;  %v1476_v36 = vld [vmem:[%s1694_s13 + $0x24] ss:$16 sps:$4 sm:$0xff]   ;;  %v1480_v38 = vld [vmem:[%s1694_s13 + $0x20] ss:$16 sps:$4 sm:$0xff]  }
  0x19   : > { %794 = vmatprep.mubr.bf16.mxu1 %v1475_v35  ;;  %v1478_v37 = vld [vmem:[%s1694_s13 + $0x2c] ss:$16 sps:$4 sm:$0xff]   ;;  %v1481_v39 = vld [vmem:[%s1694_s13 + $0x28] ss:$16 sps:$4 sm:$0xff]   ;;  %v1482_v40 = vld [vmem:[%s1694_s13 + $0x44] ss:$16 sps:$4 sm:$0xff]  }
  0x1a   : > { %1297 = vmatpush3.bf16.msra.mxu0 %v1452_v14  ;;  %v1484_v41 = vld [vmem:[%s1694_s13 + $0x4c] ss:$16 sps:$4 sm:$0xff]   ;;  %v1486_v42 = vld [vmem:[%s1694_s13 + $0x40] ss:$16 sps:$4 sm:$0xff]   ;;  %v1487_v43 = vld [vmem:[%s1694_s13 + $0x48] ss:$16 sps:$4 sm:$0xff]  }
  0x1b   : > { %1367 = vmatpush3.bf16.msra.mxu1 %v1453_v15  ;;  %1298 = vmatprep.subr.bf16.mxu0 %v1454_v16  ;;  %v1488_v44 = vld [vmem:[%s1694_s13 + $0x64] ss:$16 sps:$4 sm:$0xff]   ;;  %v1490_v45 = vld [vmem:[%s1694_s13 + $0x6c] ss:$16 sps:$4 sm:$0xff]   ;;  %v1492_v46 = vld [vmem:[%s1694_s13 + $0x60] ss:$16 sps:$4 sm:$0xff]  }
  0x1c   : > { %1368 = vmatprep.subr.bf16.mxu1 %v1455_v17  ;;  %v1493_v47 = vld [vmem:[%s1694_s13 + $0x68] ss:$16 sps:$4 sm:$0xff]   ;;  %v1494_v48 = vld [vmem:[%s1694_s13 + $0x84] ss:$16 sps:$4 sm:$0xff]   ;;  %v1496_v49 = vld [vmem:[%s1694_s13 + $0x8c] ss:$16 sps:$4 sm:$0xff]  }
  0x1d   : > { %v1498_v50 = vld [vmem:[%s1694_s13 + $0x80] ss:$16 sps:$4 sm:$0xff]   ;;  %v1499_v51 = vld [vmem:[%s1694_s13 + $0x88] ss:$16 sps:$4 sm:$0xff]   ;;  %v1500_v52 = vld [vmem:[%s1694_s13 + $0xa4] ss:$16 sps:$4 sm:$0xff]  }
  0x1e   : > { %1299 = vmatpush3.bf16.msra.mxu0 %v1456_v18  ;;  %v1502_v53 = vld [vmem:[%s1694_s13 + $0xac] ss:$16 sps:$4 sm:$0xff]   ;;  %v1504_v54 = vld [vmem:[%s1694_s13 + $0xa0] ss:$16 sps:$4 sm:$0xff]   ;;  %v1505_v55 = vld [vmem:[%s1694_s13 + $0xa8] ss:$16 sps:$4 sm:$0xff]  }
  0x1f   : > { %1369 = vmatpush3.bf16.msra.mxu1 %v1457_v19  ;;  %1300 = vmatprep.subr.bf16.mxu0 %v1458_v20  ;;  %v1506_v56 = vld [vmem:[%s1694_s13 + $0xc4] ss:$16 sps:$4 sm:$0xff]   ;;  %v1508_v57 = vld [vmem:[%s1694_s13 + $0xcc] ss:$16 sps:$4 sm:$0xff]   ;;  %v1510_v58 = vld [vmem:[%s1694_s13 + $0xc0] ss:$16 sps:$4 sm:$0xff]  }
  0x20   : > { %1370 = vmatprep.subr.bf16.mxu1 %v1459_v21  ;;  %v1511_v59 = vld [vmem:[%s1694_s13 + $0xc8] ss:$16 sps:$4 sm:$0xff]   ;;  %v1512_v60 = vld [vmem:[%s1694_s13 + $0xe4] ss:$16 sps:$4 sm:$0xff]   ;;  %v1514_v61 = vld [vmem:[%s1694_s13 + $0xec] ss:$16 sps:$4 sm:$0xff]  }
  0x21   : > { %v1516_v62 = vld [vmem:[%s1694_s13 + $0xe0] ss:$16 sps:$4 sm:$0xff]   ;;  %v1517_v63 = vld [vmem:[%s1694_s13 + $0xe8] ss:$16 sps:$4 sm:$0xff]   ;;  %v1518_v0 = vld [vmem:[%s1694_s13 + $0x104] ss:$16 sps:$4 sm:$0xff]  }
  0x22   : > { %1301 = vmatpush3.bf16.msra.mxu0 %v1460_v22  ;;  %v1520_v1 = vld [vmem:[%s1694_s13 + $0x10c] ss:$16 sps:$4 sm:$0xff]   ;;  %v1522_v2 = vld [vmem:[%s1694_s13 + $0x100] ss:$16 sps:$4 sm:$0xff]   ;;  %v1523_v3 = vld [vmem:[%s1694_s13 + $0x108] ss:$16 sps:$4 sm:$0xff]  }
  0x23   : > { %1371 = vmatpush3.bf16.msra.mxu1 %v1461_v23  ;;  %1302 = vmatprep.subr.bf16.mxu0 %v1462_v24  ;;  %v1741_v6 = vld [vmem:[%s1846_s2] ss:$0 sm:$0xff] }
  0x24   : > { %1372 = vmatprep.subr.bf16.mxu1 %v1463_v25 }
  0x26   : > { %1303 = vmatpush3.bf16.msra.mxu0 %v1464_v26 }
  0x27   : > { %1373 = vmatpush3.bf16.msra.mxu1 %v1465_v27  ;;  %1304 = vmatprep.subr.bf16.mxu0 %v1466_v28 }
  0x28   : > { %1374 = vmatprep.subr.bf16.mxu1 %v1467_v29 }
  0x2a   : > { %1305 = vmatpush3.bf16.msra.mxu0 %v1468_v30 }
  0x2b   : > { %1375 = vmatpush3.bf16.msra.mxu1 %v1469_v31 }
  0x2d   : > { %690 = vmatmul.mubr.bf16.vlgmr.msra.gmra.mxu0 %v1470_v32 }
  0x2e   : > { %795 = vmatmul.mubr.bf16.vlgmr.msra.gmra.mxu1 %v1473_v34  ;;  %697 = vmatprep.mubr.bf16.mxu0 %v1476_v36 }
  0x2f   : > { %802 = vmatprep.mubr.bf16.mxu1 %v1478_v37 }
  0x35   : > { %698 = vmatmul.mubr.bf16.gmra.mxu0 %v1480_v38 }
  0x36   : > { %803 = vmatmul.mubr.bf16.gmra.mxu1 %v1481_v39  ;;  %705 = vmatprep.mubr.bf16.mxu0 %v1482_v40 }
  0x37   : > { %810 = vmatprep.mubr.bf16.mxu1 %v1484_v41 }
  0x3d   : > { %706 = vmatmul.mubr.bf16.gmra.mxu0 %v1486_v42 }
  0x3e   : > { %811 = vmatmul.mubr.bf16.gmra.mxu1 %v1487_v43  ;;  %713 = vmatprep.mubr.bf16.mxu0 %v1488_v44 }
  0x3f   : > { %818 = vmatprep.mubr.bf16.mxu1 %v1490_v45 }
  0x45   : > { %714 = vmatmul.mubr.bf16.gmra.mxu0 %v1492_v46 }
  0x46   : > { %819 = vmatmul.mubr.bf16.gmra.mxu1 %v1493_v47  ;;  %721 = vmatprep.mubr.bf16.mxu0 %v1494_v48 }
  0x47   : > { %826 = vmatprep.mubr.bf16.mxu1 %v1496_v49 }
  0x4d   : > { %722 = vmatmul.mubr.bf16.gmra.mxu0 %v1498_v50 }
  0x4e   : > { %827 = vmatmul.mubr.bf16.gmra.mxu1 %v1499_v51  ;;  %729 = vmatprep.mubr.bf16.mxu0 %v1500_v52 }
  0x4f   : > { %834 = vmatprep.mubr.bf16.mxu1 %v1502_v53 }
  0x55   : > { %730 = vmatmul.mubr.bf16.gmra.mxu0 %v1504_v54 }
  0x56   : > { %835 = vmatmul.mubr.bf16.gmra.mxu1 %v1505_v55  ;;  %737 = vmatprep.mubr.bf16.mxu0 %v1506_v56 }
  0x57   : > { %842 = vmatprep.mubr.bf16.mxu1 %v1508_v57 }
  0x5d   : > { %738 = vmatmul.mubr.bf16.gmra.mxu0 %v1510_v58 }
  0x5e   : > { %843 = vmatmul.mubr.bf16.gmra.mxu1 %v1511_v59  ;;  %745 = vmatprep.mubr.bf16.mxu0 %v1512_v60 }
  0x5f   : > { %850 = vmatprep.mubr.bf16.mxu1 %v1514_v61 }
  0x65   : > { %746 = vmatmul.mubr.bf16.gmra.mxu0 %v1516_v62 }
  0x66   : > { %851 = vmatmul.mubr.bf16.gmra.mxu1 %v1517_v63  ;;  %753 = vmatprep.mubr.bf16.mxu0 %v1518_v0 }
  0x67   : > { %858 = vmatprep.mubr.bf16.mxu1 %v1520_v1 }
  0x6d   : > { %754 = vmatmul.mubr.bf16.gmra.mxu0 %v1522_v2 }
  0x6e   : > { %859 = vmatmul.mubr.bf16.gmra.mxu1 %v1523_v3 }
  0xed   : > { %v1306_v4 = vpop.f32.mrf.mxu0 }
  0xee   : > { %v1376_v5 = vpop.f32.mrf.mxu1 }
  0xef   : > { %v1307_v7 = vpop.f32.mrf.mxu0 }
  0xf0   : > { %v1308_v8 = vadd.f32 %v1307_v7, %v1306_v4  ;;  %v1377_v9 = vpop.f32.mrf.mxu1 }
  0xf1   : > { %v1309_v10 = vpop.f32.mrf.mxu0  ;;  %v1378_v12 = vadd.f32 %v1377_v9, %v1376_v5 }
  0xf2   : > { %v692_v11 = vadd.f32 %v1308_v8, %v1741_v6  ;;  %v1379_v13 = vpop.f32.mrf.mxu1 }
  0xf3   : > { %v1310_v14 = vpop.f32.mrf.mxu0 }
  0xf4   : > { %v1744_v15 = vadd.f32 %v1378_v12, %v692_v11  ;;  %v1311_v16 = vadd.f32 %v1310_v14, %v1309_v10  ;;  %v1380_v17 = vpop.f32.mrf.mxu1 }
  0xf5   : > { %v1312_v18 = vpop.f32.mrf.mxu0  ;;  %v1381_v21 = vadd.f32 %v1380_v17, %v1379_v13 }
  0xf6   : > { %v885_v19 = vmul.f32 1.442695, %v1744_v15  ;;  %v695_v20 = vadd.f32 %v1311_v16, %v1741_v6  ;;  %v1382_v22 = vpop.f32.mrf.mxu1  ;;  %vm867_vm0 = vcmp.gt.f32.partialorder %v1744_v15, 0.0 }
  0xf7   : > { %v1313_v23 = vpop.f32.mrf.mxu0 }
  0xf8   : > { %1524 = vpow2.f32 %v885_v19  ;;  %v800_v24 = vadd.f32 %v1381_v21, %v695_v20  ;;  %v1314_v25 = vadd.f32 %v1313_v23, %v1312_v18  ;;  %v1383_v26 = vpop.f32.mrf.mxu1 }
  0xf9   : > { %v1315_v27 = vpop.f32.mrf.mxu0  ;;  %v1384_v30 = vadd.f32 %v1383_v26, %v1382_v22 }
  0xfa   : > { %v887_v28 = vmul.f32 1.442695, %v800_v24  ;;  %v700_v29 = vadd.f32 %v1314_v25, %v1741_v6  ;;  %v1385_v31 = vpop.f32.mrf.mxu1  ;;  %vm868_vm1 = vcmp.gt.f32.partialorder %v800_v24, 0.0 }
  0xfb   : > { %v1316_v32 = vpop.f32.mrf.mxu0 }
  0xfc   : > { %1526 = vpow2.f32 %v887_v28  ;;  %v1749_v33 = vadd.f32 %v1384_v30, %v700_v29  ;;  %v1317_v34 = vadd.f32 %v1316_v32, %v1315_v27  ;;  %v1386_v35 = vpop.f32.mrf.mxu1 }
  0xfd   : > { %v1318_v36 = vpop.f32.mrf.mxu0  ;;  %v1387_v39 = vadd.f32 %v1386_v35, %v1385_v31 }
  0xfe   : > { %v889_v37 = vmul.f32 1.442695, %v1749_v33  ;;  %v703_v38 = vadd.f32 %v1317_v34, %v1741_v6  ;;  %v1388_v40 = vpop.f32.mrf.mxu1  ;;  %vm869_vm2 = vcmp.gt.f32.partialorder %v1749_v33, 0.0 }
  0xff   : > { %v1319_v41 = vpop.f32.mrf.mxu0 }
 0x100   : > { %1528 = vpow2.f32 %v889_v37  ;;  %v1753_v42 = vadd.f32 %v1387_v39, %v703_v38  ;;  %v1320_v43 = vadd.f32 %v1319_v41, %v1318_v36  ;;  %v1389_v44 = vpop.f32.mrf.mxu1 }
 0x101   : > { %v1321_v45 = vpop.f32.mrf.mxu0  ;;  %v1390_v48 = vadd.f32 %v1389_v44, %v1388_v40 }
 0x102   : > { %v891_v46 = vmul.f32 1.442695, %v1753_v42  ;;  %v708_v47 = vadd.f32 %v1320_v43, %v1741_v6  ;;  %v1391_v49 = vpop.f32.mrf.mxu1  ;;  %vm870_vm3 = vcmp.gt.f32.partialorder %v1753_v42, 0.0 }
 0x103   : > { %v1322_v50 = vpop.f32.mrf.mxu0 }
 0x104   : > { %1530 = vpow2.f32 %v891_v46  ;;  %v1757_v51 = vadd.f32 %v1390_v48, %v708_v47  ;;  %v1323_v52 = vadd.f32 %v1322_v50, %v1321_v45  ;;  %v1392_v53 = vpop.f32.mrf.mxu1 }
 0x105   : > { %v1525_v54 = vpop.eup %1524  ;;  %v1324_v55 = vpop.f32.mrf.mxu0  ;;  %v1393_v58 = vadd.f32 %v1392_v53, %v1391_v49 }
 0x106   : > { %v893_v56 = vmul.f32 1.442695, %v1757_v51  ;;  %v711_v57 = vadd.f32 %v1323_v52, %v1741_v6  ;;  %v1394_v59 = vpop.f32.mrf.mxu1  ;;  %v1180_v60 = vadd.f32 -1.0, %v1525_v54  ;;  %vm871_vm4 = vcmp.gt.f32.partialorder %v1757_v51, 0.0 }
 0x107   : > { %v1325_v61 = vpop.f32.mrf.mxu0 }
 0x108   : > { %1532 = vpow2.f32 %v893_v56  ;;  %v1761_v62 = vadd.f32 %v1393_v58, %v711_v57  ;;  %v1326_v63 = vadd.f32 %v1325_v61, %v1324_v55  ;;  %v1395_v0 = vpop.f32.mrf.mxu1  ;;  %v939_v9 = vsel %vm867_vm0, %v1744_v15, %v1180_v60 }
 0x109   : > { %v1527_v1 = vpop.eup %1526  ;;  %v1327_v2 = vpop.f32.mrf.mxu0  ;;  %v1396_v7 = vadd.f32 %v1395_v0, %v1394_v59 }
 0x10a   : > { %v1181_v3 = vadd.f32 -1.0, %v1527_v1  ;;  %v895_v4 = vmul.f32 1.442695, %v1761_v62  ;;  %v716_v5 = vadd.f32 %v1326_v63, %v1741_v6  ;;  %v1397_v8 = vpop.f32.mrf.mxu1  ;;  %vm872_vm5 = vcmp.gt.f32.partialorder %v1761_v62, 0.0 }
 0x10b   : > { %v1328_v10 = vpop.f32.mrf.mxu0 }
 0x10c   : > { %v940_v11 = vsel %vm868_vm1, %v800_v24, %v1181_v3  ;;  %1534 = vpow2.f32 %v895_v4  ;;  %v1773_v12 = vadd.f32 %v1396_v7, %v716_v5  ;;  %v1329_v13 = vadd.f32 %v1328_v10, %v1327_v2  ;;  %v1398_v14 = vpop.f32.mrf.mxu1 }
 0x10d   : > { %v1529_v16 = vpop.eup %1528  ;;  %v1240_v17 = vpack.c.bf16 %v940_v11, %v939_v9  ;;  %v1330_v18 = vpop.f32.mrf.mxu0  ;;  %v1399_v20 = vadd.f32 %v1398_v14, %v1397_v8 }
 0x10e   : > { %v897_v19 = vmul.f32 1.442695, %v1773_v12  ;;  %v719_v15 = vadd.f32 %v1329_v13, %v1741_v6  ;;  %v1400_v21 = vpop.f32.mrf.mxu1  ;;  %v1182_v22 = vadd.f32 -1.0, %v1529_v16  ;;  %vm873_vm6 = vcmp.gt.f32.partialorder %v1773_v12, 0.0 }
 0x10f   : > { %1241 = vst [vmem:[%s1771_s10] sm:$0xff] %v1240_v17   ;;  %v1331_v23 = vpop.f32.mrf.mxu0 }
 0x110   : > { %1536 = vpow2.f32 %v897_v19  ;;  %v1778_v25 = vadd.f32 %v1399_v20, %v719_v15  ;;  %v1332_v24 = vadd.f32 %v1331_v23, %v1330_v18  ;;  %v1401_v26 = vpop.f32.mrf.mxu1  ;;  %v941_v35 = vsel %vm869_vm2, %v1749_v33, %v1182_v22 }
 0x111   : > { %v1531_v27 = vpop.eup %1530  ;;  %v1333_v28 = vpop.f32.mrf.mxu0  ;;  %v1402_v32 = vadd.f32 %v1401_v26, %v1400_v21 }
 0x112   : > { %v1183_v29 = vadd.f32 -1.0, %v1531_v27  ;;  %v899_v30 = vmul.f32 1.442695, %v1778_v25  ;;  %v724_v31 = vadd.f32 %v1332_v24, %v1741_v6  ;;  %v1403_v34 = vpop.f32.mrf.mxu1  ;;  %vm874_vm7 = vcmp.gt.f32.partialorder %v1778_v25, 0.0 }
 0x113   : > { %v1334_v36 = vpop.f32.mrf.mxu0 }
 0x114   : > { %v942_v37 = vsel %vm870_vm3, %v1753_v42, %v1183_v29  ;;  %1538 = vpow2.f32 %v899_v30  ;;  %v1786_v38 = vadd.f32 %v1402_v32, %v724_v31  ;;  %v1335_v39 = vadd.f32 %v1334_v36, %v1333_v28  ;;  %v1404_v40 = vpop.f32.mrf.mxu1 }
 0x115   : > { %v1533_v41 = vpop.eup %1532  ;;  %v1245_v43 = vpack.c.bf16 %v942_v37, %v941_v35  ;;  %v1336_v44 = vpop.f32.mrf.mxu0  ;;  %v1405_v47 = vadd.f32 %v1404_v40, %v1403_v34 }
 0x116   : > { %v901_v45 = vmul.f32 1.442695, %v1786_v38  ;;  %v727_v46 = vadd.f32 %v1335_v39, %v1741_v6  ;;  %v1406_v48 = vpop.f32.mrf.mxu1  ;;  %v1184_v33 = vadd.f32 -1.0, %v1533_v41  ;;  %vm875_vm8 = vcmp.gt.f32.partialorder %v1786_v38, 0.0 }
 0x117   : > { %1282 = vst [vmem:[%s1771_s10 + $0x8] sm:$0xff] %v1245_v43   ;;  %v1337_v49 = vpop.f32.mrf.mxu0 }
 0x118   : > { %1540 = vpow2.f32 %v901_v45  ;;  %v1791_v50 = vadd.f32 %v1405_v47, %v727_v46  ;;  %v1338_v42 = vadd.f32 %v1337_v49, %v1336_v44  ;;  %v1407_v52 = vpop.f32.mrf.mxu1  ;;  %v943_v60 = vsel %vm871_vm4, %v1757_v51, %v1184_v33 }
 0x119   : > { %v1535_v53 = vpop.eup %1534  ;;  %v1339_v54 = vpop.f32.mrf.mxu0  ;;  %v1408_v58 = vadd.f32 %v1407_v52, %v1406_v48 }
 0x11a   : > { %v1185_v55 = vadd.f32 -1.0, %v1535_v53  ;;  %v903_v56 = vmul.f32 1.442695, %v1791_v50  ;;  %v732_v57 = vadd.f32 %v1338_v42, %v1741_v6  ;;  %v1409_v59 = vpop.f32.mrf.mxu1  ;;  %vm876_vm9 = vcmp.gt.f32.partialorder %v1791_v50, 0.0 }
 0x11b   : > { %v1340_v61 = vpop.f32.mrf.mxu0 }
 0x11c   : > { %v944_v63 = vsel %vm872_vm5, %v1761_v62, %v1185_v55  ;;  %1542 = vpow2.f32 %v903_v56  ;;  %v1799_v0 = vadd.f32 %v1408_v58, %v732_v57  ;;  %v1341_v1 = vadd.f32 %v1340_v61, %v1339_v54  ;;  %v1410_v2 = vpop.f32.mrf.mxu1 }
 0x11d   : > { %v1537_v3 = vpop.eup %1536  ;;  %v1250_v4 = vpack.c.bf16 %v944_v63, %v943_v60  ;;  %v1342_v5 = vpop.f32.mrf.mxu0  ;;  %v1411_v9 = vadd.f32 %v1410_v2, %v1409_v59 }
 0x11e   : > { %v905_v7 = vmul.f32 1.442695, %v1799_v0  ;;  %v735_v8 = vadd.f32 %v1341_v1, %v1741_v6  ;;  %v1412_v10 = vpop.f32.mrf.mxu1  ;;  %v1186_v51 = vadd.f32 -1.0, %v1537_v3  ;;  %vm877_vm10 = vcmp.gt.f32.partialorder %v1799_v0, 0.0 }
 0x11f   : > { %1283 = vst [vmem:[%s1771_s10 + $0x10] sm:$0xff] %v1250_v4   ;;  %v1343_v11 = vpop.f32.mrf.mxu0 }
 0x120   : > { %1544 = vpow2.f32 %v905_v7  ;;  %v1804_v13 = vadd.f32 %v1411_v9, %v735_v8  ;;  %v1344_v62 = vadd.f32 %v1343_v11, %v1342_v5  ;;  %v1413_v14 = vpop.f32.mrf.mxu1  ;;  %v945_v22 = vsel %vm873_vm6, %v1773_v12, %v1186_v51 }
 0x121   : > { %v1539_v16 = vpop.eup %1538  ;;  %v1345_v17 = vpop.f32.mrf.mxu0  ;;  %v1414_v20 = vadd.f32 %v1413_v14, %v1412_v10 }
 0x122   : > { %v1187_v18 = vadd.f32 -1.0, %v1539_v16  ;;  %v907_v19 = vmul.f32 1.442695, %v1804_v13  ;;  %v740_v15 = vadd.f32 %v1344_v62, %v1741_v6  ;;  %v1415_v21 = vpop.f32.mrf.mxu1  ;;  %vm878_vm11 = vcmp.gt.f32.partialorder %v1804_v13, 0.0 }
 0x123   : > { %v1346_v23 = vpop.f32.mrf.mxu0 }
 0x124   : > { %v946_v24 = vsel %vm874_vm7, %v1778_v25, %v1187_v18  ;;  %1546 = vpow2.f32 %v907_v19  ;;  %v1812_v26 = vadd.f32 %v1414_v20, %v740_v15  ;;  %v1347_v27 = vadd.f32 %v1346_v23, %v1345_v17  ;;  %v1416_v28 = vpop.f32.mrf.mxu1 }
 0x125   : > { %v1541_v29 = vpop.eup %1540  ;;  %v1255_v30 = vpack.c.bf16 %v946_v24, %v945_v22  ;;  %v1348_v31 = vpop.f32.mrf.mxu0  ;;  %v1417_v35 = vadd.f32 %v1416_v28, %v1415_v21 }
 0x126   : > { %v909_v32 = vmul.f32 1.442695, %v1812_v26  ;;  %v743_v34 = vadd.f32 %v1347_v27, %v1741_v6  ;;  %v1418_v36 = vpop.f32.mrf.mxu1  ;;  %v1188_v12 = vadd.f32 -1.0, %v1541_v29  ;;  %vm879_vm12 = vcmp.gt.f32.partialorder %v1812_v26, 0.0 }
 0x127   : > { %1284 = vst [vmem:[%s1771_s10 + $0x18] sm:$0xff] %v1255_v30   ;;  %v1349_v37 = vpop.f32.mrf.mxu0 }
 0x128   : > { %1548 = vpow2.f32 %v909_v32  ;;  %v1817_v39 = vadd.f32 %v1417_v35, %v743_v34  ;;  %v1350_v25 = vadd.f32 %v1349_v37, %v1348_v31  ;;  %v1419_v40 = vpop.f32.mrf.mxu1  ;;  %v947_v33 = vsel %vm875_vm8, %v1786_v38, %v1188_v12 }
 0x129   : > { %v1543_v41 = vpop.eup %1542  ;;  %v1351_v43 = vpop.f32.mrf.mxu0  ;;  %v1420_v47 = vadd.f32 %v1419_v40, %v1418_v36 }
 0x12a   : > { %v1189_v44 = vadd.f32 -1.0, %v1543_v41  ;;  %v911_v45 = vmul.f32 1.442695, %v1817_v39  ;;  %v748_v46 = vadd.f32 %v1350_v25, %v1741_v6  ;;  %v1421_v48 = vpop.f32.mrf.mxu1  ;;  %vm880_vm13 = vcmp.gt.f32.partialorder %v1817_v39, 0.0 }
 0x12b   : > { %v1352_v49 = vpop.f32.mrf.mxu0 }
 0x12c   : > { %v948_v42 = vsel %vm876_vm9, %v1791_v50, %v1189_v44  ;;  %1550 = vpow2.f32 %v911_v45  ;;  %v853_v52 = vadd.f32 %v1420_v47, %v748_v46  ;;  %v1353_v53 = vadd.f32 %v1352_v49, %v1351_v43  ;;  %v1422_v54 = vpop.f32.mrf.mxu1 }
 0x12d   : > { %v1545_v55 = vpop.eup %1544  ;;  %v1260_v56 = vpack.c.bf16 %v948_v42, %v947_v33  ;;  %v1354_v57 = vpop.f32.mrf.mxu0  ;;  %v1423_v60 = vadd.f32 %v1422_v54, %v1421_v48 }
 0x12e   : > { %v913_v58 = vmul.f32 1.442695, %v853_v52  ;;  %v751_v59 = vadd.f32 %v1353_v53, %v1741_v6  ;;  %v1424_v61 = vpop.f32.mrf.mxu1  ;;  %v1190_v63 = vadd.f32 -1.0, %v1545_v55  ;;  %vm881_vm14 = vcmp.gt.f32.partialorder %v853_v52, 0.0 }
 0x12f   : > { %1285 = vst [vmem:[%s1771_s10 + $0x20] sm:$0xff] %v1260_v56   ;;  %v1355_v38 = vpop.f32.mrf.mxu0 }
 0x130   : > { %1552 = vpow2.f32 %v913_v58  ;;  %v856_v1 = vadd.f32 %v1423_v60, %v751_v59  ;;  %v1356_v2 = vadd.f32 %v1355_v38, %v1354_v57  ;;  %v1425_v3 = vpop.f32.mrf.mxu1  ;;  %v949_v51 = vsel %vm877_vm10, %v1799_v0, %v1190_v63 }
 0x131   : > { %v1547_v50 = vpop.eup %1546  ;;  %v1357_v4 = vpop.f32.mrf.mxu0  ;;  %v1426_v9 = vadd.f32 %v1425_v3, %v1424_v61 }
 0x132   : > { %v1191_v5 = vadd.f32 -1.0, %v1547_v50  ;;  %v915_v7 = vmul.f32 1.442695, %v856_v1  ;;  %v756_v8 = vadd.f32 %v1356_v2, %v1741_v6  ;;  %v1427_v10 = vpop.f32.mrf.mxu1  ;;  %vm882_vm15 = vcmp.gt.f32.partialorder %v856_v1, 0.0 }
 0x133   : > { %v1358_v11 = vpop.f32.mrf.mxu0 }
 0x134   : > { %v950_v62 = vsel %vm878_vm11, %v1804_v13, %v1191_v5  ;;  %1554 = vpow2.f32 %v915_v7  ;;  %v861_v14 = vadd.f32 %v1426_v9, %v756_v8  ;;  %v1359_v16 = vadd.f32 %v1358_v11, %v1357_v4  ;;  %v1428_v17 = vpop.f32.mrf.mxu1 }
 0x135   : > { %v1549_v18 = vpop.eup %1548  ;;  %v1265_v19 = vpack.c.bf16 %v950_v62, %v949_v51  ;;  %v1429_v21 = vadd.f32 %v1428_v17, %v1427_v10 }
 0x136   : > { %v917_v15 = vmul.f32 1.442695, %v861_v14  ;;  %v759_v20 = vadd.f32 %v1359_v16, %v1741_v6  ;;  %v1192_v22 = vadd.f32 -1.0, %v1549_v18  ;;  %vm883_vm0 = vcmp.gt.f32.partialorder %v861_v14, 0.0 }
 0x137   : > { %1286 = vst [vmem:[%s1771_s10 + $0x28] sm:$0xff] %v1265_v19  }
 0x138   : > { %1556 = vpow2.f32 %v917_v15  ;;  %v864_v0 = vadd.f32 %v1429_v21, %v759_v20  ;;  %v951_v13 = vsel %vm879_vm12, %v1812_v26, %v1192_v22 }
 0x139   : > { %v1551_v23 = vpop.eup %1550 }
 0x13a   : > { %v1193_v24 = vadd.f32 -1.0, %v1551_v23  ;;  %v919_v27 = vmul.f32 1.442695, %v864_v0  ;;  %vm884_vm1 = vcmp.gt.f32.partialorder %v864_v0, 0.0 }
 0x13c   : > { %v952_v28 = vsel %vm880_vm13, %v1817_v39, %v1193_v24  ;;  %1558 = vpow2.f32 %v919_v27 }
 0x13d   : > { %v1553_v6 = vpop.eup %1552  ;;  %v1270_v29 = vpack.c.bf16 %v952_v28, %v951_v13 }
 0x13e   : > { %v1194_v30 = vadd.f32 -1.0, %v1553_v6 }
 0x13f   : > { %1287 = vst [vmem:[%s1771_s10 + $0x30] sm:$0xff] %v1270_v29  }
 0x140   : > { %v953_v34 = vsel %vm881_vm14, %v853_v52, %v1194_v30 }
 0x141   : > { %v1555_v31 = vpop.eup %1554 }
 0x142   : > { %v1195_v32 = vadd.f32 -1.0, %v1555_v31 }
 0x144   : > { %v954_v35 = vsel %vm882_vm15, %v856_v1, %v1195_v32 }
 0x145   : > { %v1557_v36 = vpop.eup %1556  ;;  %v1275_v12 = vpack.c.bf16 %v954_v35, %v953_v34 }
 0x146   : > { %v1196_v37 = vadd.f32 -1.0, %v1557_v36 }
 0x147   : > { %1288 = vst [vmem:[%s1771_s10 + $0x38] sm:$0xff] %v1275_v12  }
 0x148   : > { %v955_v39 = vsel %vm883_vm0, %v861_v14, %v1196_v37 }
 0x149   : > { %v1559_v25 = vpop.eup %1558 }
 0x14a   : > { %v1197_v26 = vadd.f32 -1.0, %v1559_v25 }
 0x14c   : > { %v956_v40 = vsel %vm884_vm1, %v864_v0, %v1197_v26 }
 0x14d   : > { %v1280_v41 = vpack.c.bf16 %v956_v40, %v955_v39 }
 0x14f   : > { %1289 = vst [vmem:[%s1771_s10 + $0x40] sm:$0xff] %v1280_v41  }
 0x150 PF: > { %s13_s12 = sadd.s32 1, %s1566_s12  }
 0x151   : > { %p10_p4 = scmp.ge.s32.totalorder %s13_s12, 4  }
 0x153   :  { %12 = sbr.rel (!%p10_p4) target bundleno = 1 (0x1), region = 62 }

// kernel: nvidia_forward.10
= control target key start
LH: loop header
LB: loop body
LE: loop exit
PB: predicated region body
PF: predicated region fallthrough
CT: control target
= control target key end

     0   :  { %s1359_s12 = smov 0   ;;  %s1599_s0 = inlined_call_operand.vmem [shape: bf16[144,640], index: 0, kind: input, shape index: {}]   ;;  %s1600_s1 = inlined_call_operand.vmem [shape: bf16[640,128], index: 1, kind: input, shape index: {}]   ;;  %s1601_s2 = inlined_call_operand.vmem [shape: f32[1,128], index: 2, kind: input, shape index: {}]   ;;  %s1602_s3 = inlined_call_operand.vmem [shape: bf16[144,128], index: 3, kind: output, shape index: {}]  }
   0x1 LB: > { %s972_s13 = sadd.s32 4294967295, %s1335_s12   ;;  %p976_p0 = scmp.ge.s32.totalorder %s1335_s12, 1  ;;  %s1335_s12 = sphi %s1359_s12, %s13_s12  }
   0x2   : > { %p139_p1 = scmp.lt.s32.totalorder %s1335_s12, 3 }
   0x4   : > { %p140_p2 = pnand %p976_p0, %p139_p1 }
   0x5   : > { %s164_s17 = smul.u32 (!%p140_p2), 9, %s972_s13 }
   0x6   : > { %143 = sbr.rel (%p140_p2) target bundleno = 303 (0x12f), region = 32 }
   0x7   : > { %p165_p3 = scmp.lt.s32.totalorder (!%p140_p2), %s164_s17, 17 }
   0xb   : > { %v1256_v0 = vld [vmem:[%s1600_s1 + $0x78] sm:$0xff]   ;;  %v1260_v4 = vld [vmem:[%s1600_s1 + $0x70] sm:$0xff]   ;;  %v1264_v8 = vld [vmem:[%s1600_s1 + $0x68] sm:$0xff]   ;;  %s1604_s17 = smov (!%p165_p3, %s164_s17), 17  ;;  %v1337_v34 = vmov 0.0   ;;  %vm1338_vm0 = vmmov 0  }
   0xc   : > { %v1257_v1 = vld [vmem:[%s1600_s1 + $0xf8] sm:$0xff]   ;;  %1088 = vmatprep.subr.bf16.mxu0 %v1256_v0  ;;  %v1261_v5 = vld [vmem:[%s1600_s1 + $0xf0] sm:$0xff]   ;;  %v1265_v9 = vld [vmem:[%s1600_s1 + $0xe8] sm:$0xff]   ;;  %s1245_s16 = smul.u32 20, %s1604_s17  ;;  %s978_s13 = sshll.u32 %s1604_s17, 2 }
   0xd   : > { %v1258_v2 = vld [vmem:[%s1600_s1 + $0x38] sm:$0xff]   ;;  %1134 = vmatprep.subr.bf16.mxu1 %v1257_v1  ;;  %v1262_v6 = vld [vmem:[%s1600_s1 + $0x30] sm:$0xff]   ;;  %v1266_v10 = vld [vmem:[%s1600_s1 + $0x28] sm:$0xff]   ;;  %s1575_s28 = scalar_lea.vmem %s1602_s3, %s978_s13 }
   0xe   : > { %v1259_v3 = vld [vmem:[%s1600_s1 + $0xb8] sm:$0xff]   ;;  %1089 = vmatpush3.bf16.msra.mxu0 %v1258_v2  ;;  %v1263_v7 = vld [vmem:[%s1600_s1 + $0xb0] sm:$0xff]   ;;  %v1267_v11 = vld [vmem:[%s1600_s1 + $0xa8] sm:$0xff]   ;;  %s1465_s27 = scalar_lea.vmem %s1599_s0, %s1245_s16 }
   0xf   : > { %1135 = vmatpush3.bf16.msra.mxu1 %v1259_v3  ;;  %1090 = vmatprep.subr.bf16.mxu0 %v1260_v4  ;;  %v1268_v12 = vld [vmem:[%s1600_s1 + $0x60] sm:$0xff]   ;;  %v1272_v16 = vld [vmem:[%s1600_s1 + $0x58] sm:$0xff]   ;;  %v1276_v20 = vld [vmem:[%s1600_s1 + $0x50] sm:$0xff]  }
  0x10   : > { %1136 = vmatprep.subr.bf16.mxu1 %v1261_v5  ;;  %v1269_v13 = vld [vmem:[%s1600_s1 + $0xe0] sm:$0xff]   ;;  %v1273_v17 = vld [vmem:[%s1600_s1 + $0xd8] sm:$0xff]   ;;  %v1277_v21 = vld [vmem:[%s1600_s1 + $0xd0] sm:$0xff]  }
  0x11   : > { %v1270_v14 = vld [vmem:[%s1600_s1 + $0x20] sm:$0xff]   ;;  %v1274_v18 = vld [vmem:[%s1600_s1 + $0x18] sm:$0xff]   ;;  %v1278_v22 = vld [vmem:[%s1600_s1 + $0x10] sm:$0xff]  }
  0x12   : > { %1091 = vmatpush3.bf16.msra.mxu0 %v1262_v6  ;;  %v1271_v15 = vld [vmem:[%s1600_s1 + $0xa0] sm:$0xff]   ;;  %v1275_v19 = vld [vmem:[%s1600_s1 + $0x98] sm:$0xff]   ;;  %v1279_v23 = vld [vmem:[%s1600_s1 + $0x90] sm:$0xff]  }
  0x13   : > { %1137 = vmatpush3.bf16.msra.mxu1 %v1263_v7  ;;  %1092 = vmatprep.subr.bf16.mxu0 %v1264_v8  ;;  %v1280_v24 = vld [vmem:[%s1600_s1 + $0x48] sm:$0xff]   ;;  %v1284_v28 = vld [vmem:[%s1600_s1 + $0x40] sm:$0xff]   ;;  %v1294_v37 = vld [vmem:[%s1600_s1 + $0x138] sm:$0xff]  }
  0x14   : > { %1138 = vmatprep.subr.bf16.mxu1 %v1265_v9  ;;  %v1281_v25 = vld [vmem:[%s1600_s1 + $0xc8] sm:$0xff]   ;;  %v1285_v29 = vld [vmem:[%s1600_s1 + $0xc0] sm:$0xff]   ;;  %v1295_v38 = vld [vmem:[%s1600_s1 + $0x130] sm:$0xff]  }
  0x15   : > { %v1282_v26 = vld [vmem:[%s1600_s1 + $0x8] sm:$0xff]   ;;  %v1286_v30 = vld [vmem:[%s1600_s1] sm:$0xff]   ;;  %v1305_v45 = vld [vmem:[%s1465_s27 + $0x5c] ss:$20 sps:$4 sm:$0xff]  }
  0x16   : > { %1093 = vmatpush3.bf16.msra.mxu0 %v1266_v10  ;;  %v1283_v27 = vld [vmem:[%s1600_s1 + $0x88] sm:$0xff]   ;;  %v1287_v31 = vld [vmem:[%s1600_s1 + $0x80] sm:$0xff]   ;;  %v1310_v49 = vld [vmem:[%s1600_s1 + $0x118] sm:$0xff]  }
  0x17   : > { %1139 = vmatpush3.bf16.msra.mxu1 %v1267_v11  ;;  %1094 = vmatprep.subr.bf16.mxu0 %v1268_v12  ;;  %v1288_v32 = vld [vmem:[%s1465_s27] ss:$20 sps:$4 sm:$0xff]   ;;  %v1290_v33 = vld [vmem:[%s1465_s27 + $0x4] ss:$20 sps:$4 sm:$0xff]   ;;  %v1291_v35 = vld [vmem:[%s1465_s27 + $0x8] ss:$20 sps:$4 sm:$0xff]  }
  0x18   : > { %1140 = vmatprep.subr.bf16.mxu1 %v1269_v13  ;;  %v1293_v36 = vld [vmem:[%s1465_s27 + $0xc] ss:$20 sps:$4 sm:$0xff]   ;;  %686 = vmatprep.mubr.bf16.mxu0 %v1290_v33  ;;  %v1298_v40 = vld [vmem:[%s1465_s27 + $0x34] ss:$20 sps:$4 sm:$0xff]   ;;  %v1301_v42 = vld [vmem:[%s1465_s27 + $0x30] ss:$20 sps:$4 sm:$0xff]  }
  0x19   : > { %758 = vmatprep.mubr.bf16.mxu1 %v1293_v36  ;;  %v1296_v39 = vld [vmem:[%s1465_s27 + $0x2c] ss:$20 sps:$4 sm:$0xff]   ;;  %v1300_v41 = vld [vmem:[%s1465_s27 + $0x28] ss:$20 sps:$4 sm:$0xff]   ;;  %v1307_v47 = vld [vmem:[%s1465_s27 + $0x50] ss:$20 sps:$4 sm:$0xff]  }
  0x1a   : > { %1095 = vmatpush3.bf16.msra.mxu0 %v1270_v14  ;;  %v1302_v43 = vld [vmem:[%s1600_s1 + $0x128] sm:$0xff]   ;;  %v1309_v46 = vld [vmem:[%s1600_s1 + $0x120] sm:$0xff]   ;;  %v1311_v50 = vld [vmem:[%s1465_s27 + $0x7c] ss:$20 sps:$4 sm:$0xff]  }
  0x1b   : > { %1141 = vmatpush3.bf16.msra.mxu1 %v1271_v15  ;;  %1096 = vmatprep.subr.bf16.mxu0 %v1272_v16  ;;  %v1303_v44 = vld [vmem:[%s1465_s27 + $0x54] ss:$20 sps:$4 sm:$0xff]   ;;  %v1308_v48 = vld [vmem:[%s1465_s27 + $0x58] ss:$20 sps:$4 sm:$0xff]   ;;  %v202_v53 = vld [vmem:[%s1465_s27 + $0xa0] sm:$0xff] }
  0x1c   : > { %1142 = vmatprep.subr.bf16.mxu1 %v1273_v17  ;;  %v1313_v51 = vld [vmem:[%s1465_s27 + $0x84] ss:$20 sps:$4 sm:$0xff]   ;;  %v1317_v52 = vld [vmem:[%s1600_s1 + $0x110] sm:$0xff]   ;;  %v203_v54 = vld [vmem:[%s1465_s27 + $0xa8] sm:$0xff]  ;;  %v1001_v57 = vcombine.high %v202_v53, %v202_v53  ;;  %v1000_v61 = vcombine.low %v202_v53, %v202_v53 }
  0x1d   : > { %v1315_v55 = vld [vmem:[%s1465_s27 + $0x78] ss:$20 sps:$4 sm:$0xff]   ;;  %v1316_v56 = vld [vmem:[%s1465_s27 + $0x80] ss:$20 sps:$4 sm:$0xff]   ;;  %v1003_v58 = vcombine.high %v203_v54, %v203_v54  ;;  %v1002_v62 = vcombine.low %v203_v54, %v203_v54  ;;  %v1324_v63 = vld [vmem:[%s1465_s27 + $0x10] ss:$20 sps:$4 sm:$0xff]  }
  0x1e   : > { %1097 = vmatpush3.bf16.msra.mxu0 %v1274_v18  ;;  %v1320_v59 = vld [vmem:[%s1600_s1 + $0x108] sm:$0xff]   ;;  %v1323_v60 = vld [vmem:[%s1600_s1 + $0x100] sm:$0xff]   ;;  %v1327_v2 = vld [vmem:[%s1465_s27 + $0xb0] ss:$0 sps:$4 sm:$0xff]  }
  0x1f   : > { %1143 = vmatpush3.bf16.msra.mxu1 %v1275_v19  ;;  %1098 = vmatprep.subr.bf16.mxu0 %v1276_v20  ;;  %v1325_v0 = vld [vmem:[%s1465_s27 + $0x88] ss:$20 sps:$4 sm:$0xff]   ;;  %v1326_v1 = vld [vmem:[%s1465_s27 + $0x38] ss:$20 sps:$4 sm:$0xff]   ;;  %v1328_v3 = vld [vmem:[%s1465_s27 + $0x60] ss:$20 sps:$4 sm:$0xff]  }
  0x20   : > { %1144 = vmatprep.subr.bf16.mxu1 %v1277_v21 }
  0x22   : > { %1099 = vmatpush3.bf16.msra.mxu0 %v1278_v22 }
  0x23   : > { %1145 = vmatpush3.bf16.msra.mxu1 %v1279_v23  ;;  %1100 = vmatprep.subr.bf16.mxu0 %v1280_v24 }
  0x24   : > { %1146 = vmatprep.subr.bf16.mxu1 %v1281_v25 }
  0x26   : > { %1101 = vmatpush3.bf16.msra.mxu0 %v1282_v26 }
  0x27   : > { %1147 = vmatpush3.bf16.msra.mxu1 %v1283_v27  ;;  %1102 = vmatprep.subr.bf16.mxu0 %v1284_v28 }
  0x28   : > { %1148 = vmatprep.subr.bf16.mxu1 %v1285_v29 }
  0x2a   : > { %1103 = vmatpush3.bf16.msra.mxu0 %v1286_v30 }
  0x2b   : > { %1149 = vmatpush3.bf16.msra.mxu1 %v1287_v31  ;;  %1193 = vmatprep.subr.bf16.mxu0 %v1337_v34 }
  0x2c   : > { %1229 = vmatprep.subr.bf16.mxu1 %v1337_v34 }
  0x2d   : > { %687 = vmatmul.mubr.bf16.vlgmr.msra.gmra.mxu0 %v1288_v32 }
  0x2e   : > { %759 = vmatmul.mubr.bf16.vlgmr.msra.gmra.mxu1 %v1291_v35  ;;  %1194 = vmatpush3.bf16.msra.mxu0 %v1294_v37 }
  0x2f   : > { %1195 = vmatprep.subr.bf16.mxu0 %v1337_v34  ;;  %1237 = vmatpush3.bf16.msra.mxu1 %v1294_v37 }
  0x30   : > { %694 = vmatprep.mubr.bf16.mxu0 %v1296_v39  ;;  %1230 = vmatprep.subr.bf16.mxu1 %v1337_v34 }
  0x31   : > { %766 = vmatprep.mubr.bf16.mxu1 %v1298_v40 }
  0x32   : > { %1196 = vmatpush3.bf16.msra.mxu0 %v1295_v38 }
  0x33   : > { %1197 = vmatprep.subr.bf16.mxu0 %v1337_v34  ;;  %1238 = vmatpush3.bf16.msra.mxu1 %v1295_v38 }
  0x34   : > { %1231 = vmatprep.subr.bf16.mxu1 %v1337_v34 }
  0x35   : > { %695 = vmatmul.mubr.bf16.gmra.mxu0 %v1300_v41 }
  0x36   : > { %767 = vmatmul.mubr.bf16.gmra.mxu1 %v1301_v42  ;;  %1198 = vmatpush3.bf16.msra.mxu0 %v1302_v43  ;;  %v1564_v42 = vld [vmem:[%s1601_s2] ss:$0 sm:$0xff] }
  0x37   : > { %702 = vmatprep.mubr.bf16.mxu0 %v1303_v44  ;;  %774 = vmatprep.mubr.bf16.mxu1 %v1305_v45 }
  0x38   : > { %1199 = vmatprep.subr.bf16.mxu0 %v1337_v34  ;;  %1239 = vmatpush3.bf16.msra.mxu1 %v1302_v43 }
  0x39   : > { %1232 = vmatprep.subr.bf16.mxu1 %v1337_v34 }
  0x3a   : > { %1200 = vmatpush3.bf16.msra.mxu0 %v1309_v46 }
  0x3b   : > { %1201 = vmatprep.subr.bf16.mxu0 %v1337_v34 }
  0x3c   : > { %1240 = vmatpush3.bf16.msra.mxu1 %v1309_v46 }
  0x3d   : > { %703 = vmatmul.mubr.bf16.gmra.mxu0 %v1307_v47  ;;  %1233 = vmatprep.subr.bf16.mxu1 %v1337_v34 }
  0x3e   : > { %775 = vmatmul.mubr.bf16.gmra.mxu1 %v1308_v48  ;;  %1202 = vmatpush3.bf16.msra.mxu0 %v1310_v49 }
  0x3f   : > { %710 = vmatprep.mubr.bf16.mxu0 %v1311_v50  ;;  %782 = vmatprep.mubr.bf16.mxu1 %v1313_v51 }
  0x40   : > { %1241 = vmatpush3.bf16.msra.mxu1 %v1310_v49  ;;  %1203 = vmatprep.subr.bf16.mxu0 %v1337_v34 }
  0x41   : > { %1234 = vmatprep.subr.bf16.mxu1 %v1337_v34 }
  0x42   : > { %1204 = vmatpush3.bf16.msra.mxu0 %v1317_v52 }
  0x43   : > { %1205 = vmatprep.subr.bf16.mxu0 %v1337_v34 }
  0x44   : > { %1242 = vmatpush3.bf16.msra.mxu1 %v1317_v52 }
  0x45   : > { %711 = vmatmul.mubr.bf16.gmra.mxu0 %v1315_v55  ;;  %1235 = vmatprep.subr.bf16.mxu1 %v1337_v34 }
  0x46   : > { %783 = vmatmul.mubr.bf16.gmra.mxu1 %v1316_v56  ;;  %718 = vmatprep.mubr.bf16.mxu0 %v1001_v57 }
  0x47   : > { %790 = vmatprep.mubr.bf16.mxu1 %v1003_v58  ;;  %1206 = vmatpush3.bf16.msra.mxu0 %v1320_v59 }
  0x48   : > { %1243 = vmatpush3.bf16.msra.mxu1 %v1320_v59  ;;  %1207 = vmatprep.subr.bf16.mxu0 %v1337_v34 }
  0x49   : > { %1236 = vmatprep.subr.bf16.mxu1 %v1337_v34 }
  0x4b   : > { %1208 = vmatpush3.bf16.msra.mxu0 %v1323_v60 }
  0x4c   : > { %1244 = vmatpush3.bf16.msra.mxu1 %v1323_v60 }
  0x4d   : > { %719 = vmatmul.mubr.bf16.gmra.mxu0 %v1000_v61 }
  0x4e   : > { %791 = vmatmul.mubr.bf16.gmra.mxu1 %v1002_v62  ;;  %1209 = vmatprep.mubr.msk.bf16.mxu0 %vm1338_vm0, %v1337_v34 }
  0x4f   : > { %1221 = vmatprep.mubr.msk.bf16.mxu1 %vm1338_vm0, %v1337_v34 }
  0x55   : > { %1210 = vmatmul.mubr.bf16.vlgmr.msra.gmra.mxu0 %v1324_v63 }
  0x56   : > { %1222 = vmatmul.mubr.bf16.vlgmr.msra.gmra.mxu1 %v1325_v0  ;;  %1213 = vmatprep.mubr.msk.bf16.mxu0 %vm1338_vm0, %v1337_v34 }
  0x57   : > { %1225 = vmatprep.mubr.msk.bf16.mxu1 %vm1338_vm0, %v1337_v34 }
  0x5d   : > { %1214 = vmatmul.mubr.bf16.gmra.mxu0 %v1326_v1 }
  0x5e   : > { %1226 = vmatmul.mubr.bf16.gmra.mxu1 %v1327_v2  ;;  %1217 = vmatprep.mubr.msk.bf16.mxu0 %vm1338_vm0, %v1337_v34 }
  0x65   : > { %1218 = vmatmul.mubr.bf16.gmra.mxu0 %v1328_v3 }
  0xed   : > { %v1104_v4 = vpop.f32.mrf.mxu0 }
  0xee   : > { %v1150_v5 = vpop.f32.mrf.mxu1 }
  0xef   : > { %v1105_v6 = vpop.f32.mrf.mxu0 }
  0xf0   : > { %v1151_v7 = vpop.f32.mrf.mxu1  ;;  %v1106_v39 = vadd.f32 %v1105_v6, %v1104_v4 }
  0xf1   : > { %v1107_v8 = vpop.f32.mrf.mxu0  ;;  %v1152_v47 = vadd.f32 %v1151_v7, %v1150_v5 }
  0xf2   : > { %v1153_v9 = vpop.f32.mrf.mxu1  ;;  %v689_v49 = vadd.f32 %v1106_v39, %v1564_v42 }
  0xf3   : > { %v1108_v10 = vpop.f32.mrf.mxu0 }
  0xf4   : > { %v1154_v11 = vpop.f32.mrf.mxu1  ;;  %v1109_v40 = vadd.f32 %v1108_v10, %v1107_v8  ;;  %v761_v63 = vadd.f32 %v1152_v47, %v689_v49 }
  0xf5   : > { %v1110_v12 = vpop.f32.mrf.mxu0  ;;  %v1155_v51 = vadd.f32 %v1154_v11, %v1153_v9 }
  0xf6   : > { %v1156_v13 = vpop.f32.mrf.mxu1  ;;  %v692_v50 = vadd.f32 %v1109_v40, %v1564_v42 }
  0xf7   : > { %v1111_v14 = vpop.f32.mrf.mxu0 }
  0xf8   : > { %v1157_v15 = vpop.f32.mrf.mxu1  ;;  %v1112_v61 = vadd.f32 %v1111_v14, %v1110_v12  ;;  %v764_v1 = vadd.f32 %v1155_v51, %v692_v50 }
  0xf9   : > { %v1113_v16 = vpop.f32.mrf.mxu0  ;;  %v1158_v10 = vadd.f32 %v1157_v15, %v1156_v13 }
  0xfa   : > { %v1541_v17 = vpop.f32.mrf.mxu1 }
  0xfb   : > { %v1114_v18 = vpop.f32.mrf.mxu0 }
  0xfc   : > { %v1543_v19 = vpop.f32.mrf.mxu1  ;;  %v1115_v62 = vadd.f32 %v1114_v18, %v1113_v16  ;;  %v697_v16 = vadd.f32 %v1112_v61, %v1564_v42 }
  0xfd   : > { %v1545_v20 = vpop.f32.mrf.mxu0 }
  0xfe   : > { %v1547_v21 = vpop.f32.mrf.mxu1  ;;  %v700_v18 = vadd.f32 %v1115_v62, %v1564_v42 }
  0xff   : > { %v1549_v22 = vpop.f32.mrf.mxu0 }
 0x100   : > { %v1551_v23 = vpop.f32.mrf.mxu1 }
 0x101   : > { %v1553_v24 = vpop.f32.mrf.mxu0 }
 0x102   : > { %v1555_v25 = vpop.f32.mrf.mxu1 }
 0x103   : > { %v1557_v26 = vpop.f32.mrf.mxu0 }
 0x104   : > { %v1559_v27 = vpop.f32.mrf.mxu1 }
 0x105   : > { %v1122_v28 = vpop.f32.mrf.mxu0 }
 0x106   : > { %v1168_v29 = vpop.f32.mrf.mxu1 }
 0x107   : > { %v1123_v30 = vpop.f32.mrf.mxu0 }
 0x108   : > { %v1169_v31 = vpop.f32.mrf.mxu1  ;;  %v1124_v43 = vadd.f32 %v1123_v30, %v1122_v28  ;;  %v1161_v28 = vadd.f32 %v1543_v19, %v1541_v17 }
 0x109   : > { %v1125_v32 = vpop.f32.mrf.mxu0  ;;  %v1170_v52 = vadd.f32 %v1169_v31, %v1168_v29 }
 0x10a   : > { %v1171_v33 = vpop.f32.mrf.mxu1  ;;  %v713_v54 = vadd.f32 %v1124_v43, %v1564_v42 }
 0x10b   : > { %v1126_v34 = vpop.f32.mrf.mxu0 }
 0x10c   : > { %v1172_v35 = vpop.f32.mrf.mxu1  ;;  %v1127_v44 = vadd.f32 %v1126_v34, %v1125_v32  ;;  %v785_v4 = vadd.f32 %v1170_v52, %v713_v54 }
 0x10d   : > { %v1128_v36 = vpop.f32.mrf.mxu0  ;;  %v1173_v56 = vadd.f32 %v1172_v35, %v1171_v33  ;;  %v1118_v35 = vadd.f32 %v1549_v22, %v1545_v20 }
 0x10e   : > { %v1174_v37 = vpop.f32.mrf.mxu1  ;;  %v716_v55 = vadd.f32 %v1127_v44, %v1564_v42  ;;  %v1164_v44 = vadd.f32 %v1551_v23, %v1547_v21 }
 0x10f   : > { %v1129_v38 = vpop.f32.mrf.mxu0  ;;  %v705_v20 = vadd.f32 %v1118_v35, %v1564_v42 }
 0x110   : > { %v1175_v41 = vpop.f32.mrf.mxu1  ;;  %v1130_v57 = vadd.f32 %v1129_v38, %v1128_v36  ;;  %v788_v6 = vadd.f32 %v1173_v56, %v716_v55  ;;  %v1121_v36 = vadd.f32 %v1557_v26, %v1553_v24  ;;  %v772_v38 = vadd.f32 %v1161_v28, %v700_v18 }
 0x111   : > { %v1131_v45 = vpop.f32.mrf.mxu0  ;;  %v1176_v3 = vadd.f32 %v1175_v41, %v1174_v37  ;;  %v769_v37 = vadd.f32 %v1158_v10, %v697_v16  ;;  %v1167_v24 = vadd.f32 %v1559_v27, %v1555_v25  ;;  %v777_v49 = vadd.f32 %v1164_v44, %v705_v20 }
 0x112   : > { %v1177_v46 = vpop.f32.mrf.mxu1  ;;  %v721_v2 = vadd.f32 %v1130_v57, %v1564_v42  ;;  %v708_v22 = vadd.f32 %v1121_v36, %v1564_v42 }
 0x113   : > { %v1132_v48 = vpop.f32.mrf.mxu0 }
 0x114   : > { %v1178_v53 = vpop.f32.mrf.mxu1  ;;  %v793_v31 = vadd.f32 %v1176_v3, %v721_v2  ;;  %v780_v50 = vadd.f32 %v1167_v24, %v708_v22 }
 0x115   : > { %v832_v58 = vpop.f32.mrf.mxu0 }
 0x116   : > { %v856_v59 = vpop.f32.mrf.mxu1  ;;  %v833_v7 = vadd.f32 %v832_v58, %v761_v63 }
 0x117   : > { %v1211_v60 = vpop.f32.mrf.mxu0  ;;  %v857_v11 = vadd.f32 %v856_v59, %v785_v4 }
 0x118   : > { %v1223_v0 = vpop.f32.mrf.mxu1 }
 0x119   : > { %v835_v5 = vpop.f32.mrf.mxu0 }
 0x11a   : > { %v836_v8 = vadd.f32 %v835_v5, %v764_v1  ;;  %v859_v9 = vpop.f32.mrf.mxu1 }
 0x11b   : > { %v860_v12 = vadd.f32 %v859_v9, %v788_v6  ;;  %v1212_v14 = vpop.f32.mrf.mxu0 }
 0x11c   : > { %v1068_v29 = vpack.c.bf16 %v836_v8, %v833_v7  ;;  %v1224_v30 = vpop.f32.mrf.mxu1 }
 0x11d   : > { %v1083_v13 = vpack.c.bf16 %v860_v12, %v857_v11  ;;  %v840_v15 = vpop.f32.mrf.mxu0 }
 0x11e   : > { %1069 = vst [vmem:[%s1575_s28] sm:$0xff] %v1068_v29   ;;  %v864_v32 = vpop.f32.mrf.mxu1  ;;  %v841_v40 = vadd.f32 %v840_v15, %v769_v37 }
 0x11f   : > { %1087 = vst [vmem:[%s1575_s28 + $0x18] sm:$0xff] %v1083_v13   ;;  %v865_v33 = vadd.f32 %v864_v32, %v793_v31  ;;  %v1215_v34 = vpop.f32.mrf.mxu0 }
 0x120   : > { %v1227_v17 = vpop.f32.mrf.mxu1 }
 0x121   : > { %v1064_v19 = vpack.c.bf16 %v865_v33, %v865_v33  ;;  %v843_v39 = vpop.f32.mrf.mxu0 }
 0x122   : > { %v844_v41 = vadd.f32 %v843_v39, %v772_v38  ;;  %v867_v43 = vpop.f32.mrf.mxu1 }
 0x123   : > { %915 = vst [vmem:[%s1575_s28 + $0x20] sm:$0xf] %v1064_v19  ;;  %v1216_v45 = vpop.f32.mrf.mxu0 }
 0x124   : > { %v1073_v26 = vpack.c.bf16 %v844_v41, %v841_v40  ;;  %v1228_v46 = vpop.f32.mrf.mxu1 }
 0x125   : > { %v848_v47 = vpop.f32.mrf.mxu0 }
 0x126   : > { %1085 = vst [vmem:[%s1575_s28 + $0x8] sm:$0xff] %v1073_v26   ;;  %v849_v52 = vadd.f32 %v848_v47, %v777_v49 }
 0x127   : > { %v1219_v48 = vpop.f32.mrf.mxu0 }
 0x129   : > { %v851_v51 = vpop.f32.mrf.mxu0 }
 0x12a   : > { %v852_v21 = vadd.f32 %v851_v51, %v780_v50 }
 0x12b   : > { %v1220_v23 = vpop.f32.mrf.mxu0 }
 0x12c   : > { %v1078_v53 = vpack.c.bf16 %v852_v21, %v849_v52 }
 0x12e   : > { %1086 = vst [vmem:[%s1575_s28 + $0x10] sm:$0xff] %v1078_v53  }
 0x12f PF: > { %s13_s12 = sadd.s32 1, %s1335_s12  }
 0x130   : > { %p10_p4 = scmp.ge.s32.totalorder %s13_s12, 4  }
 0x132   :  { %12 = sbr.rel (!%p10_p4) target bundleno = 1 (0x1), region = 62 }

// kernel: nvidia_forward.11
= control target key start
LH: loop header
LB: loop body
LE: loop exit
PB: predicated region body
PF: predicated region fallthrough
CT: control target
= control target key end

     0   :  { %vm4439_vm0 = vmmov 0   ;;  %s5463_s1 = inlined_call_operand.vmem [shape: bf16[4224,128], index: 1, kind: input, shape index: {}]   ;;  %s5464_s0 = inlined_call_operand.vmem [shape: bf16[8,4224], index: 0, kind: input, shape index: {}]   ;;  %s5465_s2 = inlined_call_operand.vmem [shape: f32[1,128], index: 2, kind: input, shape index: {}]   ;;  %s5466_s3 = inlined_call_operand.vmem [shape: bf16[128,128], index: 3, kind: input, shape index: {}]   ;;  %s5467_s5 = inlined_call_operand.vmem [shape: bf16[128,128], index: 5, kind: input, shape index: {}]   ;;  %s5468_s7 = inlined_call_operand.vmem [shape: bf16[128,128], index: 7, kind: input, shape index: {}]   ;;  %s5469_s4 = inlined_call_operand.vmem [shape: f32[1,128], index: 4, kind: input, shape index: {}]   ;;  %s5470_s6 = inlined_call_operand.vmem [shape: f32[1,128], index: 6, kind: input, shape index: {}]   ;;  %s5471_s8 = inlined_call_operand.vmem [shape: f32[1,128], index: 8, kind: input, shape index: {}]   ;;  %s5472_s9 = inlined_call_operand.vmem [shape: f32[8,128], index: 9, kind: output, shape index: {}]  }
   0x1   :  { %v4113_v0 = vld [vmem:[%s5463_s1 + $0x78] sm:$0xff]   ;;  %v4117_v4 = vld [vmem:[%s5463_s1 + $0x70] sm:$0xff]   ;;  %v4121_v8 = vld [vmem:[%s5463_s1 + $0x68] sm:$0xff]  }
   0x2   :  { %v4114_v1 = vld [vmem:[%s5463_s1 + $0x38] sm:$0xff]   ;;  %3643 = vmatprep.subr.bf16.mxu0 %v4113_v0  ;;  %v4118_v5 = vld [vmem:[%s5463_s1 + $0x30] sm:$0xff]   ;;  %v4122_v9 = vld [vmem:[%s5463_s1 + $0x28] sm:$0xff]  }
   0x3   :  { %v4115_v2 = vld [vmem:[%s5463_s1 + $0xf8] sm:$0xff]   ;;  %3644 = vmatpush3.bf16.msra.mxu0 %v4114_v1  ;;  %v4119_v6 = vld [vmem:[%s5463_s1 + $0xf0] sm:$0xff]   ;;  %v4123_v10 = vld [vmem:[%s5463_s1 + $0xe8] sm:$0xff]  }
   0x4   :  { %v4116_v3 = vld [vmem:[%s5463_s1 + $0xb8] sm:$0xff]   ;;  %3665 = vmatprep.subr.bf16.mxu1 %v4115_v2  ;;  %3645 = vmatprep.subr.bf16.mxu0 %v4117_v4  ;;  %v4120_v7 = vld [vmem:[%s5463_s1 + $0xb0] sm:$0xff]   ;;  %v4124_v11 = vld [vmem:[%s5463_s1 + $0xa8] sm:$0xff]  }
   0x5   :  { %3666 = vmatpush3.bf16.msra.mxu1 %v4116_v3  ;;  %v4125_v12 = vld [vmem:[%s5463_s1 + $0x60] sm:$0xff]   ;;  %v4129_v16 = vld [vmem:[%s5463_s1 + $0x58] sm:$0xff]   ;;  %v4133_v20 = vld [vmem:[%s5463_s1 + $0x50] sm:$0xff]  }
   0x6   :  { %3667 = vmatprep.subr.bf16.mxu1 %v4119_v6  ;;  %v4126_v13 = vld [vmem:[%s5463_s1 + $0x20] sm:$0xff]   ;;  %v4130_v17 = vld [vmem:[%s5463_s1 + $0x18] sm:$0xff]   ;;  %v4134_v21 = vld [vmem:[%s5463_s1 + $0x10] sm:$0xff]  }
   0x7   :  { %3646 = vmatpush3.bf16.msra.mxu0 %v4118_v5  ;;  %v4127_v14 = vld [vmem:[%s5463_s1 + $0xe0] sm:$0xff]   ;;  %v4131_v18 = vld [vmem:[%s5463_s1 + $0xd8] sm:$0xff]   ;;  %v4135_v22 = vld [vmem:[%s5463_s1 + $0xd0] sm:$0xff]  }
   0x8   :  { %3647 = vmatprep.subr.bf16.mxu0 %v4121_v8  ;;  %v4128_v15 = vld [vmem:[%s5463_s1 + $0xa0] sm:$0xff]   ;;  %v4132_v19 = vld [vmem:[%s5463_s1 + $0x98] sm:$0xff]   ;;  %v4136_v23 = vld [vmem:[%s5463_s1 + $0x90] sm:$0xff]  }
   0x9   :  { %3668 = vmatpush3.bf16.msra.mxu1 %v4120_v7  ;;  %v4137_v24 = vld [vmem:[%s5463_s1 + $0x48] sm:$0xff]   ;;  %v4141_v28 = vld [vmem:[%s5463_s1 + $0x40] sm:$0xff]   ;;  %v4147_v35 = vld [vmem:[%s5463_s1 + $0x178] sm:$0xff]  }
   0xa   :  { %3669 = vmatprep.subr.bf16.mxu1 %v4123_v10  ;;  %v4138_v25 = vld [vmem:[%s5463_s1 + $0x8] sm:$0xff]   ;;  %v4142_v29 = vld [vmem:[%s5463_s1] sm:$0xff]   ;;  %v4150_v39 = vld [vmem:[%s5463_s1 + $0x138] sm:$0xff]  }
   0xb   :  { %3648 = vmatpush3.bf16.msra.mxu0 %v4122_v9  ;;  %v4139_v26 = vld [vmem:[%s5463_s1 + $0xc8] sm:$0xff]   ;;  %v4143_v30 = vld [vmem:[%s5463_s1 + $0xc0] sm:$0xff]   ;;  %v4151_v40 = vld [vmem:[%s5463_s1 + $0x1f8] sm:$0xff]  }
   0xc   :  { %3649 = vmatprep.subr.bf16.mxu0 %v4125_v12  ;;  %v4140_v27 = vld [vmem:[%s5463_s1 + $0x88] sm:$0xff]   ;;  %v33_v31 = vld [vmem:[%s5464_s0] sm:$0xff]  ;;  %v4152_v41 = vld [vmem:[%s5463_s1 + $0x1b8] sm:$0xff]  }
   0xd   :  { %3670 = vmatpush3.bf16.msra.mxu1 %v4124_v11  ;;  %v3317_v32 = vcombine.low %v33_v31, %v33_v31  ;;  %v3318_v33 = vcombine.high %v33_v31, %v33_v31  ;;  %v4146_v34 = vld [vmem:[%s5463_s1 + $0x80] sm:$0xff]   ;;  %v34_v36 = vld [vmem:[%s5464_s0 + $0x8] sm:$0xff]  ;;  %v4153_v42 = vld [vmem:[%s5463_s1 + $0x170] sm:$0xff]  }
   0xe   :  { %3671 = vmatprep.subr.bf16.mxu1 %v4127_v14  ;;  %v3319_v37 = vcombine.low %v34_v36, %v34_v36  ;;  %v3320_v38 = vcombine.high %v34_v36, %v34_v36  ;;  %v4154_v43 = vld [vmem:[%s5463_s1 + $0x130] sm:$0xff]   ;;  %v4157_v46 = vld [vmem:[%s5463_s1 + $0x168] sm:$0xff]   ;;  %v4161_v50 = vld [vmem:[%s5463_s1 + $0x160] sm:$0xff]  }
   0xf   :  { %3650 = vmatpush3.bf16.msra.mxu0 %v4126_v13  ;;  %2317 = vmatprep.mubr.bf16.mxu0 %v3318_v33  ;;  %v4155_v44 = vld [vmem:[%s5463_s1 + $0x1f0] sm:$0xff]   ;;  %v4158_v47 = vld [vmem:[%s5463_s1 + $0x128] sm:$0xff]   ;;  %v4162_v51 = vld [vmem:[%s5463_s1 + $0x120] sm:$0xff]  }
  0x10   :  { %3651 = vmatprep.subr.bf16.mxu0 %v4129_v16  ;;  %2357 = vmatprep.mubr.bf16.mxu1 %v3320_v38  ;;  %v4156_v45 = vld [vmem:[%s5463_s1 + $0x1b0] sm:$0xff]   ;;  %v4159_v48 = vld [vmem:[%s5463_s1 + $0x1e8] sm:$0xff]   ;;  %v4163_v52 = vld [vmem:[%s5463_s1 + $0x1e0] sm:$0xff]  }
  0x11   :  { %3672 = vmatpush3.bf16.msra.mxu1 %v4128_v15  ;;  %v4160_v49 = vld [vmem:[%s5463_s1 + $0x1a8] sm:$0xff]   ;;  %v4164_v53 = vld [vmem:[%s5463_s1 + $0x1a0] sm:$0xff]   ;;  %v4165_v54 = vld [vmem:[%s5463_s1 + $0x158] sm:$0xff]  }
  0x12   :  { %3673 = vmatprep.subr.bf16.mxu1 %v4131_v18  ;;  %v4166_v55 = vld [vmem:[%s5463_s1 + $0x118] sm:$0xff]   ;;  %v4169_v58 = vld [vmem:[%s5463_s1 + $0x150] sm:$0xff]   ;;  %v4173_v62 = vld [vmem:[%s5463_s1 + $0x148] sm:$0xff]  }
  0x13   :  { %3652 = vmatpush3.bf16.msra.mxu0 %v4130_v17  ;;  %v4167_v56 = vld [vmem:[%s5463_s1 + $0x1d8] sm:$0xff]   ;;  %v4170_v59 = vld [vmem:[%s5463_s1 + $0x110] sm:$0xff]   ;;  %v4174_v63 = vld [vmem:[%s5463_s1 + $0x108] sm:$0xff]  }
  0x14   :  { %3653 = vmatprep.subr.bf16.mxu0 %v4133_v20  ;;  %v4168_v57 = vld [vmem:[%s5463_s1 + $0x198] sm:$0xff]   ;;  %v4171_v60 = vld [vmem:[%s5463_s1 + $0x1d0] sm:$0xff]   ;;  %v4175_v0 = vld [vmem:[%s5463_s1 + $0x1c8] sm:$0xff]  }
  0x15   :  { %3674 = vmatpush3.bf16.msra.mxu1 %v4132_v19  ;;  %v4172_v61 = vld [vmem:[%s5463_s1 + $0x190] sm:$0xff]   ;;  %v4176_v1 = vld [vmem:[%s5463_s1 + $0x188] sm:$0xff]   ;;  %v4177_v2 = vld [vmem:[%s5463_s1 + $0x140] sm:$0xff]  }
  0x16   :  { %3675 = vmatprep.subr.bf16.mxu1 %v4135_v22  ;;  %v4178_v3 = vld [vmem:[%s5463_s1 + $0x100] sm:$0xff]   ;;  %v35_v5 = vld [vmem:[%s5464_s0 + $0x10] sm:$0xff]  ;;  %v4183_v9 = vld [vmem:[%s5463_s1 + $0x278] sm:$0xff]  }
  0x17   :  { %3654 = vmatpush3.bf16.msra.mxu0 %v4134_v21  ;;  %v4179_v4 = vld [vmem:[%s5463_s1 + $0x1c0] sm:$0xff]   ;;  %v3321_v6 = vcombine.low %v35_v5, %v35_v5  ;;  %v3322_v7 = vcombine.high %v35_v5, %v35_v5  ;;  %v36_v10 = vld [vmem:[%s5464_s0 + $0x18] sm:$0xff]  ;;  %v4189_v16 = vld [vmem:[%s5463_s1 + $0x270] sm:$0xff]  }
  0x18   :  { %3655 = vmatprep.subr.bf16.mxu0 %v4137_v24  ;;  %v4182_v8 = vld [vmem:[%s5463_s1 + $0x180] sm:$0xff]   ;;  %v3323_v11 = vcombine.low %v36_v10, %v36_v10  ;;  %v3324_v12 = vcombine.high %v36_v10, %v36_v10  ;;  %v4186_v13 = vld [vmem:[%s5463_s1 + $0x238] sm:$0xff]   ;;  %v4190_v17 = vld [vmem:[%s5463_s1 + $0x230] sm:$0xff]  }
  0x19   :  { %3676 = vmatpush3.bf16.msra.mxu1 %v4136_v23  ;;  %v4187_v14 = vld [vmem:[%s5463_s1 + $0x2f8] sm:$0xff]   ;;  %v4191_v18 = vld [vmem:[%s5463_s1 + $0x2f0] sm:$0xff]   ;;  %v4193_v20 = vld [vmem:[%s5463_s1 + $0x268] sm:$0xff]  }
  0x1a   :  { %3677 = vmatprep.subr.bf16.mxu1 %v4139_v26  ;;  %v4188_v15 = vld [vmem:[%s5463_s1 + $0x2b8] sm:$0xff]   ;;  %v4192_v19 = vld [vmem:[%s5463_s1 + $0x2b0] sm:$0xff]   ;;  %v4194_v21 = vld [vmem:[%s5463_s1 + $0x228] sm:$0xff]  }
  0x1b   :  { %3656 = vmatpush3.bf16.msra.mxu0 %v4138_v25  ;;  %v4195_v22 = vld [vmem:[%s5463_s1 + $0x2e8] sm:$0xff]   ;;  %v4197_v24 = vld [vmem:[%s5463_s1 + $0x260] sm:$0xff]   ;;  %v4204_v31 = vld [vmem:[%s5463_s1 + $0x298] sm:$0xff]  }
  0x1c   :  { %3657 = vmatprep.subr.bf16.mxu0 %v4141_v28  ;;  %v4196_v23 = vld [vmem:[%s5463_s1 + $0x2a8] sm:$0xff]   ;;  %v4198_v25 = vld [vmem:[%s5463_s1 + $0x220] sm:$0xff]   ;;  %v4201_v28 = vld [vmem:[%s5463_s1 + $0x258] sm:$0xff]  }
  0x1d   :  { %3678 = vmatpush3.bf16.msra.mxu1 %v4140_v27  ;;  %v4199_v26 = vld [vmem:[%s5463_s1 + $0x2e0] sm:$0xff]   ;;  %v4206_v33 = vld [vmem:[%s5463_s1 + $0x210] sm:$0xff]   ;;  %v4209_v36 = vld [vmem:[%s5463_s1 + $0x248] sm:$0xff]  }
  0x1e   :  { %3679 = vmatprep.subr.bf16.mxu1 %v4143_v30  ;;  %v4200_v27 = vld [vmem:[%s5463_s1 + $0x2a0] sm:$0xff]   ;;  %v4203_v30 = vld [vmem:[%s5463_s1 + $0x2d8] sm:$0xff]   ;;  %v4211_v38 = vld [vmem:[%s5463_s1 + $0x2c8] sm:$0xff]  }
  0x1f   :  { %3658 = vmatpush3.bf16.msra.mxu0 %v4142_v29  ;;  %v4202_v29 = vld [vmem:[%s5463_s1 + $0x218] sm:$0xff]   ;;  %v4245_v10 = vld [vmem:[%s5463_s1 + $0x348] sm:$0xff]  }
  0x20   :  { %3687 = vmatprep.subr.bf16.mxu0 %v4147_v35  ;;  %v4208_v35 = vld [vmem:[%s5463_s1 + $0x290] sm:$0xff]   ;;  %v4240_v5 = vld [vmem:[%s5463_s1 + $0x398] sm:$0xff]  }
  0x21   :  { %3680 = vmatpush3.bf16.msra.mxu1 %v4146_v34  ;;  %v4207_v34 = vld [vmem:[%s5463_s1 + $0x2d0] sm:$0xff]  }
  0x22   :  { %2318 = vmatmul.mubr.bf16.vlgmr.msra.gmra.mxu0 %v3317_v32  ;;  %3709 = vmatprep.subr.bf16.mxu1 %v4151_v40  ;;  %v4205_v32 = vld [vmem:[%s5463_s1 + $0x250] sm:$0xff]   ;;  %v4213_v40 = vld [vmem:[%s5463_s1 + $0x240] sm:$0xff]  }
  0x23   :  { %3688 = vmatpush3.bf16.msra.mxu0 %v4150_v39  ;;  %2397 = vmatprep.mubr.bf16.mxu0 %v3322_v7  ;;  %v4212_v39 = vld [vmem:[%s5463_s1 + $0x288] sm:$0xff]   ;;  %v4242_v7 = vld [vmem:[%s5463_s1 + $0x310] sm:$0xff]  }
  0x24   :  { %2358 = vmatmul.mubr.bf16.vlgmr.msra.gmra.mxu1 %v3319_v37  ;;  %3689 = vmatprep.subr.bf16.mxu0 %v4153_v42  ;;  %v4210_v37 = vld [vmem:[%s5463_s1 + $0x208] sm:$0xff]   ;;  %v4215_v42 = vld [vmem:[%s5463_s1 + $0x2c0] sm:$0xff]  }
  0x25   :  { %3710 = vmatpush3.bf16.msra.mxu1 %v4152_v41  ;;  %2437 = vmatprep.mubr.bf16.mxu1 %v3324_v12  ;;  %v4214_v41 = vld [vmem:[%s5463_s1 + $0x200] sm:$0xff]   ;;  %v4247_v12 = vld [vmem:[%s5463_s1 + $0x3c8] sm:$0xff]  }
  0x26   :  { %3711 = vmatprep.subr.bf16.mxu1 %v4155_v44 }
  0x27   :  { %3690 = vmatpush3.bf16.msra.mxu0 %v4154_v43  ;;  %v37_v43 = vld [vmem:[%s5464_s0 + $0x20] sm:$0xff] }
  0x28   :  { %3691 = vmatprep.subr.bf16.mxu0 %v4157_v46  ;;  %v3325_v44 = vcombine.low %v37_v43, %v37_v43  ;;  %v4218_v46 = vld [vmem:[%s5463_s1 + $0x280] sm:$0xff]  }
  0x29   :  { %3712 = vmatpush3.bf16.msra.mxu1 %v4156_v45  ;;  %v3326_v45 = vcombine.high %v37_v43, %v37_v43  ;;  %v4276_v43 = vld [vmem:[%s5463_s1 + $0x498] sm:$0xff]  }
  0x2a   :  { %3713 = vmatprep.subr.bf16.mxu1 %v4159_v48  ;;  %v38_v48 = vld [vmem:[%s5464_s0 + $0x28] sm:$0xff] }
  0x2b   :  { %3692 = vmatpush3.bf16.msra.mxu0 %v4158_v47  ;;  %v4219_v47 = vld [vmem:[%s5463_s1 + $0x378] sm:$0xff]  }
  0x2c   :  { %3693 = vmatprep.subr.bf16.mxu0 %v4161_v50  ;;  %v3328_v50 = vcombine.high %v38_v48, %v38_v48 }
  0x2d   :  { %3714 = vmatpush3.bf16.msra.mxu1 %v4160_v49  ;;  %v3327_v49 = vcombine.low %v38_v48, %v38_v48  ;;  %v4281_v48 = vld [vmem:[%s5463_s1 + $0x448] sm:$0xff]  }
  0x2e   :  { %3715 = vmatprep.subr.bf16.mxu1 %v4163_v52  ;;  %v4223_v52 = vld [vmem:[%s5463_s1 + $0x3f8] sm:$0xff]  }
  0x2f   :  { %3694 = vmatpush3.bf16.msra.mxu0 %v4162_v51  ;;  %v4222_v51 = vld [vmem:[%s5463_s1 + $0x338] sm:$0xff]  }
  0x30   :  { %3695 = vmatprep.subr.bf16.mxu0 %v4165_v54  ;;  %v4225_v54 = vld [vmem:[%s5463_s1 + $0x370] sm:$0xff]  }
  0x31   :  { %3716 = vmatpush3.bf16.msra.mxu1 %v4164_v53  ;;  %v4224_v53 = vld [vmem:[%s5463_s1 + $0x3b8] sm:$0xff]  }
  0x32   :  { %3717 = vmatprep.subr.bf16.mxu1 %v4167_v56  ;;  %v4227_v56 = vld [vmem:[%s5463_s1 + $0x3f0] sm:$0xff]  }
  0x33   :  { %3696 = vmatpush3.bf16.msra.mxu0 %v4166_v55  ;;  %v4226_v55 = vld [vmem:[%s5463_s1 + $0x330] sm:$0xff]  }
  0x34   :  { %3697 = vmatprep.subr.bf16.mxu0 %v4169_v58  ;;  %v4229_v58 = vld [vmem:[%s5463_s1 + $0x368] sm:$0xff]  }
  0x35   :  { %3718 = vmatpush3.bf16.msra.mxu1 %v4168_v57  ;;  %v4228_v57 = vld [vmem:[%s5463_s1 + $0x3b0] sm:$0xff]  }
  0x36   :  { %3719 = vmatprep.subr.bf16.mxu1 %v4171_v60  ;;  %v4231_v60 = vld [vmem:[%s5463_s1 + $0x3e8] sm:$0xff]  }
  0x37   :  { %3698 = vmatpush3.bf16.msra.mxu0 %v4170_v59  ;;  %v4230_v59 = vld [vmem:[%s5463_s1 + $0x328] sm:$0xff]  }
  0x38   :  { %3699 = vmatprep.subr.bf16.mxu0 %v4173_v62  ;;  %v4233_v62 = vld [vmem:[%s5463_s1 + $0x360] sm:$0xff]  }
  0x39   :  { %3720 = vmatpush3.bf16.msra.mxu1 %v4172_v61  ;;  %v4232_v61 = vld [vmem:[%s5463_s1 + $0x3a8] sm:$0xff]  }
  0x3a   :  { %3721 = vmatprep.subr.bf16.mxu1 %v4175_v0  ;;  %v4235_v0 = vld [vmem:[%s5463_s1 + $0x3e0] sm:$0xff]  }
  0x3b   :  { %3700 = vmatpush3.bf16.msra.mxu0 %v4174_v63  ;;  %v4234_v63 = vld [vmem:[%s5463_s1 + $0x320] sm:$0xff]  }
  0x3c   :  { %3701 = vmatprep.subr.bf16.mxu0 %v4177_v2  ;;  %v4237_v2 = vld [vmem:[%s5463_s1 + $0x358] sm:$0xff]  }
  0x3d   :  { %3722 = vmatpush3.bf16.msra.mxu1 %v4176_v1  ;;  %v4236_v1 = vld [vmem:[%s5463_s1 + $0x3a0] sm:$0xff]  }
  0x3e   :  { %3723 = vmatprep.subr.bf16.mxu1 %v4179_v4  ;;  %v4239_v4 = vld [vmem:[%s5463_s1 + $0x3d8] sm:$0xff]  }
  0x3f   :  { %3702 = vmatpush3.bf16.msra.mxu0 %v4178_v3  ;;  %v4238_v3 = vld [vmem:[%s5463_s1 + $0x318] sm:$0xff]  }
  0x40   :  { %3731 = vmatprep.subr.bf16.mxu0 %v4183_v9  ;;  %v4244_v9 = vld [vmem:[%s5463_s1 + $0x390] sm:$0xff]  }
  0x41   :  { %3724 = vmatpush3.bf16.msra.mxu1 %v4182_v8  ;;  %v4243_v8 = vld [vmem:[%s5463_s1 + $0x3d0] sm:$0xff]  }
  0x42   :  { %2398 = vmatmul.mubr.bf16.vlgmr.msra.gmra.mxu0 %v3321_v6  ;;  %3753 = vmatprep.subr.bf16.mxu1 %v4187_v14  ;;  %v4241_v6 = vld [vmem:[%s5463_s1 + $0x350] sm:$0xff]   ;;  %v4249_v14 = vld [vmem:[%s5463_s1 + $0x340] sm:$0xff]  }
  0x43   :  { %3732 = vmatpush3.bf16.msra.mxu0 %v4186_v13  ;;  %2477 = vmatprep.mubr.bf16.mxu0 %v3326_v45  ;;  %v4248_v13 = vld [vmem:[%s5463_s1 + $0x388] sm:$0xff]   ;;  %v4278_v45 = vld [vmem:[%s5463_s1 + $0x410] sm:$0xff]  }
  0x44   :  { %2438 = vmatmul.mubr.bf16.vlgmr.msra.gmra.mxu1 %v3323_v11  ;;  %3733 = vmatprep.subr.bf16.mxu0 %v4189_v16  ;;  %v4246_v11 = vld [vmem:[%s5463_s1 + $0x308] sm:$0xff]   ;;  %v4251_v16 = vld [vmem:[%s5463_s1 + $0x3c0] sm:$0xff]  }
  0x45   :  { %3754 = vmatpush3.bf16.msra.mxu1 %v4188_v15  ;;  %2517 = vmatprep.mubr.bf16.mxu1 %v3328_v50  ;;  %v4250_v15 = vld [vmem:[%s5463_s1 + $0x300] sm:$0xff]   ;;  %v4283_v50 = vld [vmem:[%s5463_s1 + $0x4c8] sm:$0xff]  }
  0x46   :  { %3755 = vmatprep.subr.bf16.mxu1 %v4191_v18 }
  0x47   :  { %3734 = vmatpush3.bf16.msra.mxu0 %v4190_v17  ;;  %v39_v17 = vld [vmem:[%s5464_s0 + $0x30] sm:$0xff] }
  0x48   :  { %3735 = vmatprep.subr.bf16.mxu0 %v4193_v20  ;;  %v3329_v18 = vcombine.low %v39_v17, %v39_v17  ;;  %v4254_v20 = vld [vmem:[%s5463_s1 + $0x380] sm:$0xff]  }
  0x49   :  { %3756 = vmatpush3.bf16.msra.mxu1 %v4192_v19  ;;  %v3330_v19 = vcombine.high %v39_v17, %v39_v17  ;;  %v4312_v17 = vld [vmem:[%s5463_s1 + $0x598] sm:$0xff]  }
  0x4a   :  { %3757 = vmatprep.subr.bf16.mxu1 %v4195_v22  ;;  %v40_v22 = vld [vmem:[%s5464_s0 + $0x38] sm:$0xff] }
  0x4b   :  { %3736 = vmatpush3.bf16.msra.mxu0 %v4194_v21  ;;  %v4255_v21 = vld [vmem:[%s5463_s1 + $0x478] sm:$0xff]  }
  0x4c   :  { %3737 = vmatprep.subr.bf16.mxu0 %v4197_v24  ;;  %v3332_v24 = vcombine.high %v40_v22, %v40_v22 }
  0x4d   :  { %3758 = vmatpush3.bf16.msra.mxu1 %v4196_v23  ;;  %v3331_v23 = vcombine.low %v40_v22, %v40_v22  ;;  %v4317_v22 = vld [vmem:[%s5463_s1 + $0x548] sm:$0xff]  }
  0x4e   :  { %3759 = vmatprep.subr.bf16.mxu1 %v4199_v26  ;;  %v4259_v26 = vld [vmem:[%s5463_s1 + $0x4f8] sm:$0xff]  }
  0x4f   :  { %3738 = vmatpush3.bf16.msra.mxu0 %v4198_v25  ;;  %v4258_v25 = vld [vmem:[%s5463_s1 + $0x438] sm:$0xff]  }
  0x50   :  { %3739 = vmatprep.subr.bf16.mxu0 %v4201_v28  ;;  %v4261_v28 = vld [vmem:[%s5463_s1 + $0x470] sm:$0xff]  }
  0x51   :  { %3760 = vmatpush3.bf16.msra.mxu1 %v4200_v27  ;;  %v4260_v27 = vld [vmem:[%s5463_s1 + $0x4b8] sm:$0xff]  }
  0x52   :  { %3761 = vmatprep.subr.bf16.mxu1 %v4203_v30  ;;  %v4263_v30 = vld [vmem:[%s5463_s1 + $0x4f0] sm:$0xff]  }
  0x53   :  { %3740 = vmatpush3.bf16.msra.mxu0 %v4202_v29  ;;  %v4262_v29 = vld [vmem:[%s5463_s1 + $0x430] sm:$0xff]  }
  0x54   :  { %3741 = vmatprep.subr.bf16.mxu0 %v4205_v32  ;;  %v4265_v32 = vld [vmem:[%s5463_s1 + $0x468] sm:$0xff]  }
  0x55   :  { %3762 = vmatpush3.bf16.msra.mxu1 %v4204_v31  ;;  %v4264_v31 = vld [vmem:[%s5463_s1 + $0x4b0] sm:$0xff]  }
  0x56   :  { %3763 = vmatprep.subr.bf16.mxu1 %v4207_v34  ;;  %v4267_v34 = vld [vmem:[%s5463_s1 + $0x4e8] sm:$0xff]  }
  0x57   :  { %3742 = vmatpush3.bf16.msra.mxu0 %v4206_v33  ;;  %v4266_v33 = vld [vmem:[%s5463_s1 + $0x428] sm:$0xff]  }
  0x58   :  { %3743 = vmatprep.subr.bf16.mxu0 %v4209_v36  ;;  %v4269_v36 = vld [vmem:[%s5463_s1 + $0x460] sm:$0xff]  }
  0x59   :  { %3764 = vmatpush3.bf16.msra.mxu1 %v4208_v35  ;;  %v4268_v35 = vld [vmem:[%s5463_s1 + $0x4a8] sm:$0xff]  }
  0x5a   :  { %3765 = vmatprep.subr.bf16.mxu1 %v4211_v38  ;;  %v4271_v38 = vld [vmem:[%s5463_s1 + $0x4e0] sm:$0xff]  }
  0x5b   :  { %3744 = vmatpush3.bf16.msra.mxu0 %v4210_v37  ;;  %v4270_v37 = vld [vmem:[%s5463_s1 + $0x420] sm:$0xff]  }
  0x5c   :  { %3745 = vmatprep.subr.bf16.mxu0 %v4213_v40  ;;  %v4273_v40 = vld [vmem:[%s5463_s1 + $0x458] sm:$0xff]  }
  0x5d   :  { %3766 = vmatpush3.bf16.msra.mxu1 %v4212_v39  ;;  %v4272_v39 = vld [vmem:[%s5463_s1 + $0x4a0] sm:$0xff]  }
  0x5e   :  { %3767 = vmatprep.subr.bf16.mxu1 %v4215_v42  ;;  %v4275_v42 = vld [vmem:[%s5463_s1 + $0x4d8] sm:$0xff]  }
  0x5f   :  { %3746 = vmatpush3.bf16.msra.mxu0 %v4214_v41  ;;  %v4274_v41 = vld [vmem:[%s5463_s1 + $0x418] sm:$0xff]  }
  0x60   :  { %3775 = vmatprep.subr.bf16.mxu0 %v4219_v47  ;;  %v4280_v47 = vld [vmem:[%s5463_s1 + $0x490] sm:$0xff]  }
  0x61   :  { %3768 = vmatpush3.bf16.msra.mxu1 %v4218_v46  ;;  %v4279_v46 = vld [vmem:[%s5463_s1 + $0x4d0] sm:$0xff]  }
  0x62   :  { %2478 = vmatmul.mubr.bf16.vlgmr.msra.gmra.mxu0 %v3325_v44  ;;  %3797 = vmatprep.subr.bf16.mxu1 %v4223_v52  ;;  %v4277_v44 = vld [vmem:[%s5463_s1 + $0x450] sm:$0xff]   ;;  %v4285_v52 = vld [vmem:[%s5463_s1 + $0x440] sm:$0xff]  }
  0x63   :  { %3776 = vmatpush3.bf16.msra.mxu0 %v4222_v51  ;;  %2557 = vmatprep.mubr.bf16.mxu0 %v3330_v19  ;;  %v4284_v51 = vld [vmem:[%s5463_s1 + $0x488] sm:$0xff]   ;;  %v4314_v19 = vld [vmem:[%s5463_s1 + $0x510] sm:$0xff]  }
  0x64   :  { %2518 = vmatmul.mubr.bf16.vlgmr.msra.gmra.mxu1 %v3327_v49  ;;  %3777 = vmatprep.subr.bf16.mxu0 %v4225_v54  ;;  %v4282_v49 = vld [vmem:[%s5463_s1 + $0x408] sm:$0xff]   ;;  %v4287_v54 = vld [vmem:[%s5463_s1 + $0x4c0] sm:$0xff]  }
  0x65   :  { %3798 = vmatpush3.bf16.msra.mxu1 %v4224_v53  ;;  %2597 = vmatprep.mubr.bf16.mxu1 %v3332_v24  ;;  %v4286_v53 = vld [vmem:[%s5463_s1 + $0x400] sm:$0xff]   ;;  %v4319_v24 = vld [vmem:[%s5463_s1 + $0x5c8] sm:$0xff]  }
  0x66   :  { %3799 = vmatprep.subr.bf16.mxu1 %v4227_v56 }
  0x67   :  { %3778 = vmatpush3.bf16.msra.mxu0 %v4226_v55  ;;  %v41_v55 = vld [vmem:[%s5464_s0 + $0x40] sm:$0xff] }
  0x68   :  { %3779 = vmatprep.subr.bf16.mxu0 %v4229_v58  ;;  %v3333_v56 = vcombine.low %v41_v55, %v41_v55  ;;  %v4290_v58 = vld [vmem:[%s5463_s1 + $0x480] sm:$0xff]  }
  0x69   :  { %3800 = vmatpush3.bf16.msra.mxu1 %v4228_v57  ;;  %v3334_v57 = vcombine.high %v41_v55, %v41_v55  ;;  %v4348_v55 = vld [vmem:[%s5463_s1 + $0x698] sm:$0xff]  }
  0x6a   :  { %3801 = vmatprep.subr.bf16.mxu1 %v4231_v60  ;;  %v42_v60 = vld [vmem:[%s5464_s0 + $0x48] sm:$0xff] }
  0x6b   :  { %3780 = vmatpush3.bf16.msra.mxu0 %v4230_v59  ;;  %v4291_v59 = vld [vmem:[%s5463_s1 + $0x578] sm:$0xff]  }
  0x6c   :  { %3781 = vmatprep.subr.bf16.mxu0 %v4233_v62  ;;  %v3336_v62 = vcombine.high %v42_v60, %v42_v60 }
  0x6d   :  { %3802 = vmatpush3.bf16.msra.mxu1 %v4232_v61  ;;  %v3335_v61 = vcombine.low %v42_v60, %v42_v60  ;;  %v4353_v60 = vld [vmem:[%s5463_s1 + $0x648] sm:$0xff]  }
  0x6e   :  { %3803 = vmatprep.subr.bf16.mxu1 %v4235_v0  ;;  %v4295_v0 = vld [vmem:[%s5463_s1 + $0x5f8] sm:$0xff]  }
  0x6f   :  { %3782 = vmatpush3.bf16.msra.mxu0 %v4234_v63  ;;  %v4294_v63 = vld [vmem:[%s5463_s1 + $0x538] sm:$0xff]  }
  0x70   :  { %3783 = vmatprep.subr.bf16.mxu0 %v4237_v2  ;;  %v4297_v2 = vld [vmem:[%s5463_s1 + $0x570] sm:$0xff]  }
  0x71   :  { %3804 = vmatpush3.bf16.msra.mxu1 %v4236_v1  ;;  %v4296_v1 = vld [vmem:[%s5463_s1 + $0x5b8] sm:$0xff]  }
  0x72   :  { %3805 = vmatprep.subr.bf16.mxu1 %v4239_v4  ;;  %v4299_v4 = vld [vmem:[%s5463_s1 + $0x5f0] sm:$0xff]  }
  0x73   :  { %3784 = vmatpush3.bf16.msra.mxu0 %v4238_v3  ;;  %v4298_v3 = vld [vmem:[%s5463_s1 + $0x530] sm:$0xff]  }
  0x74   :  { %3785 = vmatprep.subr.bf16.mxu0 %v4241_v6  ;;  %v4301_v6 = vld [vmem:[%s5463_s1 + $0x568] sm:$0xff]  }
  0x75   :  { %3806 = vmatpush3.bf16.msra.mxu1 %v4240_v5  ;;  %v4300_v5 = vld [vmem:[%s5463_s1 + $0x5b0] sm:$0xff]  }
  0x76   :  { %3807 = vmatprep.subr.bf16.mxu1 %v4243_v8  ;;  %v4303_v8 = vld [vmem:[%s5463_s1 + $0x5e8] sm:$0xff]  }
  0x77   :  { %3786 = vmatpush3.bf16.msra.mxu0 %v4242_v7  ;;  %v4302_v7 = vld [vmem:[%s5463_s1 + $0x528] sm:$0xff]  }
  0x78   :  { %3787 = vmatprep.subr.bf16.mxu0 %v4245_v10  ;;  %v4305_v10 = vld [vmem:[%s5463_s1 + $0x560] sm:$0xff]  }
  0x79   :  { %3808 = vmatpush3.bf16.msra.mxu1 %v4244_v9  ;;  %v4304_v9 = vld [vmem:[%s5463_s1 + $0x5a8] sm:$0xff]  }
  0x7a   :  { %3809 = vmatprep.subr.bf16.mxu1 %v4247_v12  ;;  %v4307_v12 = vld [vmem:[%s5463_s1 + $0x5e0] sm:$0xff]  }
  0x7b   :  { %3788 = vmatpush3.bf16.msra.mxu0 %v4246_v11  ;;  %v4306_v11 = vld [vmem:[%s5463_s1 + $0x520] sm:$0xff]  }
  0x7c   :  { %3789 = vmatprep.subr.bf16.mxu0 %v4249_v14  ;;  %v4309_v14 = vld [vmem:[%s5463_s1 + $0x558] sm:$0xff]  }
  0x7d   :  { %3810 = vmatpush3.bf16.msra.mxu1 %v4248_v13  ;;  %v4308_v13 = vld [vmem:[%s5463_s1 + $0x5a0] sm:$0xff]  }
  0x7e   :  { %3811 = vmatprep.subr.bf16.mxu1 %v4251_v16  ;;  %v4311_v16 = vld [vmem:[%s5463_s1 + $0x5d8] sm:$0xff]  }
  0x7f   :  { %3790 = vmatpush3.bf16.msra.mxu0 %v4250_v15  ;;  %v4310_v15 = vld [vmem:[%s5463_s1 + $0x518] sm:$0xff]  }
  0x80   :  { %3819 = vmatprep.subr.bf16.mxu0 %v4255_v21  ;;  %v4316_v21 = vld [vmem:[%s5463_s1 + $0x590] sm:$0xff]  }
  0x81   :  { %3812 = vmatpush3.bf16.msra.mxu1 %v4254_v20  ;;  %v4315_v20 = vld [vmem:[%s5463_s1 + $0x5d0] sm:$0xff]  }
  0x82   :  { %2558 = vmatmul.mubr.bf16.vlgmr.msra.gmra.mxu0 %v3329_v18  ;;  %3841 = vmatprep.subr.bf16.mxu1 %v4259_v26  ;;  %v4313_v18 = vld [vmem:[%s5463_s1 + $0x550] sm:$0xff]   ;;  %v4321_v26 = vld [vmem:[%s5463_s1 + $0x540] sm:$0xff]  }
  0x83   :  { %3820 = vmatpush3.bf16.msra.mxu0 %v4258_v25  ;;  %2637 = vmatprep.mubr.bf16.mxu0 %v3334_v57  ;;  %v4320_v25 = vld [vmem:[%s5463_s1 + $0x588] sm:$0xff]   ;;  %v4350_v57 = vld [vmem:[%s5463_s1 + $0x610] sm:$0xff]  }
  0x84   :  { %2598 = vmatmul.mubr.bf16.vlgmr.msra.gmra.mxu1 %v3331_v23  ;;  %3821 = vmatprep.subr.bf16.mxu0 %v4261_v28  ;;  %v4318_v23 = vld [vmem:[%s5463_s1 + $0x508] sm:$0xff]   ;;  %v4323_v28 = vld [vmem:[%s5463_s1 + $0x5c0] sm:$0xff]  }
  0x85   :  { %3842 = vmatpush3.bf16.msra.mxu1 %v4260_v27  ;;  %2677 = vmatprep.mubr.bf16.mxu1 %v3336_v62  ;;  %v4322_v27 = vld [vmem:[%s5463_s1 + $0x500] sm:$0xff]   ;;  %v4355_v62 = vld [vmem:[%s5463_s1 + $0x6c8] sm:$0xff]  }
  0x86   :  { %3843 = vmatprep.subr.bf16.mxu1 %v4263_v30 }
  0x87   :  { %3822 = vmatpush3.bf16.msra.mxu0 %v4262_v29  ;;  %v43_v29 = vld [vmem:[%s5464_s0 + $0x50] sm:$0xff] }
  0x88   :  { %3823 = vmatprep.subr.bf16.mxu0 %v4265_v32  ;;  %v3337_v30 = vcombine.low %v43_v29, %v43_v29  ;;  %v4326_v32 = vld [vmem:[%s5463_s1 + $0x580] sm:$0xff]  }
  0x89   :  { %3844 = vmatpush3.bf16.msra.mxu1 %v4264_v31  ;;  %v3338_v31 = vcombine.high %v43_v29, %v43_v29 }
  0x8a   :  { %3845 = vmatprep.subr.bf16.mxu1 %v4267_v34  ;;  %v44_v34 = vld [vmem:[%s5464_s0 + $0x58] sm:$0xff] }
  0x8b   :  { %3824 = vmatpush3.bf16.msra.mxu0 %v4266_v33  ;;  %v4327_v33 = vld [vmem:[%s5463_s1 + $0x678] sm:$0xff]  }
  0x8c   :  { %3825 = vmatprep.subr.bf16.mxu0 %v4269_v36  ;;  %v3340_v36 = vcombine.high %v44_v34, %v44_v34 }
  0x8d   :  { %3846 = vmatpush3.bf16.msra.mxu1 %v4268_v35  ;;  %v3339_v35 = vcombine.low %v44_v34, %v44_v34  ;;  %v4376_v34 = vld [vmem:[%s5463_s1 + $0x7a8] sm:$0xff]  }
  0x8e   :  { %3847 = vmatprep.subr.bf16.mxu1 %v4271_v38  ;;  %v4331_v38 = vld [vmem:[%s5463_s1 + $0x6f8] sm:$0xff]  }
  0x8f   :  { %3826 = vmatpush3.bf16.msra.mxu0 %v4270_v37  ;;  %v4330_v37 = vld [vmem:[%s5463_s1 + $0x638] sm:$0xff]  }
  0x90   :  { %3827 = vmatprep.subr.bf16.mxu0 %v4273_v40  ;;  %v4333_v40 = vld [vmem:[%s5463_s1 + $0x670] sm:$0xff]  }
  0x91   :  { %3848 = vmatpush3.bf16.msra.mxu1 %v4272_v39  ;;  %v4332_v39 = vld [vmem:[%s5463_s1 + $0x6b8] sm:$0xff]  }
  0x92   :  { %3849 = vmatprep.subr.bf16.mxu1 %v4275_v42  ;;  %v4335_v42 = vld [vmem:[%s5463_s1 + $0x6f0] sm:$0xff]  }
  0x93   :  { %3828 = vmatpush3.bf16.msra.mxu0 %v4274_v41  ;;  %v4334_v41 = vld [vmem:[%s5463_s1 + $0x630] sm:$0xff]  }
  0x94   :  { %3829 = vmatprep.subr.bf16.mxu0 %v4277_v44  ;;  %v4337_v44 = vld [vmem:[%s5463_s1 + $0x668] sm:$0xff]  }
  0x95   :  { %3850 = vmatpush3.bf16.msra.mxu1 %v4276_v43  ;;  %v4336_v43 = vld [vmem:[%s5463_s1 + $0x6b0] sm:$0xff]  }
  0x96   :  { %3851 = vmatprep.subr.bf16.mxu1 %v4279_v46  ;;  %v4339_v46 = vld [vmem:[%s5463_s1 + $0x6e8] sm:$0xff]  }
  0x97   :  { %3830 = vmatpush3.bf16.msra.mxu0 %v4278_v45  ;;  %v4338_v45 = vld [vmem:[%s5463_s1 + $0x628] sm:$0xff]  }
  0x98   :  { %3831 = vmatprep.subr.bf16.mxu0 %v4281_v48  ;;  %v4341_v48 = vld [vmem:[%s5463_s1 + $0x660] sm:$0xff]  }
  0x99   :  { %3852 = vmatpush3.bf16.msra.mxu1 %v4280_v47  ;;  %v4340_v47 = vld [vmem:[%s5463_s1 + $0x6a8] sm:$0xff]  }
  0x9a   :  { %3853 = vmatprep.subr.bf16.mxu1 %v4283_v50  ;;  %v4343_v50 = vld [vmem:[%s5463_s1 + $0x6e0] sm:$0xff]  }
  0x9b   :  { %3832 = vmatpush3.bf16.msra.mxu0 %v4282_v49  ;;  %v4342_v49 = vld [vmem:[%s5463_s1 + $0x620] sm:$0xff]  }
  0x9c   :  { %3833 = vmatprep.subr.bf16.mxu0 %v4285_v52  ;;  %v4345_v52 = vld [vmem:[%s5463_s1 + $0x658] sm:$0xff]  }
  0x9d   :  { %3854 = vmatpush3.bf16.msra.mxu1 %v4284_v51  ;;  %v4344_v51 = vld [vmem:[%s5463_s1 + $0x6a0] sm:$0xff]  }
  0x9e   :  { %3855 = vmatprep.subr.bf16.mxu1 %v4287_v54  ;;  %v4347_v54 = vld [vmem:[%s5463_s1 + $0x6d8] sm:$0xff]  }
  0x9f   :  { %3834 = vmatpush3.bf16.msra.mxu0 %v4286_v53  ;;  %v4346_v53 = vld [vmem:[%s5463_s1 + $0x618] sm:$0xff]  }
  0xa0   :  { %3863 = vmatprep.subr.bf16.mxu0 %v4291_v59  ;;  %v4352_v59 = vld [vmem:[%s5463_s1 + $0x690] sm:$0xff]  }
  0xa1   :  { %3856 = vmatpush3.bf16.msra.mxu1 %v4290_v58  ;;  %v4351_v58 = vld [vmem:[%s5463_s1 + $0x6d0] sm:$0xff]  }
  0xa2   :  { %2638 = vmatmul.mubr.bf16.vlgmr.msra.gmra.mxu0 %v3333_v56  ;;  %3885 = vmatprep.subr.bf16.mxu1 %v4295_v0  ;;  %v4349_v56 = vld [vmem:[%s5463_s1 + $0x650] sm:$0xff]   ;;  %v4357_v0 = vld [vmem:[%s5463_s1 + $0x640] sm:$0xff]  }
  0xa3   :  { %3864 = vmatpush3.bf16.msra.mxu0 %v4294_v63  ;;  %2717 = vmatprep.mubr.bf16.mxu0 %v3338_v31  ;;  %v4356_v63 = vld [vmem:[%s5463_s1 + $0x688] sm:$0xff]  }
  0xa4   :  { %2678 = vmatmul.mubr.bf16.vlgmr.msra.gmra.mxu1 %v3335_v61  ;;  %3865 = vmatprep.subr.bf16.mxu0 %v4297_v2  ;;  %v4354_v61 = vld [vmem:[%s5463_s1 + $0x608] sm:$0xff]   ;;  %v4359_v2 = vld [vmem:[%s5463_s1 + $0x6c0] sm:$0xff]  }
  0xa5   :  { %3886 = vmatpush3.bf16.msra.mxu1 %v4296_v1  ;;  %2757 = vmatprep.mubr.bf16.mxu1 %v3340_v36  ;;  %v4358_v1 = vld [vmem:[%s5463_s1 + $0x600] sm:$0xff]   ;;  %v4373_v31 = vld [vmem:[%s5463_s1 + $0x768] sm:$0xff]  }
  0xa6   :  { %3887 = vmatprep.subr.bf16.mxu1 %v4299_v4  ;;  %v4378_v36 = vld [vmem:[%s5463_s1 + $0x720] sm:$0xff]  }
  0xa7   :  { %3866 = vmatpush3.bf16.msra.mxu0 %v4298_v3  ;;  %v45_v3 = vld [vmem:[%s5464_s0 + $0x60] sm:$0xff] }
  0xa8   :  { %3867 = vmatprep.subr.bf16.mxu0 %v4301_v6  ;;  %v3342_v6 = vcombine.high %v45_v3, %v45_v3 }
  0xa9   :  { %3888 = vmatpush3.bf16.msra.mxu1 %v4300_v5  ;;  %v3341_v5 = vcombine.low %v45_v3, %v45_v3 }
  0xaa   :  { %3889 = vmatprep.subr.bf16.mxu1 %v4303_v8  ;;  %v4363_v8 = vld [vmem:[%s5463_s1 + $0x778] sm:$0xff]  }
  0xab   :  { %3868 = vmatpush3.bf16.msra.mxu0 %v4302_v7  ;;  %v4362_v7 = vld [vmem:[%s5463_s1 + $0x680] sm:$0xff]  }
  0xac   :  { %3869 = vmatprep.subr.bf16.mxu0 %v4305_v10 }
  0xad   :  { %3890 = vmatpush3.bf16.msra.mxu1 %v4304_v9  ;;  %v46_v9 = vld [vmem:[%s5464_s0 + $0x68] sm:$0xff] }
  0xae   :  { %3891 = vmatprep.subr.bf16.mxu1 %v4307_v12  ;;  %v3343_v12 = vcombine.low %v46_v9, %v46_v9 }
  0xaf   :  { %3870 = vmatpush3.bf16.msra.mxu0 %v4306_v11 }
  0xb0   :  { %3871 = vmatprep.subr.bf16.mxu0 %v4309_v14  ;;  %v4366_v14 = vld [vmem:[%s5463_s1 + $0x738] sm:$0xff]  }
  0xb1   :  { %3892 = vmatpush3.bf16.msra.mxu1 %v4308_v13  ;;  %v3344_v13 = vcombine.high %v46_v9, %v46_v9 }
  0xb2   :  { %3893 = vmatprep.subr.bf16.mxu1 %v4311_v16 }
  0xb3   :  { %3872 = vmatpush3.bf16.msra.mxu0 %v4310_v15  ;;  %v3316_v15 = vld [vmem:[%s5465_s2] ss:$0 sm:$0xff] }
  0xb4   :  { %3873 = vmatprep.subr.bf16.mxu0 %v4313_v18 }
  0xb5   :  { %3894 = vmatpush3.bf16.msra.mxu1 %v4312_v17  ;;  %v4367_v17 = vld [vmem:[%s5463_s1 + $0x7f8] sm:$0xff]  }
  0xb6   :  { %3895 = vmatprep.subr.bf16.mxu1 %v4315_v20 }
  0xb7   :  { %3874 = vmatpush3.bf16.msra.mxu0 %v4314_v19 }
  0xb8   :  { %3875 = vmatprep.subr.bf16.mxu0 %v4317_v22 }
  0xb9   :  { %3896 = vmatpush3.bf16.msra.mxu1 %v4316_v21  ;;  %v4368_v21 = vld [vmem:[%s5463_s1 + $0x7b8] sm:$0xff]  }
  0xba   :  { %3897 = vmatprep.subr.bf16.mxu1 %v4319_v24 }
  0xbb   :  { %3876 = vmatpush3.bf16.msra.mxu0 %v4318_v23  ;;  %v4369_v23 = vld [vmem:[%s5463_s1 + $0x770] sm:$0xff]  }
  0xbc   :  { %3877 = vmatprep.subr.bf16.mxu0 %v4321_v26 }
  0xbd   :  { %3898 = vmatpush3.bf16.msra.mxu1 %v4320_v25 }
  0xbe   :  { %3899 = vmatprep.subr.bf16.mxu1 %v4323_v28  ;;  %v4371_v28 = vld [vmem:[%s5463_s1 + $0x7f0] sm:$0xff]  }
  0xbf   :  { %3878 = vmatpush3.bf16.msra.mxu0 %v4322_v27  ;;  %v4370_v27 = vld [vmem:[%s5463_s1 + $0x730] sm:$0xff]  }
  0xc0   :  { %3907 = vmatprep.subr.bf16.mxu0 %v4327_v33  ;;  %v4375_v33 = vld [vmem:[%s5463_s1 + $0x7e8] sm:$0xff]  }
  0xc1   :  { %3900 = vmatpush3.bf16.msra.mxu1 %v4326_v32  ;;  %v4374_v32 = vld [vmem:[%s5463_s1 + $0x728] sm:$0xff]  }
  0xc2   :  { %2718 = vmatmul.mubr.bf16.vlgmr.msra.gmra.mxu0 %v3337_v30  ;;  %3929 = vmatprep.subr.bf16.mxu1 %v4331_v38  ;;  %v4372_v30 = vld [vmem:[%s5463_s1 + $0x7b0] sm:$0xff]   ;;  %v4380_v38 = vld [vmem:[%s5463_s1 + $0x7a0] sm:$0xff]  }
  0xc3   :  { %3908 = vmatpush3.bf16.msra.mxu0 %v4330_v37  ;;  %2797 = vmatprep.mubr.bf16.mxu0 %v3342_v6  ;;  %v4379_v37 = vld [vmem:[%s5463_s1 + $0x7e0] sm:$0xff]  }
  0xc4   :  { %2758 = vmatmul.mubr.bf16.vlgmr.msra.gmra.mxu1 %v3339_v35  ;;  %3909 = vmatprep.subr.bf16.mxu0 %v4333_v40  ;;  %v4377_v35 = vld [vmem:[%s5463_s1 + $0x760] sm:$0xff]   ;;  %v4382_v40 = vld [vmem:[%s5463_s1 + $0x718] sm:$0xff]  }
  0xc5   :  { %3930 = vmatpush3.bf16.msra.mxu1 %v4332_v39  ;;  %2837 = vmatprep.mubr.bf16.mxu1 %v3344_v13  ;;  %v4381_v39 = vld [vmem:[%s5463_s1 + $0x758] sm:$0xff]   ;;  %v4404_v13 = vld [vmem:[%s5463_s1 + $0x820] sm:$0xff]  }
  0xc6   :  { %3931 = vmatprep.subr.bf16.mxu1 %v4335_v42  ;;  %v4384_v42 = vld [vmem:[%s5463_s1 + $0x798] sm:$0xff]  }
  0xc7   :  { %3910 = vmatpush3.bf16.msra.mxu0 %v4334_v41  ;;  %v4383_v41 = vld [vmem:[%s5463_s1 + $0x7d8] sm:$0xff]  }
  0xc8   :  { %3911 = vmatprep.subr.bf16.mxu0 %v4337_v44  ;;  %v4386_v44 = vld [vmem:[%s5463_s1 + $0x710] sm:$0xff]  }
  0xc9   :  { %3932 = vmatpush3.bf16.msra.mxu1 %v4336_v43  ;;  %v4385_v43 = vld [vmem:[%s5463_s1 + $0x750] sm:$0xff]  }
  0xca   :  { %3933 = vmatprep.subr.bf16.mxu1 %v4339_v46  ;;  %v4388_v46 = vld [vmem:[%s5463_s1 + $0x790] sm:$0xff]  }
  0xcb   :  { %3912 = vmatpush3.bf16.msra.mxu0 %v4338_v45  ;;  %v4387_v45 = vld [vmem:[%s5463_s1 + $0x7d0] sm:$0xff]  }
  0xcc   :  { %3913 = vmatprep.subr.bf16.mxu0 %v4341_v48  ;;  %v4390_v48 = vld [vmem:[%s5463_s1 + $0x708] sm:$0xff]  }
  0xcd   :  { %3934 = vmatpush3.bf16.msra.mxu1 %v4340_v47  ;;  %v4389_v47 = vld [vmem:[%s5463_s1 + $0x748] sm:$0xff]  }
  0xce   :  { %3935 = vmatprep.subr.bf16.mxu1 %v4343_v50  ;;  %v4392_v50 = vld [vmem:[%s5463_s1 + $0x788] sm:$0xff]  }
  0xcf   :  { %3914 = vmatpush3.bf16.msra.mxu0 %v4342_v49  ;;  %v4391_v49 = vld [vmem:[%s5463_s1 + $0x7c8] sm:$0xff]  }
  0xd0   :  { %3915 = vmatprep.subr.bf16.mxu0 %v4345_v52  ;;  %v4394_v52 = vld [vmem:[%s5463_s1 + $0x700] sm:$0xff]  }
  0xd1   :  { %3936 = vmatpush3.bf16.msra.mxu1 %v4344_v51  ;;  %v4393_v51 = vld [vmem:[%s5463_s1 + $0x740] sm:$0xff]  }
  0xd2   :  { %3937 = vmatprep.subr.bf16.mxu1 %v4347_v54 }
  0xd3   :  { %3916 = vmatpush3.bf16.msra.mxu0 %v4346_v53  ;;  %v4395_v53 = vld [vmem:[%s5463_s1 + $0x7c0] sm:$0xff]  }
  0xd4   :  { %3917 = vmatprep.subr.bf16.mxu0 %v4349_v56 }
  0xd5   :  { %3938 = vmatpush3.bf16.msra.mxu1 %v4348_v55  ;;  %v47_v55 = vld [vmem:[%s5464_s0 + $0x70] sm:$0xff] }
  0xd6   :  { %3939 = vmatprep.subr.bf16.mxu1 %v4351_v58  ;;  %v3345_v56 = vcombine.low %v47_v55, %v47_v55  ;;  %v4398_v58 = vld [vmem:[%s5463_s1 + $0x780] sm:$0xff]  }
  0xd7   :  { %3918 = vmatpush3.bf16.msra.mxu0 %v4350_v57  ;;  %v3346_v57 = vcombine.high %v47_v55, %v47_v55  ;;  %v4413_v55 = vld [vmem:[%s5466_s3 + $0x20] sm:$0xff]  }
  0xd8   :  { %3919 = vmatprep.subr.bf16.mxu0 %v4353_v60  ;;  %v48_v60 = vld [vmem:[%s5464_s0 + $0x78] sm:$0xff] }
  0xd9   :  { %3940 = vmatpush3.bf16.msra.mxu1 %v4352_v59  ;;  %v4438_v59 = vmov 0.0  }
  0xda   :  { %3941 = vmatprep.subr.bf16.mxu1 %v4355_v62  ;;  %v3347_v62 = vcombine.low %v48_v60, %v48_v60 }
  0xdb   :  { %3920 = vmatpush3.bf16.msra.mxu0 %v4354_v61 }
  0xdc   :  { %3921 = vmatprep.subr.bf16.mxu0 %v4357_v0  ;;  %v4401_v0 = vld [vmem:[%s5463_s1 + $0x838] sm:$0xff]  }
  0xdd   :  { %3942 = vmatpush3.bf16.msra.mxu1 %v4356_v63  ;;  %v3348_v63 = vcombine.high %v48_v60, %v48_v60  ;;  %v4414_v60 = vld [vmem:[%s5466_s3 + $0x18] sm:$0xff]  }
  0xde   :  { %3943 = vmatprep.subr.bf16.mxu1 %v4359_v2 }
  0xdf   :  { %3922 = vmatpush3.bf16.msra.mxu0 %v4358_v1 }
  0xe0   :  { %3951 = vmatprep.subr.bf16.mxu0 %v4363_v8 }
  0xe1   :  { %3944 = vmatpush3.bf16.msra.mxu1 %v4362_v7  ;;  %v4402_v7 = vld [vmem:[%s5463_s1 + $0x830] sm:$0xff]  }
  0xe2   :  { %v3659_v4 = vpop.f32.mrf.mxu0  ;;  %2798 = vmatmul.mubr.bf16.vlgmr.msra.gmra.mxu0 %v3341_v5  ;;  %3973 = vmatprep.subr.bf16.mxu1 %v4367_v17  ;;  %v4408_v17 = vld [vmem:[%s5463_s1 + $0x800] sm:$0xff]  }
  0xe3   :  { %3952 = vmatpush3.bf16.msra.mxu0 %v4366_v14  ;;  %2877 = vmatprep.mubr.bf16.mxu0 %v3346_v57  ;;  %v4405_v14 = vld [vmem:[%s5463_s1 + $0x818] sm:$0xff]  }
  0xe4   :  { %v3660_v10 = vpop.f32.mrf.mxu0  ;;  %v3681_v11 = vpop.f32.mrf.mxu1  ;;  %2838 = vmatmul.mubr.bf16.vlgmr.msra.gmra.mxu1 %v3343_v12  ;;  %3953 = vmatprep.subr.bf16.mxu0 %v4369_v23  ;;  %v4403_v12 = vld [vmem:[%s5463_s1 + $0x828] sm:$0xff]  }
  0xe5   :  { %v3661_v16 = vadd.f32 %v3660_v10, %v3659_v4  ;;  %3974 = vmatpush3.bf16.msra.mxu1 %v4368_v21  ;;  %2917 = vmatprep.mubr.bf16.mxu1 %v3348_v63  ;;  %v4417_v63 = vld [vmem:[%s5466_s3] sm:$0xff]  }
  0xe6   :  { %v3662_v18 = vpop.f32.mrf.mxu0  ;;  %v3682_v19 = vpop.f32.mrf.mxu1  ;;  %3975 = vmatprep.subr.bf16.mxu1 %v4371_v28 }
  0xe7   :  { %v2320_v20 = vadd.f32 %v3661_v16, %v3316_v15  ;;  %v3683_v22 = vadd.f32 %v3682_v19, %v3681_v11  ;;  %3954 = vmatpush3.bf16.msra.mxu0 %v4370_v27  ;;  %v4406_v15 = vld [vmem:[%s5463_s1 + $0x810] sm:$0xff]   ;;  %v4407_v16 = vld [vmem:[%s5463_s1 + $0x808] sm:$0xff]   ;;  %v4409_v19 = vld [vmem:[%s5464_s0 + $0x80] ss:$0 sps:$4 sm:$0xff]  }
  0xe8   :  { %v3663_v24 = vpop.f32.mrf.mxu0  ;;  %v3684_v25 = vpop.f32.mrf.mxu1  ;;  %3955 = vmatprep.subr.bf16.mxu0 %v4373_v31 }
  0xe9   :  { %v5222_v26 = vadd.f32 %v3683_v22, %v2320_v20  ;;  %3976 = vmatpush3.bf16.msra.mxu1 %v4372_v30 }
  0xea   :  { %v3685_v29 = vpop.f32.mrf.mxu1  ;;  %3977 = vmatprep.subr.bf16.mxu1 %v4375_v33 }
  0xeb   :  { %3956 = vmatpush3.bf16.msra.mxu0 %v4374_v32 }
  0xec   :  { %3957 = vmatprep.subr.bf16.mxu0 %v4377_v35 }
  0xed   :  { %3978 = vmatpush3.bf16.msra.mxu1 %v4376_v34 }
  0xee   :  { %3979 = vmatprep.subr.bf16.mxu1 %v4379_v37 }
  0xef   :  { %3958 = vmatpush3.bf16.msra.mxu0 %v4378_v36 }
  0xf0   :  { %3959 = vmatprep.subr.bf16.mxu0 %v4381_v39 }
  0xf1   :  { %3980 = vmatpush3.bf16.msra.mxu1 %v4380_v38 }
  0xf2   :  { %3981 = vmatprep.subr.bf16.mxu1 %v4383_v41 }
  0xf3   :  { %3960 = vmatpush3.bf16.msra.mxu0 %v4382_v40 }
  0xf4   :  { %3961 = vmatprep.subr.bf16.mxu0 %v4385_v43  ;;  %v4410_v43 = vld [vmem:[%s5466_s3 + $0x38] sm:$0xff]  }
  0xf5   :  { %3982 = vmatpush3.bf16.msra.mxu1 %v4384_v42 }
  0xf6   :  { %3983 = vmatprep.subr.bf16.mxu1 %v4387_v45 }
  0xf7   :  { %3962 = vmatpush3.bf16.msra.mxu0 %v4386_v44  ;;  %v4411_v44 = vld [vmem:[%s5466_s3 + $0x30] sm:$0xff]  }
  0xf8   :  { %3963 = vmatprep.subr.bf16.mxu0 %v4389_v47  ;;  %v4412_v47 = vld [vmem:[%s5466_s3 + $0x28] sm:$0xff]  }
  0xf9   :  { %3984 = vmatpush3.bf16.msra.mxu1 %v4388_v46 }
  0xfa   :  { %3985 = vmatprep.subr.bf16.mxu1 %v4391_v49 }
  0xfb   :  { %3964 = vmatpush3.bf16.msra.mxu0 %v4390_v48 }
  0xfc   :  { %3965 = vmatprep.subr.bf16.mxu0 %v4393_v51 }
  0xfd   :  { %3986 = vmatpush3.bf16.msra.mxu1 %v4392_v50 }
  0xfe   :  { %3987 = vmatprep.subr.bf16.mxu1 %v4395_v53 }
  0xff   :  { %3966 = vmatpush3.bf16.msra.mxu0 %v4394_v52 }
 0x100   :  { %4031 = vmatprep.subr.bf16.mxu0 %v4438_v59 }
 0x101   :  { %3988 = vmatpush3.bf16.msra.mxu1 %v4398_v58 }
 0x102   :  { %v3703_v54 = vpop.f32.mrf.mxu0  ;;  %2878 = vmatmul.mubr.bf16.vlgmr.msra.gmra.mxu0 %v3345_v56  ;;  %4051 = vmatprep.subr.bf16.mxu1 %v4438_v59 }
 0x103   :  { %4032 = vmatpush3.bf16.msra.mxu0 %v4401_v0  ;;  %4047 = vmatprep.mubr.msk.bf16.mxu0 %vm4439_vm0, %v4438_v59  ;;  %v4418_v0 = vld [vmem:[%s5467_s5 + $0x38] sm:$0xff]  }
 0x104   :  { %v3704_v61 = vpop.f32.mrf.mxu0  ;;  %v3725_v2 = vpop.f32.mrf.mxu1  ;;  %2918 = vmatmul.mubr.bf16.vlgmr.msra.gmra.mxu1 %v3347_v62  ;;  %4033 = vmatprep.subr.bf16.mxu0 %v4438_v59  ;;  %v4416_v62 = vld [vmem:[%s5466_s3 + $0x8] sm:$0xff]  }
 0x105   :  { %v3705_v1 = vadd.f32 %v3704_v61, %v3703_v54  ;;  %4067 = vmatprep.mubr.msk.bf16.mxu1 %vm4439_vm0, %v4438_v59  ;;  %4052 = vmatpush3.bf16.msra.mxu1 %v4410_v43  ;;  %v4415_v61 = vld [vmem:[%s5466_s3 + $0x10] sm:$0xff]  }
 0x106   :  { %v3706_v3 = vpop.f32.mrf.mxu0  ;;  %v3726_v5 = vpop.f32.mrf.mxu1  ;;  %4053 = vmatprep.subr.bf16.mxu1 %v4438_v59 }
 0x107   :  { %v2400_v4 = vadd.f32 %v3705_v1, %v5222_v26  ;;  %v3727_v6 = vadd.f32 %v3726_v5, %v3725_v2  ;;  %4034 = vmatpush3.bf16.msra.mxu0 %v4402_v7  ;;  %v4419_v1 = vld [vmem:[%s5467_s5 + $0x30] sm:$0xff]  }
 0x108   :  { %v3707_v8 = vpop.f32.mrf.mxu0  ;;  %v3728_v9 = vpop.f32.mrf.mxu1  ;;  %4035 = vmatprep.subr.bf16.mxu0 %v4438_v59 }
 0x109   :  { %v2440_v10 = vadd.f32 %v3727_v6, %v2400_v4  ;;  %4054 = vmatpush3.bf16.msra.mxu1 %v4411_v44 }
 0x10a   :  { %v3729_v11 = vpop.f32.mrf.mxu1  ;;  %4055 = vmatprep.subr.bf16.mxu1 %v4438_v59 }
 0x10b   :  { %4036 = vmatpush3.bf16.msra.mxu0 %v4403_v12 }
 0x10c   :  { %4037 = vmatprep.subr.bf16.mxu0 %v4438_v59 }
 0x10d   :  { %4056 = vmatpush3.bf16.msra.mxu1 %v4412_v47 }
 0x10e   :  { %4057 = vmatprep.subr.bf16.mxu1 %v4438_v59 }
 0x10f   :  { %4038 = vmatpush3.bf16.msra.mxu0 %v4404_v13 }
 0x110   :  { %4039 = vmatprep.subr.bf16.mxu0 %v4438_v59 }
 0x111   :  { %4058 = vmatpush3.bf16.msra.mxu1 %v4413_v55  ;;  %v4427_v55 = vld [vmem:[%s5468_s7 + $0x30] sm:$0xff]  }
 0x112   :  { %4059 = vmatprep.subr.bf16.mxu1 %v4438_v59 }
 0x113   :  { %4040 = vmatpush3.bf16.msra.mxu0 %v4405_v14 }
 0x114   :  { %4041 = vmatprep.subr.bf16.mxu0 %v4438_v59 }
 0x115   :  { %4060 = vmatpush3.bf16.msra.mxu1 %v4414_v60  ;;  %v4431_v60 = vld [vmem:[%s5468_s7 + $0x10] sm:$0xff]  }
 0x116   :  { %4061 = vmatprep.subr.bf16.mxu1 %v4438_v59 }
 0x117   :  { %4042 = vmatpush3.bf16.msra.mxu0 %v4406_v15 }
 0x118   :  { %4043 = vmatprep.subr.bf16.mxu0 %v4438_v59 }
 0x119   :  { %4062 = vmatpush3.bf16.msra.mxu1 %v4415_v61  ;;  %v4432_v61 = vld [vmem:[%s5468_s7 + $0x8] sm:$0xff]  }
 0x11a   :  { %4063 = vmatprep.subr.bf16.mxu1 %v4438_v59 }
 0x11b   :  { %4044 = vmatpush3.bf16.msra.mxu0 %v4407_v16 }
 0x11c   :  { %4045 = vmatprep.subr.bf16.mxu0 %v4438_v59 }
 0x11d   :  { %4064 = vmatpush3.bf16.msra.mxu1 %v4416_v62  ;;  %v3615_v62 = vld [vmem:[%s5469_s4] ss:$0 sm:$0xff] }
 0x11e   :  { %4065 = vmatprep.subr.bf16.mxu1 %v4438_v59 }
 0x11f   :  { %4046 = vmatpush3.bf16.msra.mxu0 %v4408_v17 }
 0x120   :  { %4071 = vmatprep.subr.bf16.mxu0 %v4438_v59 }
 0x121   :  { %4066 = vmatpush3.bf16.msra.mxu1 %v4417_v63 }
 0x122   :  { %v3747_v18 = vpop.f32.mrf.mxu0  ;;  %4048 = vmatmul.mubr.bf16.vlgmr.msra.gmra.mxu0 %v4409_v19  ;;  %4091 = vmatprep.subr.bf16.mxu1 %v4438_v59 }
 0x123   :  { %4087 = vmatprep.mubr.msk.bf16.mxu0 %vm4439_vm0, %v4438_v59  ;;  %4072 = vmatpush3.bf16.msra.mxu0 %v4418_v0 }
 0x124   :  { %v3748_v20 = vpop.f32.mrf.mxu0  ;;  %v3769_v21 = vpop.f32.mrf.mxu1  ;;  %4073 = vmatprep.subr.bf16.mxu0 %v4438_v59 }
 0x125   :  { %v3749_v22 = vadd.f32 %v3748_v20, %v3747_v18 }
 0x126   :  { %v3750_v23 = vpop.f32.mrf.mxu0  ;;  %v3770_v24 = vpop.f32.mrf.mxu1 }
 0x127   :  { %v2480_v25 = vadd.f32 %v3749_v22, %v2440_v10  ;;  %v3771_v26 = vadd.f32 %v3770_v24, %v3769_v21  ;;  %4074 = vmatpush3.bf16.msra.mxu0 %v4419_v1 }
 0x128   :  { %v3751_v27 = vpop.f32.mrf.mxu0  ;;  %v3772_v28 = vpop.f32.mrf.mxu1  ;;  %4075 = vmatprep.subr.bf16.mxu0 %v4438_v59 }
 0x129   :  { %v2520_v29 = vadd.f32 %v3771_v26, %v2480_v25 }
 0x12a   :  { %v3773_v30 = vpop.f32.mrf.mxu1 }
 0x142   :  { %v3791_v31 = vpop.f32.mrf.mxu0 }
 0x144   :  { %v3792_v32 = vpop.f32.mrf.mxu0  ;;  %v3813_v33 = vpop.f32.mrf.mxu1 }
 0x145   :  { %v3793_v34 = vadd.f32 %v3792_v32, %v3791_v31 }
 0x146   :  { %v3794_v35 = vpop.f32.mrf.mxu0  ;;  %v3814_v36 = vpop.f32.mrf.mxu1 }
 0x147   :  { %v2560_v37 = vadd.f32 %v3793_v34, %v2520_v29  ;;  %v3815_v38 = vadd.f32 %v3814_v36, %v3813_v33 }
 0x148   :  { %v3795_v39 = vpop.f32.mrf.mxu0  ;;  %v3816_v40 = vpop.f32.mrf.mxu1 }
 0x149   :  { %v2600_v41 = vadd.f32 %v3815_v38, %v2560_v37 }
 0x14a   :  { %v3817_v42 = vpop.f32.mrf.mxu1 }
 0x162   :  { %v3835_v45 = vpop.f32.mrf.mxu0 }
 0x164   :  { %v3836_v46 = vpop.f32.mrf.mxu0  ;;  %v3857_v49 = vpop.f32.mrf.mxu1 }
 0x165   :  { %v3837_v48 = vadd.f32 %v3836_v46, %v3835_v45 }
 0x166   :  { %v3838_v50 = vpop.f32.mrf.mxu0  ;;  %v3858_v52 = vpop.f32.mrf.mxu1 }
 0x167   :  { %v2640_v51 = vadd.f32 %v3837_v48, %v2600_v41  ;;  %v3859_v53 = vadd.f32 %v3858_v52, %v3857_v49  ;;  %v4420_v48 = vld [vmem:[%s5467_s5 + $0x28] sm:$0xff]   ;;  %v4421_v49 = vld [vmem:[%s5467_s5 + $0x20] sm:$0xff]   ;;  %v4422_v50 = vld [vmem:[%s5467_s5 + $0x18] sm:$0xff]  }
 0x168   :  { %v3839_v54 = vpop.f32.mrf.mxu0  ;;  %v3860_v56 = vpop.f32.mrf.mxu1  ;;  %4076 = vmatpush3.bf16.msra.mxu0 %v4420_v48  ;;  %v4424_v52 = vld [vmem:[%s5467_s5 + $0x8] sm:$0xff]  }
 0x169   :  { %v2680_v57 = vadd.f32 %v3859_v53, %v2640_v51  ;;  %4077 = vmatprep.subr.bf16.mxu0 %v4438_v59  ;;  %v4423_v51 = vld [vmem:[%s5467_s5 + $0x10] sm:$0xff]   ;;  %v4425_v53 = vld [vmem:[%s5467_s5] sm:$0xff]   ;;  %v4426_v54 = vld [vmem:[%s5468_s7 + $0x38] sm:$0xff]  }
 0x16a   :  { %v3861_v58 = vpop.f32.mrf.mxu1  ;;  %v4428_v56 = vld [vmem:[%s5468_s7 + $0x28] sm:$0xff]  }
 0x16b   :  { %v4430_v58 = vld [vmem:[%s5468_s7 + $0x18] sm:$0xff]  }
 0x16c   :  { %4078 = vmatpush3.bf16.msra.mxu0 %v4421_v49 }
 0x16d   :  { %4079 = vmatprep.subr.bf16.mxu0 %v4438_v59 }
 0x170   :  { %4080 = vmatpush3.bf16.msra.mxu0 %v4422_v50 }
 0x171   :  { %4081 = vmatprep.subr.bf16.mxu0 %v4438_v59 }
 0x174   :  { %4082 = vmatpush3.bf16.msra.mxu0 %v4423_v51 }
 0x175   :  { %4083 = vmatprep.subr.bf16.mxu0 %v4438_v59 }
 0x178   :  { %4084 = vmatpush3.bf16.msra.mxu0 %v4424_v52 }
 0x179   :  { %4085 = vmatprep.subr.bf16.mxu0 %v4438_v59 }
 0x17c   :  { %4086 = vmatpush3.bf16.msra.mxu0 %v4425_v53 }
 0x182   :  { %v3879_v2 = vpop.f32.mrf.mxu0 }
 0x184   :  { %v3880_v3 = vpop.f32.mrf.mxu0  ;;  %v3901_v4 = vpop.f32.mrf.mxu1 }
 0x185   :  { %v3881_v5 = vadd.f32 %v3880_v3, %v3879_v2 }
 0x186   :  { %v3882_v6 = vpop.f32.mrf.mxu0  ;;  %v3902_v7 = vpop.f32.mrf.mxu1 }
 0x187   :  { %v2720_v8 = vadd.f32 %v3881_v5, %v2680_v57  ;;  %v3903_v9 = vadd.f32 %v3902_v7, %v3901_v4  ;;  %v4429_v57 = vld [vmem:[%s5468_s7 + $0x20] sm:$0xff]  }
 0x188   :  { %v3883_v10 = vpop.f32.mrf.mxu0  ;;  %v3904_v11 = vpop.f32.mrf.mxu1 }
 0x189   :  { %v2760_v12 = vadd.f32 %v3903_v9, %v2720_v8  ;;  %v3625_v9 = vld [vmem:[%s5470_s6] ss:$0 sm:$0xff] }
 0x18a   :  { %v3905_v13 = vpop.f32.mrf.mxu1 }
 0x1a2   :  { %v3923_v14 = vpop.f32.mrf.mxu0 }
 0x1a4   :  { %v3924_v15 = vpop.f32.mrf.mxu0  ;;  %v3945_v16 = vpop.f32.mrf.mxu1 }
 0x1a5   :  { %v3925_v30 = vadd.f32 %v3924_v15, %v3923_v14 }
 0x1a6   :  { %v3926_v17 = vpop.f32.mrf.mxu0  ;;  %v3946_v18 = vpop.f32.mrf.mxu1 }
 0x1a7   :  { %v2800_v31 = vadd.f32 %v3925_v30, %v2760_v12  ;;  %v3947_v32 = vadd.f32 %v3946_v18, %v3945_v16  ;;  %v3634_v16 = vld [vmem:[%s5471_s8] ss:$0 sm:$0xff] }
 0x1a8   :  { %v3927_v19 = vpop.f32.mrf.mxu0  ;;  %v3948_v20 = vpop.f32.mrf.mxu1 }
 0x1a9   :  { %v2840_v34 = vadd.f32 %v3947_v32, %v2800_v31 }
 0x1aa   :  { %v3949_v21 = vpop.f32.mrf.mxu1 }
 0x1c2   :  { %v3967_v22 = vpop.f32.mrf.mxu0 }
 0x1c4   :  { %v3968_v23 = vpop.f32.mrf.mxu0  ;;  %v3989_v24 = vpop.f32.mrf.mxu1 }
 0x1c5   :  { %v3969_v33 = vadd.f32 %v3968_v23, %v3967_v22 }
 0x1c6   :  { %v3970_v25 = vpop.f32.mrf.mxu0  ;;  %v3990_v26 = vpop.f32.mrf.mxu1 }
 0x1c7   :  { %v2880_v35 = vadd.f32 %v3969_v33, %v2840_v34  ;;  %v3991_v36 = vadd.f32 %v3990_v26, %v3989_v24 }
 0x1c8   :  { %v3971_v27 = vpop.f32.mrf.mxu0  ;;  %v3992_v28 = vpop.f32.mrf.mxu1 }
 0x1c9   :  { %v2920_v37 = vadd.f32 %v3991_v36, %v2880_v35 }
 0x1ca   :  { %v3993_v29 = vpop.f32.mrf.mxu1 }
 0x1e2   :  { %v2959_v38 = vpop.f32.mrf.mxu0 }
 0x1e3   :  { %v2960_v39 = vadd.f32 %v2959_v38, %v2920_v37 }
 0x1e4   :  { %v4049_v40 = vpop.f32.mrf.mxu0 }
 0x1e5   :  { %v2966_v41 = vmul.f32 1.442695, %v2960_v39  ;;  %vm2965_vm1 = vcmp.gt.f32.partialorder %v2960_v39, 0.0 }
 0x1e6   :  { %v2962_v42 = vpop.f32.mrf.mxu0 }
 0x1e7   :  { %4434 = vpow2.f32 %v2966_v41 }
 0x1e8   :  { %v4050_v43 = vpop.f32.mrf.mxu0 }
 0x1f4   :  { %v4435_v44 = vpop.eup %4434 }
 0x1f5   :  { %v3614_v45 = vadd.f32 -1.0, %v4435_v44 }
 0x1f7   :  { %v2969_v46 = vsel %vm2965_vm1, %v2960_v39, %v3614_v45 }
 0x1f8   :  { %v2970_v47 = vpack.c.bf16 %v2969_v46, %v2969_v46 }
 0x1fa   :  { %4068 = vmatmul.mubr.bf16.vlgmr.msra.gmra.mxu1 %v2970_v47 }
 0x1fb   :  { %4107 = vmatprep.mubr.msk.bf16.mxu1 %vm4439_vm0, %v4438_v59  ;;  %4092 = vmatpush3.bf16.msra.mxu1 %v4426_v54 }
 0x1fc   :  { %4093 = vmatprep.subr.bf16.mxu1 %v4438_v59 }
 0x1ff   :  { %4094 = vmatpush3.bf16.msra.mxu1 %v4427_v55 }
 0x200   :  { %4095 = vmatprep.subr.bf16.mxu1 %v4438_v59 }
 0x203   :  { %4096 = vmatpush3.bf16.msra.mxu1 %v4428_v56 }
 0x204   :  { %4097 = vmatprep.subr.bf16.mxu1 %v4438_v59 }
 0x207   :  { %4098 = vmatpush3.bf16.msra.mxu1 %v4429_v57 }
 0x208   :  { %4099 = vmatprep.subr.bf16.mxu1 %v4438_v59 }
 0x20b   :  { %4100 = vmatpush3.bf16.msra.mxu1 %v4430_v58 }
 0x20c   :  { %4101 = vmatprep.subr.bf16.mxu1 %v4438_v59 }
 0x20f   :  { %4102 = vmatpush3.bf16.msra.mxu1 %v4431_v60 }
 0x210   :  { %4103 = vmatprep.subr.bf16.mxu1 %v4438_v59 }
 0x213   :  { %4104 = vmatpush3.bf16.msra.mxu1 %v4432_v61 }
 0x214   :  { %4105 = vmatprep.subr.bf16.mxu1 %v4438_v59  ;;  %v4433_v59 = vld [vmem:[%s5468_s7] sm:$0xff]  }
 0x217   :  { %4106 = vmatpush3.bf16.msra.mxu1 %v4433_v59 }
 0x2ba   :  { %v3076_v63 = vpop.f32.mrf.mxu1 }
 0x2bb   :  { %v3077_v0 = vadd.f32 %v3615_v62, %v3076_v63 }
 0x2bc   :  { %v4069_v1 = vpop.f32.mrf.mxu1 }
 0x2bd   :  { %v3083_v2 = vmul.f32 1.442695, %v3077_v0  ;;  %vm3082_vm2 = vcmp.gt.f32.partialorder %v3077_v0, 0.0 }
 0x2be   :  { %v3079_v3 = vpop.f32.mrf.mxu1 }
 0x2bf   :  { %4436 = vpow2.f32 %v3083_v2 }
 0x2c0   :  { %v4070_v4 = vpop.f32.mrf.mxu1 }
 0x2cc   :  { %v4437_v5 = vpop.eup %4436 }
 0x2cd   :  { %v3624_v6 = vadd.f32 -1.0, %v4437_v5 }
 0x2cf   :  { %v3086_v7 = vsel %vm3082_vm2, %v3077_v0, %v3624_v6 }
 0x2d0   :  { %v3087_v8 = vpack.c.bf16 %v3086_v7, %v3086_v7 }
 0x2d2   :  { %4088 = vmatmul.mubr.bf16.vlgmr.msra.gmra.mxu0 %v3087_v8 }
 0x392   :  { %v3193_v10 = vpop.f32.mrf.mxu0 }
 0x393   :  { %v3194_v11 = vadd.f32 %v3625_v9, %v3193_v10 }
 0x394   :  { %v4089_v12 = vpop.f32.mrf.mxu0 }
 0x395   :  { %v3199_v13 = vpack.c.bf16 %v3194_v11, %v3194_v11 }
 0x396   :  { %v3196_v14 = vpop.f32.mrf.mxu0 }
 0x397   :  { %4108 = vmatmul.mubr.bf16.vlgmr.msra.gmra.mxu1 %v3199_v13 }
 0x398   :  { %v4090_v15 = vpop.f32.mrf.mxu0 }
 0x457   :  { %v3305_v17 = vpop.f32.mrf.mxu1 }
 0x458   :  { %v3306_v18 = vadd.f32 %v3634_v16, %v3305_v17 }
 0x459   :  { %v4109_v19 = vpop.f32.mrf.mxu1 }
 0x45a   :  { %3311 = vst [vmem:[%s5472_s9] sm:$0xff] %v3306_v18 }
 0x45b   :  { %v3308_v20 = vpop.f32.mrf.mxu1 }
 0x45d   :  { %v4110_v21 = vpop.f32.mrf.mxu1 }

</bundles_post_ra>
